<compile_context>
chip_gen: v7x
topology: tpu7x:2x2x1
jax: 0.10.0
libtpu: 0.0.40
codegen_flags: <defaults>
</compile_context>

<pallas_src>
import jax
import jax.numpy as jnp
import numpy as np
from jax.experimental import pallas as pl
from jax.experimental.pallas import tpu as pltpu

FEA_DIM = 768                      # self.fea_dim == cnt_emb_dim == cmt_emb_dim
MLP_DIMS = (FEA_DIM, 384)          # self.mlp_dims = [768, 384]
N_GENDER, N_AGE, N_EDU = 2, 3, 5   # demographic subpopulations per view
N_SUB = N_GENDER + N_AGE + N_EDU   # 10
N_VIEW = 3
VOCAB = 128
BN_EPS = 1e-5
NEG_INF = -1e30                    # finite "masked" value (avoids -inf -> NaN)

TB = 8                             # batch tile; 8 rows keeps v7x VMEM headroom
OUT_W = 128                        # lane-dense output slab width


def _softmax_last(x):
    m = jnp.max(x, axis=-1, keepdims=True)
    e = jnp.exp(x - m)
    return e / jnp.sum(e, axis=-1, keepdims=True)


def _sigmoid(x):
    return 1.0 / (1.0 + jnp.exp(-x))


def genfend_kernel(tok_ref, mask_ref, sub_ref,
                   emb_ref, escore_ref,
                   wrep_ref, brep_ref,
                   wg_ref, bg_ref,
                   w1_ref, b1_ref, s1_ref, t1_ref,
                   w2_ref, b2_ref, s2_ref, t2_ref,
                   w3_ref, b3_ref,
                   out_ref):
    tok = tok_ref[...]                               # (TB, L) int32
    mask = mask_ref[...]                             # (TB, L) f32
    tb, L = tok.shape

    # ---- substitute-BERT token features via one-hot (gather-free) ----
    lane = jax.lax.broadcasted_iota(jnp.int32, (tb, L, VOCAB), 2)
    onehot = (lane == tok[:, :, None]).astype(jnp.float32)          # (TB, L, V)

    # ---- MaskAttention(cnt_fea, content_masks): score -> masked softmax -> pool ----
    # per-token scores come from the pre-folded (emb @ w_att + b) vector
    scores = jnp.sum(onehot * escore_ref[...][None, :, :], axis=-1)  # (TB, L)
    scores = jnp.where(mask == 0.0, NEG_INF, scores)
    probs = _softmax_last(scores)                                    # (TB, L)

    # pooled content feature = (softmax-weighted token counts) @ emb  (no (TB,L,D) temp)
    wcnt = jnp.sum(probs[:, :, None] * onehot, axis=1)               # (TB, V)
    emb_f32 = emb_ref[...].astype(jnp.float32)                       # (V, D)
    cnt_fea = jnp.dot(wcnt, emb_f32, preferred_element_type=jnp.float32)  # (TB, D)

    # ---- MultiSubppModel: per-view subpopulation attention pooling ----
    sub = sub_ref[...]                                               # (TB, N_SUB, D)
    sc_all = jnp.sum(sub * wrep_ref[...][None, :, :], axis=-1) + brep_ref[...]  # (TB, N_SUB)

    def view_pool(lo, hi):
        p = _softmax_last(sc_all[:, lo:hi])                          # (TB, K)
        return jnp.sum(p[:, :, None] * sub[:, lo:hi, :], axis=1)     # (TB, D)

    s_gender = view_pool(0, N_GENDER)
    s_age = view_pool(N_GENDER, N_GENDER + N_AGE)
    s_edu = view_pool(N_GENDER + N_AGE, N_SUB)

    # bf16-input / f32-accumulation MXU matmul
    def bdot(x, w):
        return jnp.dot(x.astype(jnp.bfloat16), w, preferred_element_type=jnp.float32)

    # ---- view gate (split matmuls instead of a (TB, 4D) concat) ----
    gate_logits = (bdot(cnt_fea, wg_ref[0]) + bdot(s_gender, wg_ref[1]) +
                   bdot(s_age, wg_ref[2]) + bdot(s_edu, wg_ref[3]) + bg_ref[...])
    gate = _softmax_last(gate_logits)                                # (TB, 3)

    gen_cmt_fea = (gate[:, 0:1] * s_gender +
                   gate[:, 1:2] * s_age +
                   gate[:, 2:3] * s_edu)                             # (TB, D)

    # ---- final MLP over cat(cnt_fea, gen_cmt_fea) as split matmuls ----
    h = bdot(cnt_fea, w1_ref[0]) + bdot(gen_cmt_fea, w1_ref[1]) + b1_ref[...]
    h = jnp.maximum(h * s1_ref[...] + t1_ref[...], 0.0)              # BN(eval) + ReLU
    h = bdot(h, w2_ref[...]) + b2_ref[...]
    h = jnp.maximum(h * s2_ref[...] + t2_ref[...], 0.0)              # BN(eval) + ReLU
    logit = bdot(h, w3_ref[...]) + b3_ref[...]                       # (TB, 1)
    prob = _sigmoid(logit)

    # ---- lane-dense (TB, 128) output slab: [prob | gate | zeros], single unmasked store ----
    pad = jnp.zeros((tb, OUT_W - 1 - N_VIEW), jnp.float32)
    out_ref[...] = jnp.concatenate([prob, gate, pad], axis=-1)


def make_params(key):
    ks = jax.random.split(key, 24)

    def nrm(k, shape, scale=0.05, dtype=jnp.float32):
        return (scale * jax.random.normal(k, shape)).astype(dtype)

    p = {}
    p['emb'] = nrm(ks[0], (VOCAB, FEA_DIM), 0.5, jnp.bfloat16)       # BERT substitute table
    p['w_catt'] = nrm(ks[1], (1, FEA_DIM))                           # MaskAttention Linear(768,1)
    p['b_catt'] = nrm(ks[2], (1, 1))
    p['w_vatt'] = nrm(ks[3], (N_VIEW, FEA_DIM))                      # per-view attention scorers
    p['b_vatt'] = nrm(ks[4], (1, N_VIEW))
    p['w_gate'] = nrm(ks[5], (4 * FEA_DIM, N_VIEW), dtype=jnp.bfloat16)   # gate Linear(4*768, 3)
    p['b_gate'] = nrm(ks[6], (1, N_VIEW))
    p['w1'] = nrm(ks[7], (2 * FEA_DIM, MLP_DIMS[0]), dtype=jnp.bfloat16)  # MLP Linear(1536, 768)
    p['b1'] = nrm(ks[8], (1, MLP_DIMS[0]))
    p['w2'] = nrm(ks[9], (MLP_DIMS[0], MLP_DIMS[1]), dtype=jnp.bfloat16)  # MLP Linear(768, 384)
    p['b2'] = nrm(ks[10], (1, MLP_DIMS[1]))
    p['w3'] = nrm(ks[11], (MLP_DIMS[1], 1), dtype=jnp.bfloat16)           # output Linear(384, 1)
    p['b3'] = nrm(ks[12], (1, 1))

    def bn_fold(kg, kb, km, kv, dim):
        gamma = 1.0 + 0.1 * jax.random.normal(kg, (1, dim))
        beta = 0.05 * jax.random.normal(kb, (1, dim))
        mean = 0.02 * jax.random.normal(km, (1, dim))
        var = 1.0 + 0.1 * jnp.abs(jax.random.normal(kv, (1, dim)))
        scale = gamma / jnp.sqrt(var + BN_EPS)
        shift = beta - mean * scale
        return scale.astype(jnp.float32), shift.astype(jnp.float32)

    p['s1'], p['t1'] = bn_fold(ks[13], ks[14], ks[15], ks[16], MLP_DIMS[0])
    p['s2'], p['t2'] = bn_fold(ks[17], ks[18], ks[19], ks[20], MLP_DIMS[1])
    return p


@jax.jit
def bert_genfend_forward(content, content_masks, sub_feats, params):
    """content: (B, L) int32 token ids; content_masks: (B, L); sub_feats: (B, 10, 768)."""
    B, L = content.shape
    B_pad = pl.cdiv(B, TB) * TB
    padn = B_pad - B

    tokens = jnp.pad(content.astype(jnp.int32), ((0, padn), (0, 0)))
    mask = jnp.pad(content_masks.astype(jnp.float32), ((0, padn), (0, 0)))
    sub_p = jnp.pad(sub_feats.astype(jnp.float32), ((0, padn), (0, 0), (0, 0)))

    # ---- parameter folding (glue): per-token attention scores, per-subpop scorer, splits ----
    emb_f32 = params['emb'].astype(jnp.float32)
    emb_score = (emb_f32 @ params['w_catt'][0][:, None] + params['b_catt'][0, 0]).T   # (1, V)
    w_rep = jnp.concatenate([
        jnp.broadcast_to(params['w_vatt'][0:1], (N_GENDER, FEA_DIM)),
        jnp.broadcast_to(params['w_vatt'][1:2], (N_AGE, FEA_DIM)),
        jnp.broadcast_to(params['w_vatt'][2:3], (N_EDU, FEA_DIM))], axis=0)           # (10, D)
    b_rep = jnp.concatenate([
        jnp.broadcast_to(params['b_vatt'][:, 0:1], (1, N_GENDER)),
        jnp.broadcast_to(params['b_vatt'][:, 1:2], (1, N_AGE)),
        jnp.broadcast_to(params['b_vatt'][:, 2:3], (1, N_EDU))], axis=1)              # (1, 10)
    wg = params['w_gate'].reshape(4, FEA_DIM, N_VIEW)                                 # bf16
    w1 = params['w1'].reshape(2, FEA_DIM, FEA_DIM)                                    # bf16

    ins = (tokens, mask, sub_p,
           params['emb'], emb_score,
           w_rep, b_rep,
           wg, params['b_gate'],
           w1, params['b1'], params['s1'], params['t1'],
           params['w2'], params['b2'], params['s2'], params['t2'],
           params['w3'], params['b3'])

    bmap2 = lambda i: (i, 0)
    bmap3 = lambda i: (i, 0, 0)
    cmap2 = lambda i: (0, 0)
    cmap3 = lambda i: (0, 0, 0)

    in_specs = [
        pl.BlockSpec((TB, L), bmap2),                  # tokens
        pl.BlockSpec((TB, L), bmap2),                  # mask
        pl.BlockSpec((TB, N_SUB, FEA_DIM), bmap3),     # sub_feats
        pl.BlockSpec((VOCAB, FEA_DIM), cmap2),         # emb (bf16)
        pl.BlockSpec((1, VOCAB), cmap2),               # per-token attention scores
        pl.BlockSpec((N_SUB, FEA_DIM), cmap2),         # repeated view scorer weights
        pl.BlockSpec((1, N_SUB), cmap2),               # repeated view scorer biases
        pl.BlockSpec((4, FEA_DIM, N_VIEW), cmap3),     # gate weight (split, bf16)
        pl.BlockSpec((1, N_VIEW), cmap2),              # gate bias
        pl.BlockSpec((2, FEA_DIM, FEA_DIM), cmap3),    # w1 (split, bf16)
        pl.BlockSpec((1, MLP_DIMS[0]), cmap2),         # b1
        pl.BlockSpec((1, MLP_DIMS[0]), cmap2),         # s1
        pl.BlockSpec((1, MLP_DIMS[0]), cmap2),         # t1
        pl.BlockSpec((FEA_DIM, MLP_DIMS[1]), cmap2),   # w2 (bf16)
        pl.BlockSpec((1, MLP_DIMS[1]), cmap2),         # b2
        pl.BlockSpec((1, MLP_DIMS[1]), cmap2),         # s2
        pl.BlockSpec((1, MLP_DIMS[1]), cmap2),         # t2
        pl.BlockSpec((MLP_DIMS[1], 1), cmap2),         # w3 (bf16)
        pl.BlockSpec((1, 1), cmap2),                   # b3
    ]

    flops = 2 * B_pad * (VOCAB * FEA_DIM + L * VOCAB + N_SUB * FEA_DIM
                         + 4 * FEA_DIM * N_VIEW + 2 * FEA_DIM * FEA_DIM
                         + FEA_DIM * MLP_DIMS[1] + MLP_DIMS[1])
    transcendentals = B_pad * (L + N_SUB + N_VIEW + 1)
    bytes_accessed = sum(int(np.prod(a.shape)) * a.dtype.itemsize for a in ins) \
        + B_pad * OUT_W * 4

    out = pl.pallas_call(
        genfend_kernel,
        out_shape=jax.ShapeDtypeStruct((B_pad, OUT_W), jnp.float32),
        grid=(B_pad // TB,),
        in_specs=in_specs,
        out_specs=pl.BlockSpec((TB, OUT_W), bmap2),
        compiler_params=pltpu.CompilerParams(
            dimension_semantics=("parallel",),
            vmem_limit_bytes=48 << 20),
        cost_estimate=pl.CostEstimate(flops=flops,
                                      transcendentals=transcendentals,
                                      bytes_accessed=bytes_accessed),
    )(*ins)

    # torch.sigmoid(output.squeeze(1)) -> (B,), gate_value -> (B, 3)
    return out[:B, 0], out[:B, 1:1 + N_VIEW]


def reference_forward(content, content_masks, sub_feats, params):
    """Pure-JAX reference of the same forward math (same bf16 matmul precision)."""
    emb_f32 = params['emb'].astype(jnp.float32)
    x = emb_f32[content]                                            # (B, L, D)
    mask = content_masks.astype(jnp.float32)
    scores = jnp.einsum('bld,d->bl', x, params['w_catt'][0]) + params['b_catt'][0, 0]
    scores = jnp.where(mask == 0.0, NEG_INF, scores)
    probs = _softmax_last(scores)
    cnt_fea = jnp.einsum('bl,bld->bd', probs, x)

    def view_pool(v, lo, hi):
        feats = sub_feats[:, lo:hi, :].astype(jnp.float32)
        sc = jnp.einsum('bkd,d->bk', feats, params['w_vatt'][v]) + params['b_vatt'][0, v]
        p = _softmax_last(sc)
        return jnp.einsum('bk,bkd->bd', p, feats)

    s_g = view_pool(0, 0, N_GENDER)
    s_a = view_pool(1, N_GENDER, N_GENDER + N_AGE)
    s_e = view_pool(2, N_GENDER + N_AGE, N_SUB)

    def bdot(xx, w):
        return jnp.dot(xx.astype(jnp.bfloat16), w, preferred_element_type=jnp.float32)

    wg = params['w_gate'].reshape(4, FEA_DIM, N_VIEW)
    gl = (bdot(cnt_fea, wg[0]) + bdot(s_g, wg[1]) + bdot(s_a, wg[2]) + bdot(s_e, wg[3])
          + params['b_gate'])
    gate = _softmax_last(gl)
    gen = gate[:, 0:1] * s_g + gate[:, 1:2] * s_a + gate[:, 2:3] * s_e

    w1 = params['w1'].reshape(2, FEA_DIM, FEA_DIM)
    h = bdot(cnt_fea, w1[0]) + bdot(gen, w1[1]) + params['b1']
    h = jnp.maximum(h * params['s1'] + params['t1'], 0.0)
    h = bdot(h, params['w2']) + params['b2']
    h = jnp.maximum(h * params['s2'] + params['t2'], 0.0)
    logit = bdot(h, params['w3']) + params['b3']
    return _sigmoid(logit[:, 0]), gate


if __name__ == "__main__":
    key = jax.random.PRNGKey(0)
    k_tok, k_sub, k_par = jax.random.split(key, 3)

    B, L = 2, 16
    content = jax.random.randint(k_tok, (B, L), 0, VOCAB, dtype=jnp.int32)
    content_masks = jnp.ones((B, L), jnp.float32).at[1, L - 4:].set(0.0)
    # Pre-pooled generated-comment embeddings per demographic subpopulation
    # (2 gender + 3 age + 5 education), (B, 10, 768).
    sub_feats = (0.5 * jax.random.normal(k_sub, (B, N_SUB, FEA_DIM))).astype(jnp.float32)

    params = make_params(k_par)

    prob, gate = bert_genfend_forward(content, content_masks, sub_feats, params)
    (prob, gate) = jax.block_until_ready((prob, gate))

    assert prob.shape == (B,), prob.shape
    assert gate.shape == (B, N_VIEW), gate.shape
    assert not np.any(np.isnan(np.asarray(prob)))

    ref_prob, ref_gate = reference_forward(content, content_masks, sub_feats, params)
    np.testing.assert_allclose(np.asarray(prob), np.asarray(ref_prob), rtol=1e-2, atol=1e-2)
    np.testing.assert_allclose(np.asarray(gate), np.asarray(ref_gate), rtol=1e-2, atol=1e-2)

    print("KERNEL_OK")
</pallas_src>

<mosaic_0001>
module attributes {stable_mosaic.version = 11 : i64} {
  func.func @genfend_kernel(%arg0: i32, %arg1: memref<8x16xi32, #tpu.memory_space<vmem>>, %arg2: memref<8x16xf32, #tpu.memory_space<vmem>>, %arg3: memref<8x10x768xf32, #tpu.memory_space<vmem>>, %arg4: memref<128x768xbf16, #tpu.memory_space<vmem>>, %arg5: memref<1x128xf32, #tpu.memory_space<vmem>>, %arg6: memref<10x768xf32, #tpu.memory_space<vmem>>, %arg7: memref<1x10xf32, #tpu.memory_space<vmem>>, %arg8: memref<4x768x3xbf16, #tpu.memory_space<vmem>>, %arg9: memref<1x3xf32, #tpu.memory_space<vmem>>, %arg10: memref<2x768x768xbf16, #tpu.memory_space<vmem>>, %arg11: memref<1x768xf32, #tpu.memory_space<vmem>>, %arg12: memref<1x768xf32, #tpu.memory_space<vmem>>, %arg13: memref<1x768xf32, #tpu.memory_space<vmem>>, %arg14: memref<768x384xbf16, #tpu.memory_space<vmem>>, %arg15: memref<1x384xf32, #tpu.memory_space<vmem>>, %arg16: memref<1x384xf32, #tpu.memory_space<vmem>>, %arg17: memref<1x384xf32, #tpu.memory_space<vmem>>, %arg18: memref<384x1xbf16, #tpu.memory_space<vmem>>, %arg19: memref<1x1xf32, #tpu.memory_space<vmem>>, %arg20: memref<8x128xf32, #tpu.memory_space<vmem>>) attributes {dimension_semantics = [#tpu.dimension_semantics<parallel>], iteration_bounds = array<i64: 1>, scalar_prefetch = 0 : i64, scratch_operands = 0 : i64, tpu.core_type = #tpu.core_type<tc>, window_params = [{transform_indices = @transform_0, window_bounds = array<i64: 8, 16>}, {transform_indices = @transform_1, window_bounds = array<i64: 8, 16>}, {transform_indices = @transform_2, window_bounds = array<i64: 8, 10, 768>}, {pipeline_mode = #tpu.pipeline_mode<synchronous>, transform_indices = @transform_3, window_bounds = array<i64: 128, 768>}, {pipeline_mode = #tpu.pipeline_mode<synchronous>, transform_indices = @transform_4, window_bounds = array<i64: 1, 128>}, {pipeline_mode = #tpu.pipeline_mode<synchronous>, transform_indices = @transform_5, window_bounds = array<i64: 10, 768>}, {pipeline_mode = #tpu.pipeline_mode<synchronous>, transform_indices = @transform_6, window_bounds = array<i64: 1, 10>}, {pipeline_mode = #tpu.pipeline_mode<synchronous>, transform_indices = @transform_7, window_bounds = array<i64: 4, 768, 3>}, {pipeline_mode = #tpu.pipeline_mode<synchronous>, transform_indices = @transform_8, window_bounds = array<i64: 1, 3>}, {pipeline_mode = #tpu.pipeline_mode<synchronous>, transform_indices = @transform_9, window_bounds = array<i64: 2, 768, 768>}, {pipeline_mode = #tpu.pipeline_mode<synchronous>, transform_indices = @transform_10, window_bounds = array<i64: 1, 768>}, {pipeline_mode = #tpu.pipeline_mode<synchronous>, transform_indices = @transform_11, window_bounds = array<i64: 1, 768>}, {pipeline_mode = #tpu.pipeline_mode<synchronous>, transform_indices = @transform_12, window_bounds = array<i64: 1, 768>}, {pipeline_mode = #tpu.pipeline_mode<synchronous>, transform_indices = @transform_13, window_bounds = array<i64: 768, 384>}, {pipeline_mode = #tpu.pipeline_mode<synchronous>, transform_indices = @transform_14, window_bounds = array<i64: 1, 384>}, {pipeline_mode = #tpu.pipeline_mode<synchronous>, transform_indices = @transform_15, window_bounds = array<i64: 1, 384>}, {pipeline_mode = #tpu.pipeline_mode<synchronous>, transform_indices = @transform_16, window_bounds = array<i64: 1, 384>}, {pipeline_mode = #tpu.pipeline_mode<synchronous>, transform_indices = @transform_17, window_bounds = array<i64: 384, 1>}, {pipeline_mode = #tpu.pipeline_mode<synchronous>, transform_indices = @transform_18, window_bounds = array<i64: 1, 1>}, {transform_indices = @transform_19, window_bounds = array<i64: 8, 128>}]} {
    %c0 = arith.constant 0 : index
    %c0_0 = arith.constant 0 : index
    %0 = vector.load %arg1[%c0, %c0_0] : memref<8x16xi32, #tpu.memory_space<vmem>>, vector<8x16xi32>
    %c0_1 = arith.constant 0 : index
    %c0_2 = arith.constant 0 : index
    %1 = vector.load %arg2[%c0_1, %c0_2] : memref<8x16xf32, #tpu.memory_space<vmem>>, vector<8x16xf32>
    %2 = tpu.iota {dimensions = array<i32: 2>} : vector<8x16x128xi32>
    %3 = vector.shape_cast %0 : vector<8x16xi32> to vector<8x16x1xi32>
    %4 = vector.broadcast %3 : vector<8x16x1xi32> to vector<8x16x128xi32>
    %5 = arith.cmpi eq, %2, %4 : vector<8x16x128xi32>
    %6 = arith.extui %5 : vector<8x16x128xi1> to vector<8x16x128xi32>
    %7 = arith.sitofp %6 : vector<8x16x128xi32> to vector<8x16x128xf32>
    %c0_3 = arith.constant 0 : index
    %c0_4 = arith.constant 0 : index
    %8 = vector.load %arg5[%c0_3, %c0_4] : memref<1x128xf32, #tpu.memory_space<vmem>>, vector<1x128xf32>
    %9 = vector.shape_cast %8 : vector<1x128xf32> to vector<1x1x128xf32>
    %10 = vector.broadcast %9 : vector<1x1x128xf32> to vector<8x16x128xf32>
    %11 = arith.mulf %7, %10 : vector<8x16x128xf32>
    %cst = arith.constant dense<0.000000e+00> : vector<8x16xf32>
    %12 = vector.multi_reduction <add>, %11, %cst [2] : vector<8x16x128xf32> to vector<8x16xf32>
    %cst_5 = arith.constant 0.000000e+00 : f32
    %13 = vector.broadcast %cst_5 : f32 to vector<8x16xf32>
    %14 = arith.cmpf oeq, %1, %13 : vector<8x16xf32>
    %cst_6 = arith.constant -1.000000e+30 : f32
    %15 = vector.broadcast %cst_6 : f32 to vector<8x16xf32>
    %16 = arith.select %14, %15, %12 : vector<8x16xi1>, vector<8x16xf32>
    %cst_7 = arith.constant dense<0xFF800000> : vector<8xf32>
    %17 = vector.multi_reduction <maximumf>, %16, %cst_7 [1] : vector<8x16xf32> to vector<8xf32>
    %18 = vector.shape_cast %17 : vector<8xf32> to vector<8x1xf32>
    %19 = vector.broadcast %18 : vector<8x1xf32> to vector<8x16xf32>
    %20 = arith.subf %16, %19 : vector<8x16xf32>
    %21 = math.exp %20 : vector<8x16xf32>
    %cst_8 = arith.constant dense<0.000000e+00> : vector<8xf32>
    %22 = vector.multi_reduction <add>, %21, %cst_8 [1] : vector<8x16xf32> to vector<8xf32>
    %23 = vector.shape_cast %22 : vector<8xf32> to vector<8x1xf32>
    %24 = vector.broadcast %23 : vector<8x1xf32> to vector<8x16xf32>
    %25 = arith.divf %21, %24 : vector<8x16xf32>
    %26 = vector.shape_cast %25 : vector<8x16xf32> to vector<8x16x1xf32>
    %27 = vector.broadcast %26 : vector<8x16x1xf32> to vector<8x16x128xf32>
    %28 = arith.mulf %27, %7 : vector<8x16x128xf32>
    %cst_9 = arith.constant dense<0.000000e+00> : vector<8x128xf32>
    %29 = vector.multi_reduction <add>, %28, %cst_9 [1] : vector<8x16x128xf32> to vector<8x128xf32>
    %c0_10 = arith.constant 0 : index
    %c0_11 = arith.constant 0 : index
    %30 = vector.load %arg4[%c0_10, %c0_11] : memref<128x768xbf16, #tpu.memory_space<vmem>>, vector<128x768xbf16>
    %31 = arith.extf %30 : vector<128x768xbf16> to vector<128x768xf32>
    %cst_12 = arith.constant dense<0.000000e+00> : vector<8x768xf32>
    %32 = tpu.matmul %29, %31, %cst_12 {dimension_numbers = #tpu.dot_dimension_numbers<[1], [0], [0], [1], [0, 0, 1, 1], [], []>} : vector<8x128xf32>, vector<128x768xf32>, vector<8x768xf32> -> vector<8x768xf32>
    %c0_13 = arith.constant 0 : index
    %c0_14 = arith.constant 0 : index
    %c0_15 = arith.constant 0 : index
    %33 = vector.load %arg3[%c0_13, %c0_14, %c0_15] : memref<8x10x768xf32, #tpu.memory_space<vmem>>, vector<8x10x768xf32>
    %c0_16 = arith.constant 0 : index
    %c0_17 = arith.constant 0 : index
    %34 = vector.load %arg6[%c0_16, %c0_17] : memref<10x768xf32, #tpu.memory_space<vmem>>, vector<10x768xf32>
    %35 = vector.shape_cast %34 : vector<10x768xf32> to vector<1x10x768xf32>
    %36 = vector.broadcast %35 : vector<1x10x768xf32> to vector<8x10x768xf32>
    %37 = arith.mulf %33, %36 : vector<8x10x768xf32>
    %cst_18 = arith.constant dense<0.000000e+00> : vector<8x10xf32>
    %38 = vector.multi_reduction <add>, %37, %cst_18 [2] : vector<8x10x768xf32> to vector<8x10xf32>
    %c0_19 = arith.constant 0 : index
    %c0_20 = arith.constant 0 : index
    %39 = vector.load %arg7[%c0_19, %c0_20] : memref<1x10xf32, #tpu.memory_space<vmem>>, vector<1x10xf32>
    %40 = vector.broadcast %39 : vector<1x10xf32> to vector<8x10xf32>
    %41 = arith.addf %38, %40 : vector<8x10xf32>
    %42 = vector.extract_strided_slice %41 {offsets = [0, 0], sizes = [8, 2], strides = [1, 1]} : vector<8x10xf32> to vector<8x2xf32>
    %cst_21 = arith.constant dense<0xFF800000> : vector<8xf32>
    %43 = vector.multi_reduction <maximumf>, %42, %cst_21 [1] : vector<8x2xf32> to vector<8xf32>
    %44 = vector.shape_cast %43 : vector<8xf32> to vector<8x1xf32>
    %45 = vector.broadcast %44 : vector<8x1xf32> to vector<8x2xf32>
    %46 = arith.subf %42, %45 : vector<8x2xf32>
    %47 = math.exp %46 : vector<8x2xf32>
    %cst_22 = arith.constant dense<0.000000e+00> : vector<8xf32>
    %48 = vector.multi_reduction <add>, %47, %cst_22 [1] : vector<8x2xf32> to vector<8xf32>
    %49 = vector.shape_cast %48 : vector<8xf32> to vector<8x1xf32>
    %50 = vector.broadcast %49 : vector<8x1xf32> to vector<8x2xf32>
    %51 = arith.divf %47, %50 : vector<8x2xf32>
    %52 = vector.shape_cast %51 : vector<8x2xf32> to vector<8x2x1xf32>
    %53 = vector.extract_strided_slice %33 {offsets = [0, 0, 0], sizes = [8, 2, 768], strides = [1, 1, 1]} : vector<8x10x768xf32> to vector<8x2x768xf32>
    %54 = vector.broadcast %52 : vector<8x2x1xf32> to vector<8x2x768xf32>
    %55 = arith.mulf %54, %53 : vector<8x2x768xf32>
    %cst_23 = arith.constant dense<0.000000e+00> : vector<8x768xf32>
    %56 = vector.multi_reduction <add>, %55, %cst_23 [1] : vector<8x2x768xf32> to vector<8x768xf32>
    %57 = vector.extract_strided_slice %41 {offsets = [0, 2], sizes = [8, 3], strides = [1, 1]} : vector<8x10xf32> to vector<8x3xf32>
    %cst_24 = arith.constant dense<0xFF800000> : vector<8xf32>
    %58 = vector.multi_reduction <maximumf>, %57, %cst_24 [1] : vector<8x3xf32> to vector<8xf32>
    %59 = vector.shape_cast %58 : vector<8xf32> to vector<8x1xf32>
    %60 = vector.broadcast %59 : vector<8x1xf32> to vector<8x3xf32>
    %61 = arith.subf %57, %60 : vector<8x3xf32>
    %62 = math.exp %61 : vector<8x3xf32>
    %cst_25 = arith.constant dense<0.000000e+00> : vector<8xf32>
    %63 = vector.multi_reduction <add>, %62, %cst_25 [1] : vector<8x3xf32> to vector<8xf32>
    %64 = vector.shape_cast %63 : vector<8xf32> to vector<8x1xf32>
    %65 = vector.broadcast %64 : vector<8x1xf32> to vector<8x3xf32>
    %66 = arith.divf %62, %65 : vector<8x3xf32>
    %67 = vector.shape_cast %66 : vector<8x3xf32> to vector<8x3x1xf32>
    %68 = vector.extract_strided_slice %33 {offsets = [0, 2, 0], sizes = [8, 3, 768], strides = [1, 1, 1]} : vector<8x10x768xf32> to vector<8x3x768xf32>
    %69 = vector.broadcast %67 : vector<8x3x1xf32> to vector<8x3x768xf32>
    %70 = arith.mulf %69, %68 : vector<8x3x768xf32>
    %cst_26 = arith.constant dense<0.000000e+00> : vector<8x768xf32>
    %71 = vector.multi_reduction <add>, %70, %cst_26 [1] : vector<8x3x768xf32> to vector<8x768xf32>
    %72 = vector.extract_strided_slice %41 {offsets = [0, 5], sizes = [8, 5], strides = [1, 1]} : vector<8x10xf32> to vector<8x5xf32>
    %cst_27 = arith.constant dense<0xFF800000> : vector<8xf32>
    %73 = vector.multi_reduction <maximumf>, %72, %cst_27 [1] : vector<8x5xf32> to vector<8xf32>
    %74 = vector.shape_cast %73 : vector<8xf32> to vector<8x1xf32>
    %75 = vector.broadcast %74 : vector<8x1xf32> to vector<8x5xf32>
    %76 = arith.subf %72, %75 : vector<8x5xf32>
    %77 = math.exp %76 : vector<8x5xf32>
    %cst_28 = arith.constant dense<0.000000e+00> : vector<8xf32>
    %78 = vector.multi_reduction <add>, %77, %cst_28 [1] : vector<8x5xf32> to vector<8xf32>
    %79 = vector.shape_cast %78 : vector<8xf32> to vector<8x1xf32>
    %80 = vector.broadcast %79 : vector<8x1xf32> to vector<8x5xf32>
    %81 = arith.divf %77, %80 : vector<8x5xf32>
    %82 = vector.shape_cast %81 : vector<8x5xf32> to vector<8x5x1xf32>
    %83 = vector.extract_strided_slice %33 {offsets = [0, 5, 0], sizes = [8, 5, 768], strides = [1, 1, 1]} : vector<8x10x768xf32> to vector<8x5x768xf32>
    %84 = vector.broadcast %82 : vector<8x5x1xf32> to vector<8x5x768xf32>
    %85 = arith.mulf %84, %83 : vector<8x5x768xf32>
    %cst_29 = arith.constant dense<0.000000e+00> : vector<8x768xf32>
    %86 = vector.multi_reduction <add>, %85, %cst_29 [1] : vector<8x5x768xf32> to vector<8x768xf32>
    %c0_30 = arith.constant 0 : index
    %c0_31 = arith.constant 0 : index
    %c0_32 = arith.constant 0 : index
    %87 = vector.load %arg8[%c0_30, %c0_31, %c0_32] : memref<4x768x3xbf16, #tpu.memory_space<vmem>>, vector<1x768x3xbf16>
    %88 = vector.shape_cast %87 : vector<1x768x3xbf16> to vector<768x3xbf16>
    %89 = arith.truncf %32 : vector<8x768xf32> to vector<8x768xbf16>
    %cst_33 = arith.constant dense<0.000000e+00> : vector<8x3xf32>
    %90 = tpu.matmul %89, %88, %cst_33 {dimension_numbers = #tpu.dot_dimension_numbers<[1], [0], [0], [1], [0, 0, 1, 1], [], []>} : vector<8x768xbf16>, vector<768x3xbf16>, vector<8x3xf32> -> vector<8x3xf32>
    %c1 = arith.constant 1 : index
    %c0_34 = arith.constant 0 : index
    %c0_35 = arith.constant 0 : index
    %91 = vector.load %arg8[%c1, %c0_34, %c0_35] : memref<4x768x3xbf16, #tpu.memory_space<vmem>>, vector<1x768x3xbf16>
    %92 = vector.shape_cast %91 : vector<1x768x3xbf16> to vector<768x3xbf16>
    %93 = arith.truncf %56 : vector<8x768xf32> to vector<8x768xbf16>
    %cst_36 = arith.constant dense<0.000000e+00> : vector<8x3xf32>
    %94 = tpu.matmul %93, %92, %cst_36 {dimension_numbers = #tpu.dot_dimension_numbers<[1], [0], [0], [1], [0, 0, 1, 1], [], []>} : vector<8x768xbf16>, vector<768x3xbf16>, vector<8x3xf32> -> vector<8x3xf32>
    %95 = arith.addf %90, %94 : vector<8x3xf32>
    %c2 = arith.constant 2 : index
    %c0_37 = arith.constant 0 : index
    %c0_38 = arith.constant 0 : index
    %96 = vector.load %arg8[%c2, %c0_37, %c0_38] : memref<4x768x3xbf16, #tpu.memory_space<vmem>>, vector<1x768x3xbf16>
    %97 = vector.shape_cast %96 : vector<1x768x3xbf16> to vector<768x3xbf16>
    %98 = arith.truncf %71 : vector<8x768xf32> to vector<8x768xbf16>
    %cst_39 = arith.constant dense<0.000000e+00> : vector<8x3xf32>
    %99 = tpu.matmul %98, %97, %cst_39 {dimension_numbers = #tpu.dot_dimension_numbers<[1], [0], [0], [1], [0, 0, 1, 1], [], []>} : vector<8x768xbf16>, vector<768x3xbf16>, vector<8x3xf32> -> vector<8x3xf32>
    %100 = arith.addf %95, %99 : vector<8x3xf32>
    %c3 = arith.constant 3 : index
    %c0_40 = arith.constant 0 : index
    %c0_41 = arith.constant 0 : index
    %101 = vector.load %arg8[%c3, %c0_40, %c0_41] : memref<4x768x3xbf16, #tpu.memory_space<vmem>>, vector<1x768x3xbf16>
    %102 = vector.shape_cast %101 : vector<1x768x3xbf16> to vector<768x3xbf16>
    %103 = arith.truncf %86 : vector<8x768xf32> to vector<8x768xbf16>
    %cst_42 = arith.constant dense<0.000000e+00> : vector<8x3xf32>
    %104 = tpu.matmul %103, %102, %cst_42 {dimension_numbers = #tpu.dot_dimension_numbers<[1], [0], [0], [1], [0, 0, 1, 1], [], []>} : vector<8x768xbf16>, vector<768x3xbf16>, vector<8x3xf32> -> vector<8x3xf32>
    %105 = arith.addf %100, %104 : vector<8x3xf32>
    %c0_43 = arith.constant 0 : index
    %c0_44 = arith.constant 0 : index
    %106 = vector.load %arg9[%c0_43, %c0_44] : memref<1x3xf32, #tpu.memory_space<vmem>>, vector<1x3xf32>
    %107 = vector.broadcast %106 : vector<1x3xf32> to vector<8x3xf32>
    %108 = arith.addf %105, %107 : vector<8x3xf32>
    %cst_45 = arith.constant dense<0xFF800000> : vector<8xf32>
    %109 = vector.multi_reduction <maximumf>, %108, %cst_45 [1] : vector<8x3xf32> to vector<8xf32>
    %110 = vector.shape_cast %109 : vector<8xf32> to vector<8x1xf32>
    %111 = vector.broadcast %110 : vector<8x1xf32> to vector<8x3xf32>
    %112 = arith.subf %108, %111 : vector<8x3xf32>
    %113 = math.exp %112 : vector<8x3xf32>
    %cst_46 = arith.constant dense<0.000000e+00> : vector<8xf32>
    %114 = vector.multi_reduction <add>, %113, %cst_46 [1] : vector<8x3xf32> to vector<8xf32>
    %115 = vector.shape_cast %114 : vector<8xf32> to vector<8x1xf32>
    %116 = vector.broadcast %115 : vector<8x1xf32> to vector<8x3xf32>
    %117 = arith.divf %113, %116 : vector<8x3xf32>
    %118 = vector.extract_strided_slice %117 {offsets = [0, 0], sizes = [8, 1], strides = [1, 1]} : vector<8x3xf32> to vector<8x1xf32>
    %119 = vector.broadcast %118 : vector<8x1xf32> to vector<8x768xf32>
    %120 = arith.mulf %119, %56 : vector<8x768xf32>
    %121 = vector.extract_strided_slice %117 {offsets = [0, 1], sizes = [8, 1], strides = [1, 1]} : vector<8x3xf32> to vector<8x1xf32>
    %122 = vector.broadcast %121 : vector<8x1xf32> to vector<8x768xf32>
    %123 = arith.mulf %122, %71 : vector<8x768xf32>
    %124 = arith.addf %120, %123 : vector<8x768xf32>
    %125 = vector.extract_strided_slice %117 {offsets = [0, 2], sizes = [8, 1], strides = [1, 1]} : vector<8x3xf32> to vector<8x1xf32>
    %126 = vector.broadcast %125 : vector<8x1xf32> to vector<8x768xf32>
    %127 = arith.mulf %126, %86 : vector<8x768xf32>
    %128 = arith.addf %124, %127 : vector<8x768xf32>
    %c0_47 = arith.constant 0 : index
    %c0_48 = arith.constant 0 : index
    %c0_49 = arith.constant 0 : index
    %129 = vector.load %arg10[%c0_47, %c0_48, %c0_49] : memref<2x768x768xbf16, #tpu.memory_space<vmem>>, vector<1x768x768xbf16>
    %130 = vector.shape_cast %129 : vector<1x768x768xbf16> to vector<768x768xbf16>
    %131 = arith.truncf %32 : vector<8x768xf32> to vector<8x768xbf16>
    %cst_50 = arith.constant dense<0.000000e+00> : vector<8x768xf32>
    %132 = tpu.matmul %131, %130, %cst_50 {dimension_numbers = #tpu.dot_dimension_numbers<[1], [0], [0], [1], [0, 0, 1, 1], [], []>} : vector<8x768xbf16>, vector<768x768xbf16>, vector<8x768xf32> -> vector<8x768xf32>
    %c1_51 = arith.constant 1 : index
    %c0_52 = arith.constant 0 : index
    %c0_53 = arith.constant 0 : index
    %133 = vector.load %arg10[%c1_51, %c0_52, %c0_53] : memref<2x768x768xbf16, #tpu.memory_space<vmem>>, vector<1x768x768xbf16>
    %134 = vector.shape_cast %133 : vector<1x768x768xbf16> to vector<768x768xbf16>
    %135 = arith.truncf %128 : vector<8x768xf32> to vector<8x768xbf16>
    %cst_54 = arith.constant dense<0.000000e+00> : vector<8x768xf32>
    %136 = tpu.matmul %135, %134, %cst_54 {dimension_numbers = #tpu.dot_dimension_numbers<[1], [0], [0], [1], [0, 0, 1, 1], [], []>} : vector<8x768xbf16>, vector<768x768xbf16>, vector<8x768xf32> -> vector<8x768xf32>
    %137 = arith.addf %132, %136 : vector<8x768xf32>
    %c0_55 = arith.constant 0 : index
    %c0_56 = arith.constant 0 : index
    %138 = vector.load %arg11[%c0_55, %c0_56] : memref<1x768xf32, #tpu.memory_space<vmem>>, vector<1x768xf32>
    %139 = vector.broadcast %138 : vector<1x768xf32> to vector<8x768xf32>
    %140 = arith.addf %137, %139 : vector<8x768xf32>
    %c0_57 = arith.constant 0 : index
    %c0_58 = arith.constant 0 : index
    %141 = vector.load %arg12[%c0_57, %c0_58] : memref<1x768xf32, #tpu.memory_space<vmem>>, vector<1x768xf32>
    %142 = vector.broadcast %141 : vector<1x768xf32> to vector<8x768xf32>
    %143 = arith.mulf %140, %142 : vector<8x768xf32>
    %c0_59 = arith.constant 0 : index
    %c0_60 = arith.constant 0 : index
    %144 = vector.load %arg13[%c0_59, %c0_60] : memref<1x768xf32, #tpu.memory_space<vmem>>, vector<1x768xf32>
    %145 = vector.broadcast %144 : vector<1x768xf32> to vector<8x768xf32>
    %146 = arith.addf %143, %145 : vector<8x768xf32>
    %cst_61 = arith.constant 0.000000e+00 : f32
    %147 = vector.broadcast %cst_61 : f32 to vector<8x768xf32>
    %148 = arith.maximumf %146, %147 : vector<8x768xf32>
    %c0_62 = arith.constant 0 : index
    %c0_63 = arith.constant 0 : index
    %149 = vector.load %arg14[%c0_62, %c0_63] : memref<768x384xbf16, #tpu.memory_space<vmem>>, vector<768x384xbf16>
    %150 = arith.truncf %148 : vector<8x768xf32> to vector<8x768xbf16>
    %cst_64 = arith.constant dense<0.000000e+00> : vector<8x384xf32>
    %151 = tpu.matmul %150, %149, %cst_64 {dimension_numbers = #tpu.dot_dimension_numbers<[1], [0], [0], [1], [0, 0, 1, 1], [], []>} : vector<8x768xbf16>, vector<768x384xbf16>, vector<8x384xf32> -> vector<8x384xf32>
    %c0_65 = arith.constant 0 : index
    %c0_66 = arith.constant 0 : index
    %152 = vector.load %arg15[%c0_65, %c0_66] : memref<1x384xf32, #tpu.memory_space<vmem>>, vector<1x384xf32>
    %153 = vector.broadcast %152 : vector<1x384xf32> to vector<8x384xf32>
    %154 = arith.addf %151, %153 : vector<8x384xf32>
    %c0_67 = arith.constant 0 : index
    %c0_68 = arith.constant 0 : index
    %155 = vector.load %arg16[%c0_67, %c0_68] : memref<1x384xf32, #tpu.memory_space<vmem>>, vector<1x384xf32>
    %156 = vector.broadcast %155 : vector<1x384xf32> to vector<8x384xf32>
    %157 = arith.mulf %154, %156 : vector<8x384xf32>
    %c0_69 = arith.constant 0 : index
    %c0_70 = arith.constant 0 : index
    %158 = vector.load %arg17[%c0_69, %c0_70] : memref<1x384xf32, #tpu.memory_space<vmem>>, vector<1x384xf32>
    %159 = vector.broadcast %158 : vector<1x384xf32> to vector<8x384xf32>
    %160 = arith.addf %157, %159 : vector<8x384xf32>
    %cst_71 = arith.constant 0.000000e+00 : f32
    %161 = vector.broadcast %cst_71 : f32 to vector<8x384xf32>
    %162 = arith.maximumf %160, %161 : vector<8x384xf32>
    %c0_72 = arith.constant 0 : index
    %c0_73 = arith.constant 0 : index
    %163 = vector.load %arg18[%c0_72, %c0_73] : memref<384x1xbf16, #tpu.memory_space<vmem>>, vector<384x1xbf16>
    %164 = arith.truncf %162 : vector<8x384xf32> to vector<8x384xbf16>
    %cst_74 = arith.constant dense<0.000000e+00> : vector<8x1xf32>
    %165 = tpu.matmul %164, %163, %cst_74 {dimension_numbers = #tpu.dot_dimension_numbers<[1], [0], [0], [1], [0, 0, 1, 1], [], []>} : vector<8x384xbf16>, vector<384x1xbf16>, vector<8x1xf32> -> vector<8x1xf32>
    %c0_75 = arith.constant 0 : index
    %c0_76 = arith.constant 0 : index
    %166 = vector.load %arg19[%c0_75, %c0_76] : memref<1x1xf32, #tpu.memory_space<vmem>>, vector<1x1xf32>
    %167 = vector.broadcast %166 : vector<1x1xf32> to vector<8x1xf32>
    %168 = arith.addf %165, %167 : vector<8x1xf32>
    %cst_77 = arith.constant 0.000000e+00 : f32
    %169 = vector.broadcast %cst_77 : f32 to vector<8x1xf32>
    %170 = arith.subf %169, %168 : vector<8x1xf32>
    %171 = math.exp %170 : vector<8x1xf32>
    %cst_78 = arith.constant 1.000000e+00 : f32
    %172 = vector.broadcast %cst_78 : f32 to vector<8x1xf32>
    %173 = arith.addf %172, %171 : vector<8x1xf32>
    %cst_79 = arith.constant 1.000000e+00 : f32
    %174 = vector.broadcast %cst_79 : f32 to vector<8x1xf32>
    %175 = arith.divf %174, %173 : vector<8x1xf32>
    %cst_80 = arith.constant 0.000000e+00 : f32
    %176 = vector.broadcast %cst_80 : f32 to vector<8x124xf32>
    %177 = tpu.concatenate %175, %117, %176 in 1 : vector<8x1xf32>, vector<8x3xf32>, vector<8x124xf32> -> vector<8x128xf32>
    %c0_81 = arith.constant 0 : index
    %c0_82 = arith.constant 0 : index
    %178 = vector.load %arg20[%c0_81, %c0_82] : memref<8x128xf32, #tpu.memory_space<vmem>>, vector<8x128xf32>
    tpu.vector_store %arg20[%c0_81, %c0_82], %177 {strides = array<i32>} : memref<8x128xf32, #tpu.memory_space<vmem>>, vector<8x128xf32>,
    return
  }
  func.func @transform_0(%arg0: i32) -> (i32, i32) {
    %c0_i32 = arith.constant 0 : i32
    %c0_i32_0 = arith.constant 0 : i32
    return %arg0, %c0_i32 : i32, i32
  }
  func.func @transform_1(%arg0: i32) -> (i32, i32) {
    %c0_i32 = arith.constant 0 : i32
    %c0_i32_0 = arith.constant 0 : i32
    return %arg0, %c0_i32 : i32, i32
  }
  func.func @transform_2(%arg0: i32) -> (i32, i32, i32) {
    %c0_i32 = arith.constant 0 : i32
    %c0_i32_0 = arith.constant 0 : i32
    %c0_i32_1 = arith.constant 0 : i32
    return %arg0, %c0_i32, %c0_i32_0 : i32, i32, i32
  }
  func.func @transform_3(%arg0: i32) -> (i32, i32) {
    %c0_i32 = arith.constant 0 : i32
    %c0_i32_0 = arith.constant 0 : i32
    %c0_i32_1 = arith.constant 0 : i32
    return %c0_i32, %c0_i32_0 : i32, i32
  }
  func.func @transform_4(%arg0: i32) -> (i32, i32) {
    %c0_i32 = arith.constant 0 : i32
    %c0_i32_0 = arith.constant 0 : i32
    %c0_i32_1 = arith.constant 0 : i32
    return %c0_i32, %c0_i32_0 : i32, i32
  }
  func.func @transform_5(%arg0: i32) -> (i32, i32) {
    %c0_i32 = arith.constant 0 : i32
    %c0_i32_0 = arith.constant 0 : i32
    %c0_i32_1 = arith.constant 0 : i32
    return %c0_i32, %c0_i32_0 : i32, i32
  }
  func.func @transform_6(%arg0: i32) -> (i32, i32) {
    %c0_i32 = arith.constant 0 : i32
    %c0_i32_0 = arith.constant 0 : i32
    %c0_i32_1 = arith.constant 0 : i32
    return %c0_i32, %c0_i32_0 : i32, i32
  }
  func.func @transform_7(%arg0: i32) -> (i32, i32, i32) {
    %c0_i32 = arith.constant 0 : i32
    %c0_i32_0 = arith.constant 0 : i32
    %c0_i32_1 = arith.constant 0 : i32
    %c0_i32_2 = arith.constant 0 : i32
    return %c0_i32, %c0_i32_0, %c0_i32_1 : i32, i32, i32
  }
  func.func @transform_8(%arg0: i32) -> (i32, i32) {
    %c0_i32 = arith.constant 0 : i32
    %c0_i32_0 = arith.constant 0 : i32
    %c0_i32_1 = arith.constant 0 : i32
    return %c0_i32, %c0_i32_0 : i32, i32
  }
  func.func @transform_9(%arg0: i32) -> (i32, i32, i32) {
    %c0_i32 = arith.constant 0 : i32
    %c0_i32_0 = arith.constant 0 : i32
    %c0_i32_1 = arith.constant 0 : i32
    %c0_i32_2 = arith.constant 0 : i32
    return %c0_i32, %c0_i32_0, %c0_i32_1 : i32, i32, i32
  }
  func.func @transform_10(%arg0: i32) -> (i32, i32) {
    %c0_i32 = arith.constant 0 : i32
    %c0_i32_0 = arith.constant 0 : i32
    %c0_i32_1 = arith.constant 0 : i32
    return %c0_i32, %c0_i32_0 : i32, i32
  }
  func.func @transform_11(%arg0: i32) -> (i32, i32) {
    %c0_i32 = arith.constant 0 : i32
    %c0_i32_0 = arith.constant 0 : i32
    %c0_i32_1 = arith.constant 0 : i32
    return %c0_i32, %c0_i32_0 : i32, i32
  }
  func.func @transform_12(%arg0: i32) -> (i32, i32) {
    %c0_i32 = arith.constant 0 : i32
    %c0_i32_0 = arith.constant 0 : i32
    %c0_i32_1 = arith.constant 0 : i32
    return %c0_i32, %c0_i32_0 : i32, i32
  }
  func.func @transform_13(%arg0: i32) -> (i32, i32) {
    %c0_i32 = arith.constant 0 : i32
    %c0_i32_0 = arith.constant 0 : i32
    %c0_i32_1 = arith.constant 0 : i32
    return %c0_i32, %c0_i32_0 : i32, i32
  }
  func.func @transform_14(%arg0: i32) -> (i32, i32) {
    %c0_i32 = arith.constant 0 : i32
    %c0_i32_0 = arith.constant 0 : i32
    %c0_i32_1 = arith.constant 0 : i32
    return %c0_i32, %c0_i32_0 : i32, i32
  }
  func.func @transform_15(%arg0: i32) -> (i32, i32) {
    %c0_i32 = arith.constant 0 : i32
    %c0_i32_0 = arith.constant 0 : i32
    %c0_i32_1 = arith.constant 0 : i32
    return %c0_i32, %c0_i32_0 : i32, i32
  }
  func.func @transform_16(%arg0: i32) -> (i32, i32) {
    %c0_i32 = arith.constant 0 : i32
    %c0_i32_0 = arith.constant 0 : i32
    %c0_i32_1 = arith.constant 0 : i32
    return %c0_i32, %c0_i32_0 : i32, i32
  }
  func.func @transform_17(%arg0: i32) -> (i32, i32) {
    %c0_i32 = arith.constant 0 : i32
    %c0_i32_0 = arith.constant 0 : i32
    %c0_i32_1 = arith.constant 0 : i32
    return %c0_i32, %c0_i32_0 : i32, i32
  }
  func.func @transform_18(%arg0: i32) -> (i32, i32) {
    %c0_i32 = arith.constant 0 : i32
    %c0_i32_0 = arith.constant 0 : i32
    %c0_i32_1 = arith.constant 0 : i32
    return %c0_i32, %c0_i32_0 : i32, i32
  }
  func.func @transform_19(%arg0: i32) -> (i32, i32) {
    %c0_i32 = arith.constant 0 : i32
    %c0_i32_0 = arith.constant 0 : i32
    return %arg0, %c0_i32 : i32, i32
  }
}

</mosaic_0001>

<bundles_post_ra>
// kernel: bert_genfend_forward.1
= control target key start
LH: loop header
LB: loop body
LE: loop exit
PB: predicated region body
PF: predicated region fallthrough
CT: control target
= control target key end

     0   :  { %s21661_s0 = inlined_call_operand.vmem [shape: s32[8,16], index: 0, kind: input, shape index: {}]   ;;  %s21662_s1 = inlined_call_operand.vmem [shape: f32[8,16], index: 1, kind: input, shape index: {}]   ;;  %s21663_s2 = inlined_call_operand.vmem [shape: f32[8,10,768], index: 2, kind: input, shape index: {}]   ;;  %s21664_s3 = inlined_call_operand.hbm [shape: bf16[128,768], index: 3, kind: input, shape index: {}]   ;;  %s21665_s4 = inlined_call_operand.vmem [shape: f32[1,128], index: 4, kind: input, shape index: {}]   ;;  %s21666_s5 = inlined_call_operand.vmem [shape: f32[10,768], index: 5, kind: input, shape index: {}]   ;;  %s21667_s6 = inlined_call_operand.vmem [shape: f32[1,10], index: 6, kind: input, shape index: {}]   ;;  %s21668_s7 = inlined_call_operand.vmem [shape: bf16[4,768,3], index: 7, kind: input, shape index: {}]   ;;  %s21669_s8 = inlined_call_operand.hbm [shape: f32[1,3], index: 8, kind: input, shape index: {}]   ;;  %s21670_s9 = inlined_call_operand.hbm [shape: bf16[2,768,768], index: 9, kind: input, shape index: {}]   ;;  %s21671_s10 = inlined_call_operand.hbm [shape: f32[1,768], index: 10, kind: input, shape index: {}]   ;;  %s21672_s11 = inlined_call_operand.hbm [shape: f32[1,768], index: 11, kind: input, shape index: {}]   ;;  %s21673_s12 = inlined_call_operand.hbm [shape: f32[1,768], index: 12, kind: input, shape index: {}]   ;;  %s21674_s13 = inlined_call_operand.vmem [shape: bf16[768,384], index: 13, kind: input, shape index: {}]   ;;  %s21675_s14 = inlined_call_operand.hbm [shape: f32[1,384], index: 14, kind: input, shape index: {}]   ;;  %s21676_s15 = inlined_call_operand.hbm [shape: f32[1,384], index: 15, kind: input, shape index: {}]   ;;  %s21677_s16 = inlined_call_operand.hbm [shape: f32[1,384], index: 16, kind: input, shape index: {}]   ;;  %s21678_s17 = inlined_call_operand.vmem [shape: bf16[384,1], index: 17, kind: input, shape index: {}]   ;;  %s21679_s18 = inlined_call_operand.<no memory space> [shape: f32[1,1], index: 18, kind: input, shape index: {}]   ;;  %s21680_s19 = inlined_call_operand.vmem [shape: f32[8,128], index: 19, kind: output, shape index: {}]  }
   0x1   :  { %21897 = sst [smem:[#allocation152_spill]] %s21661_s0  ;;  %v24_v0 = vstv %s21679_s18 }
   0x2   :  { %21898 = sst [smem:[#allocation153_spill]] %s21662_s1  ;;  %25 = vst [vmem:[#allocation2] sm:$0x1] %v24_v0 }
   0x3   :  { %21899 = sst [smem:[#allocation154_spill]] %s21663_s2 }
   0x4   :  { %21900 = sst [smem:[#allocation155_spill]] %s21664_s3 }
   0x5   :  { %26 = vsyncpa [#allocation4], 0 }
   0x6   :  { %27 = vsyncpa [#allocation6], 0 }
   0x7   :  { %28 = vsyncpa [#allocation9], 0 }
   0x8   :  { %29 = vsyncpa [#allocation12], 0 }
   0x9   :  { %30 = vsyncpa [#allocation15], 0  ;;  %s16592_s20 = smov [#allocation5]   ;;  %s16593_s1 = smov [#allocation8]  }
   0xa   :  { %s63_s21 = sshll.u32 %s16592_s20, 4  ;;  %s85_s22 = sshll.u32 %s16593_s1, 4  ;;  %s64_s21 = int_to_ptr.vmem [resolvable:$true] %s63_s21  ;;  %s86_s22 = int_to_ptr.vmem [resolvable:$true] %s85_s22 }
   0xb   :  { %s16384_s24 = scalar_lea.hbm %s21669_s8, 16 }
   0xc   :  { %p16385_p0 = scmp.ne.s32.totalorder %s21669_s8, %s16384_s24  ;;  %p16388_p1 = scmp.lt.u32.totalorder %s16384_s24, %s21669_s8 }
   0xe   :  { %p16390_p2 = pnand %p16388_p1, %p16385_p0 }
  0x10   :  { %16393 = shalt.err (!%p16390_p2)
}
  0x11   :  { %s16394_s27 = scalar_lea.vmem %s64_s21, 16  ;;  %s16398_s28 = scalar_lea.vmem %s64_s21, 32 }
  0x12   :  { %p16395_p3 = scmp.ne.s32.totalorder %s64_s21, %s16394_s27  ;;  %p16399_p4 = scmp.lt.s32.totalorder %s64_s21, %s64_s21 }
  0x13   :  { %p16400_p5 = scmp.lt.s32.totalorder %s16398_s28, %s16394_s27 }
  0x15   :  { %p16401_p6 = por %p16400_p5, %p16399_p4 }
  0x17   :  { %p16402_p7 = pnand %p16401_p6, %p16395_p3 }
  0x19   :  { %16405 = shalt.err (!%p16402_p7)
}
  0x1a   :  { %66 = dma.hbm_to_vmem [thread:$0]  %s21669_s8, 16, %s64_s21, [#allocation6]  }
  0x1b   :  { %s16406_s1 = scalar_lea.hbm %s21671_s10, 96 }
  0x1c   :  { %p16407_p8 = scmp.ne.s32.totalorder %s21671_s10, %s16406_s1  ;;  %p16410_p9 = scmp.lt.u32.totalorder %s16406_s1, %s21671_s10 }
  0x1e   :  { %p16412_p10 = pnand %p16410_p9, %p16407_p8 }
  0x20   :  { %16415 = shalt.err (!%p16412_p10)
}
  0x21   :  { %s16416_s3 = scalar_lea.vmem %s86_s22, 96  ;;  %p16421_p12 = scmp.lt.s32.totalorder %s86_s22, %s86_s22 }
  0x22   :  { %p16417_p11 = scmp.ne.s32.totalorder %s86_s22, %s16416_s3  ;;  %p16422_p13 = scmp.lt.s32.totalorder %s16416_s3, %s16416_s3 }
  0x24   :  { %p16423_p0 = por %p16422_p13, %p16421_p12 }
  0x26   :  { %p16424_p1 = pnand %p16423_p0, %p16417_p11 }
  0x28   :  { %16427 = shalt.err (!%p16424_p1)
}
  0x29   :  { %88 = dma.hbm_to_vmem [thread:$0]  %s21671_s10, 96, %s86_s22, [#allocation9]  }
  0x2a   :  { %s16594_s18 = smov [#allocation11]   ;;  %s16595_s27 = smov [#allocation14]  }
  0x2b   :  { %s105_s26 = sshll.u32 %s16594_s18, 4  ;;  %s127_s28 = sshll.u32 %s16595_s27, 4  ;;  %s106_s26 = int_to_ptr.vmem [resolvable:$true] %s105_s26  ;;  %s128_s28 = int_to_ptr.vmem [resolvable:$true] %s127_s28 }
  0x2c   :  { %s16428_s30 = scalar_lea.hbm %s21673_s12, 96 }
  0x2d   :  { %p16429_p2 = scmp.ne.s32.totalorder %s21673_s12, %s16428_s30  ;;  %p16432_p3 = scmp.lt.u32.totalorder %s16428_s30, %s21673_s12 }
  0x2f   :  { %p16434_p4 = pnand %p16432_p3, %p16429_p2 }
  0x31   :  { %16437 = shalt.err (!%p16434_p4)
}
  0x32   :  { %s16438_s10 = scalar_lea.vmem %s106_s26, 96  ;;  %p16443_p6 = scmp.lt.s32.totalorder %s106_s26, %s106_s26 }
  0x33   :  { %p16439_p5 = scmp.ne.s32.totalorder %s106_s26, %s16438_s10  ;;  %p16444_p7 = scmp.lt.s32.totalorder %s16438_s10, %s16438_s10 }
  0x35   :  { %p16445_p8 = por %p16444_p7, %p16443_p6 }
  0x37   :  { %p16446_p9 = pnand %p16445_p8, %p16439_p5 }
  0x39   :  { %16449 = shalt.err (!%p16446_p9)
}
  0x3a   :  { %108 = dma.hbm_to_vmem [thread:$0]  %s21673_s12, 96, %s106_s26, [#allocation12]  }
  0x3b   :  { %s16450_s8 = scalar_lea.hbm %s21676_s15, 48 }
  0x3c   :  { %p16451_p10 = scmp.ne.s32.totalorder %s21676_s15, %s16450_s8  ;;  %p16454_p11 = scmp.lt.u32.totalorder %s16450_s8, %s21676_s15 }
  0x3e   :  { %p16456_p12 = pnand %p16454_p11, %p16451_p10 }
  0x40   :  { %16459 = shalt.err (!%p16456_p12)
}
  0x41   :  { %s16460_s0 = scalar_lea.vmem %s128_s28, 48  ;;  %s16464_s30 = scalar_lea.vmem %s128_s28, 64 }
  0x42   :  { %p16461_p13 = scmp.ne.s32.totalorder %s128_s28, %s16460_s0  ;;  %p16465_p0 = scmp.lt.s32.totalorder %s128_s28, %s128_s28 }
  0x43   :  { %p16466_p1 = scmp.lt.s32.totalorder %s16464_s30, %s16460_s0 }
  0x45   :  { %p16467_p2 = por %p16466_p1, %p16465_p0 }
  0x47   :  { %p16468_p3 = pnand %p16467_p2, %p16461_p13 }
  0x49   :  { %16471 = shalt.err (!%p16468_p3)
}
  0x4a   :  { %130 = dma.hbm_to_vmem [thread:$0]  %s21676_s15, 48, %s128_s28, [#allocation15]  }
  0x4b   :  { %s16596_s20 = smov [#allocation3]   ;;  %s21901_s10 = sld [smem:[#allocation155_spill]] }
  0x4c   :  { %s42_s1 = sshll.u32 %s16596_s20, 4  ;;  %s43_s1 = int_to_ptr.vmem [resolvable:$true] %s42_s1 }
  0x51   :  { %s16472_s22 = scalar_lea.hbm %s21901_s10, 6144 }
  0x52   :  { %p16473_p4 = scmp.ne.s32.totalorder %s21901_s10, %s16472_s22  ;;  %p16476_p5 = scmp.lt.u32.totalorder %s16472_s22, %s21901_s10 }
  0x54   :  { %p16478_p6 = pnand %p16476_p5, %p16473_p4 }
  0x56   :  { %16481 = shalt.err (!%p16478_p6)
}
  0x57   :  { %s16482_s21 = scalar_lea.vmem %s43_s1, 6144  ;;  %p16487_p8 = scmp.lt.s32.totalorder %s43_s1, %s43_s1 }
  0x58   :  { %p16483_p7 = scmp.ne.s32.totalorder %s43_s1, %s16482_s21  ;;  %p16488_p9 = scmp.lt.s32.totalorder %s16482_s21, %s16482_s21 }
  0x5a   :  { %p16489_p10 = por %p16488_p9, %p16487_p8 }
  0x5c   :  { %p16490_p11 = pnand %p16489_p10, %p16483_p7 }
  0x5e   :  { %16493 = shalt.err (!%p16490_p11)
}
  0x5f   :  { %s16597_s15 = smov 384   ;;  %s16598_s28 = smov 24  }
  0x60   :  { %48 = dma.hbm_to_vmem [thread:$0]  %s21901_s10, 6144, %s43_s1, [#allocation4], %s16597_s15, %s16597_s15, %s16598_s28  }
  0x61   :  { %s16599_s29 = smov [#allocation7]   ;;  %s16600_s30 = smov [#allocation10]  }
  0x62   :  { %s72_s0 = sshll.u32 %s16599_s29, 4  ;;  %s95_s12 = sshll.u32 %s16600_s30, 4  ;;  %s73_s0 = int_to_ptr.vmem [resolvable:$true] %s72_s0  ;;  %s96_s12 = int_to_ptr.vmem [resolvable:$true] %s95_s12 }
  0x63   :  { %s16494_s2 = scalar_lea.hbm %s21670_s9, 73728 }
  0x64   :  { %p16495_p12 = scmp.ne.s32.totalorder %s21670_s9, %s16494_s2  ;;  %p16498_p13 = scmp.lt.u32.totalorder %s16494_s2, %s21670_s9 }
  0x66   :  { %p16500_p0 = pnand %p16498_p13, %p16495_p12 }
  0x68   :  { %16503 = shalt.err (!%p16500_p0)
}
  0x69   :  { %s16504_s1 = scalar_lea.vmem %s73_s0, 73728  ;;  %p16509_p2 = scmp.lt.s32.totalorder %s73_s0, %s73_s0 }
  0x6a   :  { %p16505_p1 = scmp.ne.s32.totalorder %s73_s0, %s16504_s1  ;;  %p16510_p3 = scmp.lt.s32.totalorder %s16504_s1, %s16504_s1 }
  0x6c   :  { %p16511_p4 = por %p16510_p3, %p16509_p2 }
  0x6e   :  { %p16512_p5 = pnand %p16511_p4, %p16505_p1 }
  0x70   :  { %16515 = shalt.err (!%p16512_p5)
}
  0x71   :  { %78 = dma.hbm_to_vmem [thread:$0]  %s21670_s9, 73728, %s73_s0, [#allocation6], %s16597_s15, %s16597_s15, %s16598_s28  }
  0x72   :  { %s16516_s18 = scalar_lea.hbm %s21672_s11, 96 }
  0x73   :  { %p16517_p6 = scmp.ne.s32.totalorder %s21672_s11, %s16516_s18  ;;  %p16520_p7 = scmp.lt.u32.totalorder %s16516_s18, %s21672_s11 }
  0x75   :  { %p16522_p8 = pnand %p16520_p7, %p16517_p6 }
  0x77   :  { %16525 = shalt.err (!%p16522_p8)
}
  0x78   :  { %s16526_s20 = scalar_lea.vmem %s96_s12, 96  ;;  %p16531_p10 = scmp.lt.s32.totalorder %s96_s12, %s96_s12 }
  0x79   :  { %p16527_p9 = scmp.ne.s32.totalorder %s96_s12, %s16526_s20  ;;  %p16532_p11 = scmp.lt.s32.totalorder %s16526_s20, %s16526_s20 }
  0x7b   :  { %p16533_p12 = por %p16532_p11, %p16531_p10 }
  0x7d   :  { %p16534_p13 = pnand %p16533_p12, %p16527_p9 }
  0x7f   :  { %16537 = shalt.err (!%p16534_p13)
}
  0x80   :  { %98 = dma.hbm_to_vmem [thread:$0]  %s21672_s11, 96, %s96_s12, [#allocation9]  }
  0x81   :  { %s16601_s28 = smov [#allocation13]   ;;  %s16602_s2 = smov [#allocation16]  }
  0x82   :  { %s117_s0 = sshll.u32 %s16601_s28, 4  ;;  %s137_s23 = sshll.u32 %s16602_s2, 4  ;;  %s118_s0 = int_to_ptr.vmem [resolvable:$true] %s117_s0  ;;  %s138_s23 = int_to_ptr.vmem [resolvable:$true] %s137_s23 }
  0x83   :  { %s16538_s25 = scalar_lea.hbm %s21675_s14, 48 }
  0x84   :  { %p16539_p0 = scmp.ne.s32.totalorder %s21675_s14, %s16538_s25  ;;  %p16542_p1 = scmp.lt.u32.totalorder %s16538_s25, %s21675_s14 }
  0x86   :  { %p16544_p2 = pnand %p16542_p1, %p16539_p0 }
  0x88   :  { %16547 = shalt.err (!%p16544_p2)
}
  0x89   :  { %s16548_s11 = scalar_lea.vmem %s118_s0, 48  ;;  %s16552_s12 = scalar_lea.vmem %s118_s0, 64 }
  0x8a   :  { %p16549_p3 = scmp.ne.s32.totalorder %s118_s0, %s16548_s11  ;;  %p16553_p4 = scmp.lt.s32.totalorder %s118_s0, %s118_s0 }
  0x8b   :  { %p16554_p5 = scmp.lt.s32.totalorder %s16552_s12, %s16548_s11 }
  0x8d   :  { %p16555_p6 = por %p16554_p5, %p16553_p4 }
  0x8f   :  { %p16556_p7 = pnand %p16555_p6, %p16549_p3 }
  0x91   :  { %16559 = shalt.err (!%p16556_p7)
}
  0x92   :  { %120 = dma.hbm_to_vmem [thread:$0]  %s21675_s14, 48, %s118_s0, [#allocation12]  }
  0x93   :  { %s16560_s30 = scalar_lea.hbm %s21677_s16, 48 }
  0x94   :  { %p16561_p8 = scmp.ne.s32.totalorder %s21677_s16, %s16560_s30  ;;  %p16564_p9 = scmp.lt.u32.totalorder %s16560_s30, %s21677_s16 }
  0x96   :  { %p16566_p10 = pnand %p16564_p9, %p16561_p8 }
  0x98   :  { %16569 = shalt.err (!%p16566_p10)
}
  0x99   :  { %s16570_s28 = scalar_lea.vmem %s138_s23, 48  ;;  %s16574_s2 = scalar_lea.vmem %s138_s23, 64 }
  0x9a   :  { %p16571_p11 = scmp.ne.s32.totalorder %s138_s23, %s16570_s28  ;;  %p16575_p12 = scmp.lt.s32.totalorder %s138_s23, %s138_s23 }
  0x9b   :  { %p16576_p13 = scmp.lt.s32.totalorder %s16574_s2, %s16570_s28 }
  0x9d   :  { %p16577_p0 = por %p16576_p13, %p16575_p12 }
  0x9f   :  { %p16578_p1 = pnand %p16577_p0, %p16571_p11 }
  0xa1   :  { %16581 = shalt.err (!%p16578_p1)
}
  0xa2   :  { %140 = dma.hbm_to_vmem [thread:$0]  %s21677_s16, 48, %s138_s23, [#allocation15]  }
  0xa3   :  { %16582 = dma.done.wait [#allocation4], 6144  }
  0xa4   :  { %16583 = vsyncadd [#allocation4], 4294961152 }
  0xa5   :  { %16584 = dma.done.wait [#allocation6], 73744  }
  0xa6   :  { %16585 = vsyncadd [#allocation6], 4294893552 }
  0xa7   :  { %16586 = dma.done.wait [#allocation9], 192  }
  0xa8   :  { %16587 = vsyncadd [#allocation9], 4294967104 }
  0xa9   :  { %16588 = dma.done.wait [#allocation12], 144  }
  0xaa   :  { %16589 = vsyncadd [#allocation12], 4294967152 }
  0xab   :  { %16590 = dma.done.wait [#allocation15], 96  }
  0xac   :  { %16591 = vsyncadd [#allocation15], 4294967200  ;;  %v175_v1 = vlaneseq  ;;  %v21683_v2 = vmov 0.0   ;;  %s21905_s22 = sld [smem:[#allocation152_spill]]  ;;  %s21913_s1 = sld [smem:[#allocation154_spill]]  ;;  %v16870_v24 = vld [vmem:[%s21666_s5] sm:$0xff] }
  0xad   :  { %871 = vmatprep.mubr.f32.mxu0 %v21683_v2  ;;  %942 = vmatprep.mubr.f32.mxu1 %v21683_v2  ;;  %v16875_v25 = vld [vmem:[%s21666_s5 + $0x8] sm:$0xff]  ;;  %v16883_v27 = vld [vmem:[%s21666_s5 + $0x10] sm:$0xff]  ;;  %v16888_v28 = vld [vmem:[%s21665_s4] ss:$0 sm:$0xff]  ;;  %s21926_s4 = sld [smem:[#allocation153_spill]] }
  0xae   :  { %v16822_v3 = vshrl.u32 %v175_v1, 7  ;;  %v16859_v21 = vand.u32 127, %v175_v1  ;;  %v16900_v34 = vld [vmem:[%s21666_s5 + $0x18] sm:$0xff]  ;;  %v16933_v48 = vld [vmem:[%s21666_s5 + $0x20] sm:$0xff]  ;;  %v16964_v0 = vld [vmem:[%s21666_s5 + $0x28] sm:$0xff] }
  0xb0   :  { %21902 = vst [vmem:[#allocation22_spill] sm:$0xff] %v16822_v3  ;;  %v16825_v4 = vsub.s32 0, %v16822_v3  ;;  %v16828_v5 = vsub.s32 1, %v16822_v3  ;;  %v16836_v9 = vsub.s32 2, %v16822_v3  ;;  %v16840_v11 = vsub.s32 3, %v16822_v3  ;;  %21912 = vst [vmem:[#allocation31_spill] sm:$0xff] %v16859_v21 }
  0xb1   :  { %v16844_v13 = vsub.s32 4, %v16822_v3  ;;  %v16848_v15 = vsub.s32 5, %v16822_v3  ;;  %v16852_v17 = vsub.s32 6, %v16822_v3  ;;  %v16856_v19 = vsub.s32 7, %v16822_v3 }
  0xb2   :  { %21903 = vst [vmem:[#allocation23_spill] sm:$0xff] %v16825_v4  ;;  %21904 = vst [vmem:[#allocation24_spill] sm:$0xff] %v16828_v5  ;;  %v173_v6 = vld [vmem:[%s21905_s22] sm:$0xff]  ;;  %v1021_v23 = vld [vmem:[%s21913_s1 + $0x8] sm:$0xff] }
  0xb3   :  { %v180_v7 = vrot.slane %v173_v6, %v16825_v4  ;;  %v191_v8 = vrot.slane %v173_v6, %v16828_v5  ;;  %21906 = vst [vmem:[#allocation25_spill] sm:$0xff] %v16836_v9  ;;  %v202_v10 = vrot.slane %v173_v6, %v16836_v9  ;;  %21907 = vst [vmem:[#allocation26_spill] sm:$0xff] %v16840_v11  ;;  %v1020_v22 = vld [vmem:[%s21913_s1] sm:$0xff]  ;;  %v1022_v26 = vld [vmem:[%s21913_s1 + $0x10] sm:$0xff] }
  0xb4   :  { %v213_v12 = vrot.slane %v173_v6, %v16840_v11  ;;  %21908 = vst [vmem:[#allocation27_spill] sm:$0xff] %v16844_v13  ;;  %v224_v14 = vrot.slane %v173_v6, %v16844_v13  ;;  %21909 = vst [vmem:[#allocation28_spill] sm:$0xff] %v16848_v15  ;;  %v235_v16 = vrot.slane %v173_v6, %v16848_v15  ;;  %v1023_v33 = vld [vmem:[%s21913_s1 + $0x18] sm:$0xff]  ;;  %v1032_v39 = vld [vmem:[%s21913_s1 + $0x60] sm:$0xff] }
  0xb5   :  { %182 = vbcast.lane.b32.xlu0 %v180_v7, 256  ;;  %193 = vbcast.lane.b32.xlu1 %v191_v8, 256  ;;  %21910 = vst [vmem:[#allocation29_spill] sm:$0xff] %v16852_v17  ;;  %v246_v18 = vrot.slane %v173_v6, %v16852_v17  ;;  %21911 = vst [vmem:[#allocation30_spill] sm:$0xff] %v16856_v19  ;;  %v257_v20 = vrot.slane %v173_v6, %v16856_v19  ;;  %v1033_v40 = vld [vmem:[%s21913_s1 + $0x68] sm:$0xff]  ;;  %v1044_v42 = vld [vmem:[%s21913_s1 + $0xc0] sm:$0xff] }
  0xb6   :  { %v1128_v29 = vmul.f32 %v16870_v24, %v1020_v22  ;;  %v1129_v30 = vmul.f32 %v16875_v25, %v1021_v23  ;;  %v1130_v37 = vmul.f32 %v16883_v27, %v1022_v26  ;;  %v1045_v43 = vld [vmem:[%s21913_s1 + $0xc8] sm:$0xff]  ;;  %v1024_v47 = vld [vmem:[%s21913_s1 + $0x20] sm:$0xff]  ;;  %v1131_v51 = vmul.f32 %v16900_v34, %v1023_v33  ;;  %v1034_v53 = vld [vmem:[%s21913_s1 + $0x70] sm:$0xff] }
  0xb7   :  { %v1140_v55 = vmul.f32 %v16870_v24, %v1032_v39  ;;  %v1141_v56 = vmul.f32 %v16875_v25, %v1033_v40  ;;  %v1046_v57 = vld [vmem:[%s21913_s1 + $0xd0] sm:$0xff]  ;;  %v1152_v60 = vmul.f32 %v16870_v24, %v1044_v42  ;;  %v1153_v61 = vmul.f32 %v16875_v25, %v1045_v43  ;;  %v1025_v63 = vld [vmem:[%s21913_s1 + $0x28] sm:$0xff]  ;;  %v1048_v22 = vld [vmem:[%s21913_s1 + $0xe0] sm:$0xff] }
  0xb8   :  { %v1224_v38 = vadd.f32 %v1129_v30, %v1128_v29  ;;  %v1056_v23 = vld [vmem:[%s21913_s1 + $0x120] sm:$0xff]  ;;  %v1154_v30 = vmul.f32 %v16883_v27, %v1046_v57  ;;  %v1057_v33 = vld [vmem:[%s21913_s1 + $0x128] sm:$0xff]  ;;  %v1133_v39 = vmul.f32 %v16964_v0, %v1025_v63 }
  0xb9   :  { %186 = vbcast.lane.b32.xlu0 %v180_v7, 264  ;;  %197 = vbcast.lane.b32.xlu1 %v191_v8, 264  ;;  %v1132_v7 = vmul.f32 %v16933_v48, %v1024_v47  ;;  %v1069_v42 = vld [vmem:[%s21913_s1 + $0x188] sm:$0xff] }
  0xba   :  { %v1225_v52 = vadd.f32 %v1224_v38, %v1130_v37  ;;  %v1049_v47 = vld [vmem:[%s21913_s1 + $0xe8] sm:$0xff] }
  0xbc   :  { %v1226_v8 = vadd.f32 %v1225_v52, %v1131_v51  ;;  %v1058_v52 = vld [vmem:[%s21913_s1 + $0x130] sm:$0xff] }
  0xbd   :  { %204 = vbcast.lane.b32.xlu0 %v202_v10, 256  ;;  %208 = vbcast.lane.b32.xlu1 %v202_v10, 264  ;;  %v1035_v10 = vld [vmem:[%s21913_s1 + $0x78] sm:$0xff] }
  0xbe   :  { %v1227_v40 = vadd.f32 %v1226_v8, %v1132_v7  ;;  %v1165_v7 = vmul.f32 %v16875_v25, %v1057_v33  ;;  %v1080_v8 = vld [vmem:[%s21913_s1 + $0x1e0] sm:$0xff]  ;;  %v1166_v33 = vmul.f32 %v16883_v27, %v1058_v52 }
  0xc0   :  { %v17043_v63 = vadd.f32 %v1227_v40, %v1133_v39  ;;  %v1071_v40 = vld [vmem:[%s21913_s1 + $0x198] sm:$0xff] }
  0xc1   :  { %215 = vbcast.lane.b32.xlu0 %v213_v12, 256  ;;  %219 = vbcast.lane.b32.xlu1 %v213_v12, 264  ;;  %v1047_v12 = vld [vmem:[%s21913_s1 + $0xd8] sm:$0xff] }
  0xc2   :  { %v1155_v51 = vmul.f32 %v16900_v34, %v1047_v12 }
  0xc5   :  { %226 = vbcast.lane.b32.xlu0 %v224_v14, 256  ;;  %230 = vbcast.lane.b32.xlu1 %v224_v14, 264 }
  0xc9   :  { %237 = vbcast.lane.b32.xlu0 %v235_v16, 256  ;;  %241 = vbcast.lane.b32.xlu1 %v235_v16, 264  ;;  %v1036_v16 = vld [vmem:[%s21913_s1 + $0x80] sm:$0xff] }
  0xcd   :  { %248 = vbcast.lane.b32.xlu0 %v246_v18, 256  ;;  %252 = vbcast.lane.b32.xlu1 %v246_v18, 264  ;;  %v1142_v18 = vmul.f32 %v16883_v27, %v1034_v53 }
  0xd1   :  { %259 = vbcast.lane.b32.xlu0 %v257_v20, 256  ;;  %263 = vbcast.lane.b32.xlu1 %v257_v20, 264  ;;  %v1245_v20 = vadd.f32 %v1141_v56, %v1140_v55  ;;  %v1144_v55 = vmul.f32 %v16933_v48, %v1036_v16  ;;  %v17027_v56 = vmul.f32 %v16933_v48, %v1048_v22  ;;  %v1059_v16 = vld [vmem:[%s21913_s1 + $0x138] sm:$0xff]  ;;  %v1092_v22 = vld [vmem:[%s21913_s1 + $0x240] sm:$0xff] }
 0x127   :  { %v183_v31 = vpop.permute.xlu0 %182  ;;  %v194_v32 = vpop.permute.xlu1 %193 }
 0x128   :  { %vm265_vm0 = vcmp.eq.s32.totalorder %v16859_v21, %v183_v31  ;;  %vm267_vm1 = vcmp.eq.s32.totalorder %v16859_v21, %v194_v32  ;;  %v1265_v31 = vadd.f32 %v1153_v61, %v1152_v60  ;;  %v1070_v60 = vld [vmem:[%s21913_s1 + $0x190] sm:$0xff] }
 0x129   :  { %v16903_v35 = vsel %vm265_vm0, 1.0, %v21683_v2  ;;  %v16906_v36 = vsel %vm267_vm1, 1.0, %v21683_v2  ;;  %vm394_vm0 = vcmask 130112   ;;  %vm459_vm1 = vcmask 1041409  }
 0x12a   :  { %v320_v41 = vmul.f32 %v16888_v28, %v16903_v35  ;;  %v322_v46 = vmul.f32 %v16888_v28, %v16906_v36  ;;  %v1266_v57 = vadd.f32 %v1265_v31, %v1154_v30  ;;  %v17069_v31 = vmul.f32 %v16964_v0, %v1049_v47 }
 0x12b   :  { %v187_v44 = vpop.permute.xlu0 %186  ;;  %v198_v45 = vpop.permute.xlu1 %197 }
 0x12c   :  { %vm266_vm2 = vcmp.eq.s32.totalorder %v16859_v21, %v187_v44  ;;  %336 = vadd.xlane.f32.xlu0 %v320_v41  ;;  %vm268_vm3 = vcmp.eq.s32.totalorder %v16859_v21, %v198_v45  ;;  %v1068_v41 = vld [vmem:[%s21913_s1 + $0x180] sm:$0xff]  ;;  %v1037_v44 = vld [vmem:[%s21913_s1 + $0x88] sm:$0xff]  ;;  %v1143_v45 = vmul.f32 %v16900_v34, %v1035_v10 }
 0x12d   :  { %v16936_v49 = vsel %vm266_vm2, 1.0, %v21683_v2  ;;  %v16939_v50 = vsel %vm268_vm3, 1.0, %v21683_v2  ;;  %v1081_v10 = vld [vmem:[%s21913_s1 + $0x1e8] sm:$0xff]  ;;  %v17066_v30 = vmul.f32 %v16964_v0, %v1037_v44  ;;  %v1178_v44 = vmul.f32 %v16883_v27, %v1070_v60 }
 0x12e   :  { %v321_v54 = vmul.f32 %v16888_v28, %v16936_v49  ;;  %v323_v62 = vmul.f32 %v16888_v28, %v16939_v50  ;;  %v1189_v52 = vmul.f32 %v16875_v25, %v1081_v10  ;;  %vm461_vm2 = vcmask 1042434  }
 0x12f   :  { %v205_v58 = vpop.permute.xlu0 %204  ;;  %v209_v59 = vpop.permute.xlu1 %208  ;;  %vm463_vm3 = vcmask 1043459  }
 0x130   :  { %vm269_vm4 = vcmp.eq.s32.totalorder %v16859_v21, %v205_v58  ;;  %340 = vadd.xlane.f32.xlu0 %v322_v46  ;;  %338 = vadd.xlane.f32.xlu1 %v321_v54  ;;  %vm270_vm5 = vcmp.eq.s32.totalorder %v16859_v21, %v209_v59  ;;  %v1246_v46 = vadd.f32 %v1245_v20, %v1142_v18 }
 0x131   :  { %v16967_v1 = vsel %vm269_vm4, 1.0, %v21683_v2  ;;  %v16970_v6 = vsel %vm270_vm5, 1.0, %v21683_v2  ;;  %v1164_v58 = vmul.f32 %v16870_v24, %v1056_v23  ;;  %v1176_v18 = vmul.f32 %v16870_v24, %v1068_v41  ;;  %v1093_v23 = vld [vmem:[%s21913_s1 + $0x248] sm:$0xff] }
 0x132   :  { %21914 = vst [vmem:[#allocation32_spill] sm:$0xff] %v16970_v6  ;;  %v324_v14 = vmul.f32 %v16888_v28, %v16967_v1  ;;  %v325_v32 = vmul.f32 %v16888_v28, %v16970_v6  ;;  %v1177_v20 = vmul.f32 %v16875_v25, %v1069_v42  ;;  %v1201_v10 = vmul.f32 %v16875_v25, %v1093_v23  ;;  %v1083_v23 = vld [vmem:[%s21913_s1 + $0x1f8] sm:$0xff] }
 0x133   :  { %v216_v26 = vpop.permute.xlu0 %215  ;;  %v220_v29 = vpop.permute.xlu1 %219  ;;  %vm465_vm4 = vcmask 1044484   ;;  %vm467_vm5 = vcmask 1045509  }
 0x134   :  { %vm271_vm6 = vcmp.eq.s32.totalorder %v16859_v21, %v216_v26  ;;  %342 = vadd.xlane.f32.xlu0 %v323_v62  ;;  %344 = vadd.xlane.f32.xlu1 %v324_v14  ;;  %vm272_vm7 = vcmp.eq.s32.totalorder %v16859_v21, %v220_v29  ;;  %v1247_v14 = vadd.f32 %v1246_v46, %v1143_v45  ;;  %v1082_v45 = vld [vmem:[%s21913_s1 + $0x1f0] sm:$0xff] }
 0x135   :  { %v17000_v37 = vsel %vm271_vm6, 1.0, %v21683_v2  ;;  %v17003_v38 = vsel %vm272_vm7, 1.0, %v21683_v2  ;;  %v1305_v47 = vadd.f32 %v1177_v20, %v1176_v18  ;;  %v1060_v18 = vld [vmem:[%s21913_s1 + $0x140] sm:$0xff]  ;;  %vm469_vm6 = vcmask 1046534  }
 0x136   :  { %21915 = vst [vmem:[#allocation33_spill] sm:$0xff] %v17000_v37  ;;  %21916 = vst [vmem:[#allocation34_spill] sm:$0xff] %v17003_v38  ;;  %v326_v43 = vmul.f32 %v16888_v28, %v17000_v37  ;;  %v327_v59 = vmul.f32 %v16888_v28, %v17003_v38  ;;  %v1248_v60 = vadd.f32 %v1247_v14, %v1144_v55  ;;  %v1072_v20 = vld [vmem:[%s21913_s1 + $0x1a0] sm:$0xff]  ;;  %vm471_vm7 = vcmask 1047559  }
 0x137   :  { %v227_v53 = vpop.permute.xlu0 %226  ;;  %v231_v54 = vpop.permute.xlu1 %230 }
 0x138   :  { %vm273_vm8 = vcmp.eq.s32.totalorder %v16859_v21, %v227_v53  ;;  %346 = vadd.xlane.f32.xlu0 %v325_v32  ;;  %348 = vadd.xlane.f32.xlu1 %v326_v43  ;;  %vm274_vm9 = vcmp.eq.s32.totalorder %v16859_v21, %v231_v54  ;;  %v1267_v32 = vadd.f32 %v1266_v57, %v1155_v51  ;;  %v1094_v53 = vld [vmem:[%s21913_s1 + $0x250] sm:$0xff]  ;;  %v1104_v54 = vld [vmem:[%s21913_s1 + $0x2a0] sm:$0xff]  ;;  %v1105_v57 = vld [vmem:[%s21913_s1 + $0x2a8] sm:$0xff] }
 0x139   :  { %v17038_v61 = vsel %vm273_vm8, 1.0, %v21683_v2  ;;  %v17041_v62 = vsel %vm274_vm9, 1.0, %v21683_v2  ;;  %v1285_v43 = vadd.f32 %v1165_v7, %v1164_v58  ;;  %v1188_v51 = vmul.f32 %v16870_v24, %v1080_v8 }
 0x13a   :  { %21917 = vst [vmem:[#allocation35_spill] sm:$0xff] %v17038_v61  ;;  %21918 = vst [vmem:[#allocation36_spill] sm:$0xff] %v17041_v62  ;;  %v328_v12 = vmul.f32 %v16888_v28, %v17038_v61  ;;  %v329_v39 = vmul.f32 %v16888_v28, %v17041_v62  ;;  %v1167_v7 = vmul.f32 %v16900_v34, %v1059_v16  ;;  %vm475_vm9 = vcmask 130048   ;;  %v1115_v61 = vld [vmem:[%s21913_s1 + $0x2f8] sm:$0x3] }
 0x13b   :  { %v238_v26 = vpop.permute.xlu0 %237  ;;  %v242_v29 = vpop.permute.xlu1 %241  ;;  %v1200_v8 = vmul.f32 %v16870_v24, %v1092_v22  ;;  %v1286_v16 = vadd.f32 %v1285_v43, %v1166_v33  ;;  %v1179_v22 = vmul.f32 %v16900_v34, %v1071_v40  ;;  %v1095_v33 = vld [vmem:[%s21913_s1 + $0x258] sm:$0xff]  ;;  %v1106_v43 = vld [vmem:[%s21913_s1 + $0x2b0] sm:$0xff] }
 0x13c   :  { %vm275_vm10 = vcmp.eq.s32.totalorder %v16859_v21, %v238_v26  ;;  %350 = vadd.xlane.f32.xlu0 %v327_v59  ;;  %352 = vadd.xlane.f32.xlu1 %v328_v12  ;;  %vm276_vm11 = vcmp.eq.s32.totalorder %v16859_v21, %v242_v29  ;;  %v1306_v29 = vadd.f32 %v1305_v47, %v1178_v44  ;;  %v21923_v47 = vmov 0.0  }
 0x13d   :  { %v17080_v41 = vsel %vm275_vm10, 1.0, %v21683_v2  ;;  %v17083_v42 = vsel %vm276_vm11, 1.0, %v21683_v2  ;;  %v1213_v44 = vmul.f32 %v16875_v25, %v1105_v57  ;;  %v1168_v25 = vmul.f32 %v16933_v48, %v1060_v18  ;;  %v1084_v57 = vld [vmem:[%s21913_s1 + $0x200] sm:$0xff] }
 0x13e   :  { %21919 = vst [vmem:[#allocation37_spill] sm:$0xff] %v17080_v41  ;;  %21920 = vst [vmem:[#allocation38_spill] sm:$0xff] %v17083_v42  ;;  %v330_v46 = vmul.f32 %v16888_v28, %v17080_v41  ;;  %v331_v12 = vmul.f32 %v16888_v28, %v17083_v42  ;;  %v1212_v42 = vmul.f32 %v16870_v24, %v1104_v54  ;;  %v1061_v24 = vld [vmem:[%s21913_s1 + $0x148] sm:$0xff]  ;;  %vm1231_vm10 = vcmask 1041408   ;;  %v1114_v41 = vld [vmem:[%s21913_s1 + $0x2f0] sm:$0x3] }
 0x13f   :  { %v249_v58 = vpop.permute.xlu0 %248  ;;  %v253_v59 = vpop.permute.xlu1 %252  ;;  %v1073_v54 = vld [vmem:[%s21913_s1 + $0x1a8] sm:$0xff]  ;;  %v1307_v18 = vadd.f32 %v1306_v29, %v1179_v22  ;;  %vm1488_vm11 = vcmask 15360  }
 0x140   :  { %vm277_vm12 = vcmp.eq.s32.totalorder %v16859_v21, %v249_v58  ;;  %354 = vadd.xlane.f32.xlu0 %v329_v39  ;;  %356 = vadd.xlane.f32.xlu1 %v330_v46  ;;  %vm278_vm13 = vcmp.eq.s32.totalorder %v16859_v21, %v253_v59  ;;  %v1190_v39 = vmul.f32 %v16883_v27, %v1082_v45  ;;  %v1085_v22 = vld [vmem:[%s21913_s1 + $0x208] sm:$0xff] }
 0x141   :  { %v17113_v55 = vsel %vm277_vm12, 1.0, %v21683_v2  ;;  %v17116_v14 = vsel %vm278_vm13, 1.0, %v21683_v2  ;;  %v1325_v46 = vadd.f32 %v1189_v52, %v1188_v51  ;;  %v1202_v59 = vmul.f32 %v16883_v27, %v1094_v53 }
 0x142   :  { %21921 = vst [vmem:[#allocation39_spill] sm:$0xff] %v17113_v55  ;;  %21922 = vst [vmem:[#allocation40_spill] sm:$0xff] %v17116_v14  ;;  %v332_v26 = vmul.f32 %v16888_v28, %v17113_v55  ;;  %v1345_v2 = vadd.f32 %v1201_v10, %v1200_v8  ;;  %v333_v45 = vmul.f32 %v16888_v28, %v17116_v14  ;;  %v1113_v55 = vld [vmem:[%s21913_s1 + $0x2e8] sm:$0x3]  ;;  %vm2113_vm12 = vcmask 39952  }
 0x143   :  { %v260_v40 = vpop.permute.xlu0 %259  ;;  %v264_v58 = vpop.permute.xlu1 %263  ;;  %v1268_v53 = vadd.f32 %v1267_v32, %v17027_v56  ;;  %v1287_v10 = vadd.f32 %v1286_v16, %v1167_v7  ;;  %v1180_v56 = vmul.f32 %v16933_v48, %v1072_v20  ;;  %v1191_v32 = vmul.f32 %v16900_v34, %v1083_v23 }
 0x144   :  { %vm279_vm14 = vcmp.eq.s32.totalorder %v16859_v21, %v260_v40  ;;  %358 = vadd.xlane.f32.xlu0 %v331_v12  ;;  %360 = vadd.xlane.f32.xlu1 %v332_v26  ;;  %vm280_vm15 = vcmp.eq.s32.totalorder %v16859_v21, %v264_v58  ;;  %v1096_v12 = vld [vmem:[%s21913_s1 + $0x260] sm:$0xff]  ;;  %v1326_v26 = vadd.f32 %v1325_v46, %v1190_v39  ;;  %v1107_v58 = vld [vmem:[%s21913_s1 + $0x2b8] sm:$0xff]  ;;  %vm2965_vm13 = vcmask 80936  }
 0x145   :  { %v17142_v51 = vsel %vm279_vm14, 1.0, %v21923_v47  ;;  %v17145_v52 = vsel %vm280_vm15, 1.0, %v21923_v47  ;;  %v1203_v40 = vmul.f32 %v16900_v34, %v1095_v33  ;;  %v1214_v47 = vmul.f32 %v16883_v27, %v1106_v43 }
 0x146   :  { %21924 = vst [vmem:[#allocation41_spill] sm:$0xff] %v17142_v51  ;;  %21925 = vst [vmem:[#allocation42_spill] sm:$0xff] %v17145_v52  ;;  %v334_v8 = vmul.f32 %v16888_v28, %v17142_v51  ;;  %v335_v7 = vmul.f32 %v16888_v28, %v17145_v52  ;;  %v1346_v16 = vadd.f32 %v1345_v2, %v1202_v59  ;;  %v1097_v28 = vld [vmem:[%s21913_s1 + $0x268] sm:$0xff]  ;;  %v1108_v2 = vld [vmem:[%s21913_s1 + $0x2c0] sm:$0xff]  ;;  %vm3132_vm14 = vcmask 89112  }
 0x147   :  { %v1365_v20 = vadd.f32 %v1213_v44, %v1212_v42  ;;  %v1249_v23 = vadd.f32 %v1248_v60, %v17066_v30  ;;  %v1269_v29 = vadd.f32 %v1268_v53, %v17069_v31  ;;  %v1169_v39 = vmul.f32 %v16964_v0, %v1061_v24 }
 0x148   :  { %362 = vadd.xlane.f32.xlu0 %v333_v45  ;;  %364 = vadd.xlane.f32.xlu1 %v334_v8  ;;  %v1181_v46 = vmul.f32 %v16964_v0, %v1073_v54  ;;  %v1192_v27 = vmul.f32 %v16933_v48, %v1084_v57  ;;  %v1288_v30 = vadd.f32 %v1287_v10, %v1168_v25  ;;  %v1109_v45 = vld [vmem:[%s21913_s1 + $0x2c8] sm:$0xff]  ;;  %vm2255_vm15 = vcmask 23552  }
 0x149   :  { %v1308_v42 = vadd.f32 %v1307_v18, %v1180_v56  ;;  %v1327_v60 = vadd.f32 %v1326_v26, %v1191_v32  ;;  %v1204_v33 = vmul.f32 %v16933_v48, %v1096_v12  ;;  %v1347_v31 = vadd.f32 %v1346_v16, %v1203_v40 }
 0x14a   :  { %v1215_v43 = vmul.f32 %v16900_v34, %v1107_v58  ;;  %v1366_v59 = vadd.f32 %v1365_v20, %v1214_v47  ;;  %v1193_v44 = vmul.f32 %v16964_v0, %v1085_v22  ;;  %v1289_v53 = vadd.f32 %v1288_v30, %v1169_v39 }
 0x14b   :  { %v1309_v24 = vadd.f32 %v1308_v42, %v1181_v46  ;;  %v1205_v25 = vmul.f32 %v16964_v0, %v1097_v28  ;;  %v1216_v54 = vmul.f32 %v16933_v48, %v1108_v2  ;;  %v1328_v57 = vadd.f32 %v1327_v60, %v1192_v27  ;;  %v12958_v48 = vld [vmem:[%s21667_s6] ss:$0 sm:$0xff] }
 0x14c   :  { %366 = vadd.xlane.f32.xlu0 %v335_v7  ;;  %1229 = vadd.xlane.f32.xlu1 %v17043_v63  ;;  %v1348_v63 = vadd.f32 %v1347_v31, %v1204_v33  ;;  %v1367_v8 = vadd.f32 %v1366_v59, %v1215_v43  ;;  %v1217_v34 = vmul.f32 %v16964_v0, %v1109_v45  ;;  %v16604_v12 = vmov 0  }
 0x14d   :  { %v1329_v47 = vadd.f32 %v1328_v57, %v1193_v44  ;;  %14738 = vset.pattern.permute.xlu1 %v16604_v12  ;;  %14737 = vset.pattern.permute.xlu0 %v16604_v12  ;;  %v389_v22 = vadd.s32 4294967288, %v16859_v21  ;;  %v17202_v46 = vsub.s32 %v16859_v21, %v16822_v3 }
 0x14e   :  { %v1349_v10 = vadd.f32 %v1348_v63, %v1205_v25  ;;  %v1368_v56 = vadd.f32 %v1367_v8, %v1216_v54 }
 0x14f   :  { %v17205_v27 = vsub.s32 %v389_v22, %v16822_v3 }
 0x150   :  { %1250 = vadd.xlane.f32.xlu0 %v1249_v23  ;;  %1270 = vadd.xlane.f32.xlu1 %v1269_v29  ;;  %v1369_v32 = vadd.f32 %v1368_v56, %v1217_v34  ;;  %v174_v56 = vld [vmem:[%s21926_s4] sm:$0xff] }
 0x151   :  { %vm368_vm8 = vcmp.eq.f32.partialorder %v174_v56, 0.0 }
 0x154   :  { %1290 = vadd.xlane.f32.xlu0 %v1289_v53  ;;  %1310 = vadd.xlane.f32.xlu1 %v1309_v24 }
 0x158   :  { %1330 = vadd.xlane.f32.xlu0 %v1329_v47  ;;  %1350 = vadd.xlane.f32.xlu1 %v1349_v10 }
 0x15c   :  { %1370 = vadd.xlane.f32.xlu0 %v1369_v32 }
 0x169   :  { %1392 = vbcast.lane.b32.xlu1 %v12958_v48, 256 }
 0x1b9   :  { %v337_v18 = vpop.xlane.xlu0 %336 }
 0x1ba   :  { %v388_v44 = vrot.slane %v337_v18, %v17202_v46 }
 0x1bd   :  { %v339_v26 = vpop.xlane.xlu1 %338  ;;  %v341_v0 = vpop.xlane.xlu0 %340 }
 0x1be   :  { %v399_v28 = vrot.slane %v341_v0, %v17202_v46  ;;  %v393_v33 = vrot.slane %v339_v26, %v17205_v27 }
 0x1c0   :  { %v395_v8 = vsel %vm394_vm0, %v393_v33, %v388_v44 }
 0x1c1   :  { %v345_v40 = vpop.xlane.xlu1 %344  ;;  %v343_v58 = vpop.xlane.xlu0 %342 }
 0x1c2   :  { %v403_v2 = vrot.slane %v343_v58, %v17205_v27  ;;  %v408_v43 = vrot.slane %v345_v40, %v17202_v46 }
 0x1c4   :  { %v404_v45 = vsel %vm394_vm0, %v403_v2, %v399_v28 }
 0x1c5   :  { %v349_v7 = vpop.xlane.xlu1 %348  ;;  %v347_v16 = vpop.xlane.xlu0 %346  ;;  %v460_v32 = vsel %vm459_vm1, %v404_v45, %v395_v8  ;;  %v17273_v8 = vld [vmem:[%s21666_s5 + $0x38] sm:$0x3] }
 0x1c6   :  { %v412_v30 = vrot.slane %v347_v16, %v17205_v27  ;;  %v417_v53 = vrot.slane %v349_v7, %v17202_v46 }
 0x1c8   :  { %v413_v25 = vsel %vm394_vm0, %v412_v30, %v408_v43 }
 0x1c9   :  { %v353_v20 = vpop.xlane.xlu1 %352  ;;  %v351_v23 = vpop.xlane.xlu0 %350  ;;  %v462_v18 = vsel %vm461_vm2, %v413_v25, %v460_v32  ;;  %v1038_v25 = vld [vmem:[%s21913_s1 + $0x90] sm:$0x3] }
 0x1ca   :  { %v421_v31 = vrot.slane %v351_v23, %v17205_v27  ;;  %v426_v54 = vrot.slane %v353_v20, %v17202_v46 }
 0x1cc   :  { %v422_v34 = vsel %vm394_vm0, %v421_v31, %v417_v53 }
 0x1cd   :  { %v357_v29 = vpop.xlane.xlu1 %356  ;;  %v355_v39 = vpop.xlane.xlu0 %354  ;;  %v464_v0 = vsel %vm463_vm3, %v422_v34, %v462_v18  ;;  %v1040_v34 = vld [vmem:[%s21913_s1 + $0xa0] sm:$0x3] }
 0x1ce   :  { %v430_v59 = vrot.slane %v355_v39, %v17205_v27  ;;  %v435_v47 = vrot.slane %v357_v29, %v17202_v46  ;;  %v17292_v18 = vld [vmem:[%s21666_s5 + $0x40] sm:$0x3] }
 0x1d0   :  { %v431_v48 = vsel %vm394_vm0, %v430_v59, %v426_v54  ;;  %v1039_v54 = vld [vmem:[%s21913_s1 + $0x98] sm:$0x3] }
 0x1d1   :  { %v361_v42 = vpop.xlane.xlu1 %360  ;;  %v359_v60 = vpop.xlane.xlu0 %358  ;;  %v466_v16 = vsel %vm465_vm4, %v431_v48, %v464_v0  ;;  %v1147_v32 = vmul.f32 %v17273_v8, %v1039_v54  ;;  %v1063_v48 = vld [vmem:[%s21913_s1 + $0x158] sm:$0x3]  ;;  %v1064_v0 = vld [vmem:[%s21913_s1 + $0x160] sm:$0x3] }
 0x1d2   :  { %v439_v24 = vrot.slane %v359_v60, %v17205_v27  ;;  %v444_v12 = vrot.slane %v361_v42, %v17202_v46  ;;  %v1172_v54 = vmul.f32 %v17292_v18, %v1064_v0  ;;  %v1043_v0 = vld [vmem:[%s21913_s1 + $0xb8] sm:$0x3] }
 0x1d4   :  { %v440_v26 = vsel %vm394_vm0, %v439_v24, %v435_v47  ;;  %v1062_v47 = vld [vmem:[%s21913_s1 + $0x150] sm:$0x3] }
 0x1d5   :  { %v365_v57 = vpop.xlane.xlu1 %364  ;;  %v363_v63 = vpop.xlane.xlu0 %362  ;;  %v468_v22 = vsel %vm467_vm5, %v440_v26, %v466_v16  ;;  %v1041_v26 = vld [vmem:[%s21913_s1 + $0xa8] sm:$0x3]  ;;  %v1253_v16 = vsel %vm1231_vm10, %v1147_v32, 0.0 }
 0x1d6   :  { %v448_v10 = vrot.slane %v363_v63, %v17205_v27  ;;  %v453_v20 = vrot.slane %v365_v57, %v17202_v46  ;;  %v17268_v63 = vld [vmem:[%s21666_s5 + $0x30] sm:$0x3] }
 0x1d7   :  { %v1146_v56 = vmul.f32 %v17268_v63, %v1038_v25 }
 0x1d8   :  { %v449_v40 = vsel %vm394_vm0, %v448_v10, %v444_v12 }
 0x1d9   :  { %v1230_v58 = vpop.xlane.xlu1 %1229  ;;  %v367_v7 = vpop.xlane.xlu0 %366  ;;  %v470_v39 = vsel %vm469_vm6, %v449_v40, %v468_v22  ;;  %v17304_v40 = vld [vmem:[%s21666_s5 + $0x48] sm:$0x3]  ;;  %v1087_v22 = vld [vmem:[%s21913_s1 + $0x218] sm:$0x3] }
 0x1da   :  { %v457_v23 = vrot.slane %v367_v7, %v17205_v27  ;;  %v1252_v7 = vsel %vm1231_vm10, %v1146_v56, 0.0 }
 0x1dc   :  { %v458_v29 = vsel %vm394_vm0, %v457_v23, %v453_v20  ;;  %v1170_v20 = vmul.f32 %v17268_v63, %v1062_v47  ;;  %v1086_v23 = vld [vmem:[%s21913_s1 + $0x210] sm:$0x3] }
 0x1dd   :  { %v1271_v28 = vpop.xlane.xlu1 %1270  ;;  %v472_v2 = vsel %vm471_vm7, %v458_v29, %v470_v39  ;;  %v1251_v31 = vpop.xlane.xlu0 %1250  ;;  %v1171_v39 = vmul.f32 %v17273_v8, %v1063_v48  ;;  %v1110_v47 = vld [vmem:[%s21913_s1 + $0x2d0] sm:$0x3]  ;;  %v1194_v48 = vmul.f32 %v17268_v63, %v1086_v23  ;;  %v17364_v23 = vld [vmem:[%s21666_s5 + $0x58] sm:$0x3] }
 0x1de   :  { %v17241_v30 = vsel %vm368_vm8, -1e+30, %v472_v2  ;;  %v1042_v2 = vld [vmem:[%s21913_s1 + $0xb0] sm:$0x3]  ;;  %v1218_v21 = vmul.f32 %v17268_v63, %v1110_v47  ;;  %vm2548_vm8 = vcmask 1042432  }
 0x1df   :  { %v476_v42 = vsel %vm475_vm9, %v17241_v30, -inf  ;;  %v1293_v32 = vsel %vm1231_vm10, %v1171_v39, 0.0 }
 0x1e0   :  { %477 = vmax.xlane.f32.xlu0 %v476_v42  ;;  %v1149_v42 = vmul.f32 %v17304_v40, %v1041_v26  ;;  %v1195_v26 = vmul.f32 %v17273_v8, %v1087_v22 }
 0x1e1   :  { %v1311_v60 = vpop.xlane.xlu1 %1310  ;;  %v1291_v45 = vpop.xlane.xlu0 %1290 }
 0x1e5   :  { %v1351_v33 = vpop.xlane.xlu1 %1350  ;;  %v1331_v10 = vpop.xlane.xlu0 %1330 }
 0x1e9   :  { %v1393_v43 = vpop.permute.xlu1 %1392 }
 0x1ea   :  { %v17245_v59 = vadd.f32 %v1393_v43, %v1251_v31  ;;  %v17248_v44 = vadd.f32 %v1393_v43, %v1271_v28  ;;  %v17251_v53 = vadd.f32 %v1393_v43, %v1291_v45  ;;  %v17254_v24 = vadd.f32 %v1393_v43, %v1230_v58  ;;  %v1371_v28 = vpop.xlane.xlu0 %1370  ;;  %v1065_v31 = vld [vmem:[%s21913_s1 + $0x168] sm:$0x3]  ;;  %v17333_v45 = vld [vmem:[%s21666_s5 + $0x50] sm:$0x3] }
 0x1eb   :  { %v17263_v57 = vadd.f32 %v1393_v43, %v1311_v60  ;;  %v17287_v12 = vadd.f32 %v1393_v43, %v1331_v10  ;;  %v1148_v58 = vmul.f32 %v17292_v18, %v1040_v34  ;;  %v17316_v29 = vadd.f32 %v1393_v43, %v1351_v33  ;;  %v1088_v33 = vld [vmem:[%s21913_s1 + $0x220] sm:$0x3]  ;;  %v1111_v10 = vld [vmem:[%s21913_s1 + $0x2d8] sm:$0x3] }
 0x1ec   :  { %1428 = vperm.xlu1 %14738, %v17245_v59   ;;  %v1254_v60 = vadd.f32 %v1253_v16, %v1252_v7  ;;  %v1292_v34 = vsel %vm1231_vm10, %v1170_v20, 0.0  ;;  %v17344_v56 = vadd.f32 %v1393_v43, %v1371_v28  ;;  %v1150_v7 = vmul.f32 %v17333_v45, %v1042_v2  ;;  %v1089_v20 = vld [vmem:[%s21913_s1 + $0x228] sm:$0x3]  ;;  %v1112_v2 = vld [vmem:[%s21913_s1 + $0x2e0] sm:$0x3] }
 0x1ed   :  { %v1255_v25 = vsel %vm1231_vm10, %v1148_v58, 0.0  ;;  %v1066_v58 = vld [vmem:[%s21913_s1 + $0x170] sm:$0x3]  ;;  %v1257_v16 = vsel %vm1231_vm10, %v1149_v42, 0.0  ;;  %v1173_v22 = vmul.f32 %v17304_v40, %v1065_v31  ;;  %v1294_v39 = vadd.f32 %v1293_v32, %v1292_v34 }
 0x1ee   :  { %v1256_v43 = vadd.f32 %v1255_v25, %v1254_v60  ;;  %v1295_v28 = vsel %vm1231_vm10, %v1172_v54, 0.0  ;;  %v1196_v3 = vmul.f32 %v17292_v18, %v1088_v33  ;;  %v1026_v42 = vld [vmem:[%s21913_s1 + $0x30] sm:$0x3]  ;;  %v1332_v60 = vsel %vm1231_vm10, %v1194_v48, 0.0  ;;  %v1027_v33 = vld [vmem:[%s21913_s1 + $0x38] sm:$0x3] }
 0x1ef   :  { %v1333_v25 = vsel %vm1231_vm10, %v1195_v26, 0.0  ;;  %v1219_v31 = vmul.f32 %v17273_v8, %v1111_v10  ;;  %v1067_v54 = vld [vmem:[%s21913_s1 + $0x178] sm:$0x3]  ;;  %v1151_v34 = vmul.f32 %v17364_v23, %v1043_v0  ;;  %v1259_v52 = vsel %vm1231_vm10, %v1150_v7, 0.0  ;;  %v1090_v10 = vld [vmem:[%s21913_s1 + $0x230] sm:$0x3] }
 0x1f0   :  { %1431 = vperm.xlu1 %14738, %v17248_v44   ;;  %v1258_v32 = vadd.f32 %v1257_v16, %v1256_v43  ;;  %v1174_v48 = vmul.f32 %v17333_v45, %v1066_v58  ;;  %v1296_v26 = vadd.f32 %v1295_v28, %v1294_v39  ;;  %v1297_v47 = vsel %vm1231_vm10, %v1173_v22, 0.0  ;;  %v1028_v0 = vld [vmem:[%s21913_s1 + $0x40] sm:$0x3]  ;;  %v1051_v39 = vld [vmem:[%s21913_s1 + $0xf8] sm:$0x3] }
 0x1f1   :  { %v1197_v51 = vmul.f32 %v17304_v40, %v1089_v20  ;;  %v1334_v14 = vadd.f32 %v1333_v25, %v1332_v60  ;;  %v1335_v58 = vsel %vm1231_vm10, %v1196_v3, 0.0  ;;  %v1220_v7 = vmul.f32 %v17292_v18, %v1112_v2  ;;  %v1050_v20 = vld [vmem:[%s21913_s1 + $0xf0] sm:$0x3] }
 0x1f2   :  { %v1372_v43 = vsel %vm1231_vm10, %v1218_v21, 0.0  ;;  %v1373_v16 = vsel %vm1231_vm10, %v1219_v31, 0.0  ;;  %v1134_v22 = vmul.f32 %v17268_v63, %v1026_v42  ;;  %v1135_v28 = vmul.f32 %v17273_v8, %v1027_v33  ;;  %v1091_v42 = vld [vmem:[%s21913_s1 + $0x238] sm:$0x3]  ;;  %v1052_v33 = vld [vmem:[%s21913_s1 + $0x100] sm:$0x3] }
 0x1f3   :  { %v1260_v60 = vadd.f32 %v1259_v52, %v1258_v32  ;;  %v1261_v3 = vsel %vm1231_vm10, %v1151_v34, 0.0  ;;  %v1175_v2 = vmul.f32 %v17364_v23, %v1067_v54  ;;  %v1298_v21 = vadd.f32 %v1297_v47, %v1296_v26  ;;  %v1029_v52 = vld [vmem:[%s21913_s1 + $0x48] sm:$0x3]  ;;  %v1074_v47 = vld [vmem:[%s21913_s1 + $0x1b0] sm:$0x3] }
 0x1f4   :  { %1434 = vperm.xlu1 %14738, %v17251_v53   ;;  %v1299_v25 = vsel %vm1231_vm10, %v1174_v48, 0.0  ;;  %v1336_v31 = vadd.f32 %v1335_v58, %v1334_v14  ;;  %v1374_v62 = vadd.f32 %v1373_v16, %v1372_v43  ;;  %v1198_v54 = vmul.f32 %v17333_v45, %v1090_v10  ;;  %v1075_v58 = vld [vmem:[%s21913_s1 + $0x1b8] sm:$0x3] }
 0x1f5   :  { %v1337_v34 = vsel %vm1231_vm10, %v1197_v51, 0.0  ;;  %v1221_v32 = vmul.f32 %v17304_v40, %v1113_v55  ;;  %v1375_v14 = vsel %vm1231_vm10, %v1220_v7, 0.0  ;;  %v1136_v48 = vmul.f32 %v17292_v18, %v1028_v0  ;;  %v1030_v0 = vld [vmem:[%s21913_s1 + $0x50] sm:$0x3] }
 0x1f6   :  { %1425 = vperm.xlu0 %14737, %v17254_v24   ;;  %v1232_v26 = vsel %vm1231_vm10, %v1134_v22, 0.0  ;;  %v1233_v10 = vsel %vm1231_vm10, %v1135_v28, 0.0  ;;  %v1262_v43 = vadd.f32 %v1261_v3, %v1260_v60  ;;  %v1158_v51 = vmul.f32 %v17268_v63, %v1050_v20  ;;  %v1053_v28 = vld [vmem:[%s21913_s1 + $0x108] sm:$0x3] }
 0x1f7   :  { %v1159_v55 = vmul.f32 %v17273_v8, %v1051_v39  ;;  %v1300_v7 = vadd.f32 %v1299_v25, %v1298_v21  ;;  %v1301_v16 = vsel %vm1231_vm10, %v1175_v2, 0.0  ;;  %v1338_v22 = vadd.f32 %v1337_v34, %v1336_v31 }
 0x1f8   :  { %1437 = vperm.xlu1 %14738, %v17263_v57   ;;  %v1376_v38 = vadd.f32 %v1375_v14, %v1374_v62  ;;  %v1199_v20 = vmul.f32 %v17364_v23, %v1091_v42  ;;  %v1339_v39 = vsel %vm1231_vm10, %v1198_v54, 0.0  ;;  %v1222_v60 = vmul.f32 %v17333_v45, %v1114_v41  ;;  %v1076_v62 = vld [vmem:[%s21913_s1 + $0x1c0] sm:$0x3] }
 0x1f9   :  { %v1377_v3 = vsel %vm1231_vm10, %v1221_v32, 0.0  ;;  %v1137_v2 = vmul.f32 %v17304_v40, %v1029_v52  ;;  %v1234_v21 = vadd.f32 %v1233_v10, %v1232_v26  ;;  %v1235_v25 = vsel %vm1231_vm10, %v1136_v48, 0.0  ;;  %v1098_v52 = vld [vmem:[%s21913_s1 + $0x270] sm:$0x3]  ;;  %v1031_v32 = vld [vmem:[%s21913_s1 + $0x58] sm:$0x3] }
 0x1fa   :  { %v1160_v31 = vmul.f32 %v17292_v18, %v1052_v33  ;;  %v1272_v34 = vsel %vm1231_vm10, %v1158_v51, 0.0  ;;  %v1273_v42 = vsel %vm1231_vm10, %v1159_v55, 0.0  ;;  %v1182_v54 = vmul.f32 %v17268_v63, %v1074_v47  ;;  %v1099_v33 = vld [vmem:[%s21913_s1 + $0x278] sm:$0x3] }
 0x1fb   :  { %v1183_v41 = vmul.f32 %v17273_v8, %v1075_v58  ;;  %v1302_v14 = vadd.f32 %v1301_v16, %v1300_v7  ;;  %v1340_v48 = vadd.f32 %v1339_v39, %v1338_v22  ;;  %v1378_v26 = vadd.f32 %v1377_v3, %v1376_v38  ;;  %v1054_v58 = vld [vmem:[%s21913_s1 + $0x110] sm:$0x3]  ;;  %v1077_v38 = vld [vmem:[%s21913_s1 + $0x1c8] sm:$0x3] }
 0x1fc   :  { %1440 = vperm.xlu1 %14738, %v17287_v12   ;;  %v1138_v47 = vmul.f32 %v17333_v45, %v1030_v0  ;;  %v1341_v10 = vsel %vm1231_vm10, %v1199_v20, 0.0  ;;  %v1223_v51 = vmul.f32 %v17364_v23, %v1115_v61  ;;  %v1379_v55 = vsel %vm1231_vm10, %v1222_v60, 0.0  ;;  %v1100_v20 = vld [vmem:[%s21913_s1 + $0x280] sm:$0x3] }
 0x1fd   :  { %v1236_v37 = vadd.f32 %v1235_v25, %v1234_v21  ;;  %v1237_v6 = vsel %vm1231_vm10, %v1137_v2, 0.0  ;;  %v1274_v7 = vadd.f32 %v1273_v42, %v1272_v34  ;;  %v1275_v0 = vsel %vm1231_vm10, %v1160_v31, 0.0  ;;  %v1055_v21 = vld [vmem:[%s21913_s1 + $0x118] sm:$0x3] }
 0x1fe   :  { %v1184_v16 = vmul.f32 %v17292_v18, %v1076_v62  ;;  %v1312_v22 = vsel %vm1231_vm10, %v1182_v54, 0.0  ;;  %v1313_v61 = vsel %vm1231_vm10, %v1183_v41, 0.0  ;;  %v1342_v39 = vadd.f32 %v1341_v10, %v1340_v48 }
 0x1ff   :  { %v1207_v60 = vmul.f32 %v17273_v8, %v1099_v33  ;;  %v1380_v3 = vadd.f32 %v1379_v55, %v1378_v26  ;;  %v1139_v2 = vmul.f32 %v17364_v23, %v1031_v32  ;;  %v1381_v25 = vsel %vm1231_vm10, %v1223_v51, 0.0  ;;  %v1079_v51 = vld [vmem:[%s21913_s1 + $0x1d8] sm:$0x3] }
 0x200   :  { %1443 = vperm.xlu1 %14738, %v17316_v29   ;;  %v1238_v31 = vadd.f32 %v1237_v6, %v1236_v37  ;;  %v1239_v62 = vsel %vm1231_vm10, %v1138_v47, 0.0  ;;  %v1162_v34 = vmul.f32 %v17333_v45, %v1054_v58  ;;  %v1276_v42 = vadd.f32 %v1275_v0, %v1274_v7  ;;  %v1101_v6 = vld [vmem:[%s21913_s1 + $0x288] sm:$0x3] }
 0x201   :  { %v1185_v8 = vmul.f32 %v17304_v40, %v1077_v38  ;;  %v1314_v41 = vadd.f32 %v1313_v61, %v1312_v22  ;;  %v1208_v37 = vmul.f32 %v17292_v18, %v1100_v20  ;;  %v1353_v32 = vsel %vm1231_vm10, %v1207_v60, 0.0  ;;  %v1102_v18 = vld [vmem:[%s21913_s1 + $0x290] sm:$0x3] }
 0x202   :  { %v1240_v48 = vadd.f32 %v1239_v62, %v1238_v31  ;;  %v1241_v26 = vsel %vm1231_vm10, %v1139_v2, 0.0  ;;  %v1163_v47 = vmul.f32 %v17364_v23, %v1055_v21  ;;  %v1279_v10 = vsel %vm1231_vm10, %v1162_v34, 0.0 }
 0x203   :  { %v1317_v38 = vsel %vm1231_vm10, %v1185_v8, 0.0  ;;  %v1209_v0 = vmul.f32 %v17304_v40, %v1101_v6  ;;  %v1210_v21 = vmul.f32 %v17333_v45, %v1102_v18 }
 0x204   :  { %1446 = vperm.xlu1 %14738, %v17344_v56   ;;  %v1242_v22 = vadd.f32 %v1241_v26, %v1240_v48  ;;  %v1281_v20 = vsel %vm1231_vm10, %v1163_v47, 0.0 }
 0x215   :  { %1263 = vadd.xlane.f32.xlu0 %v1262_v43  ;;  %v1161_v43 = vmul.f32 %v17304_v40, %v1053_v28  ;;  %v1206_v28 = vmul.f32 %v17268_v63, %v1098_v52  ;;  %v1078_v63 = vld [vmem:[%s21913_s1 + $0x1d0] sm:$0x3]  ;;  %v1315_v52 = vsel %vm1231_vm10, %v1184_v16, 0.0  ;;  %v1355_v16 = vsel %vm1231_vm10, %v1208_v37, 0.0 }
 0x216   :  { %v1316_v55 = vadd.f32 %v1315_v52, %v1314_v41  ;;  %v1186_v7 = vmul.f32 %v17333_v45, %v1078_v63  ;;  %v1357_v40 = vsel %vm1231_vm10, %v1209_v0, 0.0  ;;  %v16209_v45 = vld [vmem:[%s21667_s6] ss:$0 sm:$0xff] }
 0x217   :  { %v1277_v54 = vsel %vm1231_vm10, %v1161_v43, 0.0  ;;  %v1352_v33 = vsel %vm1231_vm10, %v1206_v28, 0.0  ;;  %v1103_v28 = vld [vmem:[%s21913_s1 + $0x298] sm:$0x3] }
 0x218   :  { %v1278_v58 = vadd.f32 %v1277_v54, %v1276_v42  ;;  %v1354_v43 = vadd.f32 %v1353_v32, %v1352_v33  ;;  %v1319_v2 = vsel %vm1231_vm10, %v1186_v7, 0.0  ;;  %v1211_v42 = vmul.f32 %v17364_v23, %v1103_v28 }
 0x219   :  { %1303 = vadd.xlane.f32.xlu0 %v1302_v14  ;;  %v1382_v14 = vadd.f32 %v1381_v25, %v1380_v3  ;;  %v1187_v3 = vmul.f32 %v17364_v23, %v1079_v51  ;;  %v1359_v54 = vsel %vm1231_vm10, %v1210_v21, 0.0 }
 0x21a   :  { %v1280_v61 = vadd.f32 %v1279_v10, %v1278_v58  ;;  %v1356_v60 = vadd.f32 %v1355_v16, %v1354_v43  ;;  %v1361_v41 = vsel %vm1231_vm10, %v1211_v42, 0.0 }
 0x21b   :  { %v1321_v34 = vsel %vm1231_vm10, %v1187_v3, 0.0 }
 0x21c   :  { %v1282_v25 = vadd.f32 %v1281_v20, %v1280_v61  ;;  %v1358_v62 = vadd.f32 %v1357_v40, %v1356_v60 }
 0x21d   :  { %1343 = vadd.xlane.f32.xlu0 %v1342_v39  ;;  %v1318_v39 = vadd.f32 %v1317_v38, %v1316_v55 }
 0x21e   :  { %v1360_v8 = vadd.f32 %v1359_v54, %v1358_v62 }
 0x21f   :  { %v1320_v31 = vadd.f32 %v1319_v2, %v1318_v39 }
 0x220   :  { %v1362_v52 = vadd.f32 %v1361_v41, %v1360_v8 }
 0x221   :  { %1383 = vadd.xlane.f32.xlu0 %v1382_v14  ;;  %v1322_v63 = vadd.f32 %v1321_v34, %v1320_v31 }
 0x228   :  { %1243 = vadd.xlane.f32.xlu1 %v1242_v22 }
 0x22c   :  { %1283 = vadd.xlane.f32.xlu1 %v1282_v25 }
 0x230   :  { %1323 = vadd.xlane.f32.xlu1 %v1322_v63 }
 0x234   :  { %1363 = vadd.xlane.f32.xlu1 %v1362_v52 }
 0x245   :  { %1396 = vbcast.lane.b32.xlu1 %v16209_v45, 264 }
 0x26b   :  { %v1429_v6 = vpop.permute.xlu1 %1428 }
 0x26c   :  { %v17561_v39 = vrot.slane %v1429_v6, %v17202_v46 }
 0x26d   :  { %v478_v58 = vpop.xlane.xlu0 %477 }
 0x26e   :  { %v479_v28 = vsub.f32 %v17241_v30, %v478_v58 }
 0x26f   :  { %v1432_v37 = vpop.permute.xlu1 %1431 }
 0x270   :  { %v17570_v2 = vrot.slane %v1432_v37, %v17202_v46  ;;  %v480_v21 = vmul.f32 1.442695, %v479_v28 }
 0x272   :  { %16085 = vpow2.f32 %v480_v21 }
 0x273   :  { %v1435_v33 = vpop.permute.xlu1 %1434 }
 0x274   :  { %v17576_v25 = vrot.slane %v1435_v33, %v17202_v46 }
 0x275   :  { %v1426_v51 = vpop.permute.xlu0 %1425 }
 0x276   :  { %v17557_v20 = vrot.slane %v1426_v51, %v17202_v46 }
 0x277   :  { %v1438_v32 = vpop.permute.xlu1 %1437 }
 0x278   :  { %v1480_v3 = vsel %vm459_vm1, %v17561_v39, %v17557_v20  ;;  %v17579_v30 = vrot.slane %v1438_v32, %v17202_v46 }
 0x279   :  { %v1481_v40 = vsel %vm461_vm2, %v17570_v2, %v1480_v3 }
 0x27a   :  { %v1482_v31 = vsel %vm463_vm3, %v17576_v25, %v1481_v40 }
 0x27b   :  { %v1441_v23 = vpop.permute.xlu1 %1440  ;;  %v1483_v54 = vsel %vm465_vm4, %v17579_v30, %v1482_v31 }
 0x27c   :  { %v17584_v62 = vrot.slane %v1441_v23, %v17202_v46  ;;  %v16086_v45 = vpop.eup %16085 }
 0x27d   :  { %v482_v6 = vsel %vm475_vm9, %v16086_v45, 0.0  ;;  %vm3738_vm9 = vcmask 1044480  }
 0x27e   :  { %v1484_v63 = vsel %vm467_vm5, %v17584_v62, %v1483_v54 }
 0x27f   :  { %v1444_v14 = vpop.permute.xlu1 %1443 }
 0x280   :  { %v17587_v34 = vrot.slane %v1444_v14, %v17202_v46 }
 0x282   :  { %v1485_v8 = vsel %vm469_vm6, %v17587_v34, %v1484_v63 }
 0x283   :  { %v1447_v48 = vpop.permute.xlu1 %1446 }
 0x284   :  { %v17590_v42 = vrot.slane %v1447_v48, %v17202_v46 }
 0x286   :  { %v17600_v41 = vsel %vm471_vm7, %v17590_v42, %v1485_v8 }
 0x287   :  { %v1489_v52 = vsel %vm1488_vm11, %v17600_v41, -inf }
 0x2a2   :  { %v1264_v18 = vpop.xlane.xlu0 %1263 }
 0x2a6   :  { %v1304_v16 = vpop.xlane.xlu0 %1303 }
 0x2aa   :  { %v1344_v37 = vpop.xlane.xlu0 %1343 }
 0x2ae   :  { %v1384_v32 = vpop.xlane.xlu0 %1383 }
 0x2b5   :  { %v1244_v26 = vpop.xlane.xlu1 %1243 }
 0x2b9   :  { %v1284_v47 = vpop.xlane.xlu1 %1283 }
 0x2bd   :  { %v1324_v10 = vpop.xlane.xlu1 %1323 }
 0x2c1   :  { %v1364_v55 = vpop.xlane.xlu1 %1363 }
 0x2c5   :  { %v1397_v43 = vpop.permute.xlu1 %1396 }
 0x2c6   :  { %v17542_v7 = vadd.f32 %v1397_v43, %v1244_v26  ;;  %v17544_v38 = vadd.f32 %v1397_v43, %v1264_v18  ;;  %v17548_v0 = vadd.f32 %v1397_v43, %v1284_v47  ;;  %v17551_v22 = vadd.f32 %v1397_v43, %v1304_v16 }
 0x2c7   :  { %v17554_v61 = vadd.f32 %v1397_v43, %v1324_v10  ;;  %v17564_v60 = vadd.f32 %v1397_v43, %v1364_v55  ;;  %v17605_v33 = vadd.f32 %v1397_v43, %v1344_v37  ;;  %v17608_v23 = vadd.f32 %v1397_v43, %v1384_v32 }
 0x2c8   :  { %2894 = vperm.xlu0 %14737, %v17542_v7   ;;  %2897 = vperm.xlu1 %14738, %v17544_v38  }
 0x2cc   :  { %2900 = vperm.xlu1 %14738, %v17548_v0  }
 0x2d0   :  { %2903 = vperm.xlu1 %14738, %v17551_v22  }
 0x2d4   :  { %2906 = vperm.xlu1 %14738, %v17554_v61  }
 0x2d8   :  { %2912 = vperm.xlu1 %14738, %v17564_v60  }
 0x2e7   :  { %1490 = vmax.xlane.f32.xlu0 %v1489_v52 }
 0x2eb   :  { %483 = vadd.xlane.f32.xlu0 %v482_v6 }
 0x301   :  { %2909 = vperm.xlu0 %14737, %v17605_v33  }
 0x305   :  { %2915 = vperm.xlu0 %14737, %v17608_v23  }
 0x347   :  { %v17611_v14 = vpop.permute.xlu0 %2894 }
 0x374   :  { %v1491_v48 = vpop.xlane.xlu0 %1490 }
 0x375   :  { %v1496_v26 = vrot.slane %v1491_v48, %v16825_v4  ;;  %v1500_v47 = vrot.slane %v1491_v48, %v16828_v5  ;;  %v1504_v58 = vrot.slane %v1491_v48, %v16836_v9  ;;  %v1508_v10 = vrot.slane %v1491_v48, %v16840_v11 }
 0x376   :  { %v1512_v51 = vrot.slane %v1491_v48, %v16844_v13  ;;  %v1516_v16 = vrot.slane %v1491_v48, %v16848_v15 }
 0x377   :  { %v1533_v55 = vsub.f32 %v17254_v24, %v1496_v26  ;;  %v1534_v18 = vsub.f32 %v17245_v59, %v1500_v47  ;;  %v1535_v43 = vsub.f32 %v17248_v44, %v1504_v58  ;;  %v1536_v28 = vsub.f32 %v17251_v53, %v1508_v10 }
 0x378   :  { %v1537_v40 = vsub.f32 %v17263_v57, %v1512_v51  ;;  %v484_v54 = vpop.xlane.xlu0 %483  ;;  %v1538_v63 = vsub.f32 %v17287_v12, %v1516_v16 }
 0x379   :  { %v1541_v3 = vmul.f32 1.442695, %v1533_v55  ;;  %v1543_v21 = vmul.f32 1.442695, %v1534_v18  ;;  %v1545_v31 = vmul.f32 1.442695, %v1535_v43 }
 0x37a   :  { %v1547_v8 = vmul.f32 1.442695, %v1536_v28  ;;  %v1549_v52 = vmul.f32 1.442695, %v1537_v40  ;;  %v1551_v6 = vmul.f32 1.442695, %v1538_v63 }
 0x37b   :  { %16087 = vpow2.f32 %v1541_v3  ;;  %v1524_v3 = vrot.slane %v1491_v48, %v16856_v19  ;;  %v14741_v63 = vld [vmem:[#allocation3 + $0x4] ss:$24 sps:$4 sm:$0xff]  }
 0x37c   :  { %16089 = vpow2.f32 %v1543_v21  ;;  %14567 = vmatprep.subr.bf16.mxu0 %v14741_v63  ;;  %v14759_v63 = vld [vmem:[#allocation3 + $0x94] ss:$24 sps:$4 sm:$0xff]  }
 0x37d   :  { %16091 = vrcp.f32 %v484_v54 }
 0x37e   :  { %16093 = vpow2.f32 %v1545_v31  ;;  %v1540_v31 = vsub.f32 %v17344_v56, %v1524_v3  ;;  %v14753_v3 = vld [vmem:[#allocation3 + $0x64] ss:$24 sps:$4 sm:$0xff]  }
 0x37f   :  { %16095 = vpow2.f32 %v1547_v8 }
 0x380   :  { %16097 = vpow2.f32 %v1549_v52  ;;  %v14743_v52 = vld [vmem:[#allocation3] ss:$24 sps:$4 sm:$0xff]  }
 0x381   :  { %16099 = vpow2.f32 %v1551_v6  ;;  %v14744_v6 = vld [vmem:[#allocation3 + $0xc] ss:$24 sps:$4 sm:$0xff]   ;;  %14569 = vmatpush1.bf16.msra.mxu0 %v14743_v52  ;;  %v14762_v52 = vld [vmem:[#allocation3 + $0x9c] ss:$24 sps:$4 sm:$0xff]  }
 0x382   :  { %14599 = vmatprep.subr.bf16.mxu1 %v14744_v6 }
 0x385   :  { %v17625_v37 = vpop.eup %16087 }
 0x386   :  { %v17627_v32 = vpop.eup %16089  ;;  %1566 = vperm.xlu1 %14738, %v17625_v37  }
 0x387   :  { %1569 = vperm.xlu0 %14737, %v17627_v32   ;;  %v16092_v26 = vpop.eup %16091 }
 0x388   :  { %v17631_v47 = vpop.eup %16093  ;;  %v486_v10 = vmul.f32 %v16092_v26, %v16086_v45  ;;  %v1520_v45 = vrot.slane %v1491_v48, %v16852_v17  ;;  %v14746_v26 = vld [vmem:[#allocation3 + $0x8] ss:$24 sps:$4 sm:$0xff]   ;;  %v1555_v48 = vmul.f32 1.442695, %v1540_v31  ;;  %v14756_v31 = vld [vmem:[#allocation3 + $0x6c] ss:$24 sps:$4 sm:$0xff]  }
 0x389   :  { %v17633_v58 = vpop.eup %16095  ;;  %14601 = vmatpush1.bf16.msra.mxu1 %v14746_v26  ;;  %v14764_v26 = vld [vmem:[#allocation3 + $0x98] ss:$24 sps:$4 sm:$0xff]  }
 0x38a   :  { %1572 = vperm.xlu1 %14738, %v17631_v47   ;;  %v17637_v51 = vpop.eup %16097  ;;  %v490_v18 = vrot.slane %v486_v10, %v16825_v4  ;;  %v501_v43 = vrot.slane %v486_v10, %v16828_v5  ;;  %v512_v16 = vrot.slane %v486_v10, %v16836_v9  ;;  %v523_v28 = vrot.slane %v486_v10, %v16840_v11 }
 0x38b   :  { %1575 = vperm.xlu0 %14737, %v17633_v58   ;;  %21927 = vst [vmem:[#allocation43_spill] sm:$0xff] %v17637_v51  ;;  %v17639_v55 = vpop.eup %16099  ;;  %v1539_v21 = vsub.f32 %v17316_v29, %v1520_v45  ;;  %v534_v40 = vrot.slane %v486_v10, %v16844_v13  ;;  %v545_v8 = vrot.slane %v486_v10, %v16848_v15  ;;  %v14750_v45 = vld [vmem:[#allocation3 + $0x3c] ss:$24 sps:$4 sm:$0xff]  }
 0x38c   :  { %21928 = vst [vmem:[#allocation44_spill] sm:$0xff] %v17639_v55  ;;  %14603 = vmatprep.subr.bf16.mxu1 %v14750_v45  ;;  %v14770_v45 = vld [vmem:[#allocation3 + $0xc8] ss:$24 sps:$4 sm:$0xff]  }
 0x38d   :  { %v1553_v54 = vmul.f32 1.442695, %v1539_v21  ;;  %v567_v21 = vrot.slane %v486_v10, %v16856_v19 }
 0x38e   :  { %1578 = vperm.xlu1 %14738, %v17637_v51  }
 0x38f   :  { %1581 = vperm.xlu0 %14737, %v17639_v55   ;;  %16101 = vpow2.f32 %v1553_v54  ;;  %v14758_v54 = vld [vmem:[#allocation3 + $0x68] ss:$24 sps:$4 sm:$0xff]  }
 0x390   :  { %16103 = vpow2.f32 %v1555_v48  ;;  %v14767_v48 = vld [vmem:[#allocation3 + $0xc0] ss:$24 sps:$4 sm:$0xff]  }
 0x392   :  { %492 = vbcast.lane.b32.xlu1 %v490_v18, 256 }
 0x393   :  { %496 = vbcast.lane.b32.xlu0 %v490_v18, 264  ;;  %v14747_v18 = vld [vmem:[#allocation3 + $0x34] ss:$24 sps:$4 sm:$0xff]  }
 0x394   :  { %14571 = vmatprep.subr.bf16.mxu0 %v14747_v18  ;;  %v14768_v18 = vld [vmem:[#allocation3 + $0xcc] ss:$24 sps:$4 sm:$0xff]  }
 0x396   :  { %503 = vbcast.lane.b32.xlu1 %v501_v43, 256 }
 0x397   :  { %507 = vbcast.lane.b32.xlu0 %v501_v43, 264  ;;  %v556_v43 = vrot.slane %v486_v10, %v16852_v17  ;;  %v14765_v10 = vld [vmem:[#allocation3 + $0xc4] ss:$24 sps:$4 sm:$0xff]  }
 0x399   :  { %v17655_v6 = vpop.eup %16101 }
 0x39a   :  { %514 = vbcast.lane.b32.xlu1 %v512_v16, 256  ;;  %21929 = vst [vmem:[#allocation45_spill] sm:$0xff] %v17655_v6 }
 0x39b   :  { %518 = vbcast.lane.b32.xlu0 %v512_v16, 264  ;;  %v14749_v16 = vld [vmem:[#allocation3 + $0x30] ss:$24 sps:$4 sm:$0xff]  }
 0x39c   :  { %14573 = vmatpush1.bf16.msra.mxu0 %v14749_v16  ;;  %v2898_v16 = vpop.permute.xlu1 %2897 }
 0x39d   :  { %14575 = vmatprep.subr.bf16.mxu0 %v14753_v3  ;;  %v14773_v3 = vld [vmem:[#allocation3 + $0xf0] ss:$24 sps:$4 sm:$0xff]  }
 0x39e   :  { %525 = vbcast.lane.b32.xlu1 %v523_v28, 256 }
 0x39f   :  { %529 = vbcast.lane.b32.xlu0 %v523_v28, 264  ;;  %v14752_v28 = vld [vmem:[#allocation3 + $0x38] ss:$24 sps:$4 sm:$0xff]  }
 0x3a0   :  { %14605 = vmatpush1.bf16.msra.mxu1 %v14752_v28  ;;  %v14771_v28 = vld [vmem:[#allocation3 + $0xf4] ss:$24 sps:$4 sm:$0xff]  }
 0x3a1   :  { %14607 = vmatprep.subr.bf16.mxu1 %v14756_v31  ;;  %v14777_v31 = vld [vmem:[#allocation3 + $0x124] ss:$24 sps:$4 sm:$0xff]  }
 0x3a2   :  { %536 = vbcast.lane.b32.xlu1 %v534_v40, 256 }
 0x3a3   :  { %540 = vbcast.lane.b32.xlu0 %v534_v40, 264  ;;  %v14755_v40 = vld [vmem:[#allocation3 + $0x60] ss:$24 sps:$4 sm:$0xff]  }
 0x3a4   :  { %14577 = vmatpush1.bf16.msra.mxu0 %v14755_v40  ;;  %14609 = vmatpush1.bf16.msra.mxu1 %v14758_v54  ;;  %v14776_v40 = vld [vmem:[#allocation3 + $0xf8] ss:$24 sps:$4 sm:$0xff]  }
 0x3a5   :  { %14579 = vmatprep.subr.bf16.mxu0 %v14759_v63  ;;  %14611 = vmatprep.subr.bf16.mxu1 %v14762_v52  ;;  %v14779_v54 = vld [vmem:[#allocation3 + $0x120] ss:$24 sps:$4 sm:$0xff]   ;;  %v14780_v63 = vld [vmem:[#allocation3 + $0x12c] ss:$24 sps:$4 sm:$0xff]  }
 0x3a6   :  { %547 = vbcast.lane.b32.xlu1 %v545_v8, 256  ;;  %v14783_v52 = vld [vmem:[#allocation3 + $0x154] ss:$24 sps:$4 sm:$0xff]  }
 0x3a7   :  { %551 = vbcast.lane.b32.xlu0 %v545_v8, 264  ;;  %v14761_v8 = vld [vmem:[#allocation3 + $0x90] ss:$24 sps:$4 sm:$0xff]  }
 0x3a8   :  { %14581 = vmatpush1.bf16.msra.mxu0 %v14761_v8  ;;  %14613 = vmatpush1.bf16.msra.mxu1 %v14764_v26  ;;  %v2901_v8 = vpop.permute.xlu1 %2900  ;;  %v14782_v26 = vld [vmem:[#allocation3 + $0x128] ss:$24 sps:$4 sm:$0xff]  }
 0x3a9   :  { %14583 = vmatprep.subr.bf16.mxu0 %v14765_v10  ;;  %14615 = vmatprep.subr.bf16.mxu1 %v14768_v18  ;;  %v14786_v10 = vld [vmem:[#allocation3 + $0x15c] ss:$24 sps:$4 sm:$0xff]  }
 0x3aa   :  { %558 = vbcast.lane.b32.xlu1 %v556_v43, 256  ;;  %v14789_v18 = vld [vmem:[#allocation3 + $0x14] ss:$24 sps:$4 sm:$0xff]  }
 0x3ab   :  { %562 = vbcast.lane.b32.xlu0 %v556_v43, 264  ;;  %v17658_v43 = vpop.eup %16103 }
 0x3ac   :  { %21930 = vst [vmem:[#allocation46_spill] sm:$0xff] %v17658_v43  ;;  %14585 = vmatpush1.bf16.msra.mxu0 %v14767_v48  ;;  %14617 = vmatpush1.bf16.msra.mxu1 %v14770_v45  ;;  %v14785_v48 = vld [vmem:[#allocation3 + $0x150] ss:$24 sps:$4 sm:$0xff]  }
 0x3ad   :  { %14587 = vmatprep.subr.bf16.mxu0 %v14771_v28  ;;  %v14788_v45 = vld [vmem:[#allocation3 + $0x158] ss:$24 sps:$4 sm:$0xff]   ;;  %v2904_v28 = vpop.permute.xlu1 %2903 }
 0x3ae   :  { %569 = vbcast.lane.b32.xlu1 %v567_v21, 256 }
 0x3af   :  { %573 = vbcast.lane.b32.xlu0 %v567_v21, 264  ;;  %v14774_v21 = vld [vmem:[#allocation3 + $0xfc] ss:$24 sps:$4 sm:$0xff]  }
 0x3b0   :  { %14589 = vmatpush1.bf16.msra.mxu0 %v14773_v3  ;;  %14619 = vmatprep.subr.bf16.mxu1 %v14774_v21  ;;  %v2910_v3 = vpop.permute.xlu0 %2909  ;;  %v2925_v21 = vrot.slane %v2898_v16, %v17205_v27 }
 0x3b1   :  { %14591 = vmatprep.subr.bf16.mxu0 %v14777_v31  ;;  %14621 = vmatpush1.bf16.msra.mxu1 %v14776_v40  ;;  %v2920_v40 = vrot.slane %v17611_v14, %v17205_v27  ;;  %v2907_v31 = vpop.permute.xlu1 %2906 }
 0x3b2   :  { %1584 = vperm.xlu1 %14738, %v17655_v6   ;;  %14623 = vmatprep.subr.bf16.mxu1 %v14780_v63  ;;  %v2930_v63 = vrot.slane %v2901_v8, %v17205_v27 }
 0x3b4   :  { %14593 = vmatpush1.bf16.msra.mxu0 %v14779_v54  ;;  %v2935_v54 = vrot.slane %v2904_v28, %v17205_v27  ;;  %v2931_v16 = vsel %vm394_vm0, %v2930_v63, %v17570_v2  ;;  %v2916_v14 = vpop.permute.xlu0 %2915 }
 0x3b5   :  { %14595 = vmatprep.subr.bf16.mxu0 %v14783_v52  ;;  %14625 = vmatpush1.bf16.msra.mxu1 %v14782_v26  ;;  %v2940_v52 = vrot.slane %v2907_v31, %v17205_v27  ;;  %v2926_v26 = vsel %vm394_vm0, %v2925_v21, %v17561_v39  ;;  %v2955_v2 = vrot.slane %v2916_v14, %v17205_v27 }
 0x3b6   :  { %1587 = vperm.xlu1 %14738, %v17658_v43   ;;  %14627 = vmatprep.subr.bf16.mxu1 %v14786_v10  ;;  %v2921_v10 = vsel %vm394_vm0, %v2920_v40, %v17557_v20  ;;  %v2936_v8 = vsel %vm394_vm0, %v2935_v54, %v17576_v25 }
 0x3b7   :  { %v2957_v28 = vsel %vm459_vm1, %v2926_v26, %v2921_v10  ;;  %v2941_v39 = vsel %vm394_vm0, %v2940_v52, %v17579_v30  ;;  %v2956_v31 = vsel %vm394_vm0, %v2955_v2, %v17590_v42 }
 0x3b8   :  { %14597 = vmatpush1.bf16.msra.mxu0 %v14785_v48  ;;  %v2945_v48 = vrot.slane %v2910_v3, %v17205_v27  ;;  %v2958_v20 = vsel %vm461_vm2, %v2931_v16, %v2957_v28 }
 0x3b9   :  { %14631 = vmatprep.subr.bf16.mxu0 %v14789_v18  ;;  %14629 = vmatpush1.bf16.msra.mxu1 %v14788_v45  ;;  %v2913_v18 = vpop.permute.xlu1 %2912  ;;  %v2114_v45 = vsel %vm2113_vm12, %v17600_v41, -inf  ;;  %v2959_v21 = vsel %vm463_vm3, %v2936_v8, %v2958_v20 }
 0x3ba   :  { %v2946_v3 = vsel %vm394_vm0, %v2945_v48, %v17584_v62  ;;  %v2950_v25 = vrot.slane %v2913_v18, %v17205_v27  ;;  %v2960_v40 = vsel %vm465_vm4, %v2941_v39, %v2959_v21 }
 0x3bb   :  { %v2961_v41 = vsel %vm467_vm5, %v2946_v3, %v2960_v40 }
 0x3bc   :  { %v2951_v30 = vsel %vm394_vm0, %v2950_v25, %v17587_v34  ;;  %vm3205_vm0 = vcmask 39936  }
 0x3bd   :  { %v2962_v63 = vsel %vm469_vm6, %v2951_v30, %v2961_v41 }
 0x3be   :  { %v2963_v62 = vsel %vm471_vm7, %v2956_v31, %v2962_v63 }
 0x3bf   :  { %v2966_v54 = vsel %vm2965_vm13, %v2963_v62, -inf }
 0x3ce   :  { %2115 = vmax.xlane.f32.xlu0 %v2114_v45 }
 0x3da   :  { %2967 = vmax.xlane.f32.xlu1 %v2966_v54 }
 0x405   :  { %v1567_v52 = vpop.permute.xlu1 %1566 }
 0x406   :  { %v1592_v27 = vrot.slane %v1567_v52, %v17202_v46  ;;  %v1570_v26 = vpop.permute.xlu0 %1569 }
 0x407   :  { %v1596_v10 = vrot.slane %v1570_v26, %v17202_v46  ;;  %v21931_v26 = vld [vmem:[#allocation32_spill] sm:$0xff] }
 0x409   :  { %v1621_v48 = vsel %vm459_vm1, %v1596_v10, %v1592_v27  ;;  %v1573_v16 = vpop.permute.xlu1 %1572 }
 0x40a   :  { %v1600_v42 = vrot.slane %v1573_v16, %v17202_v46  ;;  %v1576_v14 = vpop.permute.xlu0 %1575 }
 0x40b   :  { %v1604_v34 = vrot.slane %v1576_v14, %v17202_v46  ;;  %v21932_v14 = vld [vmem:[#allocation33_spill] sm:$0xff] }
 0x40c   :  { %v1622_v8 = vsel %vm461_vm2, %v1600_v42, %v1621_v48 }
 0x40d   :  { %v1623_v18 = vsel %vm463_vm3, %v1604_v34, %v1622_v8  ;;  %v1579_v45 = vpop.permute.xlu1 %1578 }
 0x40e   :  { %v1608_v28 = vrot.slane %v1579_v45, %v17202_v46  ;;  %v1582_v39 = vpop.permute.xlu0 %1581 }
 0x40f   :  { %v1612_v20 = vrot.slane %v1582_v39, %v17202_v46 }
 0x410   :  { %v1624_v3 = vsel %vm465_vm4, %v1608_v28, %v1623_v18 }
 0x411   :  { %v17705_v2 = vsel %vm467_vm5, %v1612_v20, %v1624_v3  ;;  %v493_v21 = vpop.permute.xlu1 %492  ;;  %v21934_v20 = vld [vmem:[#allocation35_spill] sm:$0xff] }
 0x412   :  { %v497_v25 = vpop.permute.xlu0 %496  ;;  %v575_v52 = vmul.f32 %v16903_v35, %v493_v21 }
 0x413   :  { %v576_v27 = vmul.f32 %v16936_v49, %v497_v25  ;;  %v21935_v25 = vld [vmem:[#allocation36_spill] sm:$0xff] }
 0x415   :  { %v504_v40 = vpop.permute.xlu1 %503  ;;  %v591_v18 = vadd.f32 %v576_v27, %v575_v52 }
 0x416   :  { %v508_v41 = vpop.permute.xlu0 %507  ;;  %v577_v31 = vmul.f32 %v16906_v36, %v504_v40  ;;  %v21933_v36 = vld [vmem:[#allocation34_spill] sm:$0xff] }
 0x417   :  { %v578_v30 = vmul.f32 %v16939_v50, %v508_v41  ;;  %v592_v21 = vrot.slane %v591_v18, 4 }
 0x419   :  { %v515_v63 = vpop.permute.xlu1 %514  ;;  %v598_v48 = vadd.f32 %v578_v30, %v577_v31  ;;  %v593_v27 = vadd.f32 %v592_v21, %v591_v18 }
 0x41a   :  { %v579_v62 = vmul.f32 %v16967_v1, %v515_v63  ;;  %v519_v54 = vpop.permute.xlu0 %518 }
 0x41b   :  { %v580_v10 = vmul.f32 %v21931_v26, %v519_v54  ;;  %v599_v50 = vrot.slane %v598_v48, 4 }
 0x41d   :  { %v526_v16 = vpop.permute.xlu1 %525  ;;  %v605_v42 = vadd.f32 %v580_v10, %v579_v62  ;;  %v600_v41 = vadd.f32 %v599_v50, %v598_v48  ;;  %v21936_v62 = vld [vmem:[#allocation37_spill] sm:$0xff]  ;;  %v594_v48 = vrot.slane %v593_v27, 2 }
 0x41e   :  { %v581_v34 = vmul.f32 %v21932_v14, %v526_v16  ;;  %v530_v8 = vpop.permute.xlu0 %529  ;;  %v21937_v16 = vld [vmem:[#allocation38_spill] sm:$0xff] }
 0x41f   :  { %v582_v45 = vmul.f32 %v21933_v36, %v530_v8  ;;  %v606_v1 = vrot.slane %v605_v42, 4 }
 0x421   :  { %v612_v28 = vadd.f32 %v582_v45, %v581_v34  ;;  %v537_v39 = vpop.permute.xlu1 %536  ;;  %v607_v63 = vadd.f32 %v606_v1, %v605_v42  ;;  %v601_v34 = vrot.slane %v600_v41, 2 }
 0x422   :  { %v583_v3 = vmul.f32 %v21934_v20, %v537_v39  ;;  %v541_v35 = vpop.permute.xlu0 %540  ;;  %v21938_v20 = vld [vmem:[#allocation39_spill] sm:$0xff] }
 0x423   :  { %v613_v49 = vrot.slane %v612_v28, 4  ;;  %v584_v40 = vmul.f32 %v21935_v25, %v541_v35  ;;  %v608_v45 = vrot.slane %v607_v63, 2 }
 0x425   :  { %v619_v31 = vadd.f32 %v584_v40, %v583_v3  ;;  %v548_v30 = vpop.permute.xlu1 %547  ;;  %v614_v26 = vadd.f32 %v613_v49, %v612_v28  ;;  %v21939_v3 = vld [vmem:[#allocation40_spill] sm:$0xff]  ;;  %v602_v40 = vadd.f32 %v601_v34, %v600_v41  ;;  %v609_v21 = vadd.f32 %v608_v45, %v607_v63 }
 0x426   :  { %v585_v54 = vmul.f32 %v21936_v62, %v548_v30  ;;  %v552_v52 = vpop.permute.xlu0 %551  ;;  %v21940_v30 = vld [vmem:[#allocation41_spill] sm:$0xff] }
 0x427   :  { %v620_v10 = vrot.slane %v619_v31, 4  ;;  %v586_v14 = vmul.f32 %v21937_v16, %v552_v52  ;;  %v615_v50 = vrot.slane %v614_v26, 2  ;;  %v595_v52 = vadd.f32 %v594_v48, %v593_v27  ;;  %v21941_v16 = vld [vmem:[#allocation42_spill] sm:$0xff] }
 0x428   :  { %v603_v43 = vrot.slane %v602_v40, 1 }
 0x429   :  { %v621_v8 = vadd.f32 %v620_v10, %v619_v31  ;;  %v559_v36 = vpop.permute.xlu1 %558  ;;  %v626_v39 = vadd.f32 %v586_v14, %v585_v54  ;;  %v616_v10 = vadd.f32 %v615_v50, %v614_v26  ;;  %v596_v41 = vrot.slane %v595_v52, 1 }
 0x42a   :  { %v587_v6 = vmul.f32 %v21938_v20, %v559_v36  ;;  %v563_v35 = vpop.permute.xlu0 %562 }
 0x42b   :  { %v588_v42 = vmul.f32 %v21939_v3, %v563_v35  ;;  %v622_v1 = vrot.slane %v621_v8, 2  ;;  %v627_v25 = vrot.slane %v626_v39, 4  ;;  %v610_v3 = vrot.slane %v609_v21, 1 }
 0x42c   :  { %v597_v48 = vadd.f32 %v596_v41, %v595_v52  ;;  %v14800_v41 = vld [vmem:[#allocation3 + $0xa0] ss:$24 sps:$4 sm:$0xff]  }
 0x42d   :  { %v633_v18 = vadd.f32 %v588_v42, %v587_v6  ;;  %v570_v28 = vpop.permute.xlu1 %569  ;;  %v628_v49 = vadd.f32 %v627_v25, %v626_v39  ;;  %v623_v36 = vadd.f32 %v622_v1, %v621_v8  ;;  %v617_v6 = vrot.slane %v616_v10, 1 }
 0x42e   :  { %v589_v62 = vmul.f32 %v21940_v30, %v570_v28  ;;  %v574_v31 = vpop.permute.xlu0 %573  ;;  %v604_v39 = vadd.f32 %v603_v43, %v602_v40  ;;  %v611_v26 = vadd.f32 %v610_v3, %v609_v21  ;;  %v14798_v3 = vld [vmem:[#allocation3 + $0xa4] ss:$24 sps:$4 sm:$0xff]  }
 0x42f   :  { %v634_v54 = vrot.slane %v633_v18, 4  ;;  %v590_v14 = vmul.f32 %v21941_v16, %v574_v31  ;;  %v629_v20 = vrot.slane %v628_v49, 2  ;;  %v624_v45 = vrot.slane %v623_v36, 1 }
 0x430   :  { %v618_v50 = vadd.f32 %v617_v6, %v616_v10  ;;  %v14792_v10 = vld [vmem:[#allocation3 + $0x44] ss:$24 sps:$4 sm:$0xff]   ;;  %v14801_v6 = vld [vmem:[#allocation3 + $0xd4] ss:$24 sps:$4 sm:$0xff]  }
 0x431   :  { %v635_v51 = vadd.f32 %v634_v54, %v633_v18  ;;  %v640_v35 = vadd.f32 %v590_v14, %v589_v62  ;;  %v630_v55 = vadd.f32 %v629_v20, %v628_v49  ;;  %v625_v1 = vadd.f32 %v624_v45, %v623_v36  ;;  %v14795_v20 = vld [vmem:[#allocation3 + $0x74] ss:$24 sps:$4 sm:$0xff]   ;;  %v14806_v45 = vld [vmem:[#allocation3 + $0x100] ss:$24 sps:$4 sm:$0xff]  }
 0x432   :  { %v799_v18 = vsel %vm459_vm1, %v604_v39, %v597_v48  ;;  %v21942_v36 = vmov 0.0   ;;  %v14807_v39 = vld [vmem:[#allocation3 + $0x134] ss:$24 sps:$4 sm:$0xff]  }
 0x433   :  { %v636_v34 = vrot.slane %v635_v51, 2  ;;  %v641_v63 = vrot.slane %v640_v35, 4  ;;  %v631_v42 = vrot.slane %v630_v55, 1  ;;  %v800_v31 = vsel %vm461_vm2, %v611_v26, %v799_v18 }
 0x434   :  { %v801_v16 = vsel %vm463_vm3, %v618_v50, %v800_v31 }
 0x435   :  { %v637_v25 = vadd.f32 %v636_v34, %v635_v51  ;;  %v642_v27 = vadd.f32 %v641_v63, %v640_v35  ;;  %v632_v30 = vadd.f32 %v631_v42, %v630_v55  ;;  %v802_v43 = vsel %vm465_vm4, %v625_v1, %v801_v16  ;;  %v14791_v51 = vld [vmem:[#allocation3 + $0x10] ss:$24 sps:$4 sm:$0xff]   ;;  %v14794_v55 = vld [vmem:[#allocation3 + $0x40] ss:$24 sps:$4 sm:$0xff]   ;;  %v14804_v63 = vld [vmem:[#allocation3 + $0x104] ss:$24 sps:$4 sm:$0xff]   ;;  %v17735_v1 = vpop.permute.xlu1 %1584 }
 0x436   :  { %v14797_v35 = vld [vmem:[#allocation3 + $0x70] ss:$24 sps:$4 sm:$0xff]  }
 0x437   :  { %v638_v28 = vrot.slane %v637_v25, 1  ;;  %v643_v8 = vrot.slane %v642_v27, 2  ;;  %v803_v21 = vsel %vm467_vm5, %v632_v30, %v802_v43  ;;  %v14803_v34 = vld [vmem:[#allocation3 + $0xd0] ss:$24 sps:$4 sm:$0xff]  }
 0x438   :  { %v14809_v42 = vld [vmem:[#allocation3 + $0x130] ss:$24 sps:$4 sm:$0xff]  }
 0x439   :  { %v644_v62 = vadd.f32 %v643_v8, %v642_v27  ;;  %v639_v49 = vadd.f32 %v638_v28, %v637_v25  ;;  %v14810_v25 = vld [vmem:[#allocation3 + $0x164] ss:$24 sps:$4 sm:$0xff]   ;;  %v14812_v27 = vld [vmem:[#allocation3 + $0x160] ss:$24 sps:$4 sm:$0xff]  }
 0x43b   :  { %v645_v54 = vrot.slane %v644_v62, 1  ;;  %v804_v52 = vsel %vm469_vm6, %v639_v49, %v803_v21 }
 0x43d   :  { %v646_v40 = vadd.f32 %v645_v54, %v644_v62 }
 0x43f   :  { %v805_v14 = vsel %vm471_vm7, %v646_v40, %v804_v52  ;;  %v17745_v52 = vpop.permute.xlu1 %1587 }
 0x440   :  { %872 = vmatmul.mubr.f32.vlgmr.msra.gmra.mrb[0].mxu0 %v805_v14  ;;  %943 = vmatmul.mubr.f32.vlgmr.msra.gmra.mrb[0].mxu1 %v805_v14 }
 0x441   :  { %14633 = vmatpush1.bf16.msra.mxu0 %v14791_v51  ;;  %1013 = vmatprep.mubr.f32.mxu0 %v21942_v36 }
 0x442   :  { %14635 = vmatprep.subr.bf16.mxu0 %v14792_v10 }
 0x445   :  { %14637 = vmatpush1.bf16.msra.mxu0 %v14794_v55 }
 0x446   :  { %14639 = vmatprep.subr.bf16.mxu0 %v14795_v20 }
 0x449   :  { %14641 = vmatpush1.bf16.msra.mxu0 %v14797_v35 }
 0x44a   :  { %14643 = vmatprep.subr.bf16.mxu0 %v14798_v3 }
 0x44d   :  { %14645 = vmatpush1.bf16.msra.mxu0 %v14800_v41 }
 0x44e   :  { %14647 = vmatprep.subr.bf16.mxu0 %v14801_v6 }
 0x451   :  { %14649 = vmatpush1.bf16.msra.mxu0 %v14803_v34 }
 0x452   :  { %14651 = vmatprep.subr.bf16.mxu0 %v14804_v63 }
 0x455   :  { %14653 = vmatpush1.bf16.msra.mxu0 %v14806_v45 }
 0x456   :  { %14655 = vmatprep.subr.bf16.mxu0 %v14807_v39 }
 0x459   :  { %14657 = vmatpush1.bf16.msra.mxu0 %v14809_v42 }
 0x45a   :  { %14659 = vmatprep.subr.bf16.mxu0 %v14810_v25 }
 0x45b   :  { %v2116_v26 = vpop.xlane.xlu0 %2115 }
 0x45c   :  { %v2121_v48 = vrot.slane %v2116_v26, %v16825_v4  ;;  %v2125_v50 = vrot.slane %v2116_v26, %v16828_v5  ;;  %v2129_v28 = vrot.slane %v2116_v26, %v16836_v9  ;;  %v2133_v8 = vrot.slane %v2116_v26, %v16840_v11 }
 0x45d   :  { %14661 = vmatpush1.bf16.msra.mxu0 %v14812_v27  ;;  %v2137_v18 = vrot.slane %v2116_v26, %v16844_v13  ;;  %v2141_v31 = vrot.slane %v2116_v26, %v16848_v15  ;;  %v2145_v51 = vrot.slane %v2116_v26, %v16852_v17  ;;  %v2149_v10 = vrot.slane %v2116_v26, %v16856_v19 }
 0x45e   :  { %v2158_v30 = vsub.f32 %v17254_v24, %v2121_v48  ;;  %v2159_v62 = vsub.f32 %v17245_v59, %v2125_v50  ;;  %v2160_v49 = vsub.f32 %v17248_v44, %v2129_v28  ;;  %v2161_v54 = vsub.f32 %v17251_v53, %v2133_v8 }
 0x45f   :  { %v2162_v40 = vsub.f32 %v17263_v57, %v2137_v18  ;;  %v2163_v55 = vsub.f32 %v17287_v12, %v2141_v31  ;;  %v2164_v35 = vsub.f32 %v17316_v29, %v2145_v51 }
 0x460   :  { %v2166_v16 = vmul.f32 1.442695, %v2158_v30  ;;  %v2168_v43 = vmul.f32 1.442695, %v2159_v62  ;;  %1014 = vmatmul.mubr.f32.vlgmr.msra.gmra.mrb[2].mxu0 %v805_v14  ;;  %v2170_v21 = vmul.f32 1.442695, %v2160_v49  ;;  %v2165_v14 = vsub.f32 %v17344_v56, %v2149_v10 }
 0x461   :  { %v2172_v20 = vmul.f32 1.442695, %v2161_v54  ;;  %v2174_v3 = vmul.f32 1.442695, %v2162_v40  ;;  %v2176_v41 = vmul.f32 1.442695, %v2163_v55 }
 0x462   :  { %16105 = vpow2.f32 %v2166_v16  ;;  %v2178_v63 = vmul.f32 1.442695, %v2164_v35  ;;  %v2180_v45 = vmul.f32 1.442695, %v2165_v14 }
 0x463   :  { %16107 = vpow2.f32 %v2168_v43 }
 0x464   :  { %16109 = vpow2.f32 %v2170_v21 }
 0x465   :  { %16111 = vpow2.f32 %v2172_v20 }
 0x466   :  { %16113 = vpow2.f32 %v2174_v3 }
 0x467   :  { %v2968_v6 = vpop.xlane.xlu1 %2967  ;;  %16115 = vpow2.f32 %v2176_v41 }
 0x468   :  { %v17752_v34 = vrot.slane %v2968_v6, %v16825_v4  ;;  %v17755_v39 = vrot.slane %v2968_v6, %v16828_v5  ;;  %16117 = vpow2.f32 %v2178_v63  ;;  %v17766_v26 = vrot.slane %v2968_v6, %v16836_v9 }
 0x469   :  { %16119 = vpow2.f32 %v2180_v45  ;;  %v17777_v8 = vrot.slane %v2968_v6, %v16840_v11  ;;  %v17788_v49 = vrot.slane %v2968_v6, %v16844_v13  ;;  %v2993_v43 = vrot.slane %v2968_v6, %v16848_v15 }
 0x46a   :  { %v3011_v42 = vsub.f32 %v17542_v7, %v17752_v34  ;;  %v3013_v48 = vsub.f32 %v17544_v38, %v17755_v39  ;;  %v3015_v18 = vsub.f32 %v17548_v0, %v17766_v26  ;;  %v3001_v35 = vrot.slane %v2968_v6, %v16856_v19 }
 0x46b   :  { %v3017_v31 = vsub.f32 %v17551_v22, %v17777_v8  ;;  %v3019_v51 = vsub.f32 %v17554_v61, %v17788_v49  ;;  %v2997_v22 = vrot.slane %v2968_v6, %v16852_v17  ;;  %v3021_v10 = vsub.f32 %v17605_v33, %v2993_v43 }
 0x46c   :  { %v17759_v25 = vpop.eup %16105  ;;  %v3028_v50 = vmul.f32 1.442695, %v3011_v42  ;;  %v3032_v30 = vmul.f32 1.442695, %v3013_v48  ;;  %v3036_v54 = vmul.f32 1.442695, %v3015_v18  ;;  %v3025_v41 = vsub.f32 %v17608_v23, %v3001_v35 }
 0x46d   :  { %21943 = vst [vmem:[#allocation32_spill] sm:$0xff] %v17759_v25  ;;  %v17761_v27 = vpop.eup %16107  ;;  %2191 = vperm.xlu0 %14737, %v17759_v25   ;;  %v3040_v40 = vmul.f32 1.442695, %v3017_v31  ;;  %v3044_v55 = vmul.f32 1.442695, %v3019_v51  ;;  %v3023_v61 = vsub.f32 %v17564_v60, %v2997_v22  ;;  %v1616_v60 = vrot.slane %v17735_v1, %v17202_v46 }
 0x46e   :  { %21944 = vst [vmem:[#allocation33_spill] sm:$0xff] %v17761_v27  ;;  %2194 = vperm.xlu1 %14738, %v17761_v27   ;;  %v17770_v28 = vpop.eup %16109  ;;  %16121 = vpow2.f32 %v3028_v50  ;;  %v3048_v3 = vmul.f32 1.442695, %v3021_v10  ;;  %v3056_v45 = vmul.f32 1.442695, %v3025_v41  ;;  %v1620_v6 = vrot.slane %v17745_v52, %v17202_v46 }
 0x46f   :  { %21945 = vst [vmem:[#allocation34_spill] sm:$0xff] %v17770_v28  ;;  %v17772_v7 = vpop.eup %16111  ;;  %16123 = vpow2.f32 %v3032_v30  ;;  %v3052_v33 = vmul.f32 1.442695, %v3023_v61  ;;  %v1626_v48 = vsel %vm469_vm6, %v1616_v60, %v17705_v2  ;;  %v3010_v46 = vsub.f32 %v17254_v24, %v17752_v34 }
 0x470   :  { %21946 = vst [vmem:[#allocation35_spill] sm:$0xff] %v17772_v7  ;;  %v17781_v62 = vpop.eup %16113  ;;  %16125 = vpow2.f32 %v3036_v54  ;;  %v1627_v50 = vsel %vm471_vm7, %v1620_v6, %v1626_v48  ;;  %v3012_v52 = vsub.f32 %v17245_v59, %v17755_v39  ;;  %v3014_v31 = vsub.f32 %v17248_v44, %v17766_v26 }
 0x471   :  { %2197 = vperm.xlu0 %14737, %v17770_v28   ;;  %21947 = vst [vmem:[#allocation36_spill] sm:$0xff] %v17781_v62  ;;  %v17783_v38 = vpop.eup %16115  ;;  %16127 = vpow2.f32 %v3040_v40  ;;  %v1629_v30 = vsel %vm1488_vm11, %v1627_v50, 0.0  ;;  %v3026_v2 = vmul.f32 1.442695, %v3010_v46  ;;  %v3016_v51 = vsub.f32 %v17251_v53, %v17777_v8 }
 0x472   :  { %2200 = vperm.xlu1 %14738, %v17772_v7   ;;  %21948 = vst [vmem:[#allocation37_spill] sm:$0xff] %v17783_v38  ;;  %v17792_v16 = vpop.eup %16117  ;;  %16129 = vpow2.f32 %v3044_v55  ;;  %v3030_v54 = vmul.f32 1.442695, %v3012_v52  ;;  %v3034_v40 = vmul.f32 1.442695, %v3014_v31  ;;  %v3018_v10 = vsub.f32 %v17263_v57, %v17788_v49 }
 0x473   :  { %21949 = vst [vmem:[#allocation38_spill] sm:$0xff] %v17792_v16  ;;  %v17794_v0 = vpop.eup %16119  ;;  %16131 = vpow2.f32 %v3048_v3  ;;  %v3038_v55 = vmul.f32 1.442695, %v3016_v51  ;;  %v3020_v59 = vsub.f32 %v17287_v12, %v2993_v43  ;;  %v3022_v53 = vsub.f32 %v17316_v29, %v2997_v22 }
 0x474   :  { %21950 = vst [vmem:[#allocation39_spill] sm:$0xff] %v17794_v0  ;;  %16133 = vpow2.f32 %v3052_v33  ;;  %v3042_v44 = vmul.f32 1.442695, %v3018_v10  ;;  %v3024_v57 = vsub.f32 %v17344_v56, %v3001_v35 }
 0x475   :  { %2203 = vperm.xlu0 %14737, %v17781_v62   ;;  %16135 = vpow2.f32 %v3056_v45  ;;  %v3046_v39 = vmul.f32 1.442695, %v3020_v59  ;;  %v3050_v8 = vmul.f32 1.442695, %v3022_v53 }
 0x476   :  { %2206 = vperm.xlu1 %14738, %v17783_v38   ;;  %16137 = vpow2.f32 %v3026_v2  ;;  %v3054_v12 = vmul.f32 1.442695, %v3024_v57 }
 0x477   :  { %16139 = vpow2.f32 %v3030_v54 }
 0x478   :  { %v17801_v21 = vpop.eup %16121  ;;  %16141 = vpow2.f32 %v3034_v40 }
 0x479   :  { %2209 = vperm.xlu0 %14737, %v17792_v16   ;;  %21951 = vst [vmem:[#allocation40_spill] sm:$0xff] %v17801_v21  ;;  %v17806_v20 = vpop.eup %16123  ;;  %16143 = vpow2.f32 %v3038_v55 }
 0x47a   :  { %2212 = vperm.xlu1 %14738, %v17794_v0   ;;  %21952 = vst [vmem:[#allocation41_spill] sm:$0xff] %v17806_v20  ;;  %v17811_v14 = vpop.eup %16125  ;;  %16145 = vpow2.f32 %v3042_v44 }
 0x47b   :  { %21953 = vst [vmem:[#allocation42_spill] sm:$0xff] %v17811_v14  ;;  %v17815_v63 = vpop.eup %16127  ;;  %16147 = vpow2.f32 %v3046_v39 }
 0x47c   :  { %21954 = vst [vmem:[#allocation47_spill] sm:$0xff] %v17815_v63  ;;  %v17818_v42 = vpop.eup %16129  ;;  %16149 = vpow2.f32 %v3050_v8 }
 0x47d   :  { %21955 = vst [vmem:[#allocation48_spill] sm:$0xff] %v17818_v42  ;;  %v17825_v23 = vpop.eup %16131  ;;  %16151 = vpow2.f32 %v3054_v12 }
 0x47e   :  { %3078 = vperm.xlu1 %14738, %v17801_v21   ;;  %21956 = vst [vmem:[#allocation49_spill] sm:$0xff] %v17825_v23  ;;  %v17831_v18 = vpop.eup %16133 }
 0x47f   :  { %21957 = vst [vmem:[#allocation50_spill] sm:$0xff] %v17831_v18  ;;  %v17835_v1 = vpop.eup %16135 }
 0x480   :  { %21958 = vst [vmem:[#allocation51_spill] sm:$0xff] %v17835_v1  ;;  %v17848_v24 = vpop.eup %16137 }
 0x481   :  { %21959 = vst [vmem:[#allocation52_spill] sm:$0xff] %v17848_v24  ;;  %v17852_v34 = vpop.eup %16139 }
 0x482   :  { %3084 = vperm.xlu1 %14738, %v17806_v20   ;;  %21960 = vst [vmem:[#allocation53_spill] sm:$0xff] %v17852_v34  ;;  %v17856_v26 = vpop.eup %16141 }
 0x483   :  { %21961 = vst [vmem:[#allocation54_spill] sm:$0xff] %v17856_v26  ;;  %v17860_v49 = vpop.eup %16143 }
 0x484   :  { %21962 = vst [vmem:[#allocation55_spill] sm:$0xff] %v17860_v49  ;;  %v17863_v43 = vpop.eup %16145 }
 0x485   :  { %21963 = vst [vmem:[#allocation56_spill] sm:$0xff] %v17863_v43  ;;  %v17866_v29 = vpop.eup %16147 }
 0x486   :  { %3090 = vperm.xlu1 %14738, %v17811_v14   ;;  %21964 = vst [vmem:[#allocation57_spill] sm:$0xff] %v17866_v29  ;;  %v17869_v22 = vpop.eup %16149 }
 0x487   :  { %21965 = vst [vmem:[#allocation58_spill] sm:$0xff] %v17869_v22  ;;  %v17872_v56 = vpop.eup %16151 }
 0x488   :  { %21966 = vst [vmem:[#allocation59_spill] sm:$0xff] %v17872_v56 }
 0x48a   :  { %3096 = vperm.xlu1 %14738, %v17815_v63  }
 0x48e   :  { %3102 = vperm.xlu1 %14738, %v17818_v42  }
 0x492   :  { %3108 = vperm.xlu1 %14738, %v17825_v23  }
 0x496   :  { %3114 = vperm.xlu1 %14738, %v17831_v18  }
 0x498   :  { %1630 = vadd.xlane.f32.xlu0 %v1629_v30 }
 0x49a   :  { %3120 = vperm.xlu1 %14738, %v17835_v1  }
 0x4ae   :  { %3075 = vperm.xlu0 %14737, %v17848_v24  }
 0x4b2   :  { %3081 = vperm.xlu0 %14737, %v17852_v34  }
 0x4b6   :  { %3087 = vperm.xlu0 %14737, %v17856_v26  }
 0x4ba   :  { %3093 = vperm.xlu0 %14737, %v17860_v49  }
 0x4be   :  { %3099 = vperm.xlu0 %14737, %v17863_v43  }
 0x4c2   :  { %3105 = vperm.xlu0 %14737, %v17866_v29  }
 0x4c6   :  { %3111 = vperm.xlu0 %14737, %v17869_v22  }
 0x4ca   :  { %3117 = vperm.xlu0 %14737, %v17872_v56  }
 0x4ec   :  { %v17875_v35 = vpop.permute.xlu0 %2191 }
 0x4ed   :  { %v17887_v60 = vpop.permute.xlu1 %2194 }
 0x4f0   :  { %v17885_v45 = vpop.permute.xlu0 %2197 }
 0x4f1   :  { %v17891_v48 = vpop.permute.xlu1 %2200 }
 0x4f4   :  { %v17889_v6 = vpop.permute.xlu0 %2203 }
 0x4f5   :  { %v17895_v30 = vpop.permute.xlu1 %2206 }
 0x4f8   :  { %v17893_v50 = vpop.permute.xlu0 %2209 }
 0x4f9   :  { %v17901_v51 = vpop.permute.xlu1 %2212 }
 0x4fd   :  { %v17908_v44 = vpop.permute.xlu1 %3078 }
 0x501   :  { %v17919_v36 = vpop.permute.xlu1 %3084 }
 0x513   :  { %v17877_v61 = vpop.f32.mrb[0].mxu0  ;;  %v17879_v3 = vpop.f32.mrb[0].mxu1 }
 0x514   :  { %21967 = vst [vmem:[#allocation60_spill] sm:$0xff] %v17877_v61  ;;  %21968 = vst [vmem:[#allocation61_spill] sm:$0xff] %v17879_v3  ;;  %v17881_v41 = vpop.f32.mrb[1].mxu0  ;;  %v17883_v33 = vpop.f32.mrb[1].mxu1 }
 0x515   :  { %21969 = vst [vmem:[#allocation62_spill] sm:$0xff] %v17883_v33 }
 0x525   :  { %v1631_v46 = vpop.xlane.xlu0 %1630 }
 0x526   :  { %v1640_v52 = vrot.slane %v1631_v46, %v16828_v5  ;;  %v1636_v2 = vrot.slane %v1631_v46, %v16825_v4  ;;  %v1648_v31 = vrot.slane %v1631_v46, %v16840_v11  ;;  %v1644_v54 = vrot.slane %v1631_v46, %v16836_v9 }
 0x527   :  { %v1656_v40 = vrot.slane %v1631_v46, %v16848_v15  ;;  %v1652_v10 = vrot.slane %v1631_v46, %v16844_v13  ;;  %v1664_v59 = vrot.slane %v1631_v46, %v16856_v19  ;;  %v1660_v53 = vrot.slane %v1631_v46, %v16852_v17 }
 0x528   :  { %16153 = vrcp.f32 %v1640_v52 }
 0x529   :  { %16155 = vrcp.f32 %v1636_v2 }
 0x52a   :  { %16157 = vrcp.f32 %v1648_v31 }
 0x52b   :  { %16159 = vrcp.f32 %v1644_v54 }
 0x52c   :  { %16161 = vrcp.f32 %v1656_v40 }
 0x52d   :  { %v17905_v55 = vpop.permute.xlu0 %3075  ;;  %16163 = vrcp.f32 %v1652_v10 }
 0x52e   :  { %16165 = vrcp.f32 %v1664_v59 }
 0x52f   :  { %16167 = vrcp.f32 %v1660_v53  ;;  %v21972_v53 = vld [vmem:[#allocation44_spill] sm:$0xff] }
 0x531   :  { %v17911_v8 = vpop.permute.xlu0 %3081 }
 0x532   :  { %v16154_v39 = vpop.eup %16153 }
 0x533   :  { %v16156_v57 = vpop.eup %16155  ;;  %v17913_v12 = vpop.f32.mrb[2].mxu0  ;;  %v1676_v52 = vmul.f32 %v16154_v39, %v17627_v32 }
 0x534   :  { %21970 = vst [vmem:[#allocation63_spill] sm:$0xff] %v17913_v12  ;;  %v16158_v2 = vpop.eup %16157  ;;  %v17916_v31 = vpop.f32.mrb[3].mxu0  ;;  %v1674_v54 = vmul.f32 %v16156_v57, %v17625_v37  ;;  %v21973_v12 = vld [vmem:[#allocation43_spill] sm:$0xff] }
 0x535   :  { %21971 = vst [vmem:[#allocation64_spill] sm:$0xff] %v17916_v31  ;;  %v16160_v40 = vpop.eup %16159  ;;  %1696 = vperm.xlu1 %14738, %v1676_v52   ;;  %v1680_v46 = vmul.f32 %v16158_v2, %v17633_v58  ;;  %v3088_v1 = vpop.permute.xlu0 %3087  ;;  %v21975_v58 = vld [vmem:[#allocation45_spill] sm:$0xff] }
 0x536   :  { %1691 = vperm.xlu0 %14737, %v1674_v54   ;;  %v16162_v10 = vpop.eup %16161  ;;  %v1678_v59 = vmul.f32 %v16160_v40, %v17631_v47  ;;  %v3091_v32 = vpop.permute.xlu1 %3090  ;;  %v21974_v54 = vld [vmem:[#allocation46_spill] sm:$0xff]  ;;  %v21976_v47 = vld [vmem:[#allocation31_spill] sm:$0xff] }
 0x537   :  { %v16164_v56 = vpop.eup %16163  ;;  %v1684_v39 = vmul.f32 %v16162_v10, %v21972_v53  ;;  %v2214_v40 = vadd.s32 2, %v21976_v47 }
 0x538   :  { %v16166_v22 = vpop.eup %16165  ;;  %v1682_v37 = vmul.f32 %v16164_v56, %v21973_v12  ;;  %v14813_v56 = vld [vmem:[%s21668_s7 + $0x1c0] sm:$0xff]  }
 0x539   :  { %1706 = vperm.xlu1 %14738, %v1680_v46   ;;  %v16168_v57 = vpop.eup %16167  ;;  %v3094_v52 = vpop.permute.xlu0 %3093  ;;  %v1688_v18 = vmul.f32 %v16166_v22, %v21974_v54  ;;  %v14814_v12 = vld [vmem:[%s21668_s7 + $0x240] sm:$0xff]   ;;  %14185 = vmatprep.subr.bf16.mxu1 %v14813_v56 }
 0x53a   :  { %1701 = vperm.xlu0 %14737, %v1678_v59   ;;  %v1686_v2 = vmul.f32 %v16168_v57, %v21975_v58  ;;  %v3097_v29 = vpop.permute.xlu1 %3096  ;;  %v21977_v59 = vld [vmem:[#allocation22_spill] sm:$0xff]  ;;  %14207 = vmatprep.subr.bf16.mxu0 %v14814_v12  ;;  %v3122_v57 = vadd.s32 5, %v21976_v47 }
 0x53b   :  { %v2217_v23 = vsub.s32 %v2214_v40, %v21977_v59 }
 0x53d   :  { %1716 = vperm.xlu1 %14738, %v1684_v39   ;;  %v3100_v46 = vpop.permute.xlu0 %3099  ;;  %v2222_v22 = vrot.slane %v17887_v60, %v2217_v23  ;;  %v2218_v53 = vrot.slane %v17875_v35, %v2217_v23  ;;  %v2226_v39 = vrot.slane %v17885_v45, %v2217_v23  ;;  %v2230_v58 = vrot.slane %v17891_v48, %v2217_v23 }
 0x53e   :  { %1711 = vperm.xlu0 %14737, %v1682_v37   ;;  %v3103_v10 = vpop.permute.xlu1 %3102  ;;  %v2234_v40 = vrot.slane %v17889_v6, %v2217_v23  ;;  %v3127_v60 = vadd.s32 4294967293, %v21976_v47  ;;  %v3125_v35 = vsub.s32 %v3122_v57, %v21977_v59  ;;  %v2238_v56 = vrot.slane %v17895_v30, %v2217_v23 }
 0x53f   :  { %v2247_v54 = vsel %vm459_vm1, %v2222_v22, %v2218_v53  ;;  %v2242_v53 = vrot.slane %v17893_v50, %v2217_v23  ;;  %v2246_v30 = vrot.slane %v17901_v51, %v2217_v23 }
 0x540   :  { %v3130_v22 = vsub.s32 %v3127_v60, %v21977_v59  ;;  %v3137_v48 = vrot.slane %v17911_v8, %v3125_v35  ;;  %v3126_v47 = vrot.slane %v17905_v55, %v3125_v35  ;;  %v3155_v57 = vrot.slane %v3094_v52, %v3125_v35 }
 0x541   :  { %1726 = vperm.xlu1 %14738, %v1688_v18   ;;  %v3106_v18 = vpop.permute.xlu0 %3105 }
 0x542   :  { %1721 = vperm.xlu0 %14737, %v1686_v2   ;;  %v3109_v37 = vpop.permute.xlu1 %3108  ;;  %v2248_v2 = vsel %vm461_vm2, %v2226_v39, %v2247_v54  ;;  %v3146_v39 = vrot.slane %v3088_v1, %v3125_v35  ;;  %v3141_v6 = vrot.slane %v17919_v36, %v3130_v22  ;;  %v3150_v54 = vrot.slane %v3091_v32, %v3130_v22 }
 0x543   :  { %v2249_v45 = vsel %vm463_vm3, %v2230_v58, %v2248_v2  ;;  %v3164_v58 = vrot.slane %v3100_v46, %v3125_v35  ;;  %v3131_v59 = vrot.slane %v17908_v44, %v3130_v22  ;;  %v3159_v60 = vrot.slane %v3097_v29, %v3130_v22 }
 0x544   :  { %v2250_v43 = vsel %vm465_vm4, %v2234_v40, %v2249_v45  ;;  %v3142_v8 = vsel %vm3132_vm14, %v3141_v6, %v3137_v48  ;;  %v3173_v50 = vrot.slane %v3106_v18, %v3125_v35  ;;  %v3168_v1 = vrot.slane %v3103_v10, %v3130_v22 }
 0x545   :  { %v3112_v3 = vpop.permute.xlu0 %3111  ;;  %v2251_v40 = vsel %vm467_vm5, %v2238_v56, %v2250_v43  ;;  %v3151_v36 = vsel %vm3132_vm14, %v3150_v54, %v3146_v39  ;;  %v3177_v52 = vrot.slane %v3109_v37, %v3130_v22  ;;  %v3133_v23 = vsel %vm3132_vm14, %v3131_v59, %v3126_v47  ;;  %v14815_v39 = vld [vmem:[%s21668_s7 + $0x180] sm:$0xff]   ;;  %v14817_v47 = vld [vmem:[%s21668_s7 + $0x1c8] sm:$0xff]   ;;  %v14823_v59 = vld [vmem:[%s21668_s7 + $0x190] sm:$0xff]  }
 0x546   :  { %v3115_v12 = vpop.permute.xlu1 %3114  ;;  %v3182_v42 = vrot.slane %v3112_v3, %v3125_v35  ;;  %v2252_v55 = vsel %vm469_vm6, %v2242_v53, %v2251_v40  ;;  %v3160_v51 = vsel %vm3132_vm14, %v3159_v60, %v3155_v57  ;;  %v3197_v44 = vsel %vm459_vm1, %v3142_v8, %v3133_v23  ;;  %14186 = vmatpush3.bf16.msra.mxu1 %v14815_v39  ;;  %v14818_v57 = vld [vmem:[%s21668_s7 + $0x248] sm:$0xff]   ;;  %v14822_v40 = vld [vmem:[%s21668_s7 + $0x250] sm:$0xff]   ;;  %v14825_v8 = vld [vmem:[%s21668_s7 + $0x1d8] sm:$0xff]  }
 0x547   :  { %v3186_v43 = vrot.slane %v3115_v12, %v3130_v22  ;;  %v3169_v29 = vsel %vm3132_vm14, %v3168_v1, %v3164_v58  ;;  %v3198_v10 = vsel %vm461_vm2, %v3151_v36, %v3197_v44  ;;  %v3178_v18 = vsel %vm3132_vm14, %v3177_v52, %v3173_v50  ;;  %14187 = vmatprep.subr.bf16.mxu1 %v14817_v47  ;;  %v14819_v54 = vld [vmem:[%s21668_s7 + $0x188] sm:$0xff]   ;;  %v14824_v60 = vld [vmem:[%s21668_s7 + $0x210] sm:$0xff]   ;;  %v14826_v50 = vld [vmem:[%s21668_s7 + $0x258] sm:$0xff]  }
 0x548   :  { %v3199_v3 = vsel %vm463_vm3, %v3160_v51, %v3198_v10  ;;  %v2253_v37 = vsel %vm471_vm7, %v2246_v30, %v2252_v55  ;;  %v14820_v58 = vld [vmem:[%s21668_s7 + $0x208] sm:$0xff]   ;;  %v14827_v1 = vld [vmem:[%s21668_s7 + $0x198] sm:$0xff]   ;;  %v14829_v36 = vld [vmem:[%s21668_s7 + $0x1e0] sm:$0xff]  }
 0x549   :  { %v3118_v2 = vpop.permute.xlu0 %3117  ;;  %v3187_v56 = vsel %vm3132_vm14, %v3186_v43, %v3182_v42  ;;  %v3200_v48 = vsel %vm465_vm4, %v3169_v29, %v3199_v3  ;;  %v2256_v53 = vsel %vm2255_vm15, %v2253_v37, 0.0  ;;  %v14816_v42 = vld [vmem:[%s21668_s7 + $0x200] sm:$0xff]   ;;  %v14833_v51 = vld [vmem:[%s21668_s7 + $0x1e8] sm:$0xff]   ;;  %v14837_v29 = vld [vmem:[%s21668_s7 + $0x1f0] sm:$0xff]  }
 0x54a   :  { %v3121_v45 = vpop.permute.xlu1 %3120  ;;  %v3191_v32 = vrot.slane %v3118_v2, %v3125_v35  ;;  %v3201_v12 = vsel %vm467_vm5, %v3178_v18, %v3200_v48  ;;  %14208 = vmatpush3.bf16.msra.mxu0 %v14816_v42  ;;  %14188 = vmatpush3.bf16.msra.mxu1 %v14819_v54  ;;  %v14821_v2 = vld [vmem:[%s21668_s7 + $0x1d0] sm:$0xff]   ;;  %v14830_v55 = vld [vmem:[%s21668_s7 + $0x260] sm:$0xff]   ;;  %v14835_v43 = vld [vmem:[%s21668_s7 + $0x1a8] sm:$0xff]  }
 0x54b   :  { %v3195_v46 = vrot.slane %v3121_v45, %v3130_v22  ;;  %v3202_v22 = vsel %vm469_vm6, %v3187_v56, %v3201_v12  ;;  %14209 = vmatprep.subr.bf16.mxu0 %v14818_v57  ;;  %14189 = vmatprep.subr.bf16.mxu1 %v14821_v2  ;;  %v14828_v45 = vld [vmem:[%s21668_s7 + $0x218] sm:$0xff]   ;;  %v14831_v52 = vld [vmem:[%s21668_s7 + $0x1a0] sm:$0xff]   ;;  %v14836_v44 = vld [vmem:[%s21668_s7 + $0x228] sm:$0xff]  }
 0x54c   :  { %v14832_v23 = vld [vmem:[%s21668_s7 + $0x220] sm:$0xff]   ;;  %v14839_v10 = vld [vmem:[%s21668_s7 + $0x1b0] sm:$0xff]   ;;  %v14841_v3 = vld [vmem:[%s21668_s7 + $0x1f8] sm:$0xff]  }
 0x54d   :  { %v3196_v35 = vsel %vm3132_vm14, %v3195_v46, %v3191_v32  ;;  %v14834_v32 = vld [vmem:[%s21668_s7 + $0x268] sm:$0xff]   ;;  %v14838_v46 = vld [vmem:[%s21668_s7 + $0x270] sm:$0xff]   ;;  %v14842_v56 = vld [vmem:[%s21668_s7 + $0x278] sm:$0xff]  }
 0x54e   :  { %v3203_v6 = vsel %vm471_vm7, %v3196_v35, %v3202_v22  ;;  %14210 = vmatpush3.bf16.msra.mxu0 %v14820_v58  ;;  %14190 = vmatpush3.bf16.msra.mxu1 %v14823_v59  ;;  %v14840_v18 = vld [vmem:[%s21668_s7 + $0x230] sm:$0xff]   ;;  %v14843_v37 = vld [vmem:[%s21668_s7 + $0x1b8] sm:$0xff]   ;;  %v14845_v35 = vld [vmem:[%s21668_s7 + $0x2c0] sm:$0xff]  }
 0x54f   :  { %v3206_v30 = vsel %vm3205_vm0, %v3203_v6, 0.0  ;;  %14211 = vmatprep.subr.bf16.mxu0 %v14822_v40  ;;  %14191 = vmatprep.subr.bf16.mxu1 %v14825_v8  ;;  %v14844_v48 = vld [vmem:[%s21668_s7 + $0x238] sm:$0xff]   ;;  %v14846_v12 = vld [vmem:[%s21668_s7 + $0x40] sm:$0xff]   ;;  %v16211_v42 = vld [vmem:[%s21913_s1 + $0x68] sm:$0xff] }
 0x550   :  { %v16210_v22 = vld [vmem:[%s21913_s1 + $0x60] sm:$0xff]  ;;  %v16212_v47 = vld [vmem:[%s21913_s1 + $0x70] sm:$0xff]  ;;  %v16215_v40 = vld [vmem:[%s21913_s1 + $0x88] sm:$0xff] }
 0x551   :  { %v16214_v58 = vld [vmem:[%s21913_s1 + $0x80] sm:$0xff] }
 0x552   :  { %14212 = vmatpush3.bf16.msra.mxu0 %v14824_v60  ;;  %14192 = vmatpush3.bf16.msra.mxu1 %v14827_v1 }
 0x553   :  { %14213 = vmatprep.subr.bf16.mxu0 %v14826_v50  ;;  %14193 = vmatprep.subr.bf16.mxu1 %v14829_v36 }
 0x556   :  { %14214 = vmatpush3.bf16.msra.mxu0 %v14828_v45  ;;  %14194 = vmatpush3.bf16.msra.mxu1 %v14831_v52 }
 0x557   :  { %14215 = vmatprep.subr.bf16.mxu0 %v14830_v55  ;;  %14195 = vmatprep.subr.bf16.mxu1 %v14833_v51 }
 0x55a   :  { %14216 = vmatpush3.bf16.msra.mxu0 %v14832_v23  ;;  %14196 = vmatpush3.bf16.msra.mxu1 %v14835_v43  ;;  %v16216_v43 = vld [vmem:[%s21913_s1] sm:$0xff] }
 0x55b   :  { %14217 = vmatprep.subr.bf16.mxu0 %v14834_v32  ;;  %14197 = vmatprep.subr.bf16.mxu1 %v14837_v29  ;;  %v16217_v29 = vld [vmem:[%s21913_s1 + $0x8] sm:$0xff] }
 0x55e   :  { %14218 = vmatpush3.bf16.msra.mxu0 %v14836_v44  ;;  %14198 = vmatpush3.bf16.msra.mxu1 %v14839_v10 }
 0x55f   :  { %14219 = vmatprep.subr.bf16.mxu0 %v14838_v46  ;;  %14199 = vmatprep.subr.bf16.mxu1 %v14841_v3 }
 0x561   :  { %2257 = vadd.xlane.f32.xlu0 %v2256_v53 }
 0x562   :  { %14220 = vmatpush3.bf16.msra.mxu0 %v14840_v18  ;;  %14200 = vmatpush3.bf16.msra.mxu1 %v14843_v37 }
 0x563   :  { %14221 = vmatprep.subr.bf16.mxu0 %v14842_v56  ;;  %14229 = vmatprep.subr.bf16.mxu1 %v14845_v35 }
 0x565   :  { %3207 = vadd.xlane.f32.xlu1 %v3206_v30  ;;  %v16213_v30 = vld [vmem:[%s21913_s1 + $0x78] sm:$0xff] }
 0x566   :  { %14222 = vmatpush3.bf16.msra.mxu0 %v14844_v48 }
 0x567   :  { %14251 = vmatprep.subr.bf16.mxu0 %v14846_v12 }
 0x5b4   :  { %v1697_v53 = vpop.permute.xlu1 %1696 }
 0x5b5   :  { %v1735_v39 = vmul.f32 %v16210_v22, %v1697_v53  ;;  %v1736_v6 = vmul.f32 %v16211_v42, %v1697_v53  ;;  %v1737_v57 = vmul.f32 %v16212_v47, %v1697_v53  ;;  %v1738_v54 = vmul.f32 %v16213_v30, %v1697_v53  ;;  %v1692_v60 = vpop.permute.xlu0 %1691 }
 0x5b6   :  { %v1739_v2 = vmul.f32 %v16214_v58, %v1697_v53  ;;  %v1740_v59 = vmul.f32 %v16215_v40, %v1697_v53  ;;  %v1729_v44 = vmul.f32 %v16216_v43, %v1692_v60  ;;  %v1730_v46 = vmul.f32 %v16217_v29, %v1692_v60  ;;  %v16218_v29 = vld [vmem:[%s21913_s1 + $0x10] sm:$0xff] }
 0x5b7   :  { %v1819_v8 = vsel %vm1231_vm10, %v1735_v39, 0.0  ;;  %v1826_v50 = vsel %vm1231_vm10, %v1736_v6, 0.0  ;;  %v1833_v1 = vsel %vm1231_vm10, %v1737_v57, 0.0  ;;  %v1840_v45 = vsel %vm1231_vm10, %v1738_v54, 0.0 }
 0x5b8   :  { %v1820_v36 = vrot.slane %v1819_v8, 4  ;;  %v1827_v55 = vrot.slane %v1826_v50, 4  ;;  %v1834_v52 = vrot.slane %v1833_v1, 4  ;;  %v1841_v23 = vrot.slane %v1840_v45, 4 }
 0x5b9   :  { %v1847_v51 = vsel %vm1231_vm10, %v1739_v2, 0.0  ;;  %v1854_v32 = vsel %vm1231_vm10, %v1740_v59, 0.0  ;;  %v1777_v6 = vsel %vm1231_vm10, %v1729_v44, 0.0  ;;  %v1784_v47 = vsel %vm1231_vm10, %v1730_v46, 0.0 }
 0x5ba   :  { %v1821_v10 = vadd.f32 %v1820_v36, %v1819_v8  ;;  %v1828_v18 = vadd.f32 %v1827_v55, %v1826_v50  ;;  %v1835_v3 = vadd.f32 %v1834_v52, %v1833_v1  ;;  %v1842_v56 = vadd.f32 %v1841_v23, %v1840_v45 }
 0x5bb   :  { %v1848_v37 = vrot.slane %v1847_v51, 4  ;;  %v1855_v48 = vrot.slane %v1854_v32, 4  ;;  %v1778_v59 = vrot.slane %v1777_v6, 4  ;;  %v1785_v8 = vrot.slane %v1784_v47, 4 }
 0x5bc   :  { %v1822_v35 = vrot.slane %v1821_v10, 2  ;;  %v1829_v12 = vrot.slane %v1828_v18, 2  ;;  %v1836_v53 = vrot.slane %v1835_v3, 2  ;;  %v1843_v22 = vrot.slane %v1842_v56, 2 }
 0x5bd   :  { %v1849_v39 = vadd.f32 %v1848_v37, %v1847_v51  ;;  %v1856_v42 = vadd.f32 %v1855_v48, %v1854_v32  ;;  %v1779_v55 = vadd.f32 %v1778_v59, %v1777_v6  ;;  %v1786_v52 = vadd.f32 %v1785_v8, %v1784_v47  ;;  %v16221_v37 = vld [vmem:[%s21913_s1 + $0x28] sm:$0xff] }
 0x5be   :  { %v1823_v57 = vadd.f32 %v1822_v35, %v1821_v10  ;;  %v1830_v30 = vadd.f32 %v1829_v12, %v1828_v18  ;;  %v1837_v54 = vadd.f32 %v1836_v53, %v1835_v3  ;;  %v1844_v58 = vadd.f32 %v1843_v22, %v1842_v56  ;;  %v16219_v10 = vld [vmem:[%s21913_s1 + $0x18] sm:$0xff]  ;;  %v16220_v3 = vld [vmem:[%s21913_s1 + $0x20] sm:$0xff] }
 0x5bf   :  { %v1850_v2 = vrot.slane %v1849_v39, 2  ;;  %v1857_v40 = vrot.slane %v1856_v42, 2  ;;  %v1780_v43 = vrot.slane %v1779_v55, 2  ;;  %v1787_v44 = vrot.slane %v1786_v52, 2 }
 0x5c0   :  { %v1824_v50 = vrot.slane %v1823_v57, 1  ;;  %v1831_v1 = vrot.slane %v1830_v30, 1  ;;  %v1838_v45 = vrot.slane %v1837_v54, 1  ;;  %v1845_v36 = vrot.slane %v1844_v58, 1 }
 0x5c1   :  { %v1851_v23 = vadd.f32 %v1850_v2, %v1849_v39  ;;  %v1858_v32 = vadd.f32 %v1857_v40, %v1856_v42  ;;  %v1731_v46 = vmul.f32 %v16218_v29, %v1692_v60  ;;  %v1732_v18 = vmul.f32 %v16219_v10, %v1692_v60  ;;  %v16222_v29 = vld [vmem:[%s21913_s1 + $0x120] sm:$0xff] }
 0x5c2   :  { %v1825_v51 = vadd.f32 %v1824_v50, %v1823_v57  ;;  %v1733_v56 = vmul.f32 %v16220_v3, %v1692_v60  ;;  %v1734_v48 = vmul.f32 %v16221_v37, %v1692_v60  ;;  %v18114_v35 = vadd.f32 %v1831_v1, %v1830_v30 }
 0x5c3   :  { %v18116_v12 = vadd.f32 %v1838_v45, %v1837_v54  ;;  %v18118_v53 = vadd.f32 %v1845_v36, %v1844_v58  ;;  %v1781_v22 = vadd.f32 %v1780_v43, %v1779_v55  ;;  %v18122_v39 = vpack.c.bf16 %v17881_v41, %v17881_v41  ;;  %v1707_v58 = vpop.permute.xlu1 %1706 }
 0x5c4   :  { %21978 = vst [vmem:[#allocation44_spill] sm:$0xff] %v18114_v35  ;;  %v1852_v42 = vrot.slane %v1851_v23, 1  ;;  %v1859_v6 = vrot.slane %v1858_v32, 1  ;;  %v4280_v47 = vpack.c.bf16 %v1825_v51, %v1825_v51  ;;  %v1788_v2 = vadd.f32 %v1787_v44, %v1786_v52 }
 0x5c5   :  { %21979 = vst [vmem:[#allocation43_spill] sm:$0xff] %v18118_v53  ;;  %21980 = vst [vmem:[#allocation46_spill] sm:$0xff] %v18122_v39  ;;  %v1782_v57 = vrot.slane %v1781_v22, 1  ;;  %v1791_v40 = vsel %vm1231_vm10, %v1731_v46, 0.0  ;;  %v1798_v60 = vsel %vm1231_vm10, %v1732_v18, 0.0  ;;  %v1805_v30 = vsel %vm1231_vm10, %v1733_v56, 0.0 }
 0x5c6   :  { %v1812_v54 = vsel %vm1231_vm10, %v1734_v48, 0.0  ;;  %v4281_v59 = vpack.c.bf16 %v18114_v35, %v18114_v35  ;;  %v4282_v41 = vpack.c.bf16 %v18116_v12, %v18116_v12  ;;  %v4283_v8 = vpack.c.bf16 %v18118_v53, %v18118_v53 }
 0x5c7   :  { %v18134_v50 = vadd.f32 %v1782_v57, %v1781_v22  ;;  %v1792_v1 = vrot.slane %v1791_v40, 4  ;;  %v1799_v45 = vrot.slane %v1798_v60, 4  ;;  %v1806_v36 = vrot.slane %v1805_v30, 4  ;;  %v1717_v33 = vpop.permute.xlu1 %1716 }
 0x5c8   :  { %v1813_v55 = vrot.slane %v1812_v54, 4  ;;  %v18136_v52 = vadd.f32 %v1852_v42, %v1851_v23  ;;  %v1789_v43 = vrot.slane %v1788_v2, 1  ;;  %v1747_v46 = vmul.f32 %v16222_v29, %v1707_v58  ;;  %v16223_v23 = vld [vmem:[%s21913_s1 + $0x128] sm:$0xff] }
 0x5c9   :  { %v18140_v44 = vsel %vm459_vm1, %v1825_v51, %v18134_v50  ;;  %v1793_v10 = vadd.f32 %v1792_v1, %v1791_v40  ;;  %v1800_v18 = vadd.f32 %v1799_v45, %v1798_v60  ;;  %v1807_v3 = vadd.f32 %v1806_v36, %v1805_v30  ;;  %v16224_v51 = vld [vmem:[%s21913_s1 + $0x130] sm:$0xff] }
 0x5ca   :  { %21981 = vst [vmem:[#allocation45_spill] sm:$0xff] %v18136_v52  ;;  %v1814_v56 = vadd.f32 %v1813_v55, %v1812_v54  ;;  %v18145_v37 = vadd.f32 %v1859_v6, %v1858_v32  ;;  %v18147_v48 = vunpack.c.l.b16 %v4280_v47  ;;  %v1748_v22 = vmul.f32 %v16223_v23, %v1707_v58  ;;  %v16225_v6 = vld [vmem:[%s21913_s1 + $0x138] sm:$0xff] }
 0x5cb   :  { %v1749_v42 = vmul.f32 %v16224_v51, %v1707_v58  ;;  %v1794_v57 = vrot.slane %v1793_v10, 2  ;;  %v1801_v29 = vrot.slane %v1800_v18, 2  ;;  %v1808_v40 = vrot.slane %v1807_v3, 2 }
 0x5cc   :  { %21982 = vst [vmem:[#allocation31_spill] sm:$0xff] %v18145_v37  ;;  %v1815_v60 = vrot.slane %v1814_v56, 2  ;;  %v18155_v30 = vunpack.c.l.b16 %v4281_v59  ;;  %v18157_v32 = vadd.f32 %v1789_v43, %v1788_v2  ;;  %v1750_v47 = vmul.f32 %v16225_v6, %v1707_v58 }
 0x5cd   :  { %v1903_v54 = vsel %vm1231_vm10, %v1747_v46, 0.0  ;;  %v1795_v1 = vadd.f32 %v1794_v57, %v1793_v10  ;;  %v1802_v45 = vadd.f32 %v1801_v29, %v1800_v18  ;;  %v1809_v36 = vadd.f32 %v1808_v40, %v1807_v3 }
 0x5ce   :  { %21983 = vst [vmem:[#allocation22_spill] sm:$0xff] %v18157_v32  ;;  %v1816_v55 = vadd.f32 %v1815_v60, %v1814_v56  ;;  %v1904_v23 = vrot.slane %v1903_v54, 4  ;;  %v1910_v51 = vsel %vm1231_vm10, %v1748_v22, 0.0  ;;  %v1917_v53 = vsel %vm1231_vm10, %v1749_v42, 0.0 }
 0x5cf   :  { %v1924_v59 = vsel %vm1231_vm10, %v1750_v47, 0.0  ;;  %v18166_v2 = vunpack.c.l.b16 %v4282_v41  ;;  %v1796_v43 = vrot.slane %v1795_v1, 1  ;;  %v1803_v35 = vrot.slane %v1802_v45, 1  ;;  %v16226_v47 = vld [vmem:[%s21913_s1 + $0x140] sm:$0xff] }
 0x5d0   :  { %v1810_v49 = vrot.slane %v1809_v36, 1  ;;  %v4285_v6 = vpack.c.bf16 %v18145_v37, %v18145_v37  ;;  %v1905_v46 = vadd.f32 %v1904_v23, %v1903_v54  ;;  %v1911_v10 = vrot.slane %v1910_v51, 4 }
 0x5d1   :  { %v1918_v18 = vrot.slane %v1917_v53, 4  ;;  %v1797_v3 = vadd.f32 %v1796_v43, %v1795_v1  ;;  %v1817_v57 = vrot.slane %v1816_v55, 1  ;;  %v1925_v22 = vrot.slane %v1924_v59, 4 }
 0x5d2   :  { %v18170_v56 = vadd.f32 %v1810_v49, %v1809_v36  ;;  %v4274_v42 = vpack.c.bf16 %v18134_v50, %v18134_v50  ;;  %v4275_v41 = vpack.c.bf16 %v18157_v32, %v18157_v32  ;;  %v1906_v29 = vrot.slane %v1905_v46, 2  ;;  %v16227_v49 = vld [vmem:[%s21913_s1 + $0x148] sm:$0xff] }
 0x5d3   :  { %v1912_v40 = vadd.f32 %v1911_v10, %v1910_v51  ;;  %v18176_v60 = vadd.f32 %v1803_v35, %v1802_v45  ;;  %v1751_v54 = vmul.f32 %v16226_v47, %v1707_v58  ;;  %v1752_v1 = vmul.f32 %v16227_v49, %v1707_v58  ;;  %v1702_v58 = vpop.permute.xlu0 %1701 }
 0x5d4   :  { %21984 = vst [vmem:[#allocation65_spill] sm:$0xff] %v18170_v56  ;;  %v1919_v36 = vadd.f32 %v1918_v18, %v1917_v53  ;;  %v18184_v23 = vunpack.c.l.b16 %v4283_v8  ;;  %v18188_v50 = vsel %vm459_vm1, %v18116_v12, %v1797_v3  ;;  %v18193_v35 = vsel %vm459_vm1, %v18136_v52, %v18170_v56 }
 0x5d5   :  { %21985 = vst [vmem:[#allocation66_spill] sm:$0xff] %v18176_v60  ;;  %v1907_v45 = vadd.f32 %v1906_v29, %v1905_v46  ;;  %v18197_v43 = vunpack.c.l.b16 %v4285_v6  ;;  %v18199_v10 = vadd.f32 %v1817_v57, %v1816_v55  ;;  %v1926_v53 = vadd.f32 %v1925_v22, %v1924_v59  ;;  %v16228_v59 = vld [vmem:[%s21913_s1 + $0xc0] sm:$0xff]  ;;  %v16229_v57 = vld [vmem:[%s21913_s1 + $0xc8] sm:$0xff] }
 0x5d6   :  { %v4276_v8 = vpack.c.bf16 %v1797_v3, %v1797_v3  ;;  %v18201_v18 = vunpack.c.l.b16 %v4274_v42  ;;  %v18203_v12 = vunpack.c.l.b16 %v4275_v41  ;;  %v1913_v47 = vrot.slane %v1912_v40, 2 }
 0x5d7   :  { %21986 = vst [vmem:[#allocation67_spill] sm:$0xff] %v18199_v10  ;;  %v4277_v49 = vpack.c.bf16 %v18176_v60, %v18176_v60  ;;  %v1920_v37 = vrot.slane %v1919_v36, 2  ;;  %v1931_v46 = vsel %vm1231_vm10, %v1751_v54, 0.0  ;;  %v1938_v29 = vsel %vm1231_vm10, %v1752_v1, 0.0  ;;  %v16230_v60 = vld [vmem:[%s21913_s1 + $0xd0] sm:$0xff] }
 0x5d8   :  { %v1908_v6 = vrot.slane %v1907_v45, 1  ;;  %v1741_v3 = vmul.f32 %v16228_v59, %v1702_v58  ;;  %v1742_v22 = vmul.f32 %v16229_v57, %v1702_v58  ;;  %v4279_v42 = vpack.c.bf16 %v18199_v10, %v18199_v10  ;;  %v16231_v59 = vld [vmem:[%s21913_s1 + $0xd8] sm:$0xff] }
 0x5d9   :  { %v1927_v41 = vrot.slane %v1926_v53, 2  ;;  %v1932_v54 = vrot.slane %v1931_v46, 4  ;;  %v1939_v1 = vrot.slane %v1938_v29, 4  ;;  %v18219_v51 = vunpack.c.l.b16 %v4276_v8  ;;  %v16232_v8 = vld [vmem:[%s21913_s1 + $0xe0] sm:$0xff] }
 0x5da   :  { %v1914_v55 = vadd.f32 %v1913_v47, %v1912_v40  ;;  %v1743_v32 = vmul.f32 %v16230_v60, %v1702_v58  ;;  %v1744_v63 = vmul.f32 %v16231_v59, %v1702_v58  ;;  %v18227_v57 = vunpack.c.l.b16 %v4277_v49  ;;  %v16233_v60 = vld [vmem:[%s21913_s1 + $0xe8] sm:$0xff] }
 0x5db   :  { %v1921_v26 = vadd.f32 %v1920_v37, %v1919_v36  ;;  %v1940_v10 = vadd.f32 %v1939_v1, %v1938_v29  ;;  %v1745_v14 = vmul.f32 %v16232_v8, %v1702_v58  ;;  %v18232_v40 = vadd.f32 %v1908_v6, %v1907_v45 }
 0x5dc   :  { %v1746_v47 = vmul.f32 %v16233_v60, %v1702_v58  ;;  %v1861_v34 = vsel %vm1231_vm10, %v1741_v3, 0.0  ;;  %v1868_v59 = vsel %vm1231_vm10, %v1742_v22, 0.0  ;;  %v1928_v49 = vadd.f32 %v1927_v41, %v1926_v53 }
 0x5dd   :  { %21987 = vst [vmem:[#allocation68_spill] sm:$0xff] %v18232_v40  ;;  %v1933_v20 = vadd.f32 %v1932_v54, %v1931_v46  ;;  %v1862_v37 = vrot.slane %v1861_v34, 4  ;;  %v1869_v36 = vrot.slane %v1868_v59, 4  ;;  %v1915_v29 = vrot.slane %v1914_v55, 1 }
 0x5de   :  { %v1875_v1 = vsel %vm1231_vm10, %v1743_v32, 0.0  ;;  %v1882_v8 = vsel %vm1231_vm10, %v1744_v63, 0.0  ;;  %v1889_v45 = vsel %vm1231_vm10, %v1745_v14, 0.0  ;;  %v1922_v6 = vrot.slane %v1921_v26, 1 }
 0x5df   :  { %v1941_v24 = vrot.slane %v1940_v10, 2  ;;  %v1863_v21 = vadd.f32 %v1862_v37, %v1861_v34  ;;  %v1870_v16 = vadd.f32 %v1869_v36, %v1868_v59  ;;  %v1876_v58 = vrot.slane %v1875_v1, 4 }
 0x5e0   :  { %v1883_v60 = vrot.slane %v1882_v8, 4  ;;  %v1890_v3 = vrot.slane %v1889_v45, 4  ;;  %v1896_v22 = vsel %vm1231_vm10, %v1746_v47, 0.0  ;;  %v1929_v53 = vrot.slane %v1928_v49, 1 }
 0x5e1   :  { %v1934_v46 = vrot.slane %v1933_v20, 2  ;;  %v1864_v41 = vrot.slane %v1863_v21, 2  ;;  %v1871_v54 = vrot.slane %v1870_v16, 2  ;;  %v1877_v0 = vadd.f32 %v1876_v58, %v1875_v1 }
 0x5e2   :  { %v1884_v31 = vadd.f32 %v1883_v60, %v1882_v8  ;;  %v1891_v32 = vadd.f32 %v1890_v3, %v1889_v45  ;;  %v1897_v61 = vrot.slane %v1896_v22, 4  ;;  %v18243_v63 = vunpack.c.l.b16 %v4279_v42 }
 0x5e3   :  { %v18245_v14 = vadd.f32 %v1915_v29, %v1914_v55  ;;  %v1942_v62 = vadd.f32 %v1941_v24, %v1940_v10  ;;  %v1865_v34 = vadd.f32 %v1864_v41, %v1863_v21  ;;  %v1872_v59 = vadd.f32 %v1871_v54, %v1870_v16  ;;  %v16234_v16 = vld [vmem:[%s21913_s1 + $0x1e0] sm:$0xff] }
 0x5e4   :  { %v1878_v37 = vrot.slane %v1877_v0, 2  ;;  %v1892_v36 = vrot.slane %v1891_v32, 2  ;;  %v1898_v38 = vadd.f32 %v1897_v61, %v1896_v22  ;;  %v18247_v47 = vadd.f32 %v1922_v6, %v1921_v26  ;;  %v16236_v22 = vld [vmem:[%s21913_s1 + $0x1f0] sm:$0xff] }
 0x5e5   :  { %21988 = vst [vmem:[#allocation69_spill] sm:$0xff] %v18245_v14  ;;  %v18249_v28 = vadd.f32 %v1934_v46, %v1933_v20  ;;  %v1866_v8 = vrot.slane %v1865_v34, 1  ;;  %v18253_v45 = vadd.f32 %v1929_v53, %v1928_v49  ;;  %v1885_v55 = vrot.slane %v1884_v31, 2  ;;  %v16235_v20 = vld [vmem:[%s21913_s1 + $0x1e8] sm:$0xff] }
 0x5e6   :  { %21989 = vst [vmem:[#allocation70_spill] sm:$0xff] %v18247_v47  ;;  %v1879_v42 = vadd.f32 %v1878_v37, %v1877_v0  ;;  %v1893_v29 = vadd.f32 %v1892_v36, %v1891_v32  ;;  %v1943_v24 = vrot.slane %v1942_v62, 1  ;;  %v1759_v61 = vmul.f32 %v16234_v16, %v1717_v33  ;;  %v16237_v32 = vld [vmem:[%s21913_s1 + $0x1f8] sm:$0xff] }
 0x5e7   :  { %21990 = vst [vmem:[#allocation71_spill] sm:$0xff] %v18249_v28  ;;  %21991 = vst [vmem:[#allocation72_spill] sm:$0xff] %v18253_v45  ;;  %v1867_v21 = vadd.f32 %v1866_v8, %v1865_v34  ;;  %v1760_v26 = vmul.f32 %v16235_v20, %v1717_v33  ;;  %v1873_v10 = vrot.slane %v1872_v59, 1  ;;  %v1899_v49 = vrot.slane %v1898_v38, 2 }
 0x5e8   :  { %v1880_v6 = vrot.slane %v1879_v42, 1  ;;  %v1894_v58 = vrot.slane %v1893_v29, 1  ;;  %v1761_v53 = vmul.f32 %v16236_v22, %v1717_v33  ;;  %v1886_v41 = vadd.f32 %v1885_v55, %v1884_v31 }
 0x5e9   :  { %v18266_v3 = vsel %vm461_vm2, %v1867_v21, %v18140_v44  ;;  %v1762_v34 = vmul.f32 %v16237_v32, %v1717_v33  ;;  %v18276_v37 = vadd.f32 %v1943_v24, %v1942_v62  ;;  %v16238_v44 = vld [vmem:[%s21913_s1 + $0x200] sm:$0xff]  ;;  %v1987_v8 = vsel %vm1231_vm10, %v1759_v61, 0.0  ;;  %v16239_v62 = vld [vmem:[%s21913_s1 + $0x208] sm:$0xff] }
 0x5ea   :  { %21992 = vst [vmem:[#allocation73_spill] sm:$0xff] %v18266_v3  ;;  %v1881_v46 = vadd.f32 %v1880_v6, %v1879_v42  ;;  %v18271_v54 = vadd.f32 %v1894_v58, %v1893_v29  ;;  %v1763_v36 = vmul.f32 %v16238_v44, %v1717_v33  ;;  %v1994_v16 = vsel %vm1231_vm10, %v1760_v26, 0.0 }
 0x5eb   :  { %21994 = vst [vmem:[#allocation75_spill] sm:$0xff] %v18276_v37  ;;  %v18283_v42 = vadd.f32 %v1873_v10, %v1872_v59  ;;  %v1900_v31 = vadd.f32 %v1899_v49, %v1898_v38  ;;  %v1764_v29 = vmul.f32 %v16239_v62, %v1717_v33  ;;  %v1988_v61 = vrot.slane %v1987_v8, 4  ;;  %v1712_v33 = vpop.permute.xlu0 %1711 }
 0x5ec   :  { %21993 = vst [vmem:[#allocation74_spill] sm:$0xff] %v18271_v54  ;;  %v18287_v55 = vsel %vm461_vm2, %v1881_v46, %v18188_v50  ;;  %v18295_v24 = vsel %vm461_vm2, %v18271_v54, %v18193_v35  ;;  %v1995_v20 = vrot.slane %v1994_v16, 4  ;;  %v2001_v59 = vsel %vm1231_vm10, %v1761_v53, 0.0 }
 0x5ed   :  { %21995 = vst [vmem:[#allocation76_spill] sm:$0xff] %v18283_v42  ;;  %21996 = vst [vmem:[#allocation77_spill] sm:$0xff] %v18287_v55  ;;  %v1887_v26 = vrot.slane %v1886_v41, 1  ;;  %v4286_v38 = vpack.c.bf16 %v1867_v21, %v1867_v21  ;;  %v2002_v10 = vrot.slane %v2001_v59, 4  ;;  %v2008_v50 = vsel %vm1231_vm10, %v1762_v34, 0.0  ;;  %v16240_v34 = vld [vmem:[%s21913_s1 + $0x180] sm:$0xff] }
 0x5ee   :  { %21997 = vst [vmem:[#allocation78_spill] sm:$0xff] %v18295_v24  ;;  %v1989_v6 = vadd.f32 %v1988_v61, %v1987_v8  ;;  %v1996_v58 = vadd.f32 %v1995_v20, %v1994_v16  ;;  %v2009_v49 = vrot.slane %v2008_v50, 4  ;;  %v2015_v22 = vsel %vm1231_vm10, %v1763_v36, 0.0  ;;  %v16241_v36 = vld [vmem:[%s21913_s1 + $0x188] sm:$0xff] }
 0x5ef   :  { %v1901_v32 = vrot.slane %v1900_v31, 1  ;;  %v2003_v44 = vadd.f32 %v2002_v10, %v2001_v59  ;;  %v2016_v62 = vrot.slane %v2015_v22, 4  ;;  %v2022_v35 = vsel %vm1231_vm10, %v1764_v29, 0.0 }
 0x5f0   :  { %v4288_v0 = vpack.c.bf16 %v1881_v46, %v1881_v46  ;;  %v1990_v60 = vrot.slane %v1989_v6, 2  ;;  %v2010_v1 = vadd.f32 %v2009_v49, %v2008_v50  ;;  %v2023_v53 = vrot.slane %v2022_v35, 4  ;;  %v16242_v50 = vld [vmem:[%s21913_s1 + $0x190] sm:$0xff] }
 0x5f1   :  { %v2004_v24 = vrot.slane %v2003_v44, 2  ;;  %v2017_v21 = vadd.f32 %v2016_v62, %v2015_v22  ;;  %v1753_v8 = vmul.f32 %v16240_v34, %v1712_v33  ;;  %v1754_v16 = vmul.f32 %v16241_v36, %v1712_v33  ;;  %v16243_v22 = vld [vmem:[%s21913_s1 + $0x198] sm:$0xff] }
 0x5f2   :  { %v18307_v61 = vadd.f32 %v1887_v26, %v1886_v41  ;;  %v18309_v20 = vunpack.c.l.b16 %v4286_v38  ;;  %v1991_v46 = vadd.f32 %v1990_v60, %v1989_v6  ;;  %v1997_v29 = vrot.slane %v1996_v58, 2  ;;  %v16244_v60 = vld [vmem:[%s21913_s1 + $0x1a0] sm:$0xff] }
 0x5f3   :  { %v2011_v59 = vrot.slane %v2010_v1, 2  ;;  %v2024_v10 = vadd.f32 %v2023_v53, %v2022_v35  ;;  %v1755_v49 = vmul.f32 %v16242_v50, %v1712_v33  ;;  %v1756_v62 = vmul.f32 %v16243_v22, %v1712_v33  ;;  %v16245_v35 = vld [vmem:[%s21913_s1 + $0x1a8] sm:$0xff] }
 0x5f4   :  { %21998 = vst [vmem:[#allocation79_spill] sm:$0xff] %v18307_v61  ;;  %v18317_v34 = vadd.f32 %v1901_v32, %v1900_v31  ;;  %v18319_v41 = vunpack.c.l.b16 %v4288_v0  ;;  %v2005_v26 = vadd.f32 %v2004_v24, %v2003_v44  ;;  %v2018_v38 = vrot.slane %v2017_v21, 2 }
 0x5f5   :  { %v1757_v6 = vmul.f32 %v16244_v60, %v1712_v33  ;;  %v1758_v53 = vmul.f32 %v16245_v35, %v1712_v33  ;;  %v1945_v36 = vsel %vm1231_vm10, %v1753_v8, 0.0  ;;  %v1952_v50 = vsel %vm1231_vm10, %v1754_v16, 0.0  ;;  %v1727_v35 = vpop.permute.xlu1 %1726 }
 0x5f6   :  { %21999 = vst [vmem:[#allocation80_spill] sm:$0xff] %v18317_v34  ;;  %v1992_v31 = vrot.slane %v1991_v46, 1  ;;  %v18329_v32 = vadd.f32 %v1997_v29, %v1996_v58  ;;  %v1946_v0 = vrot.slane %v1945_v36, 4  ;;  %v1953_v24 = vrot.slane %v1952_v50, 4 }
 0x5f7   :  { %v18331_v44 = vadd.f32 %v2011_v59, %v2010_v1  ;;  %v2025_v22 = vrot.slane %v2024_v10, 2  ;;  %v1959_v55 = vsel %vm1231_vm10, %v1755_v49, 0.0  ;;  %v1966_v60 = vsel %vm1231_vm10, %v1756_v62, 0.0 }
 0x5f8   :  { %v1947_v3 = vadd.f32 %v1946_v0, %v1945_v36  ;;  %v1954_v7 = vadd.f32 %v1953_v24, %v1952_v50  ;;  %v1960_v25 = vrot.slane %v1959_v55, 4  ;;  %v1967_v33 = vrot.slane %v1966_v60, 4  ;;  %v16246_v36 = vld [vmem:[%s21913_s1 + $0x2a0] sm:$0xff] }
 0x5f9   :  { %v2006_v8 = vrot.slane %v2005_v26, 1  ;;  %v18335_v27 = vadd.f32 %v2018_v38, %v2017_v21  ;;  %v1973_v58 = vsel %vm1231_vm10, %v1757_v6, 0.0  ;;  %v1980_v16 = vsel %vm1231_vm10, %v1758_v53, 0.0 }
 0x5fa   :  { %v1948_v29 = vrot.slane %v1947_v3, 2  ;;  %v1955_v1 = vrot.slane %v1954_v7, 2  ;;  %v1961_v59 = vadd.f32 %v1960_v25, %v1959_v55  ;;  %v1968_v17 = vadd.f32 %v1967_v33, %v1966_v60  ;;  %v16247_v25 = vld [vmem:[%s21913_s1 + $0x2a8] sm:$0xff] }
 0x5fb   :  { %22000 = vst [vmem:[#allocation81_spill] sm:$0xff] %v18335_v27  ;;  %v18339_v19 = vadd.f32 %v1992_v31, %v1991_v46  ;;  %v1974_v49 = vrot.slane %v1973_v58, 4  ;;  %v1981_v62 = vrot.slane %v1980_v16, 4  ;;  %v1771_v50 = vmul.f32 %v16246_v36, %v1727_v35  ;;  %v16248_v46 = vld [vmem:[%s21913_s1 + $0x2b0] sm:$0xff] }
 0x5fc   :  { %v18344_v0 = vadd.f32 %v2025_v22, %v2024_v10  ;;  %v1949_v21 = vadd.f32 %v1948_v29, %v1947_v3  ;;  %v1962_v38 = vrot.slane %v1961_v59, 2  ;;  %v1969_v6 = vrot.slane %v1968_v17, 2  ;;  %v16249_v3 = vld [vmem:[%s21913_s1 + $0x2b8] sm:$0xff]  ;;  %v16250_v22 = vld [vmem:[%s21913_s1 + $0x2c0] sm:$0xff] }
 0x5fd   :  { %22001 = vst [vmem:[#allocation82_spill] sm:$0xff] %v18339_v19  ;;  %v1975_v24 = vadd.f32 %v1974_v49, %v1973_v58  ;;  %v1982_v53 = vadd.f32 %v1981_v62, %v1980_v16  ;;  %v1772_v55 = vmul.f32 %v16247_v25, %v1727_v35  ;;  %v1773_v31 = vmul.f32 %v16248_v46, %v1727_v35  ;;  %v16251_v25 = vld [vmem:[%s21913_s1 + $0x2c8] sm:$0xff] }
 0x5fe   :  { %v18352_v60 = vadd.f32 %v1955_v1, %v1954_v7  ;;  %v1963_v33 = vadd.f32 %v1962_v38, %v1961_v59  ;;  %v1774_v10 = vmul.f32 %v16249_v3, %v1727_v35  ;;  %v1775_v58 = vmul.f32 %v16250_v22, %v1727_v35 }
 0x5ff   :  { %v1950_v16 = vrot.slane %v1949_v21, 1  ;;  %v18360_v29 = vadd.f32 %v1969_v6, %v1968_v17  ;;  %v1983_v49 = vrot.slane %v1982_v53, 2  ;;  %v2071_v62 = vsel %vm1231_vm10, %v1771_v50, 0.0  ;;  %v1722_v50 = vpop.permute.xlu0 %1721 }
 0x600   :  { %v18363_v36 = vadd.f32 %v2006_v8, %v2005_v26  ;;  %v1964_v7 = vrot.slane %v1963_v33, 1  ;;  %v1976_v1 = vrot.slane %v1975_v24, 2  ;;  %v2072_v59 = vrot.slane %v2071_v62, 4 }
 0x601   :  { %v18365_v38 = vadd.f32 %v1983_v49, %v1982_v53  ;;  %v1776_v46 = vmul.f32 %v16251_v25, %v1727_v35  ;;  %v2078_v3 = vsel %vm1231_vm10, %v1772_v55, 0.0  ;;  %v2085_v17 = vsel %vm1231_vm10, %v1773_v31, 0.0 }
 0x602   :  { %22002 = vst [vmem:[#allocation83_spill] sm:$0xff] %v18363_v36  ;;  %v1957_v6 = vrot.slane %v18352_v60, 1  ;;  %v18373_v22 = vadd.f32 %v2072_v59, %v2071_v62  ;;  %v2079_v26 = vrot.slane %v2078_v3, 4  ;;  %v2086_v8 = vrot.slane %v2085_v17, 4 }
 0x603   :  { %v18375_v13 = vadd.f32 %v1950_v16, %v1949_v21  ;;  %v2092_v49 = vsel %vm1231_vm10, %v1774_v10, 0.0  ;;  %v2099_v15 = vsel %vm1231_vm10, %v1775_v58, 0.0  ;;  %v18380_v35 = vadd.f32 %v1964_v7, %v1963_v33  ;;  %v16252_v21 = vld [vmem:[%s21913_s1 + $0x240] sm:$0xff] }
 0x604   :  { %v18382_v55 = vadd.f32 %v1976_v1, %v1975_v24  ;;  %v18384_v31 = vadd.f32 %v2086_v8, %v2085_v17  ;;  %v2093_v25 = vrot.slane %v2092_v49, 4  ;;  %v2100_v59 = vrot.slane %v2099_v15, 4  ;;  %v16253_v24 = vld [vmem:[%s21913_s1 + $0x248] sm:$0xff]  ;;  %v16255_v8 = vld [vmem:[%s21913_s1 + $0x258] sm:$0xff] }
 0x605   :  { %22003 = vst [vmem:[#allocation84_spill] sm:$0xff] %v18375_v13  ;;  %22004 = vst [vmem:[#allocation85_spill] sm:$0xff] %v18380_v35  ;;  %v2106_v9 = vsel %vm1231_vm10, %v1776_v46, 0.0  ;;  %v1765_v16 = vmul.f32 %v16252_v21, %v1722_v50  ;;  %v2080_v58 = vadd.f32 %v2079_v26, %v2078_v3  ;;  %v1766_v7 = vmul.f32 %v16253_v24, %v1722_v50  ;;  %v16254_v46 = vld [vmem:[%s21913_s1 + $0x250] sm:$0xff]  ;;  %v16256_v3 = vld [vmem:[%s21913_s1 + $0x260] sm:$0xff] }
 0x606   :  { %v18396_v1 = vadd.f32 %v2093_v25, %v2092_v49  ;;  %v1767_v17 = vmul.f32 %v16254_v46, %v1722_v50  ;;  %v1768_v21 = vmul.f32 %v16255_v8, %v1722_v50  ;;  %v1769_v26 = vmul.f32 %v16256_v3, %v1722_v50  ;;  %v16257_v49 = vld [vmem:[%s21913_s1 + $0x268] sm:$0xff] }
 0x607   :  { %v2107_v62 = vrot.slane %v2106_v9, 4  ;;  %v1770_v25 = vmul.f32 %v16257_v49, %v1722_v50  ;;  %v2029_v24 = vsel %vm1231_vm10, %v1765_v16, 0.0  ;;  %v2036_v46 = vsel %vm1231_vm10, %v1766_v7, 0.0 }
 0x608   :  { %v18412_v33 = vadd.f32 %v2100_v59, %v2099_v15  ;;  %v2030_v10 = vrot.slane %v2029_v24, 4  ;;  %v2037_v53 = vrot.slane %v2036_v46, 4  ;;  %v2043_v8 = vsel %vm1231_vm10, %v1767_v17, 0.0 }
 0x609   :  { %v2044_v11 = vrot.slane %v2043_v8, 4  ;;  %v2050_v4 = vsel %vm1231_vm10, %v1768_v21, 0.0  ;;  %v2057_v3 = vsel %vm1231_vm10, %v1769_v26, 0.0  ;;  %v2064_v5 = vsel %vm1231_vm10, %v1770_v25, 0.0 }
 0x60a   :  { %v2031_v56 = vadd.f32 %v2030_v10, %v2029_v24  ;;  %v2038_v52 = vadd.f32 %v2037_v53, %v2036_v46  ;;  %v2051_v50 = vrot.slane %v2050_v4, 4  ;;  %v2058_v49 = vrot.slane %v2057_v3, 4 }
 0x60b   :  { %v2045_v16 = vadd.f32 %v2044_v11, %v2043_v8  ;;  %v2065_v54 = vrot.slane %v2064_v5, 4  ;;  %v18419_v15 = vadd.f32 %v1957_v6, %v18352_v60  ;;  %v1999_v59 = vrot.slane %v18329_v32, 1 }
 0x60c   :  { %v2032_v7 = vrot.slane %v2031_v56, 2  ;;  %v2039_v17 = vrot.slane %v2038_v52, 2  ;;  %v2052_v39 = vadd.f32 %v2051_v50, %v2050_v4  ;;  %v2059_v27 = vadd.f32 %v2058_v49, %v2057_v3 }
 0x60d   :  { %22005 = vst [vmem:[#allocation86_spill] sm:$0xff] %v18419_v15  ;;  %v2046_v21 = vrot.slane %v2045_v16, 2  ;;  %v18422_v28 = vadd.f32 %v2065_v54, %v2064_v5  ;;  %v18425_v26 = vadd.f32 %v1999_v59, %v18329_v32  ;;  %v2081_v53 = vrot.slane %v2080_v58, 2 }
 0x60e   :  { %v18427_v10 = vadd.f32 %v2107_v62, %v2106_v9  ;;  %v2033_v11 = vadd.f32 %v2032_v7, %v2031_v56  ;;  %v2060_v25 = vrot.slane %v2059_v27, 2  ;;  %v2040_v24 = vadd.f32 %v2039_v17, %v2038_v52 }
 0x60f   :  { %22006 = vst [vmem:[#allocation87_spill] sm:$0xff] %v18425_v26  ;;  %v18429_v60 = vadd.f32 %v2046_v21, %v2045_v16  ;;  %v2053_v6 = vrot.slane %v2052_v39, 2  ;;  %v2082_v46 = vadd.f32 %v2081_v53, %v2080_v58  ;;  %v4287_v4 = vpack.c.bf16 %v18283_v42, %v18283_v42 }
 0x610   :  { %v2034_v8 = vrot.slane %v2033_v11, 1  ;;  %v2067_v5 = vrot.slane %v18422_v28, 2  ;;  %v2041_v54 = vrot.slane %v2040_v24, 1  ;;  %v4293_v32 = vpack.c.bf16 %v18245_v14, %v18245_v14 }
 0x611   :  { %v18436_v3 = vadd.f32 %v2060_v25, %v2059_v27  ;;  %v2083_v9 = vrot.slane %v2082_v46, 1  ;;  %v4299_v52 = vpack.c.bf16 %v18419_v15, %v18419_v15  ;;  %v4305_v56 = vpack.c.bf16 %v18425_v26, %v18425_v26  ;;  %v19191_v15 = vld [vmem:[%s21913_s1 + $0xe0] sm:$0xff] }
 0x612   :  { %v2048_v62 = vrot.slane %v18429_v60, 1  ;;  %v18443_v58 = vadd.f32 %v2041_v54, %v2040_v24  ;;  %v4383_v50 = vunpack.c.l.b16 %v4287_v4  ;;  %v4389_v49 = vunpack.c.l.b16 %v4293_v32 }
 0x613   :  { %v18445_v16 = vadd.f32 %v2083_v9, %v2082_v46  ;;  %v4395_v59 = vunpack.c.l.b16 %v4299_v52  ;;  %v4401_v7 = vunpack.c.l.b16 %v4305_v56  ;;  %v4425_v27 = vsel %vm459_vm1, %v18155_v30, %v18203_v12 }
 0x614   :  { %22007 = vst [vmem:[#allocation88_spill] sm:$0xff] %v18443_v58  ;;  %v4311_v17 = vpack.c.bf16 %v18443_v58, %v18443_v58  ;;  %v4426_v21 = vsel %vm461_vm2, %v4383_v50, %v4425_v27  ;;  %v22009_v53 = vrot.slane %v18360_v29, 1  ;;  %v2013_v24 = vrot.slane %v18331_v44, 1 }
 0x615   :  { %22008 = vst [vmem:[#allocation89_spill] sm:$0xff] %v18445_v16  ;;  %v4317_v46 = vpack.c.bf16 %v18445_v16, %v18445_v16  ;;  %v4427_v4 = vsel %vm463_vm3, %v4389_v49, %v4426_v21  ;;  %v2054_v54 = vadd.f32 %v2053_v6, %v2052_v39  ;;  %v2095_v30 = vrot.slane %v18396_v1, 2 }
 0x616   :  { %v18456_v25 = vadd.f32 %v22009_v53, %v18360_v29  ;;  %v4407_v12 = vunpack.c.l.b16 %v4311_v17  ;;  %v4428_v32 = vsel %vm465_vm4, %v4395_v59, %v4427_v4  ;;  %v18465_v9 = vadd.f32 %v2013_v24, %v18331_v44 }
 0x617   :  { %v4289_v29 = vpack.c.bf16 %v18307_v61, %v18307_v61  ;;  %v4413_v52 = vunpack.c.l.b16 %v4317_v46  ;;  %v4429_v56 = vsel %vm467_vm5, %v4401_v7, %v4428_v32  ;;  %v2055_v50 = vrot.slane %v2054_v54, 1 }
 0x618   :  { %22010 = vst [vmem:[#allocation90_spill] sm:$0xff] %v18456_v25  ;;  %22011 = vst [vmem:[#allocation91_spill] sm:$0xff] %v18465_v9  ;;  %v2096_v27 = vadd.f32 %v2095_v30, %v18396_v1  ;;  %v4430_v49 = vsel %vm469_vm6, %v4407_v12, %v4429_v56  ;;  %v4295_v39 = vpack.c.bf16 %v18253_v45, %v18253_v45 }
 0x619   :  { %v4301_v6 = vpack.c.bf16 %v18456_v25, %v18456_v25  ;;  %v4307_v44 = vpack.c.bf16 %v18465_v9, %v18465_v9  ;;  %v4431_v59 = vsel %vm471_vm7, %v4413_v52, %v4430_v49  ;;  %v18479_v17 = vadd.f32 %v2055_v50, %v2054_v54 }
 0x61a   :  { %v2097_v21 = vrot.slane %v2096_v27, 1  ;;  %v4385_v7 = vunpack.c.l.b16 %v4289_v29  ;;  %v4461_v53 = vpack.c.b16 %v4431_v59, %v4431_v59  ;;  %v4391_v24 = vunpack.c.l.b16 %v4295_v39 }
 0x61b   :  { %22012 = vst [vmem:[#allocation92_spill] sm:$0xff] %v18479_v17  ;;  %v4397_v1 = vunpack.c.l.b16 %v4301_v6  ;;  %v4403_v46 = vunpack.c.l.b16 %v4307_v44  ;;  %v4313_v30 = vpack.c.bf16 %v18479_v17, %v18479_v17  ;;  %v4439_v12 = vsel %vm459_vm1, %v18184_v23, %v18227_v57 }
 0x61c   :  { %v18481_v4 = vadd.f32 %v2097_v21, %v2096_v27  ;;  %v18488_v32 = vadd.f32 %v2034_v8, %v2033_v11  ;;  %4792 = vmatprep.mubr.bf16.mxu1 %v4461_v53  ;;  %v4440_v54 = vsel %vm461_vm2, %v4385_v7, %v4439_v12  ;;  %v22015_v29 = vrot.slane %v18373_v22, 2 }
 0x61d   :  { %v4298_v56 = vpack.c.bf16 %v18375_v13, %v18375_v13  ;;  %v4304_v50 = vpack.c.bf16 %v18339_v19, %v18339_v19  ;;  %v4409_v49 = vunpack.c.l.b16 %v4313_v30  ;;  %v4441_v23 = vsel %vm463_vm3, %v4391_v24, %v4440_v54 }
 0x61e   :  { %22013 = vst [vmem:[#allocation93_spill] sm:$0xff] %v18481_v4  ;;  %22014 = vst [vmem:[#allocation94_spill] sm:$0xff] %v18488_v32  ;;  %v2075_v52 = vadd.f32 %v22015_v29, %v18373_v22  ;;  %v4319_v27 = vpack.c.bf16 %v18481_v4, %v18481_v4  ;;  %v4310_v57 = vpack.c.bf16 %v18488_v32, %v18488_v32 }
 0x61f   :  { %v4442_v11 = vsel %vm465_vm4, %v4397_v1, %v4441_v23  ;;  %v22016_v22 = vpack.c.bf16 %v18232_v40, %v18232_v40  ;;  %v4394_v6 = vunpack.c.l.b16 %v4298_v56  ;;  %v4400_v21 = vunpack.c.l.b16 %v4304_v50 }
 0x620   :  { %v2076_v8 = vrot.slane %v2075_v52, 1  ;;  %v4415_v44 = vunpack.c.l.b16 %v4319_v27  ;;  %v4443_v59 = vsel %vm467_vm5, %v4403_v46, %v4442_v11  ;;  %v4406_v7 = vunpack.c.l.b16 %v4310_v57 }
 0x621   :  { %v4388_v39 = vunpack.c.l.b16 %v22016_v22  ;;  %v4444_v53 = vsel %vm469_vm6, %v4409_v49, %v4443_v59  ;;  %v4418_v24 = vsel %vm459_vm1, %v18147_v48, %v18201_v18  ;;  %v18515_v1 = vadd.f32 %v2048_v62, %v18429_v60 }
 0x622   :  { %v18509_v30 = vadd.f32 %v2076_v8, %v2075_v52  ;;  %v4445_v12 = vsel %vm471_vm7, %v4415_v44, %v4444_v53  ;;  %v4419_v54 = vsel %vm461_vm2, %v18309_v20, %v4418_v24  ;;  %v22019_v46 = vrot.slane %v18384_v31, 2 }
 0x623   :  { %22018 = vst [vmem:[#allocation96_spill] sm:$0xff] %v18515_v1  ;;  %v4300_v52 = vpack.c.bf16 %v18380_v35, %v18380_v35  ;;  %v4463_v56 = vpack.c.b16 %v4445_v12, %v4445_v12  ;;  %v4420_v48 = vsel %vm463_vm3, %v4388_v39, %v4419_v54  ;;  %v4306_v18 = vpack.c.bf16 %v18363_v36, %v18363_v36  ;;  %v14849_v54 = vld [vmem:[%s21668_s7 + $0x2c8] sm:$0xff]  }
 0x624   :  { %22017 = vst [vmem:[#allocation95_spill] sm:$0xff] %v18509_v30  ;;  %v2089_v29 = vadd.f32 %v22019_v46, %v18384_v31  ;;  %v4316_v50 = vpack.c.bf16 %v18509_v30, %v18509_v30  ;;  %v4421_v60 = vsel %vm465_vm4, %v4394_v6, %v4420_v48  ;;  %v4312_v20 = vpack.c.bf16 %v18515_v1, %v18515_v1 }
 0x625   :  { %v22020_v31 = vpack.c.bf16 %v18247_v47, %v18247_v47  ;;  %4832 = vmatprep.mubr.bf16.mxu0 %v4463_v56  ;;  %v4422_v23 = vsel %vm467_vm5, %v4400_v21, %v4421_v60  ;;  %v4396_v57 = vunpack.c.l.b16 %v4300_v52  ;;  %v4402_v11 = vunpack.c.l.b16 %v4306_v18  ;;  %v14847_v21 = vld [vmem:[%s21668_s7 + $0x280] sm:$0xff]  }
 0x626   :  { %v2090_v62 = vrot.slane %v2089_v29, 1  ;;  %v4412_v49 = vunpack.c.l.b16 %v4316_v50  ;;  %v4423_v8 = vsel %vm469_vm6, %v4406_v7, %v4422_v23  ;;  %v4408_v39 = vunpack.c.l.b16 %v4312_v20 }
 0x627   :  { %v4390_v27 = vunpack.c.l.b16 %v22020_v31  ;;  %v4432_v6 = vsel %vm459_vm1, %v18166_v2, %v18219_v51  ;;  %v22022_v53 = vrot.slane %v18365_v38, 1  ;;  %v2027_v24 = vrot.slane %v18344_v0, 1  ;;  %v14848_v31 = vld [vmem:[%s21668_s7] sm:$0xff]  }
 0x628   :  { %v18538_v22 = vadd.f32 %v2090_v62, %v2089_v29  ;;  %v4424_v44 = vsel %vm471_vm7, %v4412_v49, %v4423_v8  ;;  %v4433_v59 = vsel %vm461_vm2, %v18319_v41, %v4432_v6  ;;  %v2068_v41 = vadd.f32 %v2067_v5, %v18422_v28  ;;  %v14851_v62 = vld [vmem:[%s21668_s7 + $0x288] sm:$0xff]   ;;  %v14853_v6 = vld [vmem:[%s21668_s7 + $0x2d0] sm:$0xff]  }
 0x629   :  { %v18552_v7 = vadd.f32 %v22022_v53, %v18365_v38  ;;  %v4460_v12 = vpack.c.b16 %v4424_v44, %v4424_v44  ;;  %v4434_v51 = vsel %vm463_vm3, %v4390_v27, %v4433_v59  ;;  %v18566_v38 = vadd.f32 %v2027_v24, %v18344_v0  ;;  %v22026_v24 = vld [vmem:[#allocation71_spill] sm:$0xff] }
 0x62a   :  { %22021 = vst [vmem:[#allocation97_spill] sm:$0xff] %v18538_v22  ;;  %v4318_v2 = vpack.c.bf16 %v18538_v22, %v18538_v22  ;;  %v4435_v46 = vsel %vm465_vm4, %v4396_v57, %v4434_v51  ;;  %v2109_v29 = vrot.slane %v18427_v10, 2  ;;  %v4291_v52 = vpack.c.bf16 %v18317_v34, %v18317_v34 }
 0x62b   :  { %22023 = vst [vmem:[#allocation98_spill] sm:$0xff] %v18552_v7  ;;  %22024 = vst [vmem:[#allocation99_spill] sm:$0xff] %v18566_v38  ;;  %4793 = vmatmul.mubr.bf16.vlgmr.msra.gmra.mrb[4].mxu1 %v4460_v12  ;;  %v4436_v50 = vsel %vm467_vm5, %v4402_v11, %v4435_v46  ;;  %v2069_v48 = vrot.slane %v2068_v41, 1  ;;  %v4297_v28 = vpack.c.bf16 %v18276_v37, %v18276_v37  ;;  %v2102_v23 = vrot.slane %v18412_v33, 2  ;;  %v22030_v46 = vld [vmem:[#allocation81_spill] sm:$0xff] }
 0x62c   :  { %v4414_v56 = vunpack.c.l.b16 %v4318_v2  ;;  %v4437_v5 = vsel %vm469_vm6, %v4408_v39, %v4436_v50  ;;  %14230 = vmatpush3.bf16.msra.mxu1 %v14847_v21  ;;  %v2110_v18 = vadd.f32 %v2109_v29, %v18427_v10  ;;  %v4303_v0 = vpack.c.bf16 %v18552_v7, %v18552_v7  ;;  %v14850_v39 = vld [vmem:[%s21668_s7 + $0x48] sm:$0xff]  }
 0x62d   :  { %v4309_v60 = vpack.c.bf16 %v18566_v38, %v18566_v38  ;;  %v18587_v27 = vadd.f32 %v2069_v48, %v2068_v41  ;;  %v4387_v49 = vunpack.c.l.b16 %v4291_v52  ;;  %v4393_v10 = vunpack.c.l.b16 %v4297_v28  ;;  %14231 = vmatprep.subr.bf16.mxu1 %v14849_v54  ;;  %v14855_v54 = vld [vmem:[%s21668_s7 + $0x290] sm:$0xff]   ;;  %v14852_v50 = vld [vmem:[%s21668_s7 + $0x8] sm:$0xff]   ;;  %v14857_v48 = vld [vmem:[%s21668_s7 + $0x2d8] sm:$0xff]  }
 0x62e   :  { %v4438_v20 = vsel %vm471_vm7, %v4414_v56, %v4437_v5  ;;  %v2111_v11 = vrot.slane %v2110_v18, 1  ;;  %v4399_v8 = vunpack.c.l.b16 %v4303_v0  ;;  %v1978_v44 = vrot.slane %v18382_v55, 1  ;;  %v22031_v56 = vld [vmem:[#allocation46_spill] sm:$0xff]  ;;  %v18629_v0 = vpop.xlane.xlu0 %2257 }
 0x62f   :  { %22025 = vst [vmem:[#allocation100_spill] sm:$0xff] %v18587_v27  ;;  %v4462_v57 = vpack.c.b16 %v4438_v20, %v4438_v20  ;;  %v4315_v59 = vpack.c.bf16 %v18587_v27, %v18587_v27  ;;  %v4405_v21 = vunpack.c.l.b16 %v4309_v60  ;;  %v4453_v53 = vsel %vm459_vm1, %v18197_v43, %v18243_v63 }
 0x630   :  { %v22027_v12 = vrot.slane %v22026_v24, 1  ;;  %v18607_v51 = vadd.f32 %v2111_v11, %v2110_v18  ;;  %v4454_v41 = vsel %vm461_vm2, %v4387_v49, %v4453_v53  ;;  %14232 = vmatpush3.bf16.msra.mxu1 %v14851_v62  ;;  %v2020_v29 = vrot.slane %v22030_v46, 1  ;;  %v14854_v18 = vld [vmem:[%s21668_s7 + $0x50] sm:$0xff]   ;;  %v22032_v62 = vld [vmem:[#allocation74_spill] sm:$0xff] }
 0x631   :  { %4833 = vmatmul.mubr.bf16.vlgmr.msra.gmra.mrb[4].mxu0 %v4462_v57  ;;  %v2062_v52 = vrot.slane %v18436_v3, 1  ;;  %v4411_v43 = vunpack.c.l.b16 %v4315_v59  ;;  %v4455_v63 = vsel %vm463_vm3, %v4393_v10, %v4454_v41  ;;  %14233 = vmatprep.subr.bf16.mxu1 %v14853_v6  ;;  %v2103_v60 = vadd.f32 %v2102_v23, %v18412_v33  ;;  %v22034_v10 = vld [vmem:[#allocation45_spill] sm:$0xff] }
 0x632   :  { %v18605_v2 = vadd.f32 %v22027_v12, %v22026_v24  ;;  %22029 = vst [vmem:[#allocation101_spill] sm:$0xff] %v18607_v51  ;;  %14252 = vmatpush3.bf16.msra.mxu0 %v14848_v31  ;;  %5200 = vmatprep.mubr.bf16.mxu0 %v22031_v56  ;;  %v4321_v28 = vpack.c.bf16 %v18607_v51, %v18607_v51  ;;  %v14859_v33 = vld [vmem:[%s21668_s7 + $0x298] sm:$0xff]  }
 0x633   :  { %v4456_v5 = vsel %vm465_vm4, %v4399_v8, %v4455_v63  ;;  %14253 = vmatprep.subr.bf16.mxu0 %v14850_v39  ;;  %v4290_v20 = vpack.c.bf16 %v22032_v62, %v22032_v62  ;;  %v18635_v31 = vadd.f32 %v1978_v44, %v18382_v55  ;;  %v22035_v57 = vpack.c.bf16 %v22034_v10, %v22034_v10  ;;  %v22036_v23 = vld [vmem:[#allocation65_spill] sm:$0xff]  ;;  %v22040_v24 = vld [vmem:[#allocation24_spill] sm:$0xff] }
 0x634   :  { %22028 = vst [vmem:[#allocation71_spill] sm:$0xff] %v18605_v2  ;;  %v4457_v49 = vsel %vm467_vm5, %v4405_v21, %v4456_v5  ;;  %v4296_v8 = vpack.c.bf16 %v18605_v2, %v18605_v2  ;;  %v4417_v39 = vunpack.c.l.b16 %v4321_v28  ;;  %14234 = vmatpush3.bf16.msra.mxu1 %v14855_v54  ;;  %v22037_v55 = vpack.c.bf16 %v22036_v23, %v22036_v23  ;;  %v14856_v21 = vld [vmem:[%s21668_s7 + $0x10] sm:$0xff]   ;;  %v14858_v54 = vld [vmem:[%s21668_s7 + $0x58] sm:$0xff]   ;;  %v14863_v5 = vld [vmem:[%s21668_s7 + $0x2a0] sm:$0xff]  }
 0x635   :  { %22033 = vst [vmem:[#allocation81_spill] sm:$0xff] %v18635_v31  ;;  %v4380_v11 = vunpack.c.l.b16 %v22035_v57  ;;  %v4458_v6 = vsel %vm469_vm6, %v4411_v43, %v4457_v49  ;;  %v18651_v59 = vadd.f32 %v2020_v29, %v22030_v46  ;;  %14235 = vmatprep.subr.bf16.mxu1 %v14857_v48  ;;  %v18657_v53 = vadd.f32 %v2062_v52, %v18436_v3  ;;  %v14861_v46 = vld [vmem:[%s21668_s7 + $0x2e0] sm:$0xff]   ;;  %v22041_v43 = vld [vmem:[#allocation23_spill] sm:$0xff] }
 0x636   :  { %v4374_v44 = vunpack.c.l.b16 %v22037_v55  ;;  %14254 = vmatpush3.bf16.msra.mxu0 %v14852_v50  ;;  %v2267_v12 = vrot.slane %v18629_v0, %v22040_v24  ;;  %v4459_v41 = vsel %vm471_vm7, %v4417_v39, %v4458_v6  ;;  %v2104_v29 = vrot.slane %v2103_v60, 1  ;;  %v22042_v3 = vld [vmem:[#allocation26_spill] sm:$0xff] }
 0x637   :  { %22038 = vst [vmem:[#allocation74_spill] sm:$0xff] %v18651_v59  ;;  %22039 = vst [vmem:[#allocation45_spill] sm:$0xff] %v18657_v53  ;;  %14255 = vmatprep.subr.bf16.mxu0 %v14854_v18  ;;  %v2263_v63 = vrot.slane %v18629_v0, %v22041_v43  ;;  %v2275_v52 = vrot.slane %v18629_v0, %v22042_v3  ;;  %v4386_v50 = vunpack.c.l.b16 %v4290_v20  ;;  %v22043_v18 = vld [vmem:[#allocation25_spill] sm:$0xff]  ;;  %v14865_v49 = vld [vmem:[%s21668_s7 + $0x2e8] sm:$0xff]  }
 0x638   :  { %v4465_v48 = vpack.c.b16 %v4459_v41, %v4459_v41  ;;  %v4302_v28 = vpack.c.bf16 %v18635_v31, %v18635_v31  ;;  %16169 = vrcp.f32 %v2267_v12  ;;  %14236 = vmatpush3.bf16.msra.mxu1 %v14859_v33  ;;  %v2271_v62 = vrot.slane %v18629_v0, %v22043_v18  ;;  %v14860_v20 = vld [vmem:[%s21668_s7 + $0x18] sm:$0xff]   ;;  %v14862_v57 = vld [vmem:[%s21668_s7 + $0x60] sm:$0xff]  }
 0x639   :  { %16171 = vrcp.f32 %v2263_v63  ;;  %v4308_v10 = vpack.c.bf16 %v18651_v59, %v18651_v59  ;;  %14237 = vmatprep.subr.bf16.mxu1 %v14861_v46  ;;  %v18690_v39 = vadd.f32 %v2104_v29, %v2103_v60  ;;  %v4314_v6 = vpack.c.bf16 %v18657_v53, %v18657_v53  ;;  %v22045_v12 = vld [vmem:[#allocation28_spill] sm:$0xff]  ;;  %v22046_v60 = vld [vmem:[#allocation27_spill] sm:$0xff] }
 0x63a   :  { %4872 = vmatprep.mubr.bf16.mxu1 %v4465_v48  ;;  %14256 = vmatpush3.bf16.msra.mxu0 %v14856_v21  ;;  %16173 = vrcp.f32 %v2275_v52  ;;  %v4392_v33 = vunpack.c.l.b16 %v4296_v8  ;;  %v4446_v23 = vsel %vm459_vm1, %v4380_v11, %v4374_v44  ;;  %v4398_v55 = vunpack.c.l.b16 %v4302_v28  ;;  %v14864_v11 = vld [vmem:[%s21668_s7 + $0x20] sm:$0xff]   ;;  %v14869_v8 = vld [vmem:[%s21668_s7 + $0x2f0] sm:$0xff]   ;;  %v14866_v44 = vld [vmem:[%s21668_s7 + $0x68] sm:$0xff]  }
 0x63b   :  { %14257 = vmatprep.subr.bf16.mxu0 %v14858_v54  ;;  %22044 = vst [vmem:[#allocation65_spill] sm:$0xff] %v18690_v39  ;;  %v4447_v21 = vsel %vm461_vm2, %v4386_v50, %v4446_v23  ;;  %16175 = vrcp.f32 %v2271_v62  ;;  %v2283_v41 = vrot.slane %v18629_v0, %v22045_v12  ;;  %v14867_v54 = vld [vmem:[%s21668_s7 + $0x2a8] sm:$0xff]   ;;  %v2279_v46 = vrot.slane %v18629_v0, %v22046_v60  ;;  %v14871_v62 = vld [vmem:[%s21668_s7 + $0x2b0] sm:$0xff]  }
 0x63c   :  { %14238 = vmatpush3.bf16.msra.mxu1 %v14863_v5  ;;  %v4320_v29 = vpack.c.bf16 %v18690_v39, %v18690_v39  ;;  %v4404_v63 = vunpack.c.l.b16 %v4308_v10  ;;  %v4448_v52 = vsel %vm463_vm3, %v4392_v33, %v4447_v21  ;;  %v4410_v50 = vunpack.c.l.b16 %v4314_v6  ;;  %v22047_v28 = vld [vmem:[#allocation30_spill] sm:$0xff]  ;;  %v18726_v6 = vpop.xlane.xlu1 %3207  ;;  %v14873_v33 = vld [vmem:[%s21668_s7 + $0x2f8] sm:$0xff]  }
 0x63d   :  { %14239 = vmatprep.subr.bf16.mxu1 %v14865_v49  ;;  %v4449_v48 = vsel %vm465_vm4, %v4398_v55, %v4448_v52  ;;  %16177 = vrcp.f32 %v2283_v41  ;;  %v2291_v5 = vrot.slane %v18629_v0, %v22047_v28  ;;  %v14868_v10 = vld [vmem:[%s21668_s7 + $0x28] sm:$0xff]   ;;  %v14870_v55 = vld [vmem:[%s21668_s7 + $0x70] sm:$0xff]   ;;  %v22049_v41 = vld [vmem:[#allocation33_spill] sm:$0xff] }
 0x63e   :  { %14258 = vmatpush3.bf16.msra.mxu0 %v14860_v20  ;;  %16179 = vrcp.f32 %v2279_v46  ;;  %v22048_v20 = vld [vmem:[#allocation29_spill] sm:$0xff]  ;;  %v4450_v21 = vsel %vm467_vm5, %v4404_v63, %v4449_v48  ;;  %v14872_v63 = vld [vmem:[%s21668_s7 + $0x30] sm:$0xff]   ;;  %v16271_v53 = vld [vmem:[%s21913_s1 + $0x128] sm:$0xff] }
 0x63f   :  { %14259 = vmatprep.subr.bf16.mxu0 %v14862_v57  ;;  %v2287_v49 = vrot.slane %v18629_v0, %v22048_v20  ;;  %v4416_v0 = vunpack.c.l.b16 %v4320_v29  ;;  %16181 = vrcp.f32 %v2291_v5  ;;  %v3213_v29 = vrot.slane %v18726_v6, %v22041_v43  ;;  %v14874_v48 = vld [vmem:[%s21668_s7 + $0x78] sm:$0xff]   ;;  %v19027_v43 = vld [vmem:[%s21913_s1 + $0x28] sm:$0xff] }
 0x640   :  { %14240 = vmatpush3.bf16.msra.mxu1 %v14867_v54 }
 0x641   :  { %14241 = vmatprep.subr.bf16.mxu1 %v14869_v8  ;;  %v22050_v8 = vld [vmem:[#allocation32_spill] sm:$0xff]  ;;  %16183 = vrcp.f32 %v2287_v49 }
 0x642   :  { %v16170_v57 = vpop.eup %16169  ;;  %14260 = vmatpush3.bf16.msra.mxu0 %v14864_v11  ;;  %v4451_v11 = vsel %vm469_vm6, %v4410_v50, %v4450_v21  ;;  %v14877_v50 = vld [vmem:[%s21668_s7 + $0xc0] sm:$0xff]   ;;  %16185 = vrcp.f32 %v3213_v29  ;;  %v3221_v29 = vrot.slane %v18726_v6, %v22043_v18  ;;  %v19015_v18 = vld [vmem:[%s21913_s1 + $0x18] sm:$0xff] }
 0x643   :  { %v16172_v23 = vpop.eup %16171  ;;  %14261 = vmatprep.subr.bf16.mxu0 %v14866_v44  ;;  %v2303_v54 = vmul.f32 %v16170_v57, %v22049_v41  ;;  %v14875_v44 = vld [vmem:[%s21668_s7 + $0x2b8] sm:$0xff]   ;;  %v4452_v5 = vsel %vm471_vm7, %v4416_v0, %v4451_v11  ;;  %v14879_v57 = vld [vmem:[%s21668_s7 + $0x80] sm:$0xff]   ;;  %v14881_v41 = vld [vmem:[%s21668_s7 + $0xc8] sm:$0xff]  }
 0x644   :  { %v16174_v46 = vpop.eup %16173  ;;  %v2301_v52 = vmul.f32 %v16172_v23, %v22050_v8  ;;  %14242 = vmatpush3.bf16.msra.mxu1 %v14871_v62  ;;  %v22051_v62 = vld [vmem:[#allocation35_spill] sm:$0xff]  ;;  %v3217_v23 = vrot.slane %v18726_v6, %v22040_v24  ;;  %v14876_v0 = vld [vmem:[%s21668_s7 + $0x38] sm:$0xff]   ;;  %v4464_v21 = vpack.c.b16 %v4452_v5, %v4452_v5  ;;  %v14878_v11 = vld [vmem:[%s21668_s7 + $0x140] sm:$0xff]  }
 0x645   :  { %2323 = vperm.xlu1 %14738, %v2303_v54   ;;  %v16176_v56 = vpop.eup %16175  ;;  %14243 = vmatprep.subr.bf16.mxu1 %v14873_v33  ;;  %v2307_v49 = vmul.f32 %v16174_v46, %v22051_v62  ;;  %v22053_v46 = vld [vmem:[#allocation62_spill] sm:$0xff] }
 0x646   :  { %14262 = vmatpush3.bf16.msra.mxu0 %v14868_v10  ;;  %2318 = vperm.xlu0 %14737, %v2301_v52   ;;  %v22052_v10 = vld [vmem:[#allocation34_spill] sm:$0xff]  ;;  %v22055_v52 = vld [vmem:[#allocation37_spill] sm:$0xff]  ;;  %16187 = vrcp.f32 %v3217_v23  ;;  %v22059_v23 = vld [vmem:[#allocation64_spill] sm:$0xff] }
 0x647   :  { %14263 = vmatprep.subr.bf16.mxu0 %v14870_v55  ;;  %v2305_v33 = vmul.f32 %v16176_v56, %v22052_v10  ;;  %v16178_v55 = vpop.eup %16177  ;;  %v18768_v56 = vpack.c.bf16 %v22053_v46, %v22053_v46  ;;  %v14883_v8 = vld [vmem:[%s21668_s7 + $0x88] sm:$0xff]   ;;  %16189 = vrcp.f32 %v3221_v29  ;;  %v14886_v29 = vld [vmem:[%s21668_s7 + $0x150] sm:$0xff]  }
 0x648   :  { %14244 = vmatpush3.bf16.msra.mxu1 %v14875_v44  ;;  %v16180_v54 = vpop.eup %16179  ;;  %v2311_v44 = vmul.f32 %v16178_v55, %v22055_v52  ;;  %v14882_v10 = vld [vmem:[%s21668_s7 + $0x148] sm:$0xff]   ;;  %v18796_v55 = vpack.c.bf16 %v22059_v23, %v22059_v23 }
 0x649   :  { %2333 = vperm.xlu1 %14738, %v2307_v49   ;;  %14273 = vmatprep.subr.bf16.mxu1 %v14877_v50  ;;  %22054 = vst [vmem:[#allocation30_spill] sm:$0xff] %v18768_v56  ;;  %v14880_v50 = vld [vmem:[%s21668_s7 + $0x100] sm:$0xff]   ;;  %v22057_v49 = vld [vmem:[#allocation60_spill] sm:$0xff]  ;;  %v22061_v46 = vld [vmem:[#allocation39_spill] sm:$0xff] }
 0x64a   :  { %14264 = vmatpush3.bf16.msra.mxu0 %v14872_v63  ;;  %2328 = vperm.xlu0 %14737, %v2305_v33   ;;  %v16182_v63 = vpop.eup %16181  ;;  %v14885_v33 = vld [vmem:[%s21668_s7 + $0xd0] sm:$0xff]   ;;  %22060 = vst [vmem:[#allocation33_spill] sm:$0xff] %v18796_v55 }
 0x64b   :  { %14265 = vmatprep.subr.bf16.mxu0 %v14874_v48  ;;  %4873 = vmatmul.mubr.bf16.vlgmr.msra.gmra.mrb[8].mxu1 %v4464_v21  ;;  %v22056_v48 = vld [vmem:[#allocation36_spill] sm:$0xff]  ;;  %v16184_v62 = vpop.eup %16183  ;;  %v3225_v21 = vrot.slane %v18726_v6, %v22042_v3 }
 0x64c   :  { %14274 = vmatpush3.bf16.msra.mxu1 %v14879_v57  ;;  %5240 = vmatprep.mubr.bf16.mxu1 %v18768_v56  ;;  %v2309_v5 = vmul.f32 %v16180_v54, %v22056_v48  ;;  %v18786_v57 = vpack.c.bf16 %v22057_v49, %v22057_v49  ;;  %v14889_v54 = vld [vmem:[%s21668_s7 + $0xd8] sm:$0xff]   ;;  %v14888_v48 = vld [vmem:[%s21668_s7 + $0x110] sm:$0xff]  }
 0x64d   :  { %14275 = vmatprep.subr.bf16.mxu1 %v14881_v41  ;;  %2343 = vperm.xlu1 %14738, %v2311_v44   ;;  %v14884_v41 = vld [vmem:[%s21668_s7 + $0x108] sm:$0xff]   ;;  %v16186_v44 = vpop.eup %16185  ;;  %16191 = vrcp.f32 %v3225_v21  ;;  %v14895_v21 = vld [vmem:[%s21668_s7 + $0xa0] sm:$0xff]  }
 0x64e   :  { %14266 = vmatpush3.bf16.msra.mxu0 %v14876_v0  ;;  %22058 = vst [vmem:[#allocation29_spill] sm:$0xff] %v18786_v57  ;;  %2338 = vperm.xlu0 %14737, %v2309_v5   ;;  %v14887_v0 = vld [vmem:[%s21668_s7 + $0x90] sm:$0xff]   ;;  %v14893_v5 = vld [vmem:[%s21668_s7 + $0xe0] sm:$0xff]  }
 0x64f   :  { %14295 = vmatprep.subr.bf16.mxu0 %v14878_v11  ;;  %v2315_v11 = vmul.f32 %v16182_v63, %v22061_v46  ;;  %v3229_v63 = vrot.slane %v18726_v6, %v22046_v60  ;;  %v14897_v46 = vld [vmem:[%s21668_s7 + $0xe8] sm:$0xff]   ;;  %v19009_v60 = vld [vmem:[%s21913_s1 + $0x10] sm:$0xff] }
 0x650   :  { %14276 = vmatpush3.bf16.msra.mxu1 %v14883_v8  ;;  %v22062_v8 = vld [vmem:[#allocation38_spill] sm:$0xff]  ;;  %v16188_v23 = vpop.eup %16187 }
 0x651   :  { %5201 = vmatmul.mubr.bf16.vlgmr.msra.gmra.mrb[8].mxu0 %v18786_v57  ;;  %v2313_v52 = vmul.f32 %v16184_v62, %v22062_v8  ;;  %14277 = vmatprep.subr.bf16.mxu1 %v14885_v33  ;;  %v22063_v62 = vld [vmem:[#allocation40_spill] sm:$0xff]  ;;  %16193 = vrcp.f32 %v3229_v63  ;;  %v14899_v63 = vld [vmem:[%s21668_s7 + $0xa8] sm:$0xff]  }
 0x652   :  { %14296 = vmatpush3.bf16.msra.mxu0 %v14880_v50  ;;  %5280 = vmatprep.mubr.bf16.mxu0 %v18796_v55  ;;  %v14891_v50 = vld [vmem:[%s21668_s7 + $0x98] sm:$0xff]   ;;  %v3252_v49 = vmul.f32 %v16186_v44, %v22063_v62  ;;  %v14901_v62 = vld [vmem:[%s21668_s7 + $0xf0] sm:$0xff]  }
 0x653   :  { %14297 = vmatprep.subr.bf16.mxu0 %v14882_v10  ;;  %2353 = vperm.xlu1 %14738, %v2315_v11   ;;  %v22064_v10 = vld [vmem:[#allocation52_spill] sm:$0xff]  ;;  %v22065_v11 = vld [vmem:[#allocation41_spill] sm:$0xff] }
 0x654   :  { %2348 = vperm.xlu0 %14737, %v2313_v52   ;;  %14278 = vmatpush3.bf16.msra.mxu1 %v14887_v0  ;;  %v3251_v33 = vmul.f32 %v16186_v44, %v22064_v10  ;;  %v14890_v0 = vld [vmem:[%s21668_s7 + $0x158] sm:$0xff]   ;;  %v3255_v8 = vmul.f32 %v16188_v23, %v22065_v11  ;;  %v22069_v11 = vld [vmem:[#allocation47_spill] sm:$0xff] }
 0x655   :  { %14279 = vmatprep.subr.bf16.mxu1 %v14889_v54  ;;  %v14892_v54 = vld [vmem:[%s21668_s7 + $0x118] sm:$0xff]  }
 0x656   :  { %14298 = vmatpush3.bf16.msra.mxu0 %v14884_v41  ;;  %v3233_v41 = vrot.slane %v18726_v6, %v22045_v12  ;;  %v22066_v52 = vld [vmem:[#allocation53_spill] sm:$0xff] }
 0x657   :  { %14299 = vmatprep.subr.bf16.mxu0 %v14886_v29  ;;  %3281 = vperm.xlu1 %14738, %v3252_v49   ;;  %v3254_v44 = vmul.f32 %v16188_v23, %v22066_v52  ;;  %v16190_v29 = vpop.eup %16189  ;;  %v22067_v49 = vld [vmem:[#allocation42_spill] sm:$0xff]  ;;  %v22070_v52 = vld [vmem:[#allocation55_spill] sm:$0xff] }
 0x658   :  { %3276 = vperm.xlu0 %14737, %v3251_v33   ;;  %14280 = vmatpush3.bf16.msra.mxu1 %v14891_v50  ;;  %v14894_v50 = vld [vmem:[%s21668_s7 + $0x160] sm:$0xff]   ;;  %16195 = vrcp.f32 %v3233_v41  ;;  %v3258_v10 = vmul.f32 %v16190_v29, %v22067_v49  ;;  %v3241_v41 = vrot.slane %v18726_v6, %v22047_v28  ;;  %v14902_v28 = vld [vmem:[%s21668_s7 + $0x170] sm:$0xff]  }
 0x659   :  { %14281 = vmatprep.subr.bf16.mxu1 %v14893_v5  ;;  %v14896_v5 = vld [vmem:[%s21668_s7 + $0x120] sm:$0xff]  }
 0x65a   :  { %14300 = vmatpush3.bf16.msra.mxu0 %v14888_v48  ;;  %v3237_v48 = vrot.slane %v18726_v6, %v22048_v20  ;;  %v22068_v33 = vld [vmem:[#allocation54_spill] sm:$0xff]  ;;  %v14907_v6 = vld [vmem:[%s21668_s7 + $0xb8] sm:$0xff]  }
 0x65b   :  { %14301 = vmatprep.subr.bf16.mxu0 %v14890_v0  ;;  %3291 = vperm.xlu1 %14738, %v3255_v8   ;;  %v3257_v23 = vmul.f32 %v16190_v29, %v22068_v33  ;;  %v16192_v0 = vpop.eup %16191  ;;  %v14898_v20 = vld [vmem:[%s21668_s7 + $0x168] sm:$0xff]   ;;  %v22073_v33 = vld [vmem:[#allocation61_spill] sm:$0xff] }
 0x65c   :  { %3286 = vperm.xlu0 %14737, %v3254_v44   ;;  %14282 = vmatpush3.bf16.msra.mxu1 %v14895_v21  ;;  %v14903_v21 = vld [vmem:[%s21668_s7 + $0xb0] sm:$0xff]   ;;  %16197 = vrcp.f32 %v3237_v48  ;;  %v3261_v8 = vmul.f32 %v16192_v0, %v22069_v11  ;;  %v3260_v44 = vmul.f32 %v16192_v0, %v22070_v52  ;;  %v16194_v29 = vpop.eup %16193  ;;  %v14908_v0 = vld [vmem:[%s21668_s7 + $0x138] sm:$0xff]   ;;  %v22077_v11 = vld [vmem:[#allocation50_spill] sm:$0xff] }
 0x65d   :  { %14283 = vmatprep.subr.bf16.mxu1 %v14897_v46  ;;  %v14905_v46 = vld [vmem:[%s21668_s7 + $0xf8] sm:$0xff]   ;;  %16199 = vrcp.f32 %v3241_v41 }
 0x65e   :  { %14302 = vmatpush3.bf16.msra.mxu0 %v14892_v54  ;;  %v14900_v54 = vld [vmem:[%s21668_s7 + $0x128] sm:$0xff]  }
 0x65f   :  { %14303 = vmatprep.subr.bf16.mxu0 %v14894_v50  ;;  %3301 = vperm.xlu1 %14738, %v3258_v10   ;;  %v14904_v50 = vld [vmem:[%s21668_s7 + $0x130] sm:$0xff]   ;;  %v14906_v10 = vld [vmem:[%s21668_s7 + $0x178] sm:$0xff]  }
 0x660   :  { %3296 = vperm.xlu0 %14737, %v3257_v23   ;;  %14284 = vmatpush3.bf16.msra.mxu1 %v14899_v63  ;;  %v22071_v63 = vld [vmem:[#allocation48_spill] sm:$0xff]  ;;  %v18893_v23 = vpack.c.bf16 %v22073_v33, %v22073_v33  ;;  %v14912_v33 = vld [vmem:[%s21668_s7 + $0x380] sm:$0xff]  }
 0x661   :  { %14285 = vmatprep.subr.bf16.mxu1 %v14901_v62  ;;  %v3264_v48 = vmul.f32 %v16194_v29, %v22071_v63 }
 0x662   :  { %14304 = vmatpush3.bf16.msra.mxu0 %v14896_v5  ;;  %v22072_v5 = vld [vmem:[#allocation56_spill] sm:$0xff]  ;;  %v16196_v49 = vpop.eup %16195  ;;  %22074 = vst [vmem:[#allocation32_spill] sm:$0xff] %v18893_v23 }
 0x663   :  { %14305 = vmatprep.subr.bf16.mxu0 %v14898_v20  ;;  %3311 = vperm.xlu1 %14738, %v3261_v8   ;;  %v3263_v62 = vmul.f32 %v16194_v29, %v22072_v5  ;;  %v22075_v20 = vld [vmem:[#allocation49_spill] sm:$0xff] }
 0x664   :  { %3306 = vperm.xlu0 %14737, %v3260_v44   ;;  %14286 = vmatpush3.bf16.msra.mxu1 %v14903_v21  ;;  %v3267_v21 = vmul.f32 %v16196_v49, %v22075_v20  ;;  %v22078_v44 = vld [vmem:[#allocation63_spill] sm:$0xff] }
 0x665   :  { %14287 = vmatprep.subr.bf16.mxu1 %v14905_v46  ;;  %v18904_v29 = vpack.c.bf16 %v22078_v44, %v22078_v44  ;;  %v14914_v20 = vld [vmem:[%s21668_s7 + $0x3c8] sm:$0xff]   ;;  %v14922_v44 = vld [vmem:[%s21668_s7 + $0x3d8] sm:$0xff]  }
 0x666   :  { %14306 = vmatpush3.bf16.msra.mxu0 %v14900_v54  ;;  %v16198_v41 = vpop.eup %16197  ;;  %v22076_v54 = vld [vmem:[#allocation57_spill] sm:$0xff] }
 0x667   :  { %14307 = vmatprep.subr.bf16.mxu0 %v14902_v28  ;;  %3321 = vperm.xlu1 %14738, %v3264_v48   ;;  %v3266_v46 = vmul.f32 %v16196_v49, %v22076_v54  ;;  %v3270_v8 = vmul.f32 %v16198_v41, %v22077_v11  ;;  %v16200_v52 = vpop.eup %16199  ;;  %22079 = vst [vmem:[#allocation35_spill] sm:$0xff] %v18904_v29  ;;  %v22080_v28 = vld [vmem:[#allocation58_spill] sm:$0xff]  ;;  %v22082_v48 = vld [vmem:[#allocation59_spill] sm:$0xff] }
 0x668   :  { %3316 = vperm.xlu0 %14737, %v3263_v62   ;;  %14288 = vmatpush3.bf16.msra.mxu1 %v14907_v6  ;;  %v3269_v6 = vmul.f32 %v16198_v41, %v22080_v28  ;;  %v3272_v5 = vmul.f32 %v16200_v52, %v22082_v48  ;;  %v14909_v62 = vld [vmem:[%s21668_s7 + $0x340] sm:$0xff]   ;;  %v14916_v41 = vld [vmem:[%s21668_s7 + $0x388] sm:$0xff]   ;;  %v14917_v54 = vld [vmem:[%s21668_s7 + $0x350] sm:$0xff]  }
 0x669   :  { %v14910_v49 = vld [vmem:[%s21668_s7 + $0x3c0] sm:$0xff]   ;;  %14317 = vmatprep.subr.bf16.mxu1 %v14909_v62  ;;  %v14919_v11 = vld [vmem:[%s21668_s7 + $0x310] sm:$0xff]   ;;  %v14923_v28 = vld [vmem:[%s21668_s7 + $0x318] sm:$0xff]  }
 0x66a   :  { %14308 = vmatpush3.bf16.msra.mxu0 %v14904_v50  ;;  %v22081_v50 = vld [vmem:[#allocation51_spill] sm:$0xff] }
 0x66b   :  { %14309 = vmatprep.subr.bf16.mxu0 %v14906_v10  ;;  %5241 = vmatmul.mubr.bf16.vlgmr.msra.gmra.mrb[12].mxu1 %v18893_v23  ;;  %v3273_v63 = vmul.f32 %v16200_v52, %v22081_v50  ;;  %v14911_v10 = vld [vmem:[%s21668_s7 + $0x300] sm:$0xff]   ;;  %v14921_v52 = vld [vmem:[%s21668_s7 + $0x358] sm:$0xff]  }
 0x66c   :  { %3331 = vperm.xlu1 %14738, %v3267_v21   ;;  %3326 = vperm.xlu0 %14737, %v3266_v46   ;;  %v14915_v21 = vld [vmem:[%s21668_s7 + $0x308] sm:$0xff]   ;;  %v14918_v46 = vld [vmem:[%s21668_s7 + $0x3d0] sm:$0xff]  }
 0x66d   :  { %14318 = vmatpush3.bf16.msra.mxu1 %v14911_v10 }
 0x66e   :  { %14310 = vmatpush3.bf16.msra.mxu0 %v14908_v0  ;;  %v14913_v0 = vld [vmem:[%s21668_s7 + $0x348] sm:$0xff]  }
 0x66f   :  { %14339 = vmatprep.subr.bf16.mxu0 %v14910_v49  ;;  %14319 = vmatprep.subr.bf16.mxu1 %v14913_v0  ;;  %v16260_v49 = vld [vmem:[%s21913_s1 + $0x70] sm:$0xff] }
 0x670   :  { %3341 = vperm.xlu1 %14738, %v3270_v8   ;;  %3336 = vperm.xlu0 %14737, %v3269_v6   ;;  %v14920_v8 = vld [vmem:[%s21668_s7 + $0x390] sm:$0xff]   ;;  %v14924_v6 = vld [vmem:[%s21668_s7 + $0x398] sm:$0xff]  }
 0x671   :  { %5281 = vmatmul.mubr.bf16.vlgmr.msra.gmra.mrb[12].mxu0 %v18904_v29  ;;  %14320 = vmatpush3.bf16.msra.mxu1 %v14915_v21 }
 0x672   :  { %14340 = vmatpush3.bf16.msra.mxu0 %v14912_v33  ;;  %14321 = vmatprep.subr.bf16.mxu1 %v14917_v54  ;;  %v16261_v33 = vld [vmem:[%s21913_s1 + $0x78] sm:$0xff] }
 0x673   :  { %14341 = vmatprep.subr.bf16.mxu0 %v14914_v20  ;;  %v16262_v20 = vld [vmem:[%s21913_s1 + $0x80] sm:$0xff] }
 0x674   :  { %3351 = vperm.xlu1 %14738, %v3273_v63   ;;  %3346 = vperm.xlu0 %14737, %v3272_v5   ;;  %v16258_v63 = vld [vmem:[%s21913_s1 + $0x60] sm:$0xff]  ;;  %v16259_v5 = vld [vmem:[%s21913_s1 + $0x68] sm:$0xff] }
 0x675   :  { %14322 = vmatpush3.bf16.msra.mxu1 %v14919_v11  ;;  %v14926_v11 = vld [vmem:[%s21668_s7 + $0x3e0] sm:$0xff]  }
 0x676   :  { %14342 = vmatpush3.bf16.msra.mxu0 %v14916_v41  ;;  %14323 = vmatprep.subr.bf16.mxu1 %v14921_v52  ;;  %v16263_v41 = vld [vmem:[%s21913_s1 + $0x88] sm:$0xff] }
 0x677   :  { %14343 = vmatprep.subr.bf16.mxu0 %v14918_v46  ;;  %v14925_v46 = vld [vmem:[%s21668_s7 + $0x360] sm:$0xff]  }
 0x679   :  { %14324 = vmatpush3.bf16.msra.mxu1 %v14923_v28 }
 0x67a   :  { %14344 = vmatpush3.bf16.msra.mxu0 %v14920_v8  ;;  %14325 = vmatprep.subr.bf16.mxu1 %v14925_v46  ;;  %v18997_v46 = vld [vmem:[%s21913_s1] sm:$0xff] }
 0x67b   :  { %14345 = vmatprep.subr.bf16.mxu0 %v14922_v44 }
 0x67e   :  { %14346 = vmatpush3.bf16.msra.mxu0 %v14924_v6  ;;  %v14927_v6 = vld [vmem:[%s21668_s7 + $0x320] sm:$0xff]  }
 0x67f   :  { %14347 = vmatprep.subr.bf16.mxu0 %v14926_v11  ;;  %14326 = vmatpush3.bf16.msra.mxu1 %v14927_v6 }
 0x6c4   :  { %v2324_v50 = vpop.permute.xlu1 %2323 }
 0x6c5   :  { %v2362_v48 = vmul.f32 %v16258_v63, %v2324_v50  ;;  %v2363_v62 = vmul.f32 %v16259_v5, %v2324_v50  ;;  %v2364_v10 = vmul.f32 %v16260_v49, %v2324_v50  ;;  %v2365_v0 = vmul.f32 %v16261_v33, %v2324_v50  ;;  %v2319_v49 = vpop.permute.xlu0 %2318 }
 0x6c6   :  { %v2366_v21 = vmul.f32 %v16262_v20, %v2324_v50  ;;  %v2367_v54 = vmul.f32 %v16263_v41, %v2324_v50  ;;  %v14928_v50 = vld [vmem:[%s21668_s7 + $0x3a0] sm:$0xff]   ;;  %v2356_v11 = vmul.f32 %v18997_v46, %v2319_v49  ;;  %v2358_v3 = vmul.f32 %v19009_v60, %v2319_v49 }
 0x6c7   :  { %v2458_v8 = vrot.slane %v2362_v48, 2  ;;  %v2459_v52 = vrot.slane %v2363_v62, 2  ;;  %v2460_v44 = vrot.slane %v2364_v10, 2  ;;  %v2461_v28 = vrot.slane %v2365_v0, 2  ;;  %14348 = vmatpush3.bf16.msra.mxu0 %v14928_v50 }
 0x6c8   :  { %v2462_v63 = vrot.slane %v2366_v21, 2  ;;  %v2463_v5 = vrot.slane %v2367_v54, 2  ;;  %v2359_v24 = vmul.f32 %v19015_v18, %v2319_v49  ;;  %v2361_v29 = vmul.f32 %v19027_v43, %v2319_v49 }
 0x6c9   :  { %v2591_v33 = vsel %vm2548_vm8, %v2458_v8, 0.0  ;;  %v2598_v48 = vsel %vm2548_vm8, %v2459_v52, 0.0  ;;  %v2605_v62 = vsel %vm2548_vm8, %v2460_v44, 0.0  ;;  %v2612_v10 = vsel %vm2548_vm8, %v2461_v28, 0.0  ;;  %v19003_v8 = vld [vmem:[%s21913_s1 + $0x8] sm:$0xff] }
 0x6ca   :  { %v2592_v0 = vrot.slane %v2591_v33, 4  ;;  %v2599_v20 = vrot.slane %v2598_v48, 4  ;;  %v2606_v41 = vrot.slane %v2605_v62, 4  ;;  %v2613_v12 = vrot.slane %v2612_v10, 4 }
 0x6cb   :  { %v2619_v21 = vsel %vm2548_vm8, %v2462_v63, 0.0  ;;  %v2626_v54 = vsel %vm2548_vm8, %v2463_v5, 0.0  ;;  %v2357_v52 = vmul.f32 %v19003_v8, %v2319_v49  ;;  %v2454_v27 = vrot.slane %v2358_v3, 2 }
 0x6cc   :  { %v2593_v44 = vadd.f32 %v2592_v0, %v2591_v33  ;;  %v2600_v28 = vadd.f32 %v2599_v20, %v2598_v48  ;;  %v2607_v6 = vadd.f32 %v2606_v41, %v2605_v62  ;;  %v2614_v50 = vadd.f32 %v2613_v12, %v2612_v10  ;;  %v19021_v20 = vld [vmem:[%s21913_s1 + $0x20] sm:$0xff] }
 0x6cd   :  { %v2620_v63 = vrot.slane %v2619_v21, 4  ;;  %v2627_v5 = vrot.slane %v2626_v54, 4  ;;  %v2360_v41 = vmul.f32 %v19021_v20, %v2319_v49  ;;  %v2457_v3 = vrot.slane %v2361_v29, 2 }
 0x6ce   :  { %v2594_v33 = vrot.slane %v2593_v44, 2  ;;  %v2601_v48 = vrot.slane %v2600_v28, 2  ;;  %v2608_v62 = vrot.slane %v2607_v6, 2  ;;  %v2615_v12 = vrot.slane %v2614_v50, 2 }
 0x6cf   :  { %v2621_v10 = vadd.f32 %v2620_v63, %v2619_v21  ;;  %v2628_v0 = vadd.f32 %v2627_v5, %v2626_v54  ;;  %v2452_v63 = vrot.slane %v2356_v11, 2  ;;  %v2453_v5 = vrot.slane %v2357_v52, 2 }
 0x6d0   :  { %v2595_v23 = vadd.f32 %v2594_v33, %v2593_v44  ;;  %v2602_v55 = vadd.f32 %v2601_v48, %v2600_v28  ;;  %v2609_v56 = vadd.f32 %v2608_v62, %v2607_v6  ;;  %v2616_v57 = vadd.f32 %v2615_v12, %v2614_v50 }
 0x6d1   :  { %v2622_v21 = vrot.slane %v2621_v10, 2  ;;  %v2629_v54 = vrot.slane %v2628_v0, 2  ;;  %v2549_v11 = vsel %vm2548_vm8, %v2452_v63, 0.0  ;;  %v2556_v52 = vsel %vm2548_vm8, %v2453_v5, 0.0  ;;  %v14929_v63 = vld [vmem:[%s21668_s7 + $0x368] sm:$0xff]  }
 0x6d2   :  { %v2596_v51 = vrot.slane %v2595_v23, 1  ;;  %v2603_v4 = vrot.slane %v2602_v55, 1  ;;  %v2610_v16 = vrot.slane %v2609_v56, 1  ;;  %v2617_v39 = vrot.slane %v2616_v57, 1  ;;  %14327 = vmatprep.subr.bf16.mxu1 %v14929_v63  ;;  %v16273_v63 = vld [vmem:[%s21913_s1 + $0x138] sm:$0xff] }
 0x6d3   :  { %v2623_v22 = vadd.f32 %v2622_v21, %v2621_v10  ;;  %v2630_v30 = vadd.f32 %v2629_v54, %v2628_v0  ;;  %v2455_v33 = vrot.slane %v2359_v24, 2  ;;  %v2456_v48 = vrot.slane %v2360_v41, 2  ;;  %v2334_v0 = vpop.permute.xlu1 %2333 }
 0x6d4   :  { %v19030_v17 = vadd.f32 %v2596_v51, %v2595_v23  ;;  %v19032_v38 = vadd.f32 %v2603_v4, %v2602_v55  ;;  %v19034_v49 = vadd.f32 %v2610_v16, %v2609_v56  ;;  %v19036_v44 = vadd.f32 %v2617_v39, %v2616_v57 }
 0x6d5   :  { %v2624_v28 = vrot.slane %v2623_v22, 1  ;;  %v2631_v6 = vrot.slane %v2630_v30, 1  ;;  %v2550_v4 = vrot.slane %v2549_v11, 4  ;;  %v2557_v39 = vrot.slane %v2556_v52, 4 }
 0x6d6   :  { %22083 = vst [vmem:[#allocation34_spill] sm:$0xff] %v19032_v38  ;;  %22084 = vst [vmem:[#allocation62_spill] sm:$0xff] %v19036_v44  ;;  %v5391_v50 = vpack.c.bf16 %v19030_v17, %v19030_v17  ;;  %v5392_v16 = vpack.c.bf16 %v19032_v38, %v19032_v38  ;;  %v2570_v29 = vsel %vm2548_vm8, %v2455_v33, 0.0  ;;  %v2577_v12 = vsel %vm2548_vm8, %v2456_v48, 0.0 }
 0x6d7   :  { %v19042_v51 = vadd.f32 %v2624_v28, %v2623_v22  ;;  %v19050_v55 = vadd.f32 %v2631_v6, %v2630_v30  ;;  %v2551_v24 = vadd.f32 %v2550_v4, %v2549_v11  ;;  %v2558_v62 = vadd.f32 %v2557_v39, %v2556_v52  ;;  %v14931_v52 = vld [vmem:[%s21668_s7 + $0x328] sm:$0xff]  }
 0x6d8   :  { %v19052_v23 = vunpack.c.l.b16 %v5391_v50  ;;  %v2563_v22 = vsel %vm2548_vm8, %v2454_v27, 0.0  ;;  %v2584_v10 = vsel %vm2548_vm8, %v2457_v3, 0.0  ;;  %v19060_v21 = vunpack.c.l.b16 %v5392_v16  ;;  %v14930_v27 = vld [vmem:[%s21668_s7 + $0x3e8] sm:$0xff]   ;;  %v16270_v16 = vld [vmem:[%s21913_s1 + $0x120] sm:$0xff]  ;;  %14328 = vmatpush3.bf16.msra.mxu1 %v14931_v52 }
 0x6d9   :  { %22085 = vst [vmem:[#allocation37_spill] sm:$0xff] %v19050_v55  ;;  %v5395_v41 = vpack.c.bf16 %v19042_v51, %v19042_v51  ;;  %v2552_v30 = vrot.slane %v2551_v24, 2  ;;  %v2559_v54 = vrot.slane %v2558_v62, 2  ;;  %v2564_v5 = vrot.slane %v2563_v22, 4  ;;  %v14932_v50 = vld [vmem:[%s21668_s7 + $0x3a8] sm:$0xff]   ;;  %14349 = vmatprep.subr.bf16.mxu0 %v14930_v27 }
 0x6da   :  { %22086 = vst [vmem:[#allocation36_spill] sm:$0xff] %v19052_v23  ;;  %v2571_v28 = vrot.slane %v2570_v29, 4  ;;  %v2578_v6 = vrot.slane %v2577_v12, 4  ;;  %v2585_v11 = vrot.slane %v2584_v10, 4  ;;  %v5396_v33 = vpack.c.bf16 %v19050_v55, %v19050_v55  ;;  %14350 = vmatpush3.bf16.msra.mxu0 %v14932_v50 }
 0x6db   :  { %v2553_v48 = vadd.f32 %v2552_v30, %v2551_v24  ;;  %v2560_v3 = vadd.f32 %v2559_v54, %v2558_v62  ;;  %v2374_v4 = vmul.f32 %v16270_v16, %v2334_v0  ;;  %v2565_v39 = vadd.f32 %v2564_v5, %v2563_v22  ;;  %v16272_v24 = vld [vmem:[%s21913_s1 + $0x130] sm:$0xff] }
 0x6dc   :  { %v2572_v57 = vadd.f32 %v2571_v28, %v2570_v29  ;;  %v2579_v56 = vadd.f32 %v2578_v6, %v2577_v12  ;;  %v2586_v9 = vadd.f32 %v2585_v11, %v2584_v10  ;;  %v2375_v1 = vmul.f32 %v16271_v53, %v2334_v0  ;;  %v16274_v53 = vld [vmem:[%s21913_s1 + $0x140] sm:$0xff] }
 0x6dd   :  { %v2554_v58 = vrot.slane %v2553_v48, 1  ;;  %v2561_v26 = vrot.slane %v2560_v3, 1  ;;  %v2376_v62 = vmul.f32 %v16272_v24, %v2334_v0  ;;  %v2566_v30 = vrot.slane %v2565_v39, 2 }
 0x6de   :  { %v2573_v22 = vrot.slane %v2572_v57, 2  ;;  %v2580_v29 = vrot.slane %v2579_v56, 2  ;;  %v2587_v12 = vrot.slane %v2586_v9, 2  ;;  %v2377_v27 = vmul.f32 %v16273_v63, %v2334_v0 }
 0x6df   :  { %v2555_v10 = vadd.f32 %v2554_v58, %v2553_v48  ;;  %v19085_v54 = vadd.f32 %v2561_v26, %v2560_v3  ;;  %v2378_v5 = vmul.f32 %v16274_v53, %v2334_v0  ;;  %v2567_v28 = vadd.f32 %v2566_v30, %v2565_v39  ;;  %v16275_v26 = vld [vmem:[%s21913_s1 + $0x148] sm:$0xff] }
 0x6e0   :  { %v2574_v6 = vadd.f32 %v2573_v22, %v2572_v57  ;;  %v2581_v11 = vadd.f32 %v2580_v29, %v2579_v56  ;;  %v2588_v52 = vadd.f32 %v2587_v12, %v2586_v9  ;;  %v2379_v48 = vmul.f32 %v16275_v26, %v2334_v0 }
 0x6e1   :  { %22087 = vst [vmem:[#allocation60_spill] sm:$0xff] %v19085_v54  ;;  %v5385_v50 = vpack.c.bf16 %v2555_v10, %v2555_v10  ;;  %v19095_v58 = vsel %vm459_vm1, %v19030_v17, %v2555_v10  ;;  %v2470_v3 = vrot.slane %v2374_v4, 2  ;;  %v2568_v16 = vrot.slane %v2567_v28, 1 }
 0x6e2   :  { %v2575_v24 = vrot.slane %v2574_v6, 1  ;;  %v2582_v63 = vrot.slane %v2581_v11, 1  ;;  %v5386_v39 = vpack.c.bf16 %v19085_v54, %v19085_v54  ;;  %v22088_v9 = vpack.c.bf16 %v19034_v49, %v19034_v49 }
 0x6e3   :  { %v22090_v17 = vpack.c.bf16 %v19036_v44, %v19036_v44  ;;  %v19112_v30 = vunpack.c.l.b16 %v5395_v41  ;;  %v2471_v0 = vrot.slane %v2375_v1, 2  ;;  %v19114_v4 = vadd.f32 %v2568_v16, %v2567_v28  ;;  %v14934_v16 = vld [vmem:[%s21668_s7 + $0x3f0] sm:$0xff]  }
 0x6e4   :  { %v19105_v56 = vunpack.c.l.b16 %v22088_v9  ;;  %v19116_v22 = vadd.f32 %v2575_v24, %v2574_v6  ;;  %v19118_v29 = vadd.f32 %v2582_v63, %v2581_v11  ;;  %v2589_v12 = vrot.slane %v2588_v52, 1  ;;  %14351 = vmatprep.subr.bf16.mxu0 %v14934_v16 }
 0x6e5   :  { %v19110_v57 = vunpack.c.l.b16 %v22090_v17  ;;  %22091 = vst [vmem:[#allocation39_spill] sm:$0xff] %v19112_v30  ;;  %v19120_v10 = vunpack.c.l.b16 %v5396_v33  ;;  %v2472_v53 = vrot.slane %v2376_v62, 2  ;;  %v2473_v26 = vrot.slane %v2377_v27, 2 }
 0x6e6   :  { %22089 = vst [vmem:[#allocation64_spill] sm:$0xff] %v19105_v56  ;;  %22092 = vst [vmem:[#allocation38_spill] sm:$0xff] %v19116_v22  ;;  %v2675_v9 = vsel %vm2548_vm8, %v2470_v3, 0.0  ;;  %v19123_v59 = vunpack.c.l.b16 %v5385_v50  ;;  %v19125_v17 = vunpack.c.l.b16 %v5386_v39  ;;  %v2474_v41 = vrot.slane %v2378_v5, 2  ;;  %v2329_v3 = vpop.permute.xlu0 %2328 }
 0x6e7   :  { %22093 = vst [vmem:[#allocation40_spill] sm:$0xff] %v19120_v10  ;;  %v2475_v36 = vrot.slane %v2379_v48, 2  ;;  %v19130_v1 = vsel %vm459_vm1, %v19034_v49, %v19114_v4  ;;  %v19135_v33 = vsel %vm459_vm1, %v19042_v51, %v19118_v29  ;;  %v2676_v62 = vrot.slane %v2675_v9, 4 }
 0x6e8   :  { %22094 = vst [vmem:[#allocation52_spill] sm:$0xff] %v19123_v59  ;;  %v2682_v27 = vsel %vm2548_vm8, %v2471_v0, 0.0  ;;  %v19138_v28 = vadd.f32 %v2589_v12, %v2588_v52  ;;  %v5387_v6 = vpack.c.bf16 %v19114_v4, %v19114_v4  ;;  %v5388_v5 = vpack.c.bf16 %v19116_v22, %v19116_v22  ;;  %v14933_v52 = vld [vmem:[%s21668_s7 + $0x370] sm:$0xff]  }
 0x6e9   :  { %v5389_v49 = vpack.c.bf16 %v19118_v29, %v19118_v29  ;;  %v2677_v11 = vadd.f32 %v2676_v62, %v2675_v9  ;;  %v2683_v50 = vrot.slane %v2682_v27, 4  ;;  %v2689_v48 = vsel %vm2548_vm8, %v2472_v53, 0.0  ;;  %v14935_v4 = vld [vmem:[%s21668_s7 + $0x330] sm:$0xff]   ;;  %14329 = vmatprep.subr.bf16.mxu1 %v14933_v52 }
 0x6ea   :  { %22095 = vst [vmem:[#allocation41_spill] sm:$0xff] %v19138_v28  ;;  %v2696_v51 = vsel %vm2548_vm8, %v2473_v26, 0.0  ;;  %v2690_v24 = vrot.slane %v2689_v48, 4  ;;  %v2703_v39 = vsel %vm2548_vm8, %v2474_v41, 0.0  ;;  %v2710_v0 = vsel %vm2548_vm8, %v2475_v36, 0.0  ;;  %v14936_v29 = vld [vmem:[%s21668_s7 + $0x3b0] sm:$0xff]   ;;  %14330 = vmatpush3.bf16.msra.mxu1 %v14935_v4 }
 0x6eb   :  { %v2697_v63 = vrot.slane %v2696_v51, 4  ;;  %v2678_v12 = vrot.slane %v2677_v11, 2  ;;  %v2684_v53 = vadd.f32 %v2683_v50, %v2682_v27  ;;  %v2704_v26 = vrot.slane %v2703_v39, 4  ;;  %v19167_v36 = vld [vmem:[%s21913_s1 + $0xc0] sm:$0xff]  ;;  %14352 = vmatpush3.bf16.msra.mxu0 %v14936_v29 }
 0x6ec   :  { %v2711_v9 = vrot.slane %v2710_v0, 4  ;;  %v5390_v62 = vpack.c.bf16 %v19138_v28, %v19138_v28  ;;  %v2691_v41 = vadd.f32 %v2690_v24, %v2689_v48  ;;  %v2368_v25 = vmul.f32 %v19167_v36, %v2329_v3  ;;  %v19173_v48 = vld [vmem:[%s21913_s1 + $0xc8] sm:$0xff]  ;;  %v19179_v24 = vld [vmem:[%s21913_s1 + $0xd0] sm:$0xff] }
 0x6ed   :  { %v2698_v7 = vadd.f32 %v2697_v63, %v2696_v51  ;;  %v2679_v37 = vadd.f32 %v2678_v12, %v2677_v11  ;;  %v2685_v45 = vrot.slane %v2684_v53, 2  ;;  %v2705_v27 = vadd.f32 %v2704_v26, %v2703_v39  ;;  %v19185_v26 = vld [vmem:[%s21913_s1 + $0xd8] sm:$0xff] }
 0x6ee   :  { %v2712_v50 = vadd.f32 %v2711_v9, %v2710_v0  ;;  %v2692_v52 = vrot.slane %v2691_v41, 2  ;;  %v2369_v51 = vmul.f32 %v19173_v48, %v2329_v3  ;;  %v2370_v11 = vmul.f32 %v19179_v24, %v2329_v3 }
 0x6ef   :  { %v2699_v16 = vrot.slane %v2698_v7, 2  ;;  %v2680_v63 = vrot.slane %v2679_v37, 1  ;;  %v2686_v39 = vadd.f32 %v2685_v45, %v2684_v53  ;;  %v2706_v0 = vrot.slane %v2705_v27, 2 }
 0x6f0   :  { %v2713_v4 = vrot.slane %v2712_v50, 2  ;;  %v2693_v29 = vadd.f32 %v2692_v52, %v2691_v41  ;;  %v2371_v9 = vmul.f32 %v19185_v26, %v2329_v3  ;;  %v2372_v14 = vmul.f32 %v19191_v15, %v2329_v3 }
 0x6f1   :  { %v2700_v12 = vadd.f32 %v2699_v16, %v2698_v7  ;;  %v2687_v31 = vrot.slane %v2686_v39, 1  ;;  %v2707_v45 = vadd.f32 %v2706_v0, %v2705_v27  ;;  %v19199_v7 = vld [vmem:[%s21913_s1 + $0xe8] sm:$0xff]  ;;  %v19202_v52 = vunpack.c.l.b16 %v5387_v6 }
 0x6f2   :  { %v19194_v53 = vadd.f32 %v2713_v4, %v2712_v50  ;;  %v2373_v41 = vmul.f32 %v19199_v7, %v2329_v3  ;;  %v19204_v16 = vadd.f32 %v2680_v63, %v2679_v37  ;;  %v2464_v35 = vrot.slane %v2368_v25, 2 }
 0x6f3   :  { %22096 = vst [vmem:[#allocation53_spill] sm:$0xff] %v19202_v52  ;;  %v2465_v55 = vrot.slane %v2369_v51, 2  ;;  %v19206_v28 = vunpack.c.l.b16 %v5388_v5  ;;  %v19208_v2 = vunpack.c.l.b16 %v5389_v49  ;;  %v19210_v27 = vunpack.c.l.b16 %v5390_v62 }
 0x6f4   :  { %22097 = vst [vmem:[#allocation42_spill] sm:$0xff] %v19204_v16  ;;  %v2694_v50 = vrot.slane %v2693_v29, 1  ;;  %v19212_v0 = vadd.f32 %v2687_v31, %v2686_v39  ;;  %v2701_v4 = vrot.slane %v2700_v12, 1  ;;  %v2466_v47 = vrot.slane %v2370_v11, 2  ;;  %v2344_v39 = vpop.permute.xlu1 %2343 }
 0x6f5   :  { %22098 = vst [vmem:[#allocation54_spill] sm:$0xff] %v19208_v2  ;;  %22099 = vst [vmem:[#allocation47_spill] sm:$0xff] %v19210_v27  ;;  %v2467_v34 = vrot.slane %v2371_v9, 2  ;;  %v2708_v44 = vrot.slane %v2707_v45, 1  ;;  %v2468_v3 = vrot.slane %v2372_v14, 2  ;;  %v2469_v37 = vrot.slane %v2373_v41, 2 }
 0x6f6   :  { %22100 = vst [vmem:[#allocation55_spill] sm:$0xff] %v19212_v0  ;;  %v2633_v5 = vsel %vm2548_vm8, %v2464_v35, 0.0  ;;  %v2640_v49 = vsel %vm2548_vm8, %v2465_v55, 0.0  ;;  %v2647_v62 = vsel %vm2548_vm8, %v2466_v47, 0.0  ;;  %v19220_v51 = vadd.f32 %v2694_v50, %v2693_v29  ;;  %v16282_v50 = vld [vmem:[%s21913_s1 + $0x1e0] sm:$0xff] }
 0x6f7   :  { %v2634_v31 = vrot.slane %v2633_v5, 4  ;;  %v2641_v63 = vrot.slane %v2640_v49, 4  ;;  %v2648_v11 = vrot.slane %v2647_v62, 4  ;;  %v19222_v9 = vadd.f32 %v2701_v4, %v2700_v12 }
 0x6f8   :  { %22101 = vst [vmem:[#allocation48_spill] sm:$0xff] %v19220_v51  ;;  %v2654_v14 = vsel %vm2548_vm8, %v2467_v34, 0.0  ;;  %v2661_v41 = vsel %vm2548_vm8, %v2468_v3, 0.0  ;;  %v2668_v25 = vsel %vm2548_vm8, %v2469_v37, 0.0  ;;  %v19227_v61 = vadd.f32 %v2708_v44, %v2707_v45  ;;  %v14937_v3 = vld [vmem:[%s21668_s7 + $0x378] sm:$0xff]  }
 0x6f9   :  { %22102 = vst [vmem:[#allocation56_spill] sm:$0xff] %v19222_v9  ;;  %v2635_v6 = vadd.f32 %v2634_v31, %v2633_v5  ;;  %v2642_v35 = vadd.f32 %v2641_v63, %v2640_v49  ;;  %v2649_v22 = vadd.f32 %v2648_v11, %v2647_v62  ;;  %v2655_v55 = vrot.slane %v2654_v14, 4  ;;  %v14938_v44 = vld [vmem:[%s21668_s7 + $0x3f8] sm:$0xff]   ;;  %v16283_v5 = vld [vmem:[%s21913_s1 + $0x1e8] sm:$0xff]  ;;  %v16284_v62 = vld [vmem:[%s21913_s1 + $0x1f0] sm:$0xff]  ;;  %14331 = vmatprep.subr.bf16.mxu1 %v14937_v3 }
 0x6fa   :  { %22103 = vst [vmem:[#allocation61_spill] sm:$0xff] %v19227_v61  ;;  %v2662_v47 = vrot.slane %v2661_v41, 4  ;;  %v2669_v29 = vrot.slane %v2668_v25, 4  ;;  %v2386_v12 = vmul.f32 %v16282_v50, %v2344_v39  ;;  %v2387_v49 = vmul.f32 %v16283_v5, %v2344_v39  ;;  %v14939_v63 = vld [vmem:[%s21668_s7 + $0x338] sm:$0xff]   ;;  %14353 = vmatprep.subr.bf16.mxu0 %v14938_v44 }
 0x6fb   :  { %v2636_v4 = vrot.slane %v2635_v6, 2  ;;  %v2643_v38 = vrot.slane %v2642_v35, 2  ;;  %v2650_v34 = vrot.slane %v2649_v22, 2  ;;  %v2656_v54 = vadd.f32 %v2655_v55, %v2654_v14  ;;  %v14940_v11 = vld [vmem:[%s21668_s7 + $0x3b8] sm:$0xff]   ;;  %14332 = vmatpush3.bf16.msra.mxu1 %v14939_v63 }
 0x6fc   :  { %v2663_v45 = vadd.f32 %v2662_v47, %v2661_v41  ;;  %v2670_v37 = vadd.f32 %v2669_v29, %v2668_v25  ;;  %v2388_v31 = vmul.f32 %v16284_v62, %v2344_v39  ;;  %v16285_v50 = vld [vmem:[%s21913_s1 + $0x1f8] sm:$0xff]  ;;  %v16286_v62 = vld [vmem:[%s21913_s1 + $0x200] sm:$0xff]  ;;  %14354 = vmatpush3.bf16.msra.mxu0 %v14940_v11  ;;  %v2482_v32 = vrot.slane %v2386_v12, 2 }
 0x6fd   :  { %v2637_v14 = vadd.f32 %v2636_v4, %v2635_v6  ;;  %v2644_v25 = vadd.f32 %v2643_v38, %v2642_v35  ;;  %v2651_v41 = vadd.f32 %v2650_v34, %v2649_v22  ;;  %v2657_v55 = vrot.slane %v2656_v54, 2  ;;  %v16287_v35 = vld [vmem:[%s21913_s1 + $0x208] sm:$0xff] }
 0x6fe   :  { %v2664_v47 = vrot.slane %v2663_v45, 2  ;;  %v2671_v29 = vrot.slane %v2670_v37, 2  ;;  %v2389_v5 = vmul.f32 %v16285_v50, %v2344_v39  ;;  %v2390_v42 = vmul.f32 %v16286_v62, %v2344_v39 }
 0x6ff   :  { %v2638_v6 = vrot.slane %v2637_v14, 1  ;;  %v2652_v38 = vrot.slane %v2651_v41, 1  ;;  %v2658_v22 = vadd.f32 %v2657_v55, %v2656_v54  ;;  %v2391_v4 = vmul.f32 %v16287_v35, %v2344_v39 }
 0x700   :  { %v2645_v34 = vrot.slane %v2644_v25, 1  ;;  %v2665_v3 = vadd.f32 %v2664_v47, %v2663_v45  ;;  %v2672_v44 = vadd.f32 %v2671_v29, %v2670_v37  ;;  %v2483_v40 = vrot.slane %v2387_v49, 2 }
 0x701   :  { %v2639_v50 = vadd.f32 %v2638_v6, %v2637_v14  ;;  %v2653_v19 = vadd.f32 %v2652_v38, %v2651_v41  ;;  %v2659_v13 = vrot.slane %v2658_v22, 1  ;;  %v22104_v63 = vrot.slane %v19194_v53, 1 }
 0x702   :  { %v2666_v39 = vrot.slane %v2665_v3, 1  ;;  %v2484_v12 = vrot.slane %v2388_v31, 2  ;;  %v2485_v37 = vrot.slane %v2389_v5, 2  ;;  %v2486_v14 = vrot.slane %v2390_v42, 2 }
 0x703   :  { %v19262_v11 = vadd.f32 %v22104_v63, %v19194_v53  ;;  %v19270_v45 = vsel %vm461_vm2, %v2639_v50, %v19095_v58  ;;  %v19272_v49 = vadd.f32 %v2645_v34, %v2644_v25  ;;  %v19276_v53 = vsel %vm461_vm2, %v2653_v19, %v19130_v1 }
 0x704   :  { %22106 = vst [vmem:[#allocation57_spill] sm:$0xff] %v19270_v45  ;;  %v2667_v41 = vadd.f32 %v2666_v39, %v2665_v3  ;;  %22108 = vst [vmem:[#allocation63_spill] sm:$0xff] %v19276_v53  ;;  %v2487_v47 = vrot.slane %v2391_v4, 2  ;;  %v19278_v29 = vadd.f32 %v2659_v13, %v2658_v22  ;;  %v2673_v62 = vrot.slane %v2672_v44, 1  ;;  %v2339_v22 = vpop.permute.xlu0 %2338 }
 0x705   :  { %22105 = vst [vmem:[#allocation49_spill] sm:$0xff] %v19262_v11  ;;  %22107 = vst [vmem:[#allocation50_spill] sm:$0xff] %v19272_v49  ;;  %v2759_v6 = vsel %vm2548_vm8, %v2482_v32, 0.0  ;;  %v2766_v38 = vsel %vm2548_vm8, %v2483_v40, 0.0  ;;  %v5397_v58 = vpack.c.bf16 %v2639_v50, %v2639_v50  ;;  %v2773_v5 = vsel %vm2548_vm8, %v2484_v12, 0.0  ;;  %v19293_v12 = vld [vmem:[%s21913_s1 + $0x180] sm:$0xff] }
 0x706   :  { %22109 = vst [vmem:[#allocation58_spill] sm:$0xff] %v19278_v29  ;;  %v19284_v31 = vsel %vm461_vm2, %v2667_v41, %v19135_v33  ;;  %v2760_v42 = vrot.slane %v2759_v6, 4  ;;  %v2767_v25 = vrot.slane %v2766_v38, 4  ;;  %v2780_v1 = vsel %vm2548_vm8, %v2485_v37, 0.0 }
 0x707   :  { %22110 = vst [vmem:[#allocation51_spill] sm:$0xff] %v19284_v31  ;;  %v2787_v35 = vsel %vm2548_vm8, %v2486_v14, 0.0  ;;  %v2794_v13 = vsel %vm2548_vm8, %v2487_v47, 0.0  ;;  %v5399_v4 = vpack.c.bf16 %v2653_v19, %v2653_v19  ;;  %v2774_v40 = vrot.slane %v2773_v5, 4 }
 0x708   :  { %v2761_v32 = vadd.f32 %v2760_v42, %v2759_v6  ;;  %v2768_v34 = vadd.f32 %v2767_v25, %v2766_v38  ;;  %v5401_v3 = vpack.c.bf16 %v2667_v41, %v2667_v41  ;;  %v2781_v50 = vrot.slane %v2780_v1, 4  ;;  %v19301_v41 = vld [vmem:[%s21913_s1 + $0x188] sm:$0xff]  ;;  %v19311_v25 = vld [vmem:[%s21913_s1 + $0x190] sm:$0xff] }
 0x709   :  { %v2788_v63 = vrot.slane %v2787_v35, 4  ;;  %v2795_v33 = vrot.slane %v2794_v13, 4  ;;  %v2775_v54 = vadd.f32 %v2774_v40, %v2773_v5  ;;  %v2380_v37 = vmul.f32 %v19293_v12, %v2339_v22 }
 0x70a   :  { %v2762_v39 = vrot.slane %v2761_v32, 2  ;;  %v2769_v55 = vrot.slane %v2768_v34, 2  ;;  %v2782_v14 = vadd.f32 %v2781_v50, %v2780_v1  ;;  %v2381_v6 = vmul.f32 %v19301_v41, %v2339_v22  ;;  %v19317_v1 = vld [vmem:[%s21913_s1 + $0x198] sm:$0xff] }
 0x70b   :  { %v2789_v47 = vadd.f32 %v2788_v63, %v2787_v35  ;;  %v19296_v19 = vadd.f32 %v2795_v33, %v2794_v13  ;;  %v19304_v38 = vadd.f32 %v2673_v62, %v2672_v44  ;;  %v2382_v5 = vmul.f32 %v19311_v25, %v2339_v22  ;;  %v19337_v33 = vld [vmem:[%s21913_s1 + $0x1a8] sm:$0xff] }
 0x70c   :  { %v19306_v42 = vadd.f32 %v2762_v39, %v2761_v32  ;;  %v2383_v35 = vmul.f32 %v19317_v1, %v2339_v22  ;;  %v19320_v13 = vunpack.c.l.b16 %v5397_v58  ;;  %v19322_v44 = vunpack.c.l.b16 %v5399_v4  ;;  %v19327_v32 = vld [vmem:[%s21913_s1 + $0x1a0] sm:$0xff] }
 0x70d   :  { %22111 = vst [vmem:[#allocation59_spill] sm:$0xff] %v19304_v38  ;;  %v2776_v62 = vrot.slane %v2775_v54, 2  ;;  %v2384_v40 = vmul.f32 %v19327_v32, %v2339_v22  ;;  %v19330_v50 = vunpack.c.l.b16 %v5401_v3  ;;  %v19332_v63 = vadd.f32 %v2769_v55, %v2768_v34 }
 0x70e   :  { %22112 = vst [vmem:[#allocation102_spill] sm:$0xff] %v19320_v13  ;;  %22113 = vst [vmem:[#allocation103_spill] sm:$0xff] %v19322_v44  ;;  %v2385_v58 = vmul.f32 %v19337_v33, %v2339_v22  ;;  %v2476_v4 = vrot.slane %v2380_v37, 2  ;;  %v2783_v39 = vrot.slane %v2782_v14, 2  ;;  %v2790_v53 = vrot.slane %v2789_v47, 2 }
 0x70f   :  { %22114 = vst [vmem:[#allocation104_spill] sm:$0xff] %v19330_v50  ;;  %v2797_v45 = vrot.slane %v19296_v19, 2  ;;  %v2477_v31 = vrot.slane %v2381_v6, 2  ;;  %v2478_v2 = vrot.slane %v2382_v5, 2  ;;  %v2479_v3 = vrot.slane %v2383_v35, 2 }
 0x710   :  { %v2480_v50 = vrot.slane %v2384_v40, 2  ;;  %v19342_v55 = vadd.f32 %v2776_v62, %v2775_v54  ;;  %v2481_v34 = vrot.slane %v2385_v58, 2  ;;  %v2717_v61 = vsel %vm2548_vm8, %v2476_v4, 0.0  ;;  %v2354_v58 = vpop.permute.xlu1 %2353 }
 0x711   :  { %v2724_v10 = vsel %vm2548_vm8, %v2477_v31, 0.0  ;;  %v2718_v27 = vrot.slane %v2717_v61, 4  ;;  %v2731_v37 = vsel %vm2548_vm8, %v2478_v2, 0.0  ;;  %v2738_v11 = vsel %vm2548_vm8, %v2479_v3, 0.0 }
 0x712   :  { %22115 = vst [vmem:[#allocation105_spill] sm:$0xff] %v19342_v55  ;;  %v2725_v22 = vrot.slane %v2724_v10, 4  ;;  %v2732_v38 = vrot.slane %v2731_v37, 4  ;;  %v2739_v6 = vrot.slane %v2738_v11, 4  ;;  %v2745_v30 = vsel %vm2548_vm8, %v2480_v50, 0.0 }
 0x713   :  { %v2752_v5 = vsel %vm2548_vm8, %v2481_v34, 0.0  ;;  %v2719_v35 = vadd.f32 %v2718_v27, %v2717_v61  ;;  %v2746_v62 = vrot.slane %v2745_v30, 4  ;;  %v19350_v4 = vadd.f32 %v2783_v39, %v2782_v14  ;;  %v16294_v61 = vld [vmem:[%s21913_s1 + $0x2a0] sm:$0xff]  ;;  %v16295_v27 = vld [vmem:[%s21913_s1 + $0x2a8] sm:$0xff]  ;;  %v16297_v34 = vld [vmem:[%s21913_s1 + $0x2b8] sm:$0xff] }
 0x714   :  { %v2726_v54 = vadd.f32 %v2725_v22, %v2724_v10  ;;  %v2753_v40 = vrot.slane %v2752_v5, 4  ;;  %v19352_v31 = vadd.f32 %v2790_v53, %v2789_v47  ;;  %v2733_v44 = vadd.f32 %v2732_v38, %v2731_v37  ;;  %v16298_v37 = vld [vmem:[%s21913_s1 + $0x2c0] sm:$0xff] }
 0x715   :  { %v2740_v56 = vadd.f32 %v2739_v6, %v2738_v11  ;;  %v2720_v2 = vrot.slane %v2719_v35, 2  ;;  %v2747_v3 = vadd.f32 %v2746_v62, %v2745_v30  ;;  %v2398_v10 = vmul.f32 %v16294_v61, %v2354_v58  ;;  %v16296_v30 = vld [vmem:[%s21913_s1 + $0x2b0] sm:$0xff] }
 0x716   :  { %22116 = vst [vmem:[#allocation106_spill] sm:$0xff] %v19352_v31  ;;  %v2727_v52 = vrot.slane %v2726_v54, 2  ;;  %v2754_v51 = vadd.f32 %v2753_v40, %v2752_v5  ;;  %v2734_v13 = vrot.slane %v2733_v44, 2  ;;  %v2399_v14 = vmul.f32 %v16295_v27, %v2354_v58 }
 0x717   :  { %v2741_v23 = vrot.slane %v2740_v56, 2  ;;  %v2721_v53 = vadd.f32 %v2720_v2, %v2719_v35  ;;  %v2748_v47 = vrot.slane %v2747_v3, 2  ;;  %v2400_v11 = vmul.f32 %v16296_v30, %v2354_v58 }
 0x718   :  { %v2755_v38 = vrot.slane %v2754_v51, 2  ;;  %v19363_v50 = vadd.f32 %v2727_v52, %v2726_v54  ;;  %v2735_v39 = vadd.f32 %v2734_v13, %v2733_v44  ;;  %v2401_v22 = vmul.f32 %v16297_v34, %v2354_v58  ;;  %v16299_v52 = vld [vmem:[%s21913_s1 + $0x2c8] sm:$0xff] }
 0x719   :  { %v2402_v6 = vmul.f32 %v16298_v37, %v2354_v58  ;;  %v19372_v5 = vadd.f32 %v2797_v45, %v19296_v19  ;;  %v19374_v35 = vadd.f32 %v2741_v23, %v2740_v56  ;;  %v2749_v62 = vadd.f32 %v2748_v47, %v2747_v3  ;;  %v2349_v47 = vpop.permute.xlu0 %2348 }
 0x71a   :  { %v2403_v13 = vmul.f32 %v16299_v52, %v2354_v58  ;;  %v2722_v44 = vrot.slane %v2721_v53, 1  ;;  %v19379_v54 = vadd.f32 %v2755_v38, %v2754_v51  ;;  %v2494_v40 = vrot.slane %v2398_v10, 2 }
 0x71b   :  { %22117 = vst [vmem:[#allocation107_spill] sm:$0xff] %v19372_v5  ;;  %v2495_v2 = vrot.slane %v2399_v14, 2  ;;  %v2736_v30 = vrot.slane %v2735_v39, 1  ;;  %v2496_v45 = vrot.slane %v2400_v11, 2  ;;  %v2750_v56 = vrot.slane %v2749_v62, 1 }
 0x71c   :  { %22118 = vst [vmem:[#allocation108_spill] sm:$0xff] %v19379_v54  ;;  %v2497_v19 = vrot.slane %v2401_v22, 2  ;;  %v2498_v3 = vrot.slane %v2402_v6, 2  ;;  %v2843_v58 = vsel %vm2548_vm8, %v2494_v40, 0.0  ;;  %v19390_v14 = vadd.f32 %v2722_v44, %v2721_v53  ;;  %v16300_v40 = vld [vmem:[%s21913_s1 + $0x240] sm:$0xff] }
 0x71d   :  { %v19387_v51 = vsel %vm2548_vm8, %v2495_v2, 0.0  ;;  %v2857_v10 = vsel %vm2548_vm8, %v2496_v45, 0.0  ;;  %v2499_v11 = vrot.slane %v2403_v13, 2  ;;  %v2844_v37 = vrot.slane %v2843_v58, 4 }
 0x71e   :  { %22119 = vst [vmem:[#allocation109_spill] sm:$0xff] %v19390_v14  ;;  %v19393_v52 = vadd.f32 %v2736_v30, %v2735_v39  ;;  %v19396_v22 = vsel %vm2548_vm8, %v2497_v19, 0.0  ;;  %v2871_v6 = vsel %vm2548_vm8, %v2498_v3, 0.0  ;;  %v2392_v2 = vmul.f32 %v16300_v40, %v2349_v47  ;;  %v16301_v39 = vld [vmem:[%s21913_s1 + $0x248] sm:$0xff]  ;;  %v16302_v30 = vld [vmem:[%s21913_s1 + $0x250] sm:$0xff]  ;;  %v16303_v3 = vld [vmem:[%s21913_s1 + $0x258] sm:$0xff] }
 0x71f   :  { %v19402_v27 = vadd.f32 %v2750_v56, %v2749_v62  ;;  %v2858_v44 = vrot.slane %v2857_v10, 4  ;;  %v2872_v45 = vrot.slane %v2871_v6, 4  ;;  %v2393_v13 = vmul.f32 %v16301_v39, %v2349_v47  ;;  %v16304_v56 = vld [vmem:[%s21913_s1 + $0x260] sm:$0xff] }
 0x720   :  { %22120 = vst [vmem:[#allocation110_spill] sm:$0xff] %v19393_v52  ;;  %v2394_v19 = vmul.f32 %v16302_v30, %v2349_v47  ;;  %v2395_v62 = vmul.f32 %v16303_v3, %v2349_v47  ;;  %v2396_v40 = vmul.f32 %v16304_v56, %v2349_v47  ;;  %v19417_v38 = vadd.f32 %v2844_v37, %v2843_v58  ;;  %v16305_v30 = vld [vmem:[%s21913_s1 + $0x268] sm:$0xff]  ;;  %v3282_v56 = vpop.permute.xlu1 %3281 }
 0x721   :  { %22121 = vst [vmem:[#allocation111_spill] sm:$0xff] %v19402_v27  ;;  %v19421_v39 = vsel %vm2548_vm8, %v2499_v11, 0.0  ;;  %v2397_v34 = vmul.f32 %v16305_v30, %v2349_v47  ;;  %v2488_v53 = vrot.slane %v2392_v2, 2  ;;  %v2489_v23 = vrot.slane %v2393_v13, 2  ;;  %v14941_v30 = vld [vmem:[%s21668_s7 + $0x440] sm:$0xff]  }
 0x722   :  { %22122 = vst [vmem:[#allocation112_spill] sm:$0xff] %v19421_v39  ;;  %v2490_v3 = vrot.slane %v2394_v19, 2  ;;  %v2491_v27 = vrot.slane %v2395_v62, 2  ;;  %v19426_v31 = vadd.f32 %v2858_v44, %v2857_v10  ;;  %v19428_v5 = vadd.f32 %v2872_v45, %v2871_v6  ;;  %14361 = vmatprep.subr.bf16.mxu1 %v14941_v30 }
 0x723   :  { %v2492_v58 = vrot.slane %v2396_v40, 2  ;;  %v2493_v37 = vrot.slane %v2397_v34, 2  ;;  %v2801_v61 = vsel %vm2548_vm8, %v2488_v53, 0.0  ;;  %v2808_v11 = vsel %vm2548_vm8, %v2489_v23, 0.0  ;;  %v16306_v34 = vld [vmem:[%s21913_s1 + $0x30] sm:$0x3] }
 0x724   :  { %22123 = vst [vmem:[#allocation113_spill] sm:$0xff] %v19426_v31  ;;  %22124 = vst [vmem:[#allocation114_spill] sm:$0xff] %v19428_v5  ;;  %v2815_v54 = vsel %vm2548_vm8, %v2490_v3, 0.0  ;;  %v2822_v52 = vsel %vm2548_vm8, %v2491_v27, 0.0  ;;  %v2802_v47 = vrot.slane %v2801_v61, 4  ;;  %v2809_v2 = vrot.slane %v2808_v11, 4 }
 0x725   :  { %v2816_v13 = vrot.slane %v2815_v54, 4  ;;  %v2823_v19 = vrot.slane %v2822_v52, 4  ;;  %v2829_v10 = vsel %vm2548_vm8, %v2492_v58, 0.0  ;;  %v2836_v6 = vsel %vm2548_vm8, %v2493_v37, 0.0  ;;  %v16307_v23 = vld [vmem:[%s21913_s1 + $0x38] sm:$0x3] }
 0x726   :  { %v3360_v44 = vmul.f32 %v16306_v34, %v3282_v56  ;;  %v3361_v53 = vmul.f32 %v16307_v23, %v3282_v56  ;;  %v2803_v45 = vadd.f32 %v2802_v47, %v2801_v61  ;;  %v19442_v27 = vadd.f32 %v2809_v2, %v2808_v11  ;;  %v14942_v3 = vld [vmem:[%s21668_s7 + $0x4c0] sm:$0xff]   ;;  %v3277_v2 = vpop.permute.xlu0 %3276 }
 0x727   :  { %v2817_v62 = vadd.f32 %v2816_v13, %v2815_v54  ;;  %v19444_v40 = vadd.f32 %v2823_v19, %v2822_v52  ;;  %v2830_v58 = vrot.slane %v2829_v10, 4  ;;  %v2837_v37 = vrot.slane %v2836_v6, 4  ;;  %v16308_v61 = vld [vmem:[%s21913_s1 + $0x40] sm:$0x3]  ;;  %v16309_v54 = vld [vmem:[%s21913_s1 + $0x48] sm:$0x3]  ;;  %14383 = vmatprep.subr.bf16.mxu0 %v14942_v3 }
 0x728   :  { %v3362_v11 = vmul.f32 %v16308_v61, %v3282_v56  ;;  %v3363_v52 = vmul.f32 %v16309_v54, %v3282_v56  ;;  %v16310_v19 = vld [vmem:[%s21913_s1 + $0x50] sm:$0x3]  ;;  %v2804_v61 = vrot.slane %v2803_v45, 2  ;;  %v16311_v54 = vld [vmem:[%s21913_s1 + $0x58] sm:$0x3]  ;;  %v3547_v30 = vrot.slane %v3360_v44, 5 }
 0x729   :  { %v3364_v34 = vmul.f32 %v16310_v19, %v3282_v56  ;;  %v3365_v47 = vmul.f32 %v16311_v54, %v3282_v56  ;;  %v2818_v31 = vrot.slane %v2817_v62, 2  ;;  %v19470_v39 = vadd.f32 %v2830_v58, %v2829_v10 }
 0x72a   :  { %v19472_v59 = vadd.f32 %v2837_v37, %v2836_v6  ;;  %v3550_v3 = vrot.slane %v3361_v53, 5  ;;  %v3553_v19 = vrot.slane %v3362_v11, 5  ;;  %v3556_v23 = vrot.slane %v3363_v52, 5 }
 0x72b   :  { %v3559_v5 = vrot.slane %v3364_v34, 5  ;;  %v3354_v55 = vmul.f32 %v18997_v46, %v3277_v2  ;;  %v3355_v16 = vmul.f32 %v19003_v8, %v3277_v2  ;;  %v3356_v14 = vmul.f32 %v19009_v60, %v3277_v2 }
 0x72c   :  { %v3562_v56 = vrot.slane %v3365_v47, 5  ;;  %v3357_v54 = vmul.f32 %v19015_v18, %v3277_v2  ;;  %v3358_v13 = vmul.f32 %v19021_v20, %v3277_v2  ;;  %v3359_v10 = vmul.f32 %v19027_v43, %v3277_v2 }
 0x72d   :  { %v19480_v6 = vadd.f32 %v2804_v61, %v2803_v45  ;;  %v3546_v44 = vrot.slane %v3354_v55, 5  ;;  %v3549_v53 = vrot.slane %v3355_v16, 5  ;;  %v3552_v58 = vrot.slane %v3356_v14, 5 }
 0x72e   :  { %v19482_v37 = vadd.f32 %v2818_v31, %v2817_v62  ;;  %v3555_v11 = vrot.slane %v3357_v54, 5  ;;  %v3558_v46 = vrot.slane %v3358_v13, 5  ;;  %v3561_v52 = vrot.slane %v3359_v10, 5  ;;  %v3292_v31 = vpop.permute.xlu1 %3291 }
 0x72f   :  { %v2832_v8 = vrot.slane %v19470_v39, 2  ;;  %v3548_v60 = vsel %vm2548_vm8, %v3546_v44, %v3547_v30  ;;  %v3551_v18 = vsel %vm2548_vm8, %v3549_v53, %v3550_v3  ;;  %v3554_v20 = vsel %vm2548_vm8, %v3552_v58, %v3553_v19  ;;  %v16312_v19 = vld [vmem:[%s21913_s1 + $0x90] sm:$0x3] }
 0x730   :  { %22125 = vst [vmem:[#allocation115_spill] sm:$0xff] %v19482_v37  ;;  %v3557_v43 = vsel %vm2548_vm8, %v3555_v11, %v3556_v23  ;;  %v3560_v45 = vsel %vm2548_vm8, %v3558_v46, %v3559_v5  ;;  %v3563_v16 = vsel %vm2548_vm8, %v3561_v52, %v3562_v56  ;;  %v3739_v55 = vsel %vm3738_vm9, %v3548_v60, 0.0  ;;  %v16313_v46 = vld [vmem:[%s21913_s1 + $0x98] sm:$0x3]  ;;  %v16314_v60 = vld [vmem:[%s21913_s1 + $0xa0] sm:$0x3] }
 0x731   :  { %v3740_v14 = vrot.slane %v3739_v55, 4  ;;  %v3746_v62 = vsel %vm3738_vm9, %v3551_v18, 0.0  ;;  %v3753_v47 = vsel %vm3738_vm9, %v3554_v20, 0.0  ;;  %v3760_v2 = vsel %vm3738_vm9, %v3557_v43, 0.0 }
 0x732   :  { %v3747_v13 = vrot.slane %v3746_v62, 4  ;;  %v3754_v34 = vrot.slane %v3753_v47, 4  ;;  %v3761_v61 = vrot.slane %v3760_v2, 4  ;;  %v3767_v30 = vsel %vm3738_vm9, %v3560_v45, 0.0 }
 0x733   :  { %v3741_v23 = vadd.f32 %v3740_v14, %v3739_v55  ;;  %v3768_v3 = vrot.slane %v3767_v30, 4  ;;  %v3774_v5 = vsel %vm3738_vm9, %v3563_v16, 0.0  ;;  %v19500_v56 = vmul.f32 %v16312_v19, %v3292_v31 }
 0x734   :  { %v3748_v54 = vadd.f32 %v3747_v13, %v3746_v62  ;;  %v3755_v10 = vadd.f32 %v3754_v34, %v3753_v47  ;;  %v3762_v44 = vadd.f32 %v3761_v61, %v3760_v2  ;;  %v3775_v53 = vrot.slane %v3774_v5, 4  ;;  %v16315_v62 = vld [vmem:[%s21913_s1 + $0xa8] sm:$0x3]  ;;  %v16316_v2 = vld [vmem:[%s21913_s1 + $0xb0] sm:$0x3] }
 0x735   :  { %v3742_v58 = vrot.slane %v3741_v23, 2  ;;  %v3769_v11 = vadd.f32 %v3768_v3, %v3767_v30  ;;  %v19505_v52 = vmul.f32 %v16313_v46, %v3292_v31  ;;  %v19510_v18 = vmul.f32 %v16314_v60, %v3292_v31 }
 0x736   :  { %v3749_v20 = vrot.slane %v3748_v54, 2  ;;  %v3756_v43 = vrot.slane %v3755_v10, 2  ;;  %v3763_v45 = vrot.slane %v3762_v44, 2  ;;  %v3776_v16 = vadd.f32 %v3775_v53, %v3774_v5 }
 0x737   :  { %v3743_v55 = vadd.f32 %v3742_v58, %v3741_v23  ;;  %v3770_v14 = vrot.slane %v3769_v11, 2  ;;  %v3375_v47 = vmul.f32 %v16315_v62, %v3292_v31  ;;  %v3376_v13 = vmul.f32 %v16316_v2, %v3292_v31  ;;  %v16317_v23 = vld [vmem:[%s21913_s1 + $0xb8] sm:$0x3]  ;;  %v3287_v2 = vpop.permute.xlu0 %3286 }
 0x738   :  { %v3750_v34 = vadd.f32 %v3749_v20, %v3748_v54  ;;  %v3757_v61 = vadd.f32 %v3756_v43, %v3755_v10  ;;  %v3764_v30 = vadd.f32 %v3763_v45, %v3762_v44  ;;  %v3777_v3 = vrot.slane %v3776_v16, 2 }
 0x739   :  { %v3744_v46 = vrot.slane %v3743_v55, 1  ;;  %v3771_v5 = vadd.f32 %v3770_v14, %v3769_v11  ;;  %v3377_v53 = vmul.f32 %v16317_v23, %v3292_v31  ;;  %v19523_v58 = vadd.f32 %v2832_v8, %v19470_v39  ;;  %v16318_v39 = vld [vmem:[%s21913_s1 + $0x60] sm:$0xff] }
 0x73a   :  { %v3751_v60 = vrot.slane %v3750_v34, 1  ;;  %v3758_v62 = vrot.slane %v3757_v61, 1  ;;  %v3778_v37 = vadd.f32 %v3777_v3, %v3776_v16  ;;  %v3765_v54 = vrot.slane %v3764_v30, 1  ;;  %v16319_v16 = vld [vmem:[%s21913_s1 + $0x68] sm:$0xff] }
 0x73b   :  { %22126 = vst [vmem:[#allocation116_spill] sm:$0xff] %v19523_v58  ;;  %v3772_v10 = vrot.slane %v3771_v5, 1  ;;  %v3565_v44 = vrot.slane %v19500_v56, 5  ;;  %v3568_v20 = vrot.slane %v19505_v52, 5  ;;  %v19527_v43 = vadd.f32 %v3744_v46, %v3743_v55 }
 0x73c   :  { %v3571_v11 = vrot.slane %v19510_v18, 5  ;;  %v3574_v45 = vrot.slane %v3375_v47, 5  ;;  %v3577_v14 = vrot.slane %v3376_v13, 5  ;;  %v3779_v31 = vrot.slane %v3778_v37, 1  ;;  %v16320_v18 = vld [vmem:[%s21913_s1 + $0x70] sm:$0xff]  ;;  %v16321_v47 = vld [vmem:[%s21913_s1 + $0x78] sm:$0xff] }
 0x73d   :  { %22127 = vst [vmem:[#allocation117_spill] sm:$0xff] %v19527_v43  ;;  %v3580_v23 = vrot.slane %v3377_v53, 5  ;;  %v3366_v8 = vmul.f32 %v16318_v39, %v3287_v2  ;;  %v3367_v56 = vmul.f32 %v16319_v16, %v3287_v2  ;;  %v19536_v3 = vadd.f32 %v3751_v60, %v3750_v34  ;;  %v16322_v34 = vld [vmem:[%s21913_s1 + $0x80] sm:$0xff]  ;;  %v16323_v60 = vld [vmem:[%s21913_s1 + $0x88] sm:$0xff] }
 0x73e   :  { %v19538_v52 = vadd.f32 %v3758_v62, %v3757_v61  ;;  %v3368_v55 = vmul.f32 %v16320_v18, %v3287_v2  ;;  %v3369_v13 = vmul.f32 %v16321_v47, %v3287_v2  ;;  %v19546_v46 = vadd.f32 %v3765_v54, %v3764_v30 }
 0x73f   :  { %22128 = vst [vmem:[#allocation118_spill] sm:$0xff] %v19536_v3  ;;  %v19548_v53 = vadd.f32 %v3772_v10, %v3771_v5  ;;  %v3370_v61 = vmul.f32 %v16322_v34, %v3287_v2  ;;  %v3371_v62 = vmul.f32 %v16323_v60, %v3287_v2  ;;  %v6089_v39 = vpack.c.bf16 %v19527_v43, %v19527_v43 }
 0x740   :  { %22129 = vst [vmem:[#allocation119_spill] sm:$0xff] %v19538_v52  ;;  %22130 = vst [vmem:[#allocation120_spill] sm:$0xff] %v19546_v46  ;;  %v3564_v16 = vrot.slane %v3366_v8, 5  ;;  %v3567_v18 = vrot.slane %v3367_v56, 5  ;;  %v3570_v47 = vrot.slane %v3368_v55, 5  ;;  %v19558_v30 = vadd.f32 %v3779_v31, %v3778_v37 }
 0x741   :  { %22131 = vst [vmem:[#allocation121_spill] sm:$0xff] %v19548_v53  ;;  %v3573_v5 = vrot.slane %v3369_v13, 5  ;;  %v3576_v54 = vrot.slane %v3370_v61, 5  ;;  %v3579_v10 = vrot.slane %v3371_v62, 5  ;;  %v6091_v19 = vpack.c.bf16 %v19538_v52, %v19538_v52 }
 0x742   :  { %22132 = vst [vmem:[#allocation122_spill] sm:$0xff] %v19558_v30  ;;  %v3566_v34 = vsel %vm2548_vm8, %v3564_v16, %v3565_v44  ;;  %v3569_v46 = vsel %vm2548_vm8, %v3567_v18, %v3568_v20  ;;  %v3572_v2 = vsel %vm2548_vm8, %v3570_v47, %v3571_v11  ;;  %v3302_v16 = vpop.permute.xlu1 %3301  ;;  %v19576_v47 = vpop.f32.mrb[4].mxu1 }
 0x743   :  { %v3575_v60 = vsel %vm2548_vm8, %v3573_v5, %v3574_v45  ;;  %v3578_v8 = vsel %vm2548_vm8, %v3576_v54, %v3577_v14  ;;  %v3581_v56 = vsel %vm2548_vm8, %v3579_v10, %v3580_v23  ;;  %v3781_v37 = vsel %vm3738_vm9, %v3566_v34, 0.0 }
 0x744   :  { %v3782_v31 = vrot.slane %v3781_v37, 4  ;;  %v3788_v55 = vsel %vm3738_vm9, %v3569_v46, 0.0  ;;  %v3795_v13 = vsel %vm3738_vm9, %v3572_v2, 0.0  ;;  %v3802_v61 = vsel %vm3738_vm9, %v3575_v60, 0.0  ;;  %v19578_v46 = vpop.f32.mrb[4].mxu0  ;;  %v19580_v2 = vpop.f32.mrb[5].mxu1 }
 0x745   :  { %v3789_v44 = vrot.slane %v3788_v55, 4  ;;  %v3796_v62 = vrot.slane %v3795_v13, 4  ;;  %v3803_v20 = vrot.slane %v3802_v61, 4  ;;  %v3809_v11 = vsel %vm3738_vm9, %v3578_v8, 0.0  ;;  %22133 = vst [vmem:[#allocation123_spill] sm:$0xff] %v19578_v46  ;;  %v19582_v60 = vpop.f32.mrb[5].mxu0 }
 0x746   :  { %v3783_v14 = vadd.f32 %v3782_v31, %v3781_v37  ;;  %v3810_v23 = vrot.slane %v3809_v11, 4  ;;  %v3816_v18 = vsel %vm3738_vm9, %v3581_v56, 0.0  ;;  %22134 = vst [vmem:[#allocation124_spill] sm:$0xff] %v19582_v60  ;;  %v19584_v8 = vunpack.c.l.b16 %v6089_v39  ;;  %v16324_v56 = vld [vmem:[%s21913_s1 + $0xf0] sm:$0x3]  ;;  %v14204_v31 = vpop.f32.mrb[6].mxu1 }
 0x747   :  { %v3790_v5 = vadd.f32 %v3789_v44, %v3788_v55  ;;  %v3797_v54 = vadd.f32 %v3796_v62, %v3795_v13  ;;  %v3804_v10 = vadd.f32 %v3803_v20, %v3802_v61  ;;  %v3817_v34 = vrot.slane %v3816_v18, 4  ;;  %v14226_v43 = vpop.f32.mrb[6].mxu0  ;;  %v14205_v44 = vpop.f32.mrb[7].mxu1  ;;  %v16325_v39 = vld [vmem:[%s21913_s1 + $0xf8] sm:$0x3] }
 0x748   :  { %22135 = vst [vmem:[#allocation125_spill] sm:$0xff] %v19584_v8  ;;  %v3784_v52 = vrot.slane %v3783_v14, 2  ;;  %v3811_v45 = vadd.f32 %v3810_v23, %v3809_v11  ;;  %v3384_v37 = vmul.f32 %v16324_v56, %v3302_v16  ;;  %v14227_v62 = vpop.f32.mrb[7].mxu0  ;;  %v3385_v11 = vmul.f32 %v16325_v39, %v3302_v16  ;;  %v16326_v23 = vld [vmem:[%s21913_s1 + $0x100] sm:$0x3] }
 0x749   :  { %v3791_v53 = vrot.slane %v3790_v5, 2  ;;  %v3798_v55 = vrot.slane %v3797_v54, 2  ;;  %v3805_v13 = vrot.slane %v3804_v10, 2  ;;  %v3818_v61 = vadd.f32 %v3817_v34, %v3816_v18 }
 0x74a   :  { %v3785_v20 = vadd.f32 %v3784_v52, %v3783_v14  ;;  %v3812_v30 = vrot.slane %v3811_v45, 2  ;;  %v3386_v56 = vmul.f32 %v16326_v23, %v3302_v16  ;;  %v19595_v58 = vunpack.c.l.b16 %v6091_v19  ;;  %v16327_v52 = vld [vmem:[%s21913_s1 + $0x108] sm:$0x3] }
 0x74b   :  { %v3792_v31 = vadd.f32 %v3791_v53, %v3790_v5  ;;  %v3799_v43 = vadd.f32 %v3798_v55, %v3797_v54  ;;  %v3806_v8 = vadd.f32 %v3805_v13, %v3804_v10  ;;  %v3819_v3 = vrot.slane %v3818_v61, 2  ;;  %v16328_v53 = vld [vmem:[%s21913_s1 + $0x110] sm:$0x3]  ;;  %v3297_v5 = vpop.permute.xlu0 %3296 }
 0x74c   :  { %22136 = vst [vmem:[#allocation126_spill] sm:$0xff] %v19595_v58  ;;  %v3786_v18 = vrot.slane %v3785_v20, 1  ;;  %v3813_v34 = vadd.f32 %v3812_v30, %v3811_v45  ;;  %v3387_v14 = vmul.f32 %v16327_v52, %v3302_v16  ;;  %v3388_v19 = vmul.f32 %v16328_v53, %v3302_v16  ;;  %v16329_v30 = vld [vmem:[%s21913_s1 + $0x118] sm:$0x3] }
 0x74d   :  { %v3793_v44 = vrot.slane %v3792_v31, 1  ;;  %v3800_v62 = vrot.slane %v3799_v43, 1  ;;  %v3807_v39 = vrot.slane %v3806_v8, 1  ;;  %v3820_v60 = vadd.f32 %v3819_v3, %v3818_v61 }
 0x74e   :  { %v19600_v46 = vadd.f32 %v3786_v18, %v3785_v20  ;;  %v3814_v23 = vrot.slane %v3813_v34, 1  ;;  %v3389_v45 = vmul.f32 %v16329_v30, %v3302_v16  ;;  %v3583_v10 = vrot.slane %v3384_v37, 5 }
 0x74f   :  { %v3821_v54 = vrot.slane %v3820_v60, 1  ;;  %v3586_v55 = vrot.slane %v3385_v11, 5  ;;  %v3589_v13 = vrot.slane %v3386_v56, 5  ;;  %v19608_v52 = vadd.f32 %v3793_v44, %v3792_v31 }
 0x750   :  { %22137 = vst [vmem:[#allocation127_spill] sm:$0xff] %v19600_v46  ;;  %v19610_v3 = vadd.f32 %v3800_v62, %v3799_v43  ;;  %v19612_v61 = vadd.f32 %v3807_v39, %v3806_v8  ;;  %v3592_v20 = vrot.slane %v3387_v14, 5  ;;  %v19614_v18 = vadd.f32 %v3814_v23, %v3813_v34 }
 0x751   :  { %v6095_v53 = vpack.c.bf16 %v19600_v46, %v19600_v46  ;;  %v3378_v58 = vmul.f32 %v19167_v36, %v3297_v5  ;;  %v3379_v16 = vmul.f32 %v19173_v48, %v3297_v5  ;;  %v3595_v30 = vrot.slane %v3388_v19, 5 }
 0x752   :  { %22138 = vst [vmem:[#allocation128_spill] sm:$0xff] %v19610_v3  ;;  %22139 = vst [vmem:[#allocation129_spill] sm:$0xff] %v19612_v61  ;;  %v3598_v37 = vrot.slane %v3389_v45, 5  ;;  %v3380_v11 = vmul.f32 %v19179_v24, %v3297_v5  ;;  %v3381_v56 = vmul.f32 %v19185_v26, %v3297_v5  ;;  %v19622_v31 = vadd.f32 %v3821_v54, %v3820_v60  ;;  %v3312_v54 = vpop.permute.xlu1 %3311 }
 0x753   :  { %22140 = vst [vmem:[#allocation130_spill] sm:$0xff] %v19614_v18  ;;  %v3382_v8 = vmul.f32 %v19191_v15, %v3297_v5  ;;  %v3383_v43 = vmul.f32 %v19199_v7, %v3297_v5  ;;  %v3582_v34 = vrot.slane %v3378_v58, 5  ;;  %v6097_v14 = vpack.c.bf16 %v19610_v3, %v19610_v3 }
 0x754   :  { %22141 = vst [vmem:[#allocation131_spill] sm:$0xff] %v19622_v31  ;;  %v3585_v44 = vrot.slane %v3379_v16, 5  ;;  %v3588_v36 = vrot.slane %v3380_v11, 5  ;;  %v3591_v62 = vrot.slane %v3381_v56, 5 }
 0x755   :  { %v3584_v24 = vsel %vm2548_vm8, %v3582_v34, %v3583_v10  ;;  %v3594_v39 = vrot.slane %v3382_v8, 5  ;;  %v3597_v26 = vrot.slane %v3383_v43, 5  ;;  %v19641_v43 = vunpack.c.l.b16 %v6095_v53  ;;  %v16330_v34 = vld [vmem:[%s21913_s1 + $0x150] sm:$0x3]  ;;  %v16331_v53 = vld [vmem:[%s21913_s1 + $0x158] sm:$0x3] }
 0x756   :  { %v3587_v60 = vsel %vm2548_vm8, %v3585_v44, %v3586_v55  ;;  %v3590_v15 = vsel %vm2548_vm8, %v3588_v36, %v3589_v13  ;;  %v3593_v7 = vsel %vm2548_vm8, %v3591_v62, %v3592_v20  ;;  %v3823_v58 = vsel %vm3738_vm9, %v3584_v24, 0.0 }
 0x757   :  { %v3596_v23 = vsel %vm2548_vm8, %v3594_v39, %v3595_v30  ;;  %v3599_v19 = vsel %vm2548_vm8, %v3597_v26, %v3598_v37  ;;  %v3824_v45 = vrot.slane %v3823_v58, 4  ;;  %v3830_v5 = vsel %vm3738_vm9, %v3587_v60, 0.0 }
 0x758   :  { %v3831_v16 = vrot.slane %v3830_v5, 4  ;;  %v3837_v10 = vsel %vm3738_vm9, %v3590_v15, 0.0  ;;  %v3844_v11 = vsel %vm3738_vm9, %v3593_v7, 0.0  ;;  %v3851_v55 = vsel %vm3738_vm9, %v3596_v23, 0.0  ;;  %v16332_v7 = vld [vmem:[%s21913_s1 + $0x160] sm:$0x3] }
 0x759   :  { %v3825_v13 = vadd.f32 %v3824_v45, %v3823_v58  ;;  %v3838_v56 = vrot.slane %v3837_v10, 4  ;;  %v3845_v20 = vrot.slane %v3844_v11, 4  ;;  %v3852_v8 = vrot.slane %v3851_v55, 4 }
 0x75a   :  { %v3832_v30 = vadd.f32 %v3831_v16, %v3830_v5  ;;  %v3858_v37 = vsel %vm3738_vm9, %v3599_v19, 0.0  ;;  %v19647_v44 = vmul.f32 %v16330_v34, %v3312_v54  ;;  %v3397_v15 = vmul.f32 %v16331_v53, %v3312_v54 }
 0x75b   :  { %v3826_v36 = vrot.slane %v3825_v13, 2  ;;  %v3839_v62 = vadd.f32 %v3838_v56, %v3837_v10  ;;  %v3846_v24 = vadd.f32 %v3845_v20, %v3844_v11  ;;  %v3853_v39 = vadd.f32 %v3852_v8, %v3851_v55  ;;  %v16333_v11 = vld [vmem:[%s21913_s1 + $0x168] sm:$0x3]  ;;  %v16334_v56 = vld [vmem:[%s21913_s1 + $0x170] sm:$0x3] }
 0x75c   :  { %v3833_v26 = vrot.slane %v3832_v30, 2  ;;  %v3859_v60 = vrot.slane %v3858_v37, 4  ;;  %v3398_v58 = vmul.f32 %v16332_v7, %v3312_v54  ;;  %v3399_v55 = vmul.f32 %v16333_v11, %v3312_v54  ;;  %v3307_v7 = vpop.permute.xlu0 %3306 }
 0x75d   :  { %v3827_v23 = vadd.f32 %v3826_v36, %v3825_v13  ;;  %v3840_v19 = vrot.slane %v3839_v62, 2  ;;  %v3847_v45 = vrot.slane %v3846_v24, 2  ;;  %v3854_v5 = vrot.slane %v3853_v39, 2 }
 0x75e   :  { %v19655_v16 = vadd.f32 %v3833_v26, %v3832_v30  ;;  %v3860_v10 = vadd.f32 %v3859_v60, %v3858_v37  ;;  %v3400_v20 = vmul.f32 %v16334_v56, %v3312_v54  ;;  %v19665_v36 = vunpack.c.l.b16 %v6097_v14  ;;  %v16335_v37 = vld [vmem:[%s21913_s1 + $0x178] sm:$0x3] }
 0x75f   :  { %v3828_v8 = vrot.slane %v3827_v23, 1  ;;  %v3841_v34 = vadd.f32 %v3840_v19, %v3839_v62  ;;  %v19663_v53 = vadd.f32 %v3847_v45, %v3846_v24  ;;  %v3855_v13 = vadd.f32 %v3854_v5, %v3853_v39  ;;  %v16337_v5 = vld [vmem:[%s21913_s1 + $0x128] sm:$0xff] }
 0x760   :  { %22143 = vst [vmem:[#allocation133_spill] sm:$0xff] %v19665_v36  ;;  %v3861_v30 = vrot.slane %v3860_v10, 2  ;;  %v3401_v26 = vmul.f32 %v16335_v37, %v3312_v54  ;;  %v3601_v60 = vrot.slane %v19647_v44, 5  ;;  %v3604_v56 = vrot.slane %v3397_v15, 5  ;;  %v16336_v54 = vld [vmem:[%s21913_s1 + $0x120] sm:$0xff]  ;;  %v3322_v37 = vpop.permute.xlu1 %3321 }
 0x761   :  { %22142 = vst [vmem:[#allocation132_spill] sm:$0xff] %v19663_v53  ;;  %v3842_v48 = vrot.slane %v3841_v34, 1  ;;  %v3607_v3 = vrot.slane %v3398_v58, 5  ;;  %v19672_v62 = vadd.f32 %v3828_v8, %v3827_v23  ;;  %v3856_v14 = vrot.slane %v3855_v13, 1  ;;  %v16338_v23 = vld [vmem:[%s21913_s1 + $0x130] sm:$0xff] }
 0x762   :  { %v19675_v39 = vadd.f32 %v3861_v30, %v3860_v10  ;;  %v3610_v19 = vrot.slane %v3399_v55, 5  ;;  %v3613_v45 = vrot.slane %v3400_v20, 5  ;;  %v3390_v44 = vmul.f32 %v16336_v54, %v3307_v7  ;;  %v16339_v10 = vld [vmem:[%s21913_s1 + $0x138] sm:$0xff]  ;;  %v16340_v20 = vld [vmem:[%s21913_s1 + $0x140] sm:$0xff] }
 0x763   :  { %v3391_v15 = vmul.f32 %v16337_v5, %v3307_v7  ;;  %v3616_v58 = vrot.slane %v3401_v26, 5  ;;  %v3392_v8 = vmul.f32 %v16338_v23, %v3307_v7  ;;  %v3393_v55 = vmul.f32 %v16339_v10, %v3307_v7  ;;  %v16341_v26 = vld [vmem:[%s21913_s1 + $0x148] sm:$0xff] }
 0x764   :  { %22144 = vst [vmem:[#allocation134_spill] sm:$0xff] %v19675_v39  ;;  %v3394_v30 = vmul.f32 %v16340_v20, %v3307_v7  ;;  %v19692_v54 = vadd.f32 %v3842_v48, %v3841_v34  ;;  %v3395_v5 = vmul.f32 %v16341_v26, %v3307_v7  ;;  %v3600_v24 = vrot.slane %v3390_v44, 5  ;;  %v16342_v48 = vld [vmem:[%s21913_s1 + $0x1b0] sm:$0x3] }
 0x765   :  { %v3603_v23 = vrot.slane %v3391_v15, 5  ;;  %v19697_v11 = vadd.f32 %v3856_v14, %v3855_v13  ;;  %v3606_v46 = vrot.slane %v3392_v8, 5  ;;  %v3609_v18 = vrot.slane %v3393_v55, 5 }
 0x766   :  { %22145 = vst [vmem:[#allocation135_spill] sm:$0xff] %v19692_v54  ;;  %v3612_v10 = vrot.slane %v3394_v30, 5  ;;  %v3602_v36 = vsel %vm2548_vm8, %v3600_v24, %v3601_v60  ;;  %v3615_v20 = vrot.slane %v3395_v5, 5  ;;  %v19704_v34 = vmul.f32 %v16342_v48, %v3322_v37  ;;  %v16344_v48 = vld [vmem:[%s21913_s1 + $0x1c0] sm:$0x3] }
 0x767   :  { %22146 = vst [vmem:[#allocation136_spill] sm:$0xff] %v19697_v11  ;;  %v3605_v31 = vsel %vm2548_vm8, %v3603_v23, %v3604_v56  ;;  %v3608_v7 = vsel %vm2548_vm8, %v3606_v46, %v3607_v3  ;;  %v3611_v44 = vsel %vm2548_vm8, %v3609_v18, %v3610_v19  ;;  %v3865_v14 = vsel %vm3738_vm9, %v3602_v36, 0.0 }
 0x768   :  { %v3614_v13 = vsel %vm2548_vm8, %v3612_v10, %v3613_v45  ;;  %v3617_v15 = vsel %vm2548_vm8, %v3615_v20, %v3616_v58  ;;  %v3866_v60 = vrot.slane %v3865_v14, 4  ;;  %v3872_v56 = vsel %vm3738_vm9, %v3605_v31, 0.0  ;;  %v16343_v31 = vld [vmem:[%s21913_s1 + $0x1b8] sm:$0x3] }
 0x769   :  { %v3879_v24 = vsel %vm3738_vm9, %v3608_v7, 0.0  ;;  %v3873_v8 = vrot.slane %v3872_v56, 4  ;;  %v3886_v30 = vsel %vm3738_vm9, %v3611_v44, 0.0  ;;  %v3893_v26 = vsel %vm3738_vm9, %v3614_v13, 0.0 }
 0x76a   :  { %v3880_v55 = vrot.slane %v3879_v24, 4  ;;  %v3867_v46 = vadd.f32 %v3866_v60, %v3865_v14  ;;  %v3887_v3 = vrot.slane %v3886_v30, 4  ;;  %v3894_v18 = vrot.slane %v3893_v26, 4 }
 0x76b   :  { %v3900_v19 = vsel %vm3738_vm9, %v3617_v15, 0.0  ;;  %v3874_v45 = vadd.f32 %v3873_v8, %v3872_v56  ;;  %v3409_v58 = vmul.f32 %v16343_v31, %v3322_v37  ;;  %v3410_v7 = vmul.f32 %v16344_v48, %v3322_v37  ;;  %v16345_v15 = vld [vmem:[%s21913_s1 + $0x1c8] sm:$0x3]  ;;  %v3317_v31 = vpop.permute.xlu0 %3316 }
 0x76c   :  { %v3881_v36 = vadd.f32 %v3880_v55, %v3879_v24  ;;  %v3901_v5 = vrot.slane %v3900_v19, 4  ;;  %v3868_v23 = vrot.slane %v3867_v46, 2  ;;  %v3888_v10 = vadd.f32 %v3887_v3, %v3886_v30  ;;  %v16346_v55 = vld [vmem:[%s21913_s1 + $0x1d0] sm:$0x3] }
 0x76d   :  { %v3895_v20 = vadd.f32 %v3894_v18, %v3893_v26  ;;  %v3875_v44 = vrot.slane %v3874_v45, 2  ;;  %v3411_v60 = vmul.f32 %v16345_v15, %v3322_v37  ;;  %v3412_v30 = vmul.f32 %v16346_v55, %v3322_v37 }
 0x76e   :  { %v3882_v13 = vrot.slane %v3881_v36, 2  ;;  %v3902_v14 = vadd.f32 %v3901_v5, %v3900_v19  ;;  %v3869_v56 = vadd.f32 %v3868_v23, %v3867_v46  ;;  %v3889_v24 = vrot.slane %v3888_v10, 2  ;;  %v16347_v19 = vld [vmem:[%s21913_s1 + $0x1d8] sm:$0x3] }
 0x76f   :  { %v3896_v8 = vrot.slane %v3895_v20, 2  ;;  %v3413_v5 = vmul.f32 %v16347_v19, %v3322_v37  ;;  %v19732_v15 = vadd.f32 %v3875_v44, %v3874_v45  ;;  %v3619_v46 = vrot.slane %v19704_v34, 5 }
 0x770   :  { %v3883_v3 = vadd.f32 %v3882_v13, %v3881_v36  ;;  %v3903_v18 = vrot.slane %v3902_v14, 2  ;;  %v3870_v48 = vrot.slane %v3869_v56, 1  ;;  %v3622_v23 = vrot.slane %v3409_v58, 5  ;;  %v3332_v58 = vpop.permute.xlu1 %3331 }
 0x771   :  { %v19735_v54 = vadd.f32 %v3889_v24, %v3888_v10  ;;  %v3897_v55 = vadd.f32 %v3896_v8, %v3895_v20  ;;  %v3625_v61 = vrot.slane %v3410_v7, 5  ;;  %v3628_v36 = vrot.slane %v3411_v60, 5 }
 0x772   :  { %v3884_v11 = vrot.slane %v3883_v3, 1  ;;  %v19737_v26 = vadd.f32 %v3903_v18, %v3902_v14  ;;  %v3631_v13 = vrot.slane %v3412_v30, 5  ;;  %v3402_v39 = vmul.f32 %v19293_v12, %v3317_v31 }
 0x773   :  { %v19740_v53 = vadd.f32 %v3870_v48, %v3869_v56  ;;  %v3403_v37 = vmul.f32 %v19301_v41, %v3317_v31  ;;  %v3404_v45 = vmul.f32 %v19311_v25, %v3317_v31  ;;  %v3405_v34 = vmul.f32 %v19317_v1, %v3317_v31  ;;  %v16348_v41 = vld [vmem:[%s21913_s1 + $0x210] sm:$0x3] }
 0x774   :  { %v3634_v44 = vrot.slane %v3413_v5, 5  ;;  %v3406_v10 = vmul.f32 %v19327_v32, %v3317_v31  ;;  %v3407_v20 = vmul.f32 %v19337_v33, %v3317_v31  ;;  %v3618_v7 = vrot.slane %v3402_v39, 5 }
 0x775   :  { %v3898_v14 = vrot.slane %v3897_v55, 1  ;;  %v3621_v60 = vrot.slane %v3403_v37, 5  ;;  %v3624_v24 = vrot.slane %v3404_v45, 5  ;;  %v3627_v8 = vrot.slane %v3405_v34, 5 }
 0x776   :  { %v3620_v12 = vsel %vm2548_vm8, %v3618_v7, %v3619_v46  ;;  %v3630_v56 = vrot.slane %v3406_v10, 5  ;;  %v3633_v30 = vrot.slane %v3407_v20, 5  ;;  %v19751_v25 = vmul.f32 %v16348_v41, %v3332_v58  ;;  %v16350_v7 = vld [vmem:[%s21913_s1 + $0x220] sm:$0x3] }
 0x777   :  { %v3623_v1 = vsel %vm2548_vm8, %v3621_v60, %v3622_v23  ;;  %v3626_v32 = vsel %vm2548_vm8, %v3624_v24, %v3625_v61  ;;  %v3629_v33 = vsel %vm2548_vm8, %v3627_v8, %v3628_v36  ;;  %v3907_v39 = vsel %vm3738_vm9, %v3620_v12, 0.0 }
 0x778   :  { %v3632_v18 = vsel %vm2548_vm8, %v3630_v56, %v3631_v13  ;;  %v3635_v19 = vsel %vm2548_vm8, %v3633_v30, %v3634_v44  ;;  %v3908_v5 = vrot.slane %v3907_v39, 4  ;;  %v3914_v31 = vsel %vm3738_vm9, %v3623_v1, 0.0  ;;  %v16349_v44 = vld [vmem:[%s21913_s1 + $0x218] sm:$0x3]  ;;  %v16351_v1 = vld [vmem:[%s21913_s1 + $0x228] sm:$0x3] }
 0x779   :  { %v3915_v48 = vrot.slane %v3914_v31, 4  ;;  %v3921_v46 = vsel %vm3738_vm9, %v3626_v32, 0.0  ;;  %v3928_v37 = vsel %vm3738_vm9, %v3629_v33, 0.0  ;;  %v3935_v23 = vsel %vm3738_vm9, %v3632_v18, 0.0  ;;  %v16352_v33 = vld [vmem:[%s21913_s1 + $0x230] sm:$0x3] }
 0x77a   :  { %v3909_v45 = vadd.f32 %v3908_v5, %v3907_v39  ;;  %v3922_v61 = vrot.slane %v3921_v46, 4  ;;  %v3929_v34 = vrot.slane %v3928_v37, 4  ;;  %v3936_v36 = vrot.slane %v3935_v23, 4 }
 0x77b   :  { %v19763_v10 = vadd.f32 %v3915_v48, %v3914_v31  ;;  %v3942_v13 = vsel %vm3738_vm9, %v3635_v19, 0.0  ;;  %v19769_v20 = vmul.f32 %v16349_v44, %v3332_v58  ;;  %v3422_v60 = vmul.f32 %v16350_v7, %v3332_v58  ;;  %v3327_v31 = vpop.permute.xlu0 %3326  ;;  %v19799_v44 = vpop.f32.mrb[8].mxu1 }
 0x77c   :  { %v3910_v24 = vrot.slane %v3909_v45, 2  ;;  %v3923_v8 = vadd.f32 %v3922_v61, %v3921_v46  ;;  %v19774_v12 = vadd.f32 %v3929_v34, %v3928_v37  ;;  %v3937_v56 = vadd.f32 %v3936_v36, %v3935_v23  ;;  %v19801_v7 = vpop.f32.mrb[8].mxu0 }
 0x77d   :  { %v19776_v30 = vadd.f32 %v3884_v11, %v3883_v3  ;;  %v3943_v41 = vrot.slane %v3942_v13, 4  ;;  %v3423_v32 = vmul.f32 %v16351_v1, %v3332_v58  ;;  %v3424_v39 = vmul.f32 %v16352_v33, %v3332_v58  ;;  %v16353_v11 = vld [vmem:[%s21913_s1 + $0x238] sm:$0x3]  ;;  %22149 = vst [vmem:[#allocation139_spill] sm:$0xff] %v19801_v7 }
 0x77e   :  { %v19784_v18 = vadd.f32 %v3910_v24, %v3909_v45  ;;  %v3924_v19 = vrot.slane %v3923_v8, 2  ;;  %v3938_v5 = vrot.slane %v3937_v56, 2  ;;  %v3425_v3 = vmul.f32 %v16353_v11, %v3332_v58 }
 0x77f   :  { %22147 = vst [vmem:[#allocation137_spill] sm:$0xff] %v19776_v30  ;;  %v19789_v48 = vadd.f32 %v3898_v14, %v3897_v55  ;;  %v19793_v23 = vadd.f32 %v3943_v41, %v3942_v13  ;;  %v3637_v45 = vrot.slane %v19751_v25, 5  ;;  %v3640_v34 = vrot.slane %v19769_v20, 5  ;;  %v16354_v13 = vld [vmem:[%s21913_s1 + $0x1e0] sm:$0xff]  ;;  %v19811_v25 = vpop.f32.mrb[9].mxu0  ;;  %v16355_v41 = vld [vmem:[%s21913_s1 + $0x1e8] sm:$0xff] }
 0x780   :  { %v19795_v61 = vadd.f32 %v3924_v19, %v3923_v8  ;;  %v3643_v36 = vrot.slane %v3422_v60, 5  ;;  %v19804_v58 = vadd.f32 %v3938_v5, %v3937_v56  ;;  %v3646_v14 = vrot.slane %v3423_v32, 5  ;;  %v19809_v8 = vpop.f32.mrb[9].mxu1  ;;  %22151 = vst [vmem:[#allocation141_spill] sm:$0xff] %v19811_v25  ;;  %v16356_v56 = vld [vmem:[%s21913_s1 + $0x1f0] sm:$0xff]  ;;  %v14270_v19 = vpop.f32.mrb[10].mxu0 }
 0x781   :  { %22148 = vst [vmem:[#allocation138_spill] sm:$0xff] %v19789_v48  ;;  %v3414_v24 = vmul.f32 %v16354_v13, %v3327_v31  ;;  %22150 = vst [vmem:[#allocation140_spill] sm:$0xff] %v19809_v8  ;;  %v3649_v20 = vrot.slane %v3424_v39, 5  ;;  %v3652_v60 = vrot.slane %v3425_v3, 5  ;;  %v3415_v1 = vmul.f32 %v16355_v41, %v3327_v31  ;;  %v14248_v33 = vpop.f32.mrb[10].mxu1  ;;  %v16357_v5 = vld [vmem:[%s21913_s1 + $0x1f8] sm:$0xff] }
 0x782   :  { %v3416_v32 = vmul.f32 %v16356_v56, %v3327_v31  ;;  %v3417_v11 = vmul.f32 %v16357_v5, %v3327_v31  ;;  %v16358_v39 = vld [vmem:[%s21913_s1 + $0x200] sm:$0xff]  ;;  %v16359_v13 = vld [vmem:[%s21913_s1 + $0x208] sm:$0xff]  ;;  %v14249_v55 = vpop.f32.mrb[11].mxu1  ;;  %v14271_v56 = vpop.f32.mrb[11].mxu0  ;;  %v5536_v33 = vsel %vm459_vm1, %v19060_v21, %v19125_v17  ;;  %v22162_v17 = vrot.slane %v19396_v22, 4 }
 0x783   :  { %v3418_v3 = vmul.f32 %v16358_v39, %v3327_v31  ;;  %v3419_v41 = vmul.f32 %v16359_v13, %v3327_v31  ;;  %v3636_v37 = vrot.slane %v3414_v24, 5  ;;  %v3639_v46 = vrot.slane %v3415_v1, 5 }
 0x784   :  { %v3642_v48 = vrot.slane %v3416_v32, 5  ;;  %v3645_v30 = vrot.slane %v3417_v11, 5  ;;  %v2771_v55 = vrot.slane %v19332_v63, 1 }
 0x785   :  { %v3638_v5 = vsel %vm2548_vm8, %v3636_v37, %v3637_v45  ;;  %v3648_v25 = vrot.slane %v3418_v3, 5  ;;  %v3651_v7 = vrot.slane %v3419_v41, 5  ;;  %v3641_v39 = vsel %vm2548_vm8, %v3639_v46, %v3640_v34 }
 0x786   :  { %v3644_v8 = vsel %vm2548_vm8, %v3642_v48, %v3643_v36  ;;  %v3949_v31 = vsel %vm3738_vm9, %v3638_v5, 0.0  ;;  %v3647_v24 = vsel %vm2548_vm8, %v3645_v30, %v3646_v14  ;;  %v3956_v37 = vsel %vm3738_vm9, %v3641_v39, 0.0 }
 0x787   :  { %v3650_v13 = vsel %vm2548_vm8, %v3648_v25, %v3649_v20  ;;  %v3653_v1 = vsel %vm2548_vm8, %v3651_v7, %v3652_v60  ;;  %v3950_v32 = vrot.slane %v3949_v31, 4  ;;  %v3963_v45 = vsel %vm3738_vm9, %v3644_v8, 0.0 }
 0x788   :  { %v3970_v11 = vsel %vm3738_vm9, %v3647_v24, 0.0  ;;  %v3977_v46 = vsel %vm3738_vm9, %v3650_v13, 0.0  ;;  %v3957_v34 = vrot.slane %v3956_v37, 4  ;;  %v3964_v36 = vrot.slane %v3963_v45, 4 }
 0x789   :  { %v3951_v48 = vadd.f32 %v3950_v32, %v3949_v31  ;;  %v3971_v3 = vrot.slane %v3970_v11, 4  ;;  %v3978_v41 = vrot.slane %v3977_v46, 4  ;;  %v22152_v30 = vrot.slane %v19363_v50, 1 }
 0x78a   :  { %v22154_v7 = vrot.slane %v19442_v27, 2  ;;  %v22155_v8 = vrot.slane %v19387_v51, 4  ;;  %v19853_v56 = vadd.f32 %v3964_v36, %v3963_v45  ;;  %v19856_v5 = vsel %vm3738_vm9, %v3653_v1, 0.0  ;;  %v19877_v36 = vpop.f32.mrb[12].mxu1 }
 0x78b   :  { %v19845_v14 = vadd.f32 %v22152_v30, %v19363_v50  ;;  %v3952_v60 = vrot.slane %v3951_v48, 2  ;;  %v19859_v39 = vadd.f32 %v2771_v55, %v19332_v63  ;;  %v19862_v31 = vadd.f32 %v3978_v41, %v3977_v46  ;;  %v19879_v41 = vpop.f32.mrb[12].mxu0 }
 0x78c   :  { %v2812_v25 = vadd.f32 %v22154_v7, %v19442_v27  ;;  %v2852_v20 = vadd.f32 %v22155_v8, %v19387_v51  ;;  %v19864_v27 = vadd.f32 %v3957_v34, %v3956_v37  ;;  %v19866_v32 = vadd.f32 %v3971_v3, %v3970_v11  ;;  %v19888_v30 = vpop.f32.mrb[13].mxu0 }
 0x78d   :  { %22153 = vst [vmem:[#allocation142_spill] sm:$0xff] %v19845_v14  ;;  %22156 = vst [vmem:[#allocation143_spill] sm:$0xff] %v19859_v39  ;;  %v5398_v51 = vpack.c.bf16 %v19272_v49, %v19272_v49  ;;  %v5404_v1 = vpack.c.bf16 %v19212_v0, %v19212_v0  ;;  %v19872_v45 = vadd.f32 %v3952_v60, %v3951_v48  ;;  %v19886_v48 = vpop.f32.mrb[13].mxu1  ;;  %v22203_v0 = vld [vmem:[#allocation40_spill] sm:$0xff] }
 0x78e   :  { %v2813_v24 = vrot.slane %v2812_v25, 1  ;;  %v2853_v13 = vrot.slane %v2852_v20, 2  ;;  %v5410_v11 = vpack.c.bf16 %v19845_v14, %v19845_v14  ;;  %v5416_v34 = vpack.c.bf16 %v19859_v39, %v19859_v39  ;;  %v14292_v60 = vpop.f32.mrb[14].mxu1  ;;  %v22201_v14 = vld [vmem:[#allocation49_spill] sm:$0xff] }
 0x78f   :  { %v5494_v3 = vunpack.c.l.b16 %v5398_v51  ;;  %v22158_v51 = vrot.slane %v19374_v35, 1  ;;  %v14293_v37 = vpop.f32.mrb[15].mxu1  ;;  %v2785_v60 = vrot.slane %v19350_v4, 1 }
 0x790   :  { %v19875_v55 = vadd.f32 %v2813_v24, %v2812_v25  ;;  %v2854_v46 = vadd.f32 %v2853_v13, %v2852_v20  ;;  %v5500_v20 = vunpack.c.l.b16 %v5404_v1  ;;  %v14314_v24 = vpop.f32.mrb[14].mxu0  ;;  %v5506_v13 = vunpack.c.l.b16 %v5410_v11 }
 0x791   :  { %v5512_v50 = vunpack.c.l.b16 %v5416_v34  ;;  %v19899_v19 = vadd.f32 %v22158_v51, %v19374_v35  ;;  %v14315_v7 = vpop.f32.mrb[15].mxu0  ;;  %v5537_v1 = vsel %vm461_vm2, %v5494_v3, %v5536_v33  ;;  %v22161_v34 = vrot.slane %v19444_v40, 2 }
 0x792   :  { %22157 = vst [vmem:[#allocation144_spill] sm:$0xff] %v19875_v55  ;;  %v2855_v25 = vrot.slane %v2854_v46, 1  ;;  %v5422_v8 = vpack.c.bf16 %v19875_v55, %v19875_v55  ;;  %v5538_v11 = vsel %vm463_vm3, %v5500_v20, %v5537_v1  ;;  %v2866_v35 = vadd.f32 %v22162_v17, %v19396_v22 }
 0x793   :  { %22159 = vst [vmem:[#allocation145_spill] sm:$0xff] %v19899_v19  ;;  %v2826_v21 = vadd.f32 %v22161_v34, %v19444_v40  ;;  %v5400_v37 = vpack.c.bf16 %v19278_v29, %v19278_v29  ;;  %v5539_v33 = vsel %vm465_vm4, %v5506_v13, %v5538_v11  ;;  %v19918_v3 = vadd.f32 %v2785_v60, %v19350_v4 }
 0x794   :  { %v19901_v63 = vadd.f32 %v2855_v25, %v2854_v46  ;;  %v5518_v39 = vunpack.c.l.b16 %v5422_v8  ;;  %v5406_v7 = vpack.c.bf16 %v19222_v9, %v19222_v9  ;;  %v5540_v40 = vsel %vm467_vm5, %v5512_v50, %v5539_v33  ;;  %v22199_v9 = vld [vmem:[#allocation59_spill] sm:$0xff] }
 0x795   :  { %22163 = vst [vmem:[#allocation147_spill] sm:$0xff] %v19918_v3  ;;  %v2827_v25 = vrot.slane %v2826_v21, 1  ;;  %v2867_v8 = vrot.slane %v2866_v35, 2  ;;  %v5412_v22 = vpack.c.bf16 %v19899_v19, %v19899_v19  ;;  %v5418_v51 = vpack.c.bf16 %v19918_v3, %v19918_v3 }
 0x796   :  { %22160 = vst [vmem:[#allocation146_spill] sm:$0xff] %v19901_v63  ;;  %v5428_v46 = vpack.c.bf16 %v19901_v63, %v19901_v63  ;;  %v5541_v24 = vsel %vm469_vm6, %v5518_v39, %v5540_v40  ;;  %v5496_v13 = vunpack.c.l.b16 %v5400_v37  ;;  %v5502_v60 = vunpack.c.l.b16 %v5406_v7 }
 0x797   :  { %v19928_v1 = vadd.f32 %v2827_v25, %v2826_v21  ;;  %v2868_v4 = vadd.f32 %v2867_v8, %v2866_v35  ;;  %v5508_v11 = vunpack.c.l.b16 %v5412_v22  ;;  %v5514_v50 = vunpack.c.l.b16 %v5418_v51 }
 0x798   :  { %v5524_v20 = vunpack.c.l.b16 %v5428_v46  ;;  %v5550_v17 = vsel %vm459_vm1, %v19110_v57, %v19206_v28  ;;  %v22165_v46 = vrot.slane %v19306_v42, 1  ;;  %v2806_v7 = vrot.slane %v19480_v6, 1  ;;  %v22168_v28 = vld [vmem:[#allocation109_spill] sm:$0xff] }
 0x799   :  { %22164 = vst [vmem:[#allocation148_spill] sm:$0xff] %v19928_v1  ;;  %v2869_v40 = vrot.slane %v2868_v4, 1  ;;  %v5424_v21 = vpack.c.bf16 %v19928_v1, %v19928_v1  ;;  %v5551_v35 = vsel %vm461_vm2, %v5496_v13, %v5550_v17  ;;  %v22167_v25 = vrot.slane %v19417_v38, 2 }
 0x79a   :  { %v5542_v34 = vsel %vm471_vm7, %v5524_v20, %v5541_v24  ;;  %v19937_v39 = vadd.f32 %v22165_v46, %v19306_v42  ;;  %v5552_v37 = vsel %vm463_vm3, %v5502_v60, %v5551_v35  ;;  %v5409_v8 = vpack.c.bf16 %v22168_v28, %v22168_v28 }
 0x79b   :  { %v5572_v33 = vpack.c.b16 %v5542_v34, %v5542_v34  ;;  %v2847_v57 = vadd.f32 %v22167_v25, %v19417_v38  ;;  %v19949_v42 = vadd.f32 %v2869_v40, %v2868_v4  ;;  %v5520_v22 = vunpack.c.l.b16 %v5424_v21  ;;  %v22171_v34 = vld [vmem:[#allocation42_spill] sm:$0xff]  ;;  %v22174_v21 = vld [vmem:[#allocation52_spill] sm:$0xff] }
 0x79c   :  { %22166 = vst [vmem:[#allocation149_spill] sm:$0xff] %v19937_v39  ;;  %v5553_v20 = vsel %vm465_vm4, %v5508_v11, %v5552_v37  ;;  %v5415_v24 = vpack.c.bf16 %v19937_v39, %v19937_v39  ;;  %v19956_v13 = vadd.f32 %v2806_v7, %v19480_v6  ;;  %v22172_v38 = vpack.c.bf16 %v22171_v34, %v22171_v34  ;;  %v22175_v6 = vld [vmem:[#allocation36_spill] sm:$0xff]  ;;  %v22176_v37 = vld [vmem:[#allocation105_spill] sm:$0xff] }
 0x79d   :  { %5903 = vmatprep.mubr.bf16.mxu1 %v5572_v33  ;;  %22169 = vst [vmem:[#allocation150_spill] sm:$0xff] %v19949_v42  ;;  %v5554_v51 = vsel %vm467_vm5, %v5514_v50, %v5553_v20  ;;  %v2848_v60 = vrot.slane %v2847_v57, 1  ;;  %v5430_v4 = vpack.c.bf16 %v19949_v42, %v19949_v42  ;;  %v5505_v33 = vunpack.c.l.b16 %v5409_v8  ;;  %v22180_v8 = vld [vmem:[#allocation115_spill] sm:$0xff] }
 0x79e   :  { %22170 = vst [vmem:[#allocation151_spill] sm:$0xff] %v19956_v13  ;;  %v5499_v17 = vunpack.c.l.b16 %v22172_v38  ;;  %v5555_v46 = vsel %vm469_vm6, %v5520_v22, %v5554_v51  ;;  %v5511_v11 = vunpack.c.l.b16 %v5415_v24  ;;  %v5421_v50 = vpack.c.bf16 %v19956_v13, %v19956_v13  ;;  %v22179_v38 = vld [vmem:[#allocation102_spill] sm:$0xff] }
 0x79f   :  { %v19964_v40 = vadd.f32 %v2848_v60, %v2847_v57  ;;  %v5529_v35 = vsel %vm459_vm1, %v22175_v6, %v22174_v21  ;;  %v22177_v7 = vrot.slane %v22176_v37, 1  ;;  %v5526_v20 = vunpack.c.l.b16 %v5430_v4  ;;  %v22181_v57 = vld [vmem:[#allocation113_spill] sm:$0xff]  ;;  %v22183_v6 = vld [vmem:[#allocation110_spill] sm:$0xff] }
 0x7a0   :  { %v5530_v22 = vsel %vm461_vm2, %v22179_v38, %v5529_v35  ;;  %v2820_v24 = vrot.slane %v22180_v8, 1  ;;  %v22182_v51 = vrot.slane %v22181_v57, 2  ;;  %v5517_v63 = vunpack.c.l.b16 %v5421_v50 }
 0x7a1   :  { %22173 = vst [vmem:[#allocation42_spill] sm:$0xff] %v19964_v40  ;;  %v19974_v25 = vadd.f32 %v22177_v7, %v22176_v37  ;;  %v5427_v42 = vpack.c.bf16 %v19964_v40, %v19964_v40  ;;  %v5531_v21 = vsel %vm463_vm3, %v5499_v17, %v5530_v22  ;;  %v5411_v37 = vpack.c.bf16 %v22183_v6, %v22183_v6 }
 0x7a2   :  { %v2861_v60 = vadd.f32 %v22182_v51, %v22181_v57  ;;  %v5556_v4 = vsel %vm471_vm7, %v5526_v20, %v5555_v46  ;;  %v5532_v7 = vsel %vm465_vm4, %v5505_v33, %v5531_v21  ;;  %v19990_v35 = vadd.f32 %v2820_v24, %v22180_v8  ;;  %v22186_v20 = vld [vmem:[#allocation48_spill] sm:$0xff]  ;;  %v3342_v24 = vpop.permute.xlu1 %3341  ;;  %v22188_v21 = vld [vmem:[#allocation53_spill] sm:$0xff] }
 0x7a3   :  { %22178 = vst [vmem:[#allocation52_spill] sm:$0xff] %v19974_v25  ;;  %v5574_v1 = vpack.c.b16 %v5556_v4, %v5556_v4  ;;  %v5523_v3 = vunpack.c.l.b16 %v5427_v42  ;;  %v5533_v57 = vsel %vm467_vm5, %v5511_v11, %v5532_v7  ;;  %v5417_v50 = vpack.c.bf16 %v19974_v25, %v19974_v25  ;;  %v22189_v4 = vld [vmem:[#allocation64_spill] sm:$0xff] }
 0x7a4   :  { %22184 = vst [vmem:[#allocation36_spill] sm:$0xff] %v19990_v35  ;;  %v2862_v38 = vrot.slane %v2861_v60, 1  ;;  %v5534_v17 = vsel %vm469_vm6, %v5517_v63, %v5533_v57  ;;  %v5423_v46 = vpack.c.bf16 %v19990_v35, %v19990_v35  ;;  %v22187_v33 = vpack.c.bf16 %v22186_v20, %v22186_v20  ;;  %v14943_v63 = vld [vmem:[%s21668_s7 + $0x400] sm:$0xff]  }
 0x7a5   :  { %5943 = vmatprep.mubr.bf16.mxu0 %v5574_v1  ;;  %v5535_v42 = vsel %vm471_vm7, %v5523_v3, %v5534_v17  ;;  %v5507_v51 = vunpack.c.l.b16 %v5411_v37  ;;  %v5513_v11 = vunpack.c.l.b16 %v5417_v50  ;;  %v5543_v7 = vsel %vm459_vm1, %v22189_v4, %v22188_v21  ;;  %v14945_v3 = vld [vmem:[%s21668_s7 + $0x448] sm:$0xff]   ;;  %v16360_v50 = vld [vmem:[%s21913_s1 + $0x270] sm:$0x3]  ;;  %v16362_v21 = vld [vmem:[%s21913_s1 + $0x280] sm:$0x3] }
 0x7a6   :  { %v19996_v22 = vadd.f32 %v2862_v38, %v2861_v60  ;;  %v5501_v8 = vunpack.c.l.b16 %v22187_v33  ;;  %v5571_v60 = vpack.c.b16 %v5535_v42, %v5535_v42  ;;  %v5519_v57 = vunpack.c.l.b16 %v5423_v46  ;;  %v22190_v33 = vld [vmem:[#allocation103_spill] sm:$0xff]  ;;  %v16361_v42 = vld [vmem:[%s21913_s1 + $0x278] sm:$0x3] }
 0x7a7   :  { %v5544_v1 = vsel %vm461_vm2, %v22190_v33, %v5543_v7  ;;  %v20021_v17 = vmul.f32 %v16360_v50, %v3342_v24  ;;  %v20026_v46 = vmul.f32 %v16361_v42, %v3342_v24  ;;  %v20031_v4 = vmul.f32 %v16362_v21, %v3342_v24  ;;  %v16363_v33 = vld [vmem:[%s21913_s1 + $0x288] sm:$0x3]  ;;  %v16364_v50 = vld [vmem:[%s21913_s1 + $0x290] sm:$0x3] }
 0x7a8   :  { %22185 = vst [vmem:[#allocation105_spill] sm:$0xff] %v19996_v22  ;;  %v5429_v38 = vpack.c.bf16 %v19996_v22, %v19996_v22  ;;  %v5545_v37 = vsel %vm463_vm3, %v5501_v8, %v5544_v1  ;;  %5904 = vmatmul.mubr.bf16.vlgmr.msra.gmra.mrb[16].mxu1 %v5571_v60  ;;  %v20037_v1 = vmul.f32 %v16363_v33, %v3342_v24  ;;  %v22191_v21 = vrot.slane %v19856_v5, 4  ;;  %v14947_v33 = vld [vmem:[%s21668_s7 + $0x408] sm:$0xff]  }
 0x7a9   :  { %v5546_v7 = vsel %vm465_vm4, %v5507_v51, %v5545_v37  ;;  %v20042_v42 = vmul.f32 %v16364_v50, %v3342_v24  ;;  %14362 = vmatpush3.bf16.msra.mxu1 %v14943_v63  ;;  %v16365_v51 = vld [vmem:[%s21913_s1 + $0x298] sm:$0x3]  ;;  %v22196_v40 = vrot.slane %v19472_v59, 2 }
 0x7aa   :  { %v5525_v8 = vunpack.c.l.b16 %v5429_v38  ;;  %v20047_v22 = vadd.f32 %v22191_v21, %v19856_v5  ;;  %v5547_v60 = vsel %vm467_vm5, %v5513_v11, %v5546_v7  ;;  %v20053_v38 = vmul.f32 %v16365_v51, %v3342_v24  ;;  %14363 = vmatprep.subr.bf16.mxu1 %v14945_v3  ;;  %v14949_v24 = vld [vmem:[%s21668_s7 + $0x450] sm:$0xff]   ;;  %v14944_v7 = vld [vmem:[%s21668_s7 + $0x480] sm:$0xff]   ;;  %v3337_v3 = vpop.permute.xlu0 %3336 }
 0x7ab   :  { %v5548_v50 = vsel %vm469_vm6, %v5519_v57, %v5547_v60  ;;  %v22192_v57 = vld [vmem:[#allocation108_spill] sm:$0xff]  ;;  %v22195_v21 = vld [vmem:[#allocation107_spill] sm:$0xff]  ;;  %v2840_v55 = vadd.f32 %v22196_v40, %v19472_v59  ;;  %v5402_v51 = vpack.c.bf16 %v22199_v9, %v22199_v9 }
 0x7ac   :  { %v5549_v63 = vsel %vm471_vm7, %v5525_v8, %v5548_v50  ;;  %v22193_v60 = vrot.slane %v22192_v57, 1  ;;  %v2799_v11 = vrot.slane %v22195_v21, 1  ;;  %v22197_v8 = vld [vmem:[#allocation112_spill] sm:$0xff]  ;;  %v22202_v40 = vld [vmem:[#allocation47_spill] sm:$0xff] }
 0x7ad   :  { %v5573_v37 = vpack.c.b16 %v5549_v63, %v5549_v63  ;;  %v22198_v50 = vrot.slane %v22197_v8, 4  ;;  %v5408_v63 = vpack.c.bf16 %v22201_v14, %v22201_v14  ;;  %14364 = vmatpush3.bf16.msra.mxu1 %v14947_v33  ;;  %v2841_v9 = vrot.slane %v2840_v55, 1 }
 0x7ae   :  { %v20074_v5 = vadd.f32 %v22193_v60, %v22192_v57  ;;  %v14946_v57 = vld [vmem:[%s21668_s7 + $0x4c8] sm:$0xff]   ;;  %v20089_v60 = vadd.f32 %v2799_v11, %v22195_v21  ;;  %v5498_v21 = vunpack.c.l.b16 %v5402_v51  ;;  %v16366_v11 = vld [vmem:[%s21913_s1 + $0x240] sm:$0xff]  ;;  %14365 = vmatprep.subr.bf16.mxu1 %v14949_v24 }
 0x7af   :  { %v2880_v19 = vadd.f32 %v22198_v50, %v22197_v8  ;;  %v5564_v8 = vsel %vm459_vm1, %v22203_v0, %v22202_v40  ;;  %v14951_v50 = vld [vmem:[%s21668_s7 + $0x410] sm:$0xff]   ;;  %5944 = vmatmul.mubr.bf16.vlgmr.msra.gmra.mrb[16].mxu0 %v5573_v37  ;;  %v3426_v14 = vmul.f32 %v16366_v11, %v3337_v3  ;;  %v5504_v33 = vunpack.c.l.b16 %v5408_v63  ;;  %v16367_v37 = vld [vmem:[%s21913_s1 + $0x248] sm:$0xff] }
 0x7b0   :  { %22194 = vst [vmem:[#allocation102_spill] sm:$0xff] %v20074_v5  ;;  %22200 = vst [vmem:[#allocation115_spill] sm:$0xff] %v20089_v60  ;;  %v5414_v59 = vpack.c.bf16 %v20074_v5, %v20074_v5  ;;  %v14953_v5 = vld [vmem:[%s21668_s7 + $0x458] sm:$0xff]   ;;  %14384 = vmatpush3.bf16.msra.mxu0 %v14944_v7  ;;  %v5420_v0 = vpack.c.bf16 %v20089_v60, %v20089_v60  ;;  %v3427_v51 = vmul.f32 %v16367_v37, %v3337_v3  ;;  %v14948_v11 = vld [vmem:[%s21668_s7 + $0x488] sm:$0xff]  }
 0x7b1   :  { %v2881_v29 = vrot.slane %v2880_v19, 2  ;;  %v20115_v24 = vadd.f32 %v2841_v9, %v2840_v55  ;;  %v5565_v35 = vsel %vm461_vm2, %v5498_v21, %v5564_v8  ;;  %v16368_v7 = vld [vmem:[%s21913_s1 + $0x250] sm:$0xff]  ;;  %14385 = vmatprep.subr.bf16.mxu0 %v14946_v57  ;;  %v3670_v37 = vrot.slane %v20053_v38, 5  ;;  %v16369_v9 = vld [vmem:[%s21913_s1 + $0x258] sm:$0xff]  ;;  %14366 = vmatpush3.bf16.msra.mxu1 %v14951_v50  ;;  %v14957_v50 = vld [vmem:[%s21668_s7 + $0x460] sm:$0xff]  }
 0x7b2   :  { %v5510_v40 = vunpack.c.l.b16 %v5414_v59  ;;  %v3428_v63 = vmul.f32 %v16368_v7, %v3337_v3  ;;  %v14950_v59 = vld [vmem:[%s21668_s7 + $0x4d0] sm:$0xff]   ;;  %v5516_v60 = vunpack.c.l.b16 %v5420_v0  ;;  %v14955_v57 = vld [vmem:[%s21668_s7 + $0x418] sm:$0xff]   ;;  %v5566_v21 = vsel %vm463_vm3, %v5504_v33, %v5565_v35  ;;  %v16371_v0 = vld [vmem:[%s21913_s1 + $0x268] sm:$0xff]  ;;  %14367 = vmatprep.subr.bf16.mxu1 %v14953_v5 }
 0x7b3   :  { %22204 = vst [vmem:[#allocation113_spill] sm:$0xff] %v20115_v24  ;;  %v2882_v49 = vadd.f32 %v2881_v29, %v2880_v19  ;;  %v3429_v29 = vmul.f32 %v16369_v9, %v3337_v3  ;;  %v16370_v19 = vld [vmem:[%s21913_s1 + $0x260] sm:$0xff]  ;;  %v5426_v38 = vpack.c.bf16 %v20115_v24, %v20115_v24  ;;  %v3431_v7 = vmul.f32 %v16371_v0, %v3337_v3  ;;  %v14952_v35 = vld [vmem:[%s21668_s7 + $0x490] sm:$0xff]   ;;  %v14954_v5 = vld [vmem:[%s21668_s7 + $0x4d8] sm:$0xff]  }
 0x7b4   :  { %v3430_v55 = vmul.f32 %v16370_v19, %v3337_v3  ;;  %v5567_v9 = vsel %vm465_vm4, %v5510_v40, %v5566_v21  ;;  %v3654_v19 = vrot.slane %v3426_v14, 5  ;;  %v3657_v13 = vrot.slane %v3427_v51, 5  ;;  %14386 = vmatpush3.bf16.msra.mxu0 %v14948_v11 }
 0x7b5   :  { %v2883_v8 = vrot.slane %v2882_v49, 1  ;;  %v3660_v25 = vrot.slane %v3428_v63, 5  ;;  %v5522_v24 = vunpack.c.l.b16 %v5426_v38  ;;  %v3663_v39 = vrot.slane %v3429_v29, 5  ;;  %14387 = vmatprep.subr.bf16.mxu0 %v14950_v59  ;;  %14368 = vmatpush3.bf16.msra.mxu1 %v14955_v57  ;;  %v14959_v59 = vld [vmem:[%s21668_s7 + $0x420] sm:$0xff]  }
 0x7b6   :  { %v3666_v3 = vrot.slane %v3430_v55, 5  ;;  %v22206_v40 = vrot.slane %v20021_v17, 5  ;;  %v22207_v51 = vrot.slane %v20026_v46, 5  ;;  %v22208_v63 = vrot.slane %v20031_v4, 5  ;;  %14369 = vmatprep.subr.bf16.mxu1 %v14957_v50 }
 0x7b7   :  { %v20147_v33 = vadd.f32 %v2883_v8, %v2882_v49  ;;  %v3669_v8 = vrot.slane %v3431_v7, 5  ;;  %v5568_v17 = vsel %vm467_vm5, %v5516_v60, %v5567_v9  ;;  %v22209_v55 = vrot.slane %v20037_v1, 5  ;;  %v3352_v1 = vpop.permute.xlu1 %3351 }
 0x7b8   :  { %v3656_v14 = vsel %vm2548_vm8, %v3654_v19, %v22206_v40  ;;  %v3659_v11 = vsel %vm2548_vm8, %v3657_v13, %v22207_v51  ;;  %v3662_v49 = vsel %vm2548_vm8, %v3660_v25, %v22208_v63  ;;  %v22210_v13 = vrot.slane %v20042_v42, 5  ;;  %v14961_v25 = vld [vmem:[%s21668_s7 + $0x468] sm:$0xff]   ;;  %14388 = vmatpush3.bf16.msra.mxu0 %v14952_v35  ;;  %v14965_v63 = vld [vmem:[%s21668_s7 + $0x470] sm:$0xff]  }
 0x7b9   :  { %22205 = vst [vmem:[#allocation53_spill] sm:$0xff] %v20147_v33  ;;  %v5432_v29 = vpack.c.bf16 %v20147_v33, %v20147_v33  ;;  %v3665_v46 = vsel %vm2548_vm8, %v3663_v39, %v22209_v55  ;;  %v5569_v57 = vsel %vm469_vm6, %v5522_v24, %v5568_v17  ;;  %v3671_v38 = vsel %vm2548_vm8, %v3669_v8, %v3670_v37  ;;  %v14956_v39 = vld [vmem:[%s21668_s7 + $0x498] sm:$0xff]   ;;  %v14958_v24 = vld [vmem:[%s21668_s7 + $0x4e0] sm:$0xff]   ;;  %v3347_v55 = vpop.permute.xlu0 %3346 }
 0x7ba   :  { %v3668_v4 = vsel %vm2548_vm8, %v3666_v3, %v22210_v13  ;;  %v3991_v21 = vsel %vm3738_vm9, %v3656_v14, 0.0  ;;  %v4005_v60 = vsel %vm3738_vm9, %v3662_v49, 0.0  ;;  %v20184_v7 = vsel %vm3738_vm9, %v3659_v11, 0.0  ;;  %14389 = vmatprep.subr.bf16.mxu0 %v14954_v5  ;;  %14370 = vmatpush3.bf16.msra.mxu1 %v14959_v59  ;;  %v14963_v5 = vld [vmem:[%s21668_s7 + $0x428] sm:$0xff]   ;;  %v22214_v8 = vld [vmem:[#allocation124_spill] sm:$0xff] }
 0x7bb   :  { %v5528_v42 = vunpack.c.l.b16 %v5432_v29  ;;  %v3992_v0 = vrot.slane %v3991_v21, 4  ;;  %v4006_v50 = vrot.slane %v4005_v60, 4  ;;  %v22211_v37 = vrot.slane %v19853_v56, 2  ;;  %14371 = vmatprep.subr.bf16.mxu1 %v14961_v25  ;;  %v16373_v29 = vld [vmem:[%s21913_s1 + $0x2d8] sm:$0x3] }
 0x7bc   :  { %v22212_v19 = vrot.slane %v19862_v31, 2  ;;  %v20200_v3 = vsel %vm3738_vm9, %v3665_v46, 0.0  ;;  %v20203_v40 = vsel %vm3738_vm9, %v3668_v4, 0.0  ;;  %v20212_v51 = vsel %vm3738_vm9, %v3671_v38, 0.0  ;;  %14390 = vmatpush3.bf16.msra.mxu0 %v14956_v39  ;;  %v14960_v46 = vld [vmem:[%s21668_s7 + $0x4a0] sm:$0xff]   ;;  %v22213_v39 = vld [vmem:[#allocation123_spill] sm:$0xff] }
 0x7bd   :  { %v20192_v9 = vadd.f32 %v22211_v37, %v19853_v56  ;;  %v5570_v14 = vsel %vm471_vm7, %v5528_v42, %v5569_v57  ;;  %v20209_v56 = vadd.f32 %v3992_v0, %v3991_v21  ;;  %v20223_v59 = vadd.f32 %v4006_v50, %v4005_v60  ;;  %v16374_v25 = vld [vmem:[%s21913_s1 + $0x2e0] sm:$0x3]  ;;  %v16375_v38 = vld [vmem:[%s21913_s1 + $0x2e8] sm:$0x3]  ;;  %14391 = vmatprep.subr.bf16.mxu0 %v14958_v24  ;;  %v16376_v0 = vld [vmem:[%s21913_s1 + $0x2f0] sm:$0x3] }
 0x7be   :  { %v20197_v35 = vadd.f32 %v22212_v19, %v19862_v31  ;;  %v16372_v31 = vld [vmem:[%s21913_s1 + $0x2d0] sm:$0x3]  ;;  %v5576_v49 = vpack.c.b16 %v5570_v14, %v5570_v14  ;;  %v20228_v17 = vmul.f32 %v16373_v29, %v3352_v1  ;;  %v4020_v4 = vrot.slane %v20203_v40, 4  ;;  %v14962_v60 = vld [vmem:[%s21668_s7 + $0x4e8] sm:$0xff]   ;;  %v16377_v37 = vld [vmem:[%s21913_s1 + $0x2f8] sm:$0x3]  ;;  %14372 = vmatpush3.bf16.msra.mxu1 %v14963_v5 }
 0x7bf   :  { %v20217_v11 = vmul.f32 %v16372_v31, %v3352_v1  ;;  %v3446_v57 = vmul.f32 %v16374_v25, %v3352_v1  ;;  %v3447_v21 = vmul.f32 %v16375_v38, %v3352_v1  ;;  %v3448_v50 = vmul.f32 %v16376_v0, %v3352_v1  ;;  %v14967_v24 = vld [vmem:[%s21668_s7 + $0x430] sm:$0xff]   ;;  %v16378_v29 = vld [vmem:[%s21913_s1 + $0x2a0] sm:$0xff]  ;;  %14373 = vmatprep.subr.bf16.mxu1 %v14965_v63 }
 0x7c0   :  { %5983 = vmatprep.mubr.bf16.mxu1 %v5576_v49  ;;  %v3449_v19 = vmul.f32 %v16377_v37, %v3352_v1  ;;  %v3676_v31 = vrot.slane %v20228_v17, 5  ;;  %v3438_v25 = vmul.f32 %v16378_v29, %v3347_v55  ;;  %v14969_v1 = vld [vmem:[%s21668_s7 + $0x478] sm:$0xff]   ;;  %14392 = vmatpush3.bf16.msra.mxu0 %v14960_v46  ;;  %v14964_v17 = vld [vmem:[%s21668_s7 + $0x4a8] sm:$0xff]   ;;  %v16380_v63 = vld [vmem:[%s21913_s1 + $0x2b0] sm:$0xff]  ;;  %v14225_v33 = vadd.f32 %v22214_v8, %v22213_v39 }
 0x7c1   :  { %v3673_v14 = vrot.slane %v20217_v11, 5  ;;  %v3679_v49 = vrot.slane %v3446_v57, 5  ;;  %v3682_v5 = vrot.slane %v3447_v21, 5  ;;  %v3685_v38 = vrot.slane %v3448_v50, 5  ;;  %v16379_v11 = vld [vmem:[%s21913_s1 + $0x2a8] sm:$0xff]  ;;  %v16381_v21 = vld [vmem:[%s21913_s1 + $0x2b8] sm:$0xff]  ;;  %14393 = vmatprep.subr.bf16.mxu0 %v14962_v60 }
 0x7c2   :  { %v3688_v0 = vrot.slane %v3449_v19, 5  ;;  %v3439_v37 = vmul.f32 %v16379_v11, %v3347_v55  ;;  %v3440_v57 = vmul.f32 %v16380_v63, %v3347_v55  ;;  %v3441_v50 = vmul.f32 %v16381_v21, %v3347_v55  ;;  %v16382_v19 = vld [vmem:[%s21913_s1 + $0x2c0] sm:$0xff]  ;;  %v16383_v46 = vld [vmem:[%s21913_s1 + $0x2c8] sm:$0xff]  ;;  %v14966_v63 = vld [vmem:[%s21668_s7 + $0x4f0] sm:$0xff]   ;;  %14374 = vmatpush3.bf16.msra.mxu1 %v14967_v24 }
 0x7c3   :  { %v3442_v29 = vmul.f32 %v16382_v19, %v3347_v55  ;;  %v3443_v11 = vmul.f32 %v16383_v46, %v3347_v55  ;;  %v3672_v42 = vrot.slane %v3438_v25, 5  ;;  %v14203_v21 = vadd.f32 %v19580_v2, %v19576_v47  ;;  %v14971_v19 = vld [vmem:[%s21668_s7 + $0x438] sm:$0xff]   ;;  %14375 = vmatprep.subr.bf16.mxu1 %v14969_v1  ;;  %v14973_v25 = vld [vmem:[%s21668_s7 + $0x540] sm:$0xff]   ;;  %v14968_v8 = vld [vmem:[%s21668_s7 + $0x4b0] sm:$0xff]  }
 0x7c4   :  { %v3675_v13 = vrot.slane %v3439_v37, 5  ;;  %v3678_v6 = vrot.slane %v3440_v57, 5  ;;  %v3681_v55 = vrot.slane %v3441_v50, 5  ;;  %14394 = vmatpush3.bf16.msra.mxu0 %v14964_v17  ;;  %v22215_v39 = vld [vmem:[#allocation106_spill] sm:$0xff]  ;;  %v20307_v1 = vadd.f32 %v4020_v4, %v20203_v40 }
 0x7c5   :  { %v3684_v60 = vrot.slane %v3442_v29, 5  ;;  %v3687_v46 = vrot.slane %v3443_v11, 5  ;;  %v3674_v47 = vsel %vm2548_vm8, %v3672_v42, %v3673_v14  ;;  %v20296_v2 = vadd.f32 %v14225_v33, %v14203_v21  ;;  %14395 = vmatprep.subr.bf16.mxu0 %v14966_v63  ;;  %v14970_v42 = vld [vmem:[%s21668_s7 + $0x4f8] sm:$0xff]   ;;  %v22220_v21 = vld [vmem:[#allocation111_spill] sm:$0xff] }
 0x7c6   :  { %v22216_v24 = vrot.slane %v22215_v39, 1  ;;  %v3677_v50 = vsel %vm2548_vm8, %v3675_v13, %v3676_v31  ;;  %v3680_v29 = vsel %vm2548_vm8, %v3678_v6, %v3679_v49  ;;  %v20316_v14 = vsel %vm2548_vm8, %v3681_v55, %v3682_v5  ;;  %14376 = vmatpush3.bf16.msra.mxu1 %v14971_v19  ;;  %v22217_v13 = vld [vmem:[#allocation116_spill] sm:$0xff] }
 0x7c7   :  { %v3686_v33 = vsel %vm2548_vm8, %v3684_v60, %v3685_v38  ;;  %v20319_v17 = vsel %vm2548_vm8, %v3687_v46, %v3688_v0  ;;  %v20322_v40 = vsel %vm3738_vm9, %v3674_v47, 0.0  ;;  %v2834_v4 = vrot.slane %v22217_v13, 1  ;;  %v22218_v38 = vld [vmem:[#allocation114_spill] sm:$0xff]  ;;  %14405 = vmatprep.subr.bf16.mxu1 %v14973_v25  ;;  %v14972_v0 = vld [vmem:[%s21668_s7 + $0x4b8] sm:$0xff]  }
 0x7c8   :  { %v20304_v57 = vadd.f32 %v22216_v24, %v22215_v39  ;;  %v20327_v31 = vsel %vm3738_vm9, %v3680_v29, 0.0  ;;  %v20330_v49 = vsel %vm3738_vm9, %v3686_v33, 0.0  ;;  %v22219_v5 = vrot.slane %v22218_v38, 2  ;;  %14396 = vmatpush3.bf16.msra.mxu0 %v14968_v8  ;;  %v22221_v60 = vld [vmem:[#allocation61_spill] sm:$0xff]  ;;  %v22223_v8 = vld [vmem:[#allocation54_spill] sm:$0xff]  ;;  %v22224_v39 = vld [vmem:[#allocation39_spill] sm:$0xff] }
 0x7c9   :  { %v20339_v63 = vadd.f32 %v2834_v4, %v22217_v13  ;;  %v5413_v19 = vpack.c.bf16 %v22220_v21, %v22220_v21  ;;  %v22222_v46 = vpack.c.bf16 %v22221_v60, %v22221_v60  ;;  %14397 = vmatprep.subr.bf16.mxu0 %v14970_v42  ;;  %v5557_v24 = vsel %vm459_vm1, %v22224_v39, %v22223_v8  ;;  %v14974_v4 = vld [vmem:[%s21668_s7 + $0x5c0] sm:$0xff]  }
 0x7ca   :  { %v2875_v11 = vadd.f32 %v22219_v5, %v22218_v38  ;;  %v5419_v55 = vpack.c.bf16 %v20304_v57, %v20304_v57  ;;  %v22225_v29 = vrot.slane %v19655_v16, 1  ;;  %v3877_v13 = vrot.slane %v19732_v15, 1 }
 0x7cb   :  { %v5503_v47 = vunpack.c.l.b16 %v22222_v46  ;;  %v5425_v38 = vpack.c.bf16 %v20339_v63, %v20339_v63  ;;  %v5509_v42 = vunpack.c.l.b16 %v5413_v19  ;;  %v22226_v46 = vld [vmem:[#allocation104_spill] sm:$0xff]  ;;  %v3959_v19 = vrot.slane %v19864_v27, 2 }
 0x7cc   :  { %v2876_v25 = vrot.slane %v2875_v11, 1  ;;  %v20354_v33 = vadd.f32 %v22225_v29, %v19655_v16  ;;  %v5515_v5 = vunpack.c.l.b16 %v5419_v55  ;;  %v5558_v37 = vsel %vm461_vm2, %v22226_v46, %v5557_v24  ;;  %14398 = vmatpush3.bf16.msra.mxu0 %v14972_v0  ;;  %v22231_v46 = vld [vmem:[#allocation118_spill] sm:$0xff] }
 0x7cd   :  { %v5559_v39 = vsel %vm463_vm3, %v5503_v47, %v5558_v37  ;;  %v20368_v16 = vadd.f32 %v3877_v13, %v19732_v15  ;;  %v22228_v29 = vrot.slane %v19763_v10, 2  ;;  %v5521_v28 = vunpack.c.l.b16 %v5425_v38  ;;  %14427 = vmatprep.subr.bf16.mxu0 %v14974_v4 }
 0x7ce   :  { %v20364_v8 = vadd.f32 %v2876_v25, %v2875_v11  ;;  %v5560_v20 = vsel %vm465_vm4, %v5509_v42, %v5559_v39  ;;  %v22229_v55 = vrot.slane %v20184_v7, 4  ;;  %v4040_v25 = vsel %vm3738_vm9, %v3677_v50, 0.0 }
 0x7cf   :  { %22227 = vst [vmem:[#allocation64_spill] sm:$0xff] %v20368_v16  ;;  %v3918_v6 = vadd.f32 %v22228_v29, %v19763_v10  ;;  %v5561_v15 = vsel %vm467_vm5, %v5515_v5, %v5560_v20  ;;  %v3960_v0 = vadd.f32 %v3959_v19, %v19864_v27  ;;  %v4041_v13 = vrot.slane %v4040_v25, 4  ;;  %v14975_v19 = vld [vmem:[%s21668_s7 + $0x500] sm:$0xff]  }
 0x7d0   :  { %v4000_v11 = vadd.f32 %v22229_v55, %v20184_v7  ;;  %v5431_v37 = vpack.c.bf16 %v20364_v8, %v20364_v8  ;;  %v5562_v10 = vsel %vm469_vm6, %v5521_v28, %v5561_v15  ;;  %v6090_v7 = vpack.c.bf16 %v22231_v46, %v22231_v46 }
 0x7d1   :  { %v3919_v47 = vrot.slane %v3918_v6, 1  ;;  %v6096_v39 = vpack.c.bf16 %v19608_v52, %v19608_v52  ;;  %v3961_v20 = vrot.slane %v3960_v0, 1  ;;  %v4042_v29 = vadd.f32 %v4041_v13, %v4040_v25 }
 0x7d2   :  { %v4001_v24 = vrot.slane %v4000_v11, 2  ;;  %v5527_v38 = vunpack.c.l.b16 %v5431_v37  ;;  %v6102_v50 = vpack.c.bf16 %v20354_v33, %v20354_v33  ;;  %v6108_v27 = vpack.c.bf16 %v20368_v16, %v20368_v16 }
 0x7d3   :  { %v20384_v42 = vadd.f32 %v3919_v47, %v3918_v6  ;;  %v6186_v4 = vunpack.c.l.b16 %v6090_v7  ;;  %v20400_v37 = vadd.f32 %v3961_v20, %v3960_v0  ;;  %v4043_v15 = vrot.slane %v4042_v29, 2  ;;  %v14977_v47 = vld [vmem:[%s21668_s7 + $0x548] sm:$0xff]  }
 0x7d4   :  { %v4002_v5 = vadd.f32 %v4001_v24, %v4000_v11  ;;  %v5563_v28 = vsel %vm471_vm7, %v5527_v38, %v5562_v10  ;;  %v6192_v25 = vunpack.c.l.b16 %v6096_v39  ;;  %v6198_v10 = vunpack.c.l.b16 %v6102_v50 }
 0x7d5   :  { %22230 = vst [vmem:[#allocation103_spill] sm:$0xff] %v20384_v42  ;;  %v6114_v6 = vpack.c.bf16 %v20384_v42, %v20384_v42  ;;  %v5575_v55 = vpack.c.b16 %v5563_v28, %v5563_v28  ;;  %22232 = vst [vmem:[#allocation108_spill] sm:$0xff] %v20400_v37  ;;  %v6204_v24 = vunpack.c.l.b16 %v6108_v27  ;;  %v4044_v7 = vadd.f32 %v4043_v15, %v4042_v29  ;;  %v14979_v27 = vld [vmem:[%s21668_s7 + $0x508] sm:$0xff]  }
 0x7d6   :  { %v4003_v11 = vrot.slane %v4002_v5, 1  ;;  %v6120_v42 = vpack.c.bf16 %v20400_v37, %v20400_v37  ;;  %v22234_v0 = vrot.slane %v19784_v18, 1  ;;  %v6240_v28 = vsel %vm459_vm1, %v6192_v25, %v6186_v4 }
 0x7d7   :  { %v6210_v13 = vunpack.c.l.b16 %v6114_v6  ;;  %5984 = vmatmul.mubr.bf16.vlgmr.msra.gmra.mrb[20].mxu1 %v5575_v55  ;;  %v3954_v16 = vrot.slane %v19872_v45, 1  ;;  %v22235_v39 = vrot.slane %v20209_v56, 2  ;;  %v4045_v6 = vrot.slane %v4044_v7, 1 }
 0x7d8   :  { %v20405_v38 = vadd.f32 %v4003_v11, %v4002_v5  ;;  %v20412_v20 = vadd.f32 %v22234_v0, %v19784_v18  ;;  %v22236_v5 = vrot.slane %v20322_v40, 4  ;;  %14406 = vmatpush3.bf16.msra.mxu1 %v14975_v19  ;;  %v6216_v4 = vunpack.c.l.b16 %v6120_v42 }
 0x7d9   :  { %v3995_v50 = vadd.f32 %v22235_v39, %v20209_v56  ;;  %v6241_v55 = vsel %vm461_vm2, %v6198_v10, %v6240_v28  ;;  %14407 = vmatprep.subr.bf16.mxu1 %v14977_v47  ;;  %v14981_v56 = vld [vmem:[%s21668_s7 + $0x550] sm:$0xff]   ;;  %v20435_v25 = vadd.f32 %v4045_v6, %v4044_v7  ;;  %v6101_v42 = vpack.c.bf16 %v19672_v62, %v19672_v62 }
 0x7da   :  { %22233 = vst [vmem:[#allocation107_spill] sm:$0xff] %v20405_v38  ;;  %v4035_v29 = vadd.f32 %v22236_v5, %v20322_v40  ;;  %v6126_v18 = vpack.c.bf16 %v20405_v38, %v20405_v38  ;;  %v6242_v11 = vsel %vm463_vm3, %v6204_v24, %v6241_v55  ;;  %v20433_v40 = vadd.f32 %v3954_v16, %v19872_v45  ;;  %v14983_v45 = vld [vmem:[%s21668_s7 + $0x510] sm:$0xff]   ;;  %v14985_v5 = vld [vmem:[%s21668_s7 + $0x558] sm:$0xff]  }
 0x7db   :  { %v3996_v19 = vrot.slane %v3995_v50, 1  ;;  %22237 = vst [vmem:[#allocation112_spill] sm:$0xff] %v20435_v25  ;;  %v6243_v39 = vsel %vm465_vm4, %v6210_v13, %v6242_v11  ;;  %v6107_v24 = vpack.c.bf16 %v19740_v53, %v19740_v53  ;;  %v6132_v16 = vpack.c.bf16 %v20435_v25, %v20435_v25 }
 0x7dc   :  { %v4036_v15 = vrot.slane %v4035_v29, 2  ;;  %v6222_v0 = vunpack.c.l.b16 %v6126_v18  ;;  %v6244_v47 = vsel %vm467_vm5, %v6216_v4, %v6243_v39  ;;  %14408 = vmatpush3.bf16.msra.mxu1 %v14979_v27  ;;  %v6113_v7 = vpack.c.bf16 %v20412_v20, %v20412_v20 }
 0x7dd   :  { %v20441_v10 = vadd.f32 %v3996_v19, %v3995_v50  ;;  %v6119_v50 = vpack.c.bf16 %v20433_v40, %v20433_v40  ;;  %14409 = vmatprep.subr.bf16.mxu1 %v14981_v56  ;;  %v6197_v6 = vunpack.c.l.b16 %v6101_v42  ;;  %v6203_v18 = vunpack.c.l.b16 %v6107_v24  ;;  %v22238_v19 = vld [vmem:[#allocation125_spill] sm:$0xff] }
 0x7de   :  { %v4037_v28 = vadd.f32 %v4036_v15, %v4035_v29  ;;  %v6245_v13 = vsel %vm469_vm6, %v6222_v0, %v6244_v47  ;;  %v6228_v4 = vunpack.c.l.b16 %v6132_v16  ;;  %v6209_v55 = vunpack.c.l.b16 %v6113_v7  ;;  %v22240_v47 = vld [vmem:[#allocation132_spill] sm:$0xff] }
 0x7df   :  { %v6125_v27 = vpack.c.bf16 %v20441_v10, %v20441_v10  ;;  %v6215_v11 = vunpack.c.l.b16 %v6119_v50  ;;  %v6233_v15 = vsel %vm459_vm1, %v19641_v43, %v22238_v19  ;;  %v22241_v25 = vrot.slane %v22240_v47, 1  ;;  %v14987_v42 = vld [vmem:[%s21668_s7 + $0x518] sm:$0xff]  }
 0x7e0   :  { %v4038_v29 = vrot.slane %v4037_v28, 1  ;;  %v6234_v39 = vsel %vm461_vm2, %v6197_v6, %v6233_v15  ;;  %14410 = vmatpush3.bf16.msra.mxu1 %v14983_v45  ;;  %v6246_v24 = vsel %vm471_vm7, %v6228_v4, %v6245_v13  ;;  %v3891_v43 = vrot.slane %v19735_v54, 1 }
 0x7e1   :  { %v6221_v56 = vunpack.c.l.b16 %v6125_v27  ;;  %v20469_v38 = vadd.f32 %v22241_v25, %v22240_v47  ;;  %v6235_v16 = vsel %vm463_vm3, %v6203_v18, %v6234_v39  ;;  %14411 = vmatprep.subr.bf16.mxu1 %v14985_v5  ;;  %v14989_v25 = vld [vmem:[%s21668_s7 + $0x560] sm:$0xff]   ;;  %v6276_v45 = vpack.c.b16 %v6246_v24, %v6246_v24  ;;  %v22244_v24 = vld [vmem:[#allocation120_spill] sm:$0xff] }
 0x7e2   :  { %v20463_v0 = vadd.f32 %v4038_v29, %v4037_v28  ;;  %v22242_v28 = vrot.slane %v19774_v12, 2  ;;  %v6236_v29 = vsel %vm465_vm4, %v6209_v55, %v6235_v16  ;;  %v3973_v13 = vrot.slane %v19866_v32, 2 }
 0x7e3   :  { %v6237_v27 = vsel %vm467_vm5, %v6215_v11, %v6236_v29  ;;  %v20489_v6 = vadd.f32 %v3891_v43, %v19735_v54  ;;  %6607 = vmatprep.mubr.bf16.mxu0 %v6276_v45  ;;  %v4054_v55 = vsel %vm3738_vm9, %v20316_v14, 0.0  ;;  %v14991_v54 = vld [vmem:[%s21668_s7 + $0x520] sm:$0xff]   ;;  %v6104_v43 = vpack.c.bf16 %v20469_v38, %v20469_v38  ;;  %v14978_v29 = vld [vmem:[%s21668_s7 + $0x5c8] sm:$0xff]  }
 0x7e4   :  { %22239 = vst [vmem:[#allocation47_spill] sm:$0xff] %v20463_v0  ;;  %v3932_v7 = vadd.f32 %v22242_v28, %v19774_v12  ;;  %v6131_v50 = vpack.c.bf16 %v20463_v0, %v20463_v0  ;;  %v22243_v12 = vrot.slane %v20200_v3, 4  ;;  %v6238_v19 = vsel %vm469_vm6, %v6221_v56, %v6237_v27  ;;  %14412 = vmatpush3.bf16.msra.mxu1 %v14987_v42  ;;  %v22245_v42 = vld [vmem:[#allocation129_spill] sm:$0xff] }
 0x7e5   :  { %v3974_v15 = vadd.f32 %v3973_v13, %v19866_v32  ;;  %v4055_v47 = vrot.slane %v4054_v55, 4  ;;  %14413 = vmatprep.subr.bf16.mxu1 %v14989_v25  ;;  %v14993_v32 = vld [vmem:[%s21668_s7 + $0x568] sm:$0xff]   ;;  %v6098_v16 = vpack.c.bf16 %v22245_v42, %v22245_v42  ;;  %v14976_v28 = vld [vmem:[%s21668_s7 + $0x580] sm:$0xff]  }
 0x7e6   :  { %v3933_v18 = vrot.slane %v3932_v7, 1  ;;  %v4014_v5 = vadd.f32 %v22243_v12, %v20200_v3  ;;  %v6227_v4 = vunpack.c.l.b16 %v6131_v50  ;;  %v6092_v3 = vpack.c.bf16 %v22244_v24, %v22244_v24  ;;  %v14992_v0 = vld [vmem:[%s21668_s7 + $0x5a0] sm:$0xff]  }
 0x7e7   :  { %v3975_v14 = vrot.slane %v3974_v15, 1  ;;  %v4056_v25 = vadd.f32 %v4055_v47, %v4054_v55  ;;  %v6110_v50 = vpack.c.bf16 %v20489_v6, %v20489_v6  ;;  %v6194_v12 = vunpack.c.l.b16 %v6098_v16 }
 0x7e8   :  { %v20501_v11 = vadd.f32 %v3933_v18, %v3932_v7  ;;  %v4015_v39 = vrot.slane %v4014_v5, 2  ;;  %v6239_v56 = vsel %vm471_vm7, %v6227_v4, %v6238_v19  ;;  %v6188_v18 = vunpack.c.l.b16 %v6092_v3  ;;  %14414 = vmatpush3.bf16.msra.mxu1 %v14991_v54 }
 0x7e9   :  { %v6275_v7 = vpack.c.b16 %v6239_v56, %v6239_v56  ;;  %v20521_v13 = vadd.f32 %v3975_v14, %v3974_v15  ;;  %v4057_v19 = vrot.slane %v4056_v25, 2  ;;  %v6200_v55 = vunpack.c.l.b16 %v6104_v43  ;;  %14415 = vmatprep.subr.bf16.mxu1 %v14993_v32  ;;  %v14997_v15 = vld [vmem:[%s21668_s7 + $0x570] sm:$0xff]   ;;  %v22247_v56 = vld [vmem:[#allocation134_spill] sm:$0xff] }
 0x7ea   :  { %v4016_v45 = vadd.f32 %v4015_v39, %v4014_v5  ;;  %v6116_v27 = vpack.c.bf16 %v20501_v11, %v20501_v11  ;;  %v14995_v5 = vld [vmem:[%s21668_s7 + $0x528] sm:$0xff]   ;;  %v6206_v39 = vunpack.c.l.b16 %v6110_v50  ;;  %v6254_v54 = vsel %vm459_vm1, %v6194_v12, %v6188_v18 }
 0x7eb   :  { %22246 = vst [vmem:[#allocation40_spill] sm:$0xff] %v20521_v13  ;;  %6608 = vmatmul.mubr.bf16.vlgmr.msra.gmra.mrb[20].mxu0 %v6275_v7  ;;  %v6122_v47 = vpack.c.bf16 %v20521_v13, %v20521_v13  ;;  %v22248_v14 = vrot.slane %v22247_v56, 1  ;;  %v14980_v32 = vld [vmem:[%s21668_s7 + $0x588] sm:$0xff]   ;;  %v4058_v7 = vadd.f32 %v4057_v19, %v4056_v25  ;;  %v6255_v50 = vsel %vm461_vm2, %v6200_v55, %v6254_v54  ;;  %v14999_v25 = vld [vmem:[%s21668_s7 + $0x530] sm:$0xff]  }
 0x7ec   :  { %v4017_v4 = vrot.slane %v4016_v45, 1  ;;  %v6212_v3 = vunpack.c.l.b16 %v6116_v27  ;;  %14428 = vmatpush3.bf16.msra.mxu0 %v14976_v28  ;;  %v3905_v13 = vrot.slane %v19737_v26, 1  ;;  %v14982_v28 = vld [vmem:[%s21668_s7 + $0x5d0] sm:$0xff]   ;;  %v6256_v18 = vsel %vm463_vm3, %v6206_v39, %v6255_v50  ;;  %14416 = vmatpush3.bf16.msra.mxu1 %v14995_v5  ;;  %v22253_v50 = vld [vmem:[#allocation122_spill] sm:$0xff] }
 0x7ed   :  { %v20537_v16 = vadd.f32 %v22248_v14, %v22247_v56  ;;  %14429 = vmatprep.subr.bf16.mxu0 %v14978_v29  ;;  %v6218_v27 = vunpack.c.l.b16 %v6122_v47  ;;  %v22250_v12 = vrot.slane %v19793_v23, 2  ;;  %14417 = vmatprep.subr.bf16.mxu1 %v14997_v15  ;;  %v22251_v54 = vrot.slane %v20212_v51, 4 }
 0x7ee   :  { %v20542_v43 = vadd.f32 %v4017_v4, %v4016_v45  ;;  %v3987_v45 = vrot.slane %v20047_v22, 2  ;;  %v4059_v4 = vrot.slane %v4058_v7, 1  ;;  %v6257_v19 = vsel %vm465_vm4, %v6212_v3, %v6256_v18 }
 0x7ef   :  { %v3946_v56 = vadd.f32 %v22250_v12, %v19793_v23  ;;  %v20561_v55 = vadd.f32 %v3905_v13, %v19737_v26  ;;  %v15001_v23 = vld [vmem:[%s21668_s7 + $0x578] sm:$0xff]   ;;  %v6258_v5 = vsel %vm467_vm5, %v6218_v27, %v6257_v19  ;;  %v4028_v14 = vadd.f32 %v22251_v54, %v20212_v51  ;;  %v14984_v26 = vld [vmem:[%s21668_s7 + $0x590] sm:$0xff]  }
 0x7f0   :  { %22249 = vst [vmem:[#allocation123_spill] sm:$0xff] %v20542_v43  ;;  %v6128_v29 = vpack.c.bf16 %v20542_v43, %v20542_v43  ;;  %v3988_v47 = vadd.f32 %v3987_v45, %v20047_v22  ;;  %14430 = vmatpush3.bf16.msra.mxu0 %v14980_v32  ;;  %v20574_v13 = vadd.f32 %v4059_v4, %v4058_v7  ;;  %v4068_v3 = vsel %vm3738_vm9, %v20319_v17, 0.0  ;;  %v14986_v22 = vld [vmem:[%s21668_s7 + $0x5d8] sm:$0xff]  }
 0x7f1   :  { %v3947_v39 = vrot.slane %v3946_v56, 1  ;;  %v6094_v27 = vpack.c.bf16 %v22253_v50, %v22253_v50  ;;  %14431 = vmatprep.subr.bf16.mxu0 %v14982_v28  ;;  %v4029_v18 = vrot.slane %v4028_v14, 2  ;;  %v4069_v12 = vrot.slane %v4068_v3, 4  ;;  %14418 = vmatpush3.bf16.msra.mxu1 %v14999_v25  ;;  %v15003_v7 = vld [vmem:[%s21668_s7 + $0x538] sm:$0xff]   ;;  %v22255_v28 = vld [vmem:[#allocation131_spill] sm:$0xff] }
 0x7f2   :  { %22252 = vst [vmem:[#allocation124_spill] sm:$0xff] %v20574_v13  ;;  %v6224_v15 = vunpack.c.l.b16 %v6128_v29  ;;  %v3989_v32 = vrot.slane %v3988_v47, 1  ;;  %v6134_v17 = vpack.c.bf16 %v20574_v13, %v20574_v13  ;;  %v6100_v4 = vpack.c.bf16 %v22255_v28, %v22255_v28  ;;  %14419 = vmatprep.subr.bf16.mxu1 %v15001_v23  ;;  %v14988_v54 = vld [vmem:[%s21668_s7 + $0x598] sm:$0xff]   ;;  %v14990_v23 = vld [vmem:[%s21668_s7 + $0x5e0] sm:$0xff]  }
 0x7f3   :  { %v20583_v51 = vadd.f32 %v3947_v39, %v3946_v56  ;;  %v6106_v56 = vpack.c.bf16 %v20537_v16, %v20537_v16  ;;  %v4030_v19 = vadd.f32 %v4029_v18, %v4028_v14  ;;  %v4070_v25 = vadd.f32 %v4069_v12, %v4068_v3 }
 0x7f4   :  { %v6259_v45 = vsel %vm469_vm6, %v6224_v15, %v6258_v5  ;;  %v20595_v29 = vadd.f32 %v3989_v32, %v3988_v47  ;;  %v6112_v39 = vpack.c.bf16 %v20561_v55, %v20561_v55  ;;  %14432 = vmatpush3.bf16.msra.mxu0 %v14984_v26  ;;  %v6230_v5 = vunpack.c.l.b16 %v6134_v17 }
 0x7f5   :  { %22254 = vst [vmem:[#allocation106_spill] sm:$0xff] %v20583_v51  ;;  %v6118_v15 = vpack.c.bf16 %v20583_v51, %v20583_v51  ;;  %v6190_v13 = vunpack.c.l.b16 %v6094_v27  ;;  %v6196_v43 = vunpack.c.l.b16 %v6100_v4  ;;  %14433 = vmatprep.subr.bf16.mxu0 %v14986_v22  ;;  %v4031_v47 = vrot.slane %v4030_v19, 1  ;;  %14420 = vmatpush3.bf16.msra.mxu1 %v15003_v7 }
 0x7f6   :  { %22256 = vst [vmem:[#allocation116_spill] sm:$0xff] %v20595_v29  ;;  %v4071_v14 = vrot.slane %v4070_v25, 2  ;;  %v6124_v26 = vpack.c.bf16 %v20595_v29, %v20595_v29  ;;  %v6202_v3 = vunpack.c.l.b16 %v6106_v56  ;;  %v4048_v32 = vrot.slane %v20327_v31, 4  ;;  %v22257_v56 = vld [vmem:[#allocation140_spill] sm:$0xff] }
 0x7f7   :  { %v6260_v18 = vsel %vm471_vm7, %v6230_v5, %v6259_v45  ;;  %v6208_v12 = vunpack.c.l.b16 %v6112_v39  ;;  %v6214_v17 = vunpack.c.l.b16 %v6118_v15  ;;  %v20611_v4 = vadd.f32 %v4031_v47, %v4030_v19  ;;  %v22258_v45 = vld [vmem:[#allocation139_spill] sm:$0xff]  ;;  %v22259_v39 = vld [vmem:[#allocation141_spill] sm:$0xff] }
 0x7f8   :  { %v6278_v27 = vpack.c.b16 %v6260_v18, %v6260_v18  ;;  %v4072_v22 = vadd.f32 %v4071_v14, %v4070_v25  ;;  %v6268_v37 = vsel %vm459_vm1, %v6196_v43, %v6190_v13  ;;  %14434 = vmatpush3.bf16.msra.mxu0 %v14988_v54  ;;  %v6220_v29 = vunpack.c.l.b16 %v6124_v26  ;;  %v14994_v19 = vld [vmem:[%s21668_s7 + $0x5e8] sm:$0xff]  }
 0x7f9   :  { %v6269_v7 = vsel %vm461_vm2, %v6202_v3, %v6268_v37  ;;  %v14247_v51 = vadd.f32 %v22257_v56, %v19799_v44  ;;  %v14269_v5 = vadd.f32 %v22259_v39, %v22258_v45  ;;  %14435 = vmatprep.subr.bf16.mxu0 %v14990_v23  ;;  %v6130_v13 = vpack.c.bf16 %v20611_v4, %v20611_v4 }
 0x7fa   :  { %6647 = vmatprep.mubr.bf16.mxu1 %v6278_v27  ;;  %v4073_v43 = vrot.slane %v4072_v22, 1  ;;  %v22260_v25 = vrot.slane %v19795_v61, 1  ;;  %v3968_v44 = vrot.slane %v20192_v9, 1  ;;  %v6270_v54 = vsel %vm463_vm3, %v6208_v12, %v6269_v7 }
 0x7fb   :  { %v4875_v15 = vadd.f32 %v14247_v51, %v20296_v2  ;;  %v22261_v23 = vrot.slane %v20223_v59, 2  ;;  %v4049_v14 = vadd.f32 %v4048_v32, %v20327_v31  ;;  %v6226_v3 = vunpack.c.l.b16 %v6130_v13  ;;  %v22263_v32 = vld [vmem:[#allocation135_spill] sm:$0xff] }
 0x7fc   :  { %v20630_v37 = vadd.f32 %v22260_v25, %v19795_v61  ;;  %v20639_v26 = vadd.f32 %v4073_v43, %v4072_v22  ;;  %v6271_v18 = vsel %vm465_vm4, %v6214_v17, %v6270_v54  ;;  %14436 = vmatpush3.bf16.msra.mxu0 %v14992_v0  ;;  %v14996_v61 = vld [vmem:[%s21668_s7 + $0x5a8] sm:$0xff]   ;;  %v20646_v12 = vadd.f32 %v3968_v44, %v20192_v9  ;;  %v22264_v22 = vld [vmem:[#allocation137_spill] sm:$0xff]  ;;  %v15000_v25 = vld [vmem:[%s21668_s7 + $0x5b0] sm:$0xff]  }
 0x7fd   :  { %v4009_v47 = vadd.f32 %v22261_v23, %v20223_v59  ;;  %v20648_v2 = vadd.f32 %v14269_v5, %v4875_v15  ;;  %14437 = vmatprep.subr.bf16.mxu0 %v14994_v19  ;;  %v14998_v59 = vld [vmem:[%s21668_s7 + $0x5f0] sm:$0xff]   ;;  %v4050_v51 = vrot.slane %v4049_v14, 2  ;;  %v6103_v17 = vpack.c.bf16 %v22263_v32, %v22263_v32  ;;  %v15002_v44 = vld [vmem:[%s21668_s7 + $0x5f8] sm:$0xff]  }
 0x7fe   :  { %22262 = vst [vmem:[#allocation114_spill] sm:$0xff] %v20639_v26  ;;  %v6136_v0 = vpack.c.bf16 %v20639_v26, %v20639_v26  ;;  %v6272_v27 = vsel %vm467_vm5, %v6220_v29, %v6271_v18  ;;  %v6109_v9 = vpack.c.bf16 %v22264_v22, %v22264_v22  ;;  %v6115_v7 = vpack.c.bf16 %v20630_v37, %v20630_v37 }
 0x7ff   :  { %v4010_v31 = vrot.slane %v4009_v47, 1  ;;  %v4051_v45 = vadd.f32 %v4050_v51, %v4049_v14  ;;  %v6121_v39 = vpack.c.bf16 %v20646_v12, %v20646_v12  ;;  %v6199_v5 = vunpack.c.l.b16 %v6103_v17 }
 0x800   :  { %v4022_v19 = vrot.slane %v20307_v1, 2  ;;  %v4062_v43 = vrot.slane %v20330_v49, 4  ;;  %v6232_v13 = vunpack.c.l.b16 %v6136_v0  ;;  %v6273_v29 = vsel %vm469_vm6, %v6226_v3, %v6272_v27  ;;  %14438 = vmatpush3.bf16.msra.mxu0 %v14996_v61  ;;  %v22265_v3 = vld [vmem:[#allocation126_spill] sm:$0xff]  ;;  %v22266_v61 = vld [vmem:[#allocation133_spill] sm:$0xff] }
 0x801   :  { %v20662_v56 = vadd.f32 %v4010_v31, %v4009_v47  ;;  %14439 = vmatprep.subr.bf16.mxu0 %v14998_v59  ;;  %v4052_v54 = vrot.slane %v4051_v45, 1  ;;  %v6205_v23 = vunpack.c.l.b16 %v6109_v9  ;;  %v6211_v47 = vunpack.c.l.b16 %v6115_v7  ;;  %v15004_v9 = vld [vmem:[%s21668_s7 + $0x5b8] sm:$0xff]   ;;  %s16606_s7 = smov 1  }
 0x802   :  { %v6274_v14 = vsel %vm471_vm7, %v6232_v13, %v6273_v29  ;;  %v6217_v18 = vunpack.c.l.b16 %v6121_v39  ;;  %v6247_v31 = vsel %vm459_vm1, %v22266_v61, %v22265_v3  ;;  %v3982_v51 = vrot.slane %v20197_v35, 1  ;;  %v22268_v29 = vld [vmem:[#allocation136_spill] sm:$0xff] }
 0x803   :  { %v6127_v15 = vpack.c.bf16 %v20662_v56, %v20662_v56  ;;  %v6280_v59 = vpack.c.b16 %v6274_v14, %v6274_v14  ;;  %v20682_v17 = vadd.f32 %v4052_v54, %v4051_v45  ;;  %v6248_v0 = vsel %vm461_vm2, %v6199_v5, %v6247_v31 }
 0x804   :  { %v22267_v27 = vrot.slane %v19804_v58, 1  ;;  %14440 = vmatpush3.bf16.msra.mxu0 %v15000_v25  ;;  %v20694_v39 = vadd.f32 %v3982_v51, %v20197_v35  ;;  %v4023_v13 = vadd.f32 %v4022_v19, %v20307_v1  ;;  %v4063_v45 = vadd.f32 %v4062_v43, %v20330_v49  ;;  %v22269_v35 = vld [vmem:[#allocation138_spill] sm:$0xff] }
 0x805   :  { %v6223_v7 = vunpack.c.l.b16 %v6127_v15  ;;  %6687 = vmatprep.mubr.bf16.mxu0 %v6280_v59  ;;  %14441 = vmatprep.subr.bf16.mxu0 %v15002_v44  ;;  %v6133_v5 = vpack.c.bf16 %v20682_v17, %v20682_v17  ;;  %v6105_v25 = vpack.c.bf16 %v22268_v29, %v22268_v29  ;;  %v6111_v3 = vpack.c.bf16 %v22269_v35, %v22269_v35  ;;  %v22270_v1 = vld [vmem:[#allocation130_spill] sm:$0xff]  ;;  %v22272_v59 = vld [vmem:[#allocation121_spill] sm:$0xff] }
 0x806   :  { %v20688_v26 = vadd.f32 %v22267_v27, %v19804_v58  ;;  %v6249_v58 = vsel %vm463_vm3, %v6205_v23, %v6248_v0  ;;  %v4024_v15 = vrot.slane %v4023_v13, 1  ;;  %v4064_v14 = vrot.slane %v4063_v45, 2 }
 0x807   :  { %v6250_v54 = vsel %vm465_vm4, %v6211_v47, %v6249_v58  ;;  %v22271_v49 = vpack.c.bf16 %v22270_v1, %v22270_v1  ;;  %v6229_v43 = vunpack.c.l.b16 %v6133_v5  ;;  %v6123_v51 = vpack.c.bf16 %v20694_v39, %v20694_v39 }
 0x808   :  { %v6251_v44 = vsel %vm467_vm5, %v6217_v18, %v6250_v54  ;;  %v6117_v23 = vpack.c.bf16 %v20688_v26, %v20688_v26  ;;  %14442 = vmatpush3.bf16.msra.mxu0 %v15004_v9  ;;  %v20713_v31 = vadd.f32 %v4024_v15, %v4023_v13  ;;  %v4065_v47 = vadd.f32 %v4064_v14, %v4063_v45 }
 0x809   :  { %v6195_v19 = vunpack.c.l.b16 %v22271_v49  ;;  %v6252_v61 = vsel %vm469_vm6, %v6223_v7, %v6251_v44  ;;  %v22273_v0 = vpack.c.bf16 %v22272_v59, %v22272_v59  ;;  %v6201_v58 = vunpack.c.l.b16 %v6105_v25 }
 0x80a   :  { %v6253_v5 = vsel %vm471_vm7, %v6229_v43, %v6252_v61  ;;  %v14291_v18 = vadd.f32 %v19886_v48, %v19877_v36  ;;  %v4066_v9 = vrot.slane %v4065_v47, 1  ;;  %v6129_v7 = vpack.c.bf16 %v20713_v31, %v20713_v31 }
 0x80b   :  { %v6189_v27 = vunpack.c.l.b16 %v22273_v0  ;;  %v6277_v54 = vpack.c.b16 %v6253_v5, %v6253_v5  ;;  %v6207_v13 = vunpack.c.l.b16 %v6111_v3  ;;  %v6213_v45 = vunpack.c.l.b16 %v6117_v23  ;;  %v22274_v23 = vld [vmem:[#allocation51_spill] sm:$0xff] }
 0x80c   :  { %v5243_v15 = vadd.f32 %v14291_v18, %v20648_v2  ;;  %v14313_v14 = vadd.f32 %v19888_v30, %v19879_v41  ;;  %v20728_v49 = vadd.f32 %v4066_v9, %v4065_v47  ;;  %v6219_v43 = vunpack.c.l.b16 %v6123_v51 }
 0x80d   :  { %6648 = vmatmul.mubr.bf16.vlgmr.msra.gmra.mrb[24].mxu1 %v6277_v54  ;;  %v6261_v25 = vsel %vm459_vm1, %v6195_v19, %v6189_v27  ;;  %v6225_v44 = vunpack.c.l.b16 %v6129_v7  ;;  %v6904_v2 = vsel %vm463_vm3, %v22221_v60, %v22274_v23 }
 0x80e   :  { %v6262_v36 = vsel %vm461_vm2, %v6201_v58, %v6261_v25  ;;  %v5283_v48 = vadd.f32 %v14313_v14, %v5243_v15  ;;  %v6135_v61 = vpack.c.bf16 %v20728_v49, %v20728_v49  ;;  %v6905_v30 = vsel %vm465_vm4, %v22220_v21, %v6904_v2 }
 0x80f   :  { %v6263_v3 = vsel %vm463_vm3, %v6207_v13, %v6262_v36  ;;  %v6906_v51 = vsel %vm467_vm5, %v20304_v57, %v6905_v30 }
 0x810   :  { %v6264_v41 = vsel %vm465_vm4, %v6213_v45, %v6263_v3  ;;  %v6231_v47 = vunpack.c.l.b16 %v6135_v61  ;;  %v6907_v27 = vsel %vm469_vm6, %v20339_v63, %v6906_v51 }
 0x811   :  { %v6265_v19 = vsel %vm467_vm5, %v6219_v43, %v6264_v41  ;;  %v20750_v60 = vsel %vm471_vm7, %v20364_v8, %v6907_v27 }
 0x812   :  { %v6266_v0 = vsel %vm469_vm6, %v6225_v44, %v6265_v19 }
 0x813   :  { %v6267_v5 = vsel %vm471_vm7, %v6231_v47, %v6266_v0 }
 0x814   :  { %v6279_v58 = vpack.c.b16 %v6267_v5, %v6267_v5 }
 0x816   :  { %6688 = vmatmul.mubr.bf16.vlgmr.msra.gmra.mrb[24].mxu0 %v6279_v58 }
 0x87b   :  { %v14333_v21 = vpop.f32.mrb[16].mxu1 }
 0x87c   :  { %v14334_v18 = vpop.f32.mrb[17].mxu1 }
 0x87d   :  { %v14335_v54 = vadd.f32 %v14334_v18, %v14333_v21  ;;  %v14336_v9 = vpop.f32.mrb[18].mxu1 }
 0x87e   :  { %v14337_v7 = vpop.f32.mrb[19].mxu1 }
 0x882   :  { %v14355_v13 = vpop.f32.mrb[16].mxu0 }
 0x883   :  { %v14356_v57 = vpop.f32.mrb[17].mxu0 }
 0x884   :  { %v14357_v45 = vadd.f32 %v14356_v57, %v14355_v13  ;;  %v14358_v15 = vpop.f32.mrb[18].mxu0  ;;  %v13439_v57 = vld [vmem:[#allocation5] ss:$0 sm:$0xff] }
 0x885   :  { %v14359_v14 = vpop.f32.mrb[19].mxu0 }
 0x886   :  { %v5946_v43 = vadd.f32 %v14357_v45, %v14335_v54 }
 0x8aa   :  { %v14377_v63 = vpop.f32.mrb[20].mxu1 }
 0x8ab   :  { %v14378_v25 = vpop.f32.mrb[21].mxu1 }
 0x8ac   :  { %v14379_v44 = vadd.f32 %v14378_v25, %v14377_v63  ;;  %v14380_v36 = vpop.f32.mrb[22].mxu1 }
 0x8ad   :  { %v14381_v61 = vpop.f32.mrb[23].mxu1  ;;  %v16605_v36 = vmov 1  }
 0x8ae   :  { %v5986_v8 = vadd.f32 %v14379_v44, %v5946_v43  ;;  %14739 = vset.pattern.permute.xlu1 %v16605_v36  ;;  %v15005_v61 = vld [vmem:[#allocation7 + $0x900] ss:$24 sps:$4 sm:$0xff]   ;;  %v15049_v36 = vld [vmem:[#allocation7 + $0xa54] ss:$24 sps:$4 sm:$0xff]  }
 0x8b0   :  { %v5991_v3 = vadd.f32 %v5986_v8, %v5283_v48  ;;  %v15007_v8 = vld [vmem:[#allocation7 + $0x904] ss:$24 sps:$4 sm:$0xff]  }
 0x8b1   :  { %9069 = vmatprep.subr.bf16.mxu1 %v15007_v8  ;;  %v15047_v8 = vld [vmem:[#allocation7 + $0xa50] ss:$24 sps:$4 sm:$0xff]  }
 0x8b2   :  { %9070 = vmatpush1.bf16.msra.mxu1 %v15005_v61  ;;  %v15052_v61 = vld [vmem:[#allocation7 + $0xd54] ss:$24 sps:$4 sm:$0xff]  }
 0x8be   :  { %v14399_v23 = vpop.f32.mrb[20].mxu0 }
 0x8bf   :  { %v14400_v2 = vpop.f32.mrb[21].mxu0 }
 0x8c0   :  { %v14401_v41 = vadd.f32 %v14400_v2, %v14399_v23  ;;  %v14402_v30 = vpop.f32.mrb[22].mxu0  ;;  %v15008_v23 = vld [vmem:[#allocation7 + $0xc00] ss:$24 sps:$4 sm:$0xff]   ;;  %v15013_v2 = vld [vmem:[#allocation7 + $0x934] ss:$24 sps:$4 sm:$0xff]  }
 0x8c1   :  { %v14403_v47 = vpop.f32.mrb[23].mxu0  ;;  %v15011_v30 = vld [vmem:[#allocation7 + $0x930] ss:$24 sps:$4 sm:$0xff]   ;;  %9071 = vmatprep.subr.bf16.mxu1 %v15013_v2  ;;  %v15058_v2 = vld [vmem:[#allocation7 + $0xd84] ss:$24 sps:$4 sm:$0xff]  }
 0x8c2   :  { %v15014_v47 = vld [vmem:[#allocation7 + $0xc30] ss:$24 sps:$4 sm:$0xff]   ;;  %9072 = vmatpush1.bf16.msra.mxu1 %v15011_v30  ;;  %v15056_v30 = vld [vmem:[#allocation7 + $0xd80] ss:$24 sps:$4 sm:$0xff]  }
 0x8e0   :  { %v14421_v19 = vpop.f32.mrb[24].mxu1 }
 0x8e1   :  { %v14422_v51 = vpop.f32.mrb[25].mxu1 }
 0x8e2   :  { %v14423_v0 = vadd.f32 %v14422_v51, %v14421_v19  ;;  %v14424_v27 = vpop.f32.mrb[26].mxu1  ;;  %v15019_v19 = vld [vmem:[#allocation7 + $0x964] ss:$24 sps:$4 sm:$0xff]  }
 0x8e3   :  { %v14425_v5 = vpop.f32.mrb[27].mxu1  ;;  %v15022_v51 = vld [vmem:[#allocation7 + $0xc64] ss:$24 sps:$4 sm:$0xff]   ;;  %9073 = vmatprep.subr.bf16.mxu1 %v15019_v19  ;;  %v15020_v27 = vld [vmem:[#allocation7 + $0xc60] ss:$24 sps:$4 sm:$0xff]  }
 0x8e4   :  { %v6650_v58 = vadd.f32 %v14423_v0, %v14401_v41  ;;  %v15016_v41 = vld [vmem:[#allocation7 + $0xc34] ss:$24 sps:$4 sm:$0xff]   ;;  %v15017_v0 = vld [vmem:[#allocation7 + $0x960] ss:$24 sps:$4 sm:$0xff]  }
 0x8e5   :  { %v15025_v5 = vld [vmem:[#allocation7 + $0x994] ss:$24 sps:$4 sm:$0xff]   ;;  %9074 = vmatpush1.bf16.msra.mxu1 %v15017_v0  ;;  %v15062_v0 = vld [vmem:[#allocation7 + $0xdb0] ss:$24 sps:$4 sm:$0xff]  }
 0x8e6   :  { %9075 = vmatprep.subr.bf16.mxu1 %v15025_v5  ;;  %v15064_v19 = vld [vmem:[#allocation7 + $0xdb4] ss:$24 sps:$4 sm:$0xff]   ;;  %v15070_v5 = vld [vmem:[#allocation7 + $0xde4] ss:$24 sps:$4 sm:$0xff]  }
 0x8e9   :  { %v14443_v21 = vpop.f32.mrb[24].mxu0 }
 0x8ea   :  { %v14444_v18 = vpop.f32.mrb[25].mxu0 }
 0x8eb   :  { %v14445_v54 = vadd.f32 %v14444_v18, %v14443_v21  ;;  %v14446_v9 = vpop.f32.mrb[26].mxu0  ;;  %v15023_v21 = vld [vmem:[#allocation7 + $0x990] ss:$24 sps:$4 sm:$0xff]  }
 0x8ec   :  { %v14447_v7 = vpop.f32.mrb[27].mxu0  ;;  %v15026_v18 = vld [vmem:[#allocation7 + $0xc90] ss:$24 sps:$4 sm:$0xff]   ;;  %v15034_v9 = vld [vmem:[#allocation7 + $0xcc4] ss:$24 sps:$4 sm:$0xff]   ;;  %9076 = vmatpush1.bf16.msra.mxu1 %v15023_v21 }
 0x8ed   :  { %v6690_v13 = vadd.f32 %v14445_v54, %v6650_v58  ;;  %v15028_v58 = vld [vmem:[#allocation7 + $0xc94] ss:$24 sps:$4 sm:$0xff]   ;;  %v15031_v54 = vld [vmem:[#allocation7 + $0x9c4] ss:$24 sps:$4 sm:$0xff]   ;;  %v15029_v7 = vld [vmem:[#allocation7 + $0x9c0] ss:$24 sps:$4 sm:$0xff]  }
 0x8ee   :  { %9077 = vmatprep.subr.bf16.mxu1 %v15031_v54  ;;  %v15068_v21 = vld [vmem:[#allocation7 + $0xde0] ss:$24 sps:$4 sm:$0xff]   ;;  %v15076_v54 = vld [vmem:[#allocation7 + $0xe14] ss:$24 sps:$4 sm:$0xff]  }
 0x8ef   :  { %v6695_v45 = vadd.f32 %v6690_v13, %v5991_v3  ;;  %v15010_v3 = vld [vmem:[#allocation7 + $0xc04] ss:$24 sps:$4 sm:$0xff]   ;;  %v15032_v13 = vld [vmem:[#allocation7 + $0xcc0] ss:$24 sps:$4 sm:$0xff]  }
 0x8f0   :  { %9110 = vmatprep.subr.bf16.mxu0 %v15010_v3  ;;  %9078 = vmatpush1.bf16.msra.mxu1 %v15029_v7  ;;  %v15055_v3 = vld [vmem:[#allocation7 + $0xa84] ss:$24 sps:$4 sm:$0xff]   ;;  %v15074_v7 = vld [vmem:[#allocation7 + $0xe10] ss:$24 sps:$4 sm:$0xff]  }
 0x8f1   :  { %v6703_v48 = vadd.f32 %v13439_v57, %v6695_v45  ;;  %9111 = vmatpush1.bf16.msra.mxu0 %v15008_v23  ;;  %v15037_v57 = vld [vmem:[#allocation7 + $0x9f4] ss:$24 sps:$4 sm:$0xff]   ;;  %v15050_v23 = vld [vmem:[#allocation7 + $0xd50] ss:$24 sps:$4 sm:$0xff]  }
 0x8f2   :  { %9112 = vmatprep.subr.bf16.mxu0 %v15016_v41  ;;  %v15040_v45 = vld [vmem:[#allocation7 + $0xcf4] ss:$24 sps:$4 sm:$0xff]   ;;  %9079 = vmatprep.subr.bf16.mxu1 %v15037_v57  ;;  %v15053_v41 = vld [vmem:[#allocation7 + $0xa80] ss:$24 sps:$4 sm:$0xff]   ;;  %v15082_v57 = vld [vmem:[#allocation7 + $0xe44] ss:$24 sps:$4 sm:$0xff]  }
 0x8f3   :  { %v6704_v15 = vsel %vm2255_vm15, %v6703_v48, -inf }
 0x8f4   :  { %6705 = vmax.xlane.f32.xlu0 %v6704_v15  ;;  %v15038_v15 = vld [vmem:[#allocation7 + $0xcf0] ss:$24 sps:$4 sm:$0xff]  }
 0x8f5   :  { %9113 = vmatpush1.bf16.msra.mxu0 %v15014_v47  ;;  %v15061_v47 = vld [vmem:[#allocation7 + $0xab4] ss:$24 sps:$4 sm:$0xff]  }
 0x8f6   :  { %9114 = vmatprep.subr.bf16.mxu0 %v15022_v51  ;;  %v15059_v51 = vld [vmem:[#allocation7 + $0xab0] ss:$24 sps:$4 sm:$0xff]  }
 0x8f9   :  { %9115 = vmatpush1.bf16.msra.mxu0 %v15020_v27  ;;  %v15067_v27 = vld [vmem:[#allocation7 + $0xae4] ss:$24 sps:$4 sm:$0xff]  }
 0x8fa   :  { %9116 = vmatprep.subr.bf16.mxu0 %v15028_v58  ;;  %v15065_v58 = vld [vmem:[#allocation7 + $0xae0] ss:$24 sps:$4 sm:$0xff]  }
 0x8fd   :  { %9117 = vmatpush1.bf16.msra.mxu0 %v15026_v18  ;;  %v15073_v18 = vld [vmem:[#allocation7 + $0xb14] ss:$24 sps:$4 sm:$0xff]  }
 0x8fe   :  { %9118 = vmatprep.subr.bf16.mxu0 %v15034_v9  ;;  %v15071_v9 = vld [vmem:[#allocation7 + $0xb10] ss:$24 sps:$4 sm:$0xff]  }
 0x901   :  { %9119 = vmatpush1.bf16.msra.mxu0 %v15032_v13  ;;  %v15079_v13 = vld [vmem:[#allocation7 + $0xb44] ss:$24 sps:$4 sm:$0xff]  }
 0x902   :  { %9120 = vmatprep.subr.bf16.mxu0 %v15040_v45  ;;  %v15077_v45 = vld [vmem:[#allocation7 + $0xb40] ss:$24 sps:$4 sm:$0xff]  }
 0x905   :  { %9121 = vmatpush1.bf16.msra.mxu0 %v15038_v15  ;;  %v15085_v15 = vld [vmem:[#allocation7 + $0xb74] ss:$24 sps:$4 sm:$0xff]  }
 0x981   :  { %v6706_v14 = vpop.xlane.xlu0 %6705 }
 0x982   :  { %v6707_v43 = vsub.f32 %v6703_v48, %v6706_v14  ;;  %v15035_v48 = vld [vmem:[#allocation7 + $0x9f0] ss:$24 sps:$4 sm:$0xff]   ;;  %v15043_v14 = vld [vmem:[#allocation7 + $0xa24] ss:$24 sps:$4 sm:$0xff]  }
 0x983   :  { %9080 = vmatpush1.bf16.msra.mxu1 %v15035_v48  ;;  %v15080_v48 = vld [vmem:[#allocation7 + $0xe40] ss:$24 sps:$4 sm:$0xff]  }
 0x984   :  { %v6708_v63 = vmul.f32 1.442695, %v6707_v43  ;;  %v15046_v43 = vld [vmem:[#allocation7 + $0xd24] ss:$24 sps:$4 sm:$0xff]   ;;  %9081 = vmatprep.subr.bf16.mxu1 %v15043_v14  ;;  %v15088_v14 = vld [vmem:[#allocation7 + $0xe74] ss:$24 sps:$4 sm:$0xff]  }
 0x985   :  { %9122 = vmatprep.subr.bf16.mxu0 %v15046_v43  ;;  %v15083_v43 = vld [vmem:[#allocation7 + $0xb70] ss:$24 sps:$4 sm:$0xff]  }
 0x986   :  { %16201 = vpow2.f32 %v6708_v63  ;;  %v15041_v63 = vld [vmem:[#allocation7 + $0xa20] ss:$24 sps:$4 sm:$0xff]  }
 0x987   :  { %9082 = vmatpush1.bf16.msra.mxu1 %v15041_v63  ;;  %v15086_v63 = vld [vmem:[#allocation7 + $0xe70] ss:$24 sps:$4 sm:$0xff]  }
 0x988   :  { %9083 = vmatprep.subr.bf16.mxu1 %v15049_v36 }
 0x98b   :  { %9084 = vmatpush1.bf16.msra.mxu1 %v15047_v8  ;;  %v15091_v8 = vld [vmem:[#allocation7 + $0xba4] ss:$24 sps:$4 sm:$0xff]  }
 0x98c   :  { %9085 = vmatprep.subr.bf16.mxu1 %v15055_v3  ;;  %v15092_v3 = vld [vmem:[#allocation7 + $0xea0] ss:$24 sps:$4 sm:$0xff]  }
 0x98f   :  { %9086 = vmatpush1.bf16.msra.mxu1 %v15053_v41  ;;  %v16607_v41 = vmov 2  }
 0x990   :  { %v20753_v25 = vpop.eup %16201  ;;  %9087 = vmatprep.subr.bf16.mxu1 %v15061_v47  ;;  %v15095_v47 = vld [vmem:[#allocation7 + $0xbd0] ss:$24 sps:$4 sm:$0xff]  }
 0x991   :  { %v6710_v44 = vsel %vm2255_vm15, %v20753_v25, 0.0 }
 0x992   :  { %6711 = vadd.xlane.f32.xlu1 %v6710_v44  ;;  %v15044_v44 = vld [vmem:[#allocation7 + $0xd20] ss:$24 sps:$4 sm:$0xff]  }
 0x993   :  { %9123 = vmatpush1.bf16.msra.mxu0 %v15044_v44  ;;  %9088 = vmatpush1.bf16.msra.mxu1 %v15059_v51  ;;  %v15100_v51 = vld [vmem:[#allocation7 + $0xed4] ss:$24 sps:$4 sm:$0xff]  }
 0x994   :  { %9124 = vmatprep.subr.bf16.mxu0 %v15052_v61  ;;  %9089 = vmatprep.subr.bf16.mxu1 %v15067_v27  ;;  %v22275_v27 = vld [vmem:[#allocation57_spill] sm:$0xff] }
 0x997   :  { %9125 = vmatpush1.bf16.msra.mxu0 %v15050_v23  ;;  %9090 = vmatpush1.bf16.msra.mxu1 %v15065_v58  ;;  %v15089_v23 = vld [vmem:[#allocation7 + $0xba0] ss:$24 sps:$4 sm:$0xff]   ;;  %v22276_v58 = vld [vmem:[#allocation63_spill] sm:$0xff] }
 0x998   :  { %9126 = vmatprep.subr.bf16.mxu0 %v15058_v2  ;;  %9091 = vmatprep.subr.bf16.mxu1 %v15073_v18  ;;  %v15094_v2 = vld [vmem:[#allocation7 + $0xea4] ss:$24 sps:$4 sm:$0xff]  }
 0x99b   :  { %9127 = vmatpush1.bf16.msra.mxu0 %v15056_v30  ;;  %9092 = vmatpush1.bf16.msra.mxu1 %v15071_v9  ;;  %v15097_v30 = vld [vmem:[#allocation7 + $0xbd4] ss:$24 sps:$4 sm:$0xff]  }
 0x99c   :  { %9128 = vmatprep.subr.bf16.mxu0 %v15064_v19  ;;  %9093 = vmatprep.subr.bf16.mxu1 %v15079_v13  ;;  %v15098_v19 = vld [vmem:[#allocation7 + $0xed0] ss:$24 sps:$4 sm:$0xff]   ;;  %v22280_v13 = vld [vmem:[#allocation109_spill] sm:$0xff] }
 0x99d   :  { %v22279_v9 = vld [vmem:[#allocation68_spill] sm:$0xff] }
 0x99f   :  { %9129 = vmatpush1.bf16.msra.mxu0 %v15062_v0  ;;  %9094 = vmatpush1.bf16.msra.mxu1 %v15077_v45  ;;  %v15106_v0 = vld [vmem:[#allocation7 + $0x90c] ss:$24 sps:$4 sm:$0xff]  }
 0x9a0   :  { %9130 = vmatprep.subr.bf16.mxu0 %v15070_v5  ;;  %9095 = vmatprep.subr.bf16.mxu1 %v15085_v15  ;;  %v6876_v5 = vsel %vm463_vm3, %v22171_v34, %v22275_v27  ;;  %v22281_v45 = vld [vmem:[#allocation110_spill] sm:$0xff]  ;;  %v22282_v15 = vld [vmem:[#allocation84_spill] sm:$0xff] }
 0x9a1   :  { %v22292_v27 = vld [vmem:[#allocation60_spill] sm:$0xff] }
 0x9a3   :  { %9131 = vmatpush1.bf16.msra.mxu0 %v15068_v21  ;;  %9096 = vmatpush1.bf16.msra.mxu1 %v15083_v43  ;;  %v22277_v21 = vld [vmem:[#allocation48_spill] sm:$0xff]  ;;  %v22283_v43 = vld [vmem:[#allocation149_spill] sm:$0xff] }
 0x9a4   :  { %9132 = vmatprep.subr.bf16.mxu0 %v15076_v54  ;;  %9097 = vmatprep.subr.bf16.mxu1 %v15091_v8  ;;  %v6890_v18 = vsel %vm463_vm3, %v22277_v21, %v22276_v58  ;;  %v22278_v54 = vld [vmem:[#allocation73_spill] sm:$0xff]  ;;  %v22286_v8 = vld [vmem:[#allocation151_spill] sm:$0xff]  ;;  %v22294_v21 = vld [vmem:[#allocation66_spill] sm:$0xff] }
 0x9a7   :  { %9133 = vmatpush1.bf16.msra.mxu0 %v15074_v7  ;;  %9098 = vmatpush1.bf16.msra.mxu1 %v15089_v23  ;;  %v6770_v7 = vsel %vm463_vm3, %v22279_v9, %v22278_v54  ;;  %v22296_v9 = vld [vmem:[#allocation67_spill] sm:$0xff] }
 0x9a8   :  { %9134 = vmatprep.subr.bf16.mxu0 %v15082_v57  ;;  %9099 = vmatprep.subr.bf16.mxu1 %v15097_v30  ;;  %v6877_v57 = vsel %vm465_vm4, %v22280_v13, %v6876_v5  ;;  %v22293_v5 = vld [vmem:[#allocation34_spill] sm:$0xff] }
 0x9a9   :  { %v6878_v34 = vsel %vm467_vm5, %v22283_v43, %v6877_v57  ;;  %v6881_v58 = vsel %vm459_vm1, %v22293_v5, %v22292_v27  ;;  %v22298_v57 = vld [vmem:[#allocation50_spill] sm:$0xff]  ;;  %v22309_v27 = vld [vmem:[#allocation37_spill] sm:$0xff] }
 0x9aa   :  { %v6879_v23 = vsel %vm469_vm6, %v22286_v8, %v6878_v34  ;;  %v22301_v43 = vld [vmem:[#allocation62_spill] sm:$0xff] }
 0x9ab   :  { %9135 = vmatpush1.bf16.msra.mxu0 %v15080_v48  ;;  %9100 = vmatpush1.bf16.msra.mxu1 %v15095_v47  ;;  %v6891_v48 = vsel %vm465_vm4, %v22281_v45, %v6890_v18  ;;  %v22289_v47 = vld [vmem:[#allocation22_spill] sm:$0xff]  ;;  %v22295_v18 = vld [vmem:[#allocation43_spill] sm:$0xff]  ;;  %v6882_v45 = vsel %vm461_vm2, %v22298_v57, %v6881_v58  ;;  %v22310_v58 = vld [vmem:[#allocation85_spill] sm:$0xff] }
 0x9ac   :  { %9136 = vmatprep.subr.bf16.mxu0 %v15088_v14  ;;  %v6771_v14 = vsel %vm465_vm4, %v22282_v15, %v6770_v7  ;;  %v6789_v54 = vsel %vm459_vm1, %v22295_v18, %v22294_v21  ;;  %v22297_v7 = vld [vmem:[#allocation31_spill] sm:$0xff]  ;;  %v22311_v18 = vld [vmem:[#allocation81_spill] sm:$0xff] }
 0x9ad   :  { %v6803_v13 = vsel %vm459_vm1, %v22297_v7, %v22296_v9  ;;  %v22312_v9 = vld [vmem:[#allocation69_spill] sm:$0xff] }
 0x9af   :  { %9137 = vmatpush1.bf16.msra.mxu0 %v15086_v63  ;;  %v22284_v63 = vld [vmem:[#allocation52_spill] sm:$0xff] }
 0x9b0   :  { %9138 = vmatprep.subr.bf16.mxu0 %v15094_v2 }
 0x9b3   :  { %9139 = vmatpush1.bf16.msra.mxu0 %v15092_v3  ;;  %v22287_v3 = vld [vmem:[#allocation36_spill] sm:$0xff] }
 0x9b4   :  { %9140 = vmatprep.subr.bf16.mxu0 %v15100_v51 }
 0x9b7   :  { %9141 = vmatpush1.bf16.msra.mxu0 %v15098_v19  ;;  %v22290_v19 = vld [vmem:[#allocation44_spill] sm:$0xff] }
 0x9b8   :  { %9192 = vmatprep.subr.bf16.mxu0 %v15106_v0  ;;  %v6775_v51 = vsel %vm459_vm1, %v22290_v19, %v22289_v47  ;;  %v22307_v19 = vld [vmem:[#allocation58_spill] sm:$0xff] }
 0xa1f   :  { %v6712_v44 = vpop.xlane.xlu1 %6711 }
 0xa20   :  { %16203 = vrcp.f32 %v6712_v44  ;;  %v6892_v44 = vsel %vm467_vm5, %v22284_v63, %v6891_v48  ;;  %v22299_v48 = vld [vmem:[#allocation79_spill] sm:$0xff]  ;;  %v22302_v63 = vld [vmem:[#allocation80_spill] sm:$0xff] }
 0xa21   :  { %v6893_v2 = vsel %vm469_vm6, %v22287_v3, %v6892_v44  ;;  %v6790_v15 = vsel %vm461_vm2, %v22299_v48, %v6789_v54  ;;  %v6804_v44 = vsel %vm461_vm2, %v22302_v63, %v6803_v13  ;;  %v22305_v3 = vld [vmem:[#allocation78_spill] sm:$0xff]  ;;  %v22313_v13 = vld [vmem:[#allocation59_spill] sm:$0xff]  ;;  %v22316_v63 = vld [vmem:[#allocation72_spill] sm:$0xff] }
 0xa22   :  { %v22314_v48 = vld [vmem:[#allocation86_spill] sm:$0xff] }
 0xa2a   :  { %v16204_v36 = vpop.eup %16203 }
 0xa2b   :  { %v6714_v61 = vmul.f32 %v16204_v36, %v20753_v25  ;;  %v15103_v25 = vld [vmem:[#allocation7 + $0xf04] ss:$24 sps:$4 sm:$0xff]  }
 0xa2c   :  { %9151 = vmatprep.subr.bf16.mxu1 %v15103_v25  ;;  %v22285_v36 = vld [vmem:[#allocation82_spill] sm:$0xff]  ;;  %v22291_v25 = vld [vmem:[#allocation76_spill] sm:$0xff] }
 0xa2d   :  { %6823 = vperm.xlu1 %14739, %v6714_v61   ;;  %6717 = vperm.xlu0 %14737, %v6714_v61   ;;  %v6776_v0 = vsel %vm461_vm2, %v22291_v25, %v6775_v51  ;;  %v22308_v25 = vld [vmem:[#allocation41_spill] sm:$0xff] }
 0xa2e   :  { %v6909_v5 = vsel %vm459_vm1, %v22309_v27, %v22308_v25  ;;  %v6777_v7 = vsel %vm463_vm3, %v22312_v9, %v6776_v0  ;;  %v22321_v27 = vld [vmem:[#allocation98_spill] sm:$0xff]  ;;  %v22324_v9 = vld [vmem:[#allocation145_spill] sm:$0xff] }
 0xa2f   :  { %v6910_v57 = vsel %vm461_vm2, %v22313_v13, %v6909_v5 }
 0xa31   :  { %12924 = vrot.lane.b32.xlu1 %v6714_v61, %s16606_s7  ;;  %14740 = vset.pattern.permute.xlu0 %v16607_v41  ;;  %v22288_v41 = vld [vmem:[#allocation94_spill] sm:$0xff] }
 0xa32   :  { %6935 = vperm.xlu0 %14740, %v6714_v61   ;;  %v6772_v61 = vsel %vm467_vm5, %v22285_v36, %v6771_v14  ;;  %v22300_v14 = vld [vmem:[#allocation38_spill] sm:$0xff]  ;;  %v22303_v36 = vld [vmem:[#allocation77_spill] sm:$0xff] }
 0xa33   :  { %v6773_v30 = vsel %vm469_vm6, %v22288_v41, %v6772_v61  ;;  %v6895_v34 = vsel %vm459_vm1, %v22301_v43, %v22300_v14  ;;  %v22304_v61 = vld [vmem:[#allocation70_spill] sm:$0xff]  ;;  %v22306_v41 = vld [vmem:[#allocation71_spill] sm:$0xff]  ;;  %v6778_v14 = vsel %vm465_vm4, %v22314_v48, %v6777_v7  ;;  %v22325_v7 = vld [vmem:[#allocation49_spill] sm:$0xff] }
 0xa34   :  { %v6784_v8 = vsel %vm463_vm3, %v22304_v61, %v22303_v36  ;;  %v6798_v47 = vsel %vm463_vm3, %v22306_v41, %v22305_v3  ;;  %v6896_v51 = vsel %vm461_vm2, %v22307_v19, %v6895_v34  ;;  %v22315_v43 = vld [vmem:[#allocation55_spill] sm:$0xff]  ;;  %v6791_v36 = vsel %vm463_vm3, %v22316_v63, %v6790_v15  ;;  %v22318_v3 = vld [vmem:[#allocation142_spill] sm:$0xff]  ;;  %v22320_v19 = vld [vmem:[#allocation56_spill] sm:$0xff] }
 0xa35   :  { %v6785_v21 = vsel %vm465_vm4, %v22310_v58, %v6784_v8  ;;  %v6799_v54 = vsel %vm465_vm4, %v22311_v18, %v6798_v47  ;;  %v6883_v34 = vsel %vm463_vm3, %v22315_v43, %v6882_v45  ;;  %v22317_v61 = vld [vmem:[#allocation75_spill] sm:$0xff]  ;;  %v22319_v47 = vld [vmem:[#allocation90_spill] sm:$0xff]  ;;  %v6897_v25 = vsel %vm463_vm3, %v22320_v19, %v6896_v51  ;;  %v22326_v48 = vld [vmem:[#allocation96_spill] sm:$0xff] }
 0xa36   :  { %v6805_v8 = vsel %vm463_vm3, %v22317_v61, %v6804_v44  ;;  %v6884_v41 = vsel %vm465_vm4, %v22318_v3, %v6883_v34  ;;  %v6792_v0 = vsel %vm465_vm4, %v22319_v47, %v6791_v36  ;;  %v22322_v58 = vld [vmem:[#allocation83_spill] sm:$0xff]  ;;  %v22323_v18 = vld [vmem:[#allocation74_spill] sm:$0xff]  ;;  %v6898_v44 = vsel %vm465_vm4, %v22324_v9, %v6897_v25  ;;  %v22327_v34 = vld [vmem:[#allocation45_spill] sm:$0xff] }
 0xa37   :  { %v6806_v5 = vsel %vm465_vm4, %v22321_v27, %v6805_v8  ;;  %v6786_v45 = vsel %vm467_vm5, %v22322_v58, %v6785_v21  ;;  %v6800_v15 = vsel %vm467_vm5, %v22323_v18, %v6799_v54  ;;  %v6911_v13 = vsel %vm463_vm3, %v22325_v7, %v6910_v57  ;;  %v22328_v63 = vld [vmem:[#allocation87_spill] sm:$0xff]  ;;  %v22329_v61 = vld [vmem:[#allocation102_spill] sm:$0xff]  ;;  %v22330_v8 = vld [vmem:[#allocation88_spill] sm:$0xff] }
 0xa38   :  { %v6787_v43 = vsel %vm469_vm6, %v22326_v48, %v6786_v45  ;;  %v6801_v51 = vsel %vm469_vm6, %v22327_v34, %v6800_v15  ;;  %v6779_v36 = vsel %vm467_vm5, %v22328_v63, %v6778_v14  ;;  %v6912_v21 = vsel %vm465_vm4, %v22329_v61, %v6911_v13  ;;  %v22331_v3 = vld [vmem:[#allocation143_spill] sm:$0xff]  ;;  %v22334_v58 = vld [vmem:[#allocation144_spill] sm:$0xff]  ;;  %v22338_v48 = vld [vmem:[#allocation42_spill] sm:$0xff] }
 0xa39   :  { %v6780_v54 = vsel %vm469_vm6, %v22330_v8, %v6779_v36  ;;  %v6885_v47 = vsel %vm467_vm5, %v22331_v3, %v6884_v41  ;;  %v22332_v19 = vld [vmem:[#allocation91_spill] sm:$0xff]  ;;  %v22335_v18 = vld [vmem:[#allocation92_spill] sm:$0xff]  ;;  %v6880_v41 = vsel %vm471_vm7, %v22338_v48, %v6879_v23  ;;  %v22339_v34 = vld [vmem:[#allocation105_spill] sm:$0xff] }
 0xa3a   :  { %v6793_v57 = vsel %vm467_vm5, %v22332_v19, %v6792_v0  ;;  %v22333_v25 = vld [vmem:[#allocation99_spill] sm:$0xff]  ;;  %v6886_v45 = vsel %vm469_vm6, %v22334_v58, %v6885_v47  ;;  %v22337_v7 = vld [vmem:[#allocation100_spill] sm:$0xff]  ;;  %v6894_v0 = vsel %vm471_vm7, %v22339_v34, %v6893_v2  ;;  %v22343_v47 = vld [vmem:[#allocation97_spill] sm:$0xff] }
 0xa3b   :  { %v6807_v27 = vsel %vm467_vm5, %v22333_v25, %v6806_v5  ;;  %v6794_v14 = vsel %vm469_vm6, %v22335_v18, %v6793_v57  ;;  %v22336_v15 = vld [vmem:[#allocation147_spill] sm:$0xff]  ;;  %v22340_v63 = vld [vmem:[#allocation148_spill] sm:$0xff]  ;;  %v22344_v19 = vld [vmem:[#allocation65_spill] sm:$0xff] }
 0xa3c   :  { %v6899_v9 = vsel %vm467_vm5, %v22336_v15, %v6898_v44  ;;  %v6808_v13 = vsel %vm469_vm6, %v22337_v7, %v6807_v27  ;;  %v22341_v36 = vld [vmem:[#allocation115_spill] sm:$0xff]  ;;  %v6788_v44 = vsel %vm471_vm7, %v22343_v47, %v6787_v43  ;;  %v6802_v57 = vsel %vm471_vm7, %v22344_v19, %v6801_v51  ;;  %v22345_v25 = vld [vmem:[#allocation113_spill] sm:$0xff]  ;;  %v22347_v58 = vld [vmem:[#allocation146_spill] sm:$0xff] }
 0xa3d   :  { %v6900_v5 = vsel %vm469_vm6, %v22340_v63, %v6899_v9  ;;  %v6913_v61 = vsel %vm467_vm5, %v22341_v36, %v6912_v21  ;;  %v22342_v8 = vld [vmem:[#allocation95_spill] sm:$0xff]  ;;  %v22346_v27 = vld [vmem:[#allocation89_spill] sm:$0xff]  ;;  %v6887_v18 = vsel %vm471_vm7, %v22347_v58, %v6886_v45  ;;  %v22353_v34 = vld [vmem:[#allocation128_spill] sm:$0xff] }
 0xa3e   :  { %v6774_v3 = vsel %vm471_vm7, %v22342_v8, %v6773_v30  ;;  %v6914_v23 = vsel %vm469_vm6, %v22345_v25, %v6913_v61  ;;  %v6781_v2 = vsel %vm471_vm7, %v22346_v27, %v6780_v54  ;;  %v22348_v15 = vld [vmem:[#allocation93_spill] sm:$0xff]  ;;  %v22351_v43 = vld [vmem:[#allocation127_spill] sm:$0xff]  ;;  %v7014_v54 = vsel %vm459_vm1, %v22270_v1, %v22272_v59  ;;  %v22354_v36 = vld [vmem:[#allocation150_spill] sm:$0xff] }
 0xa3f   :  { %v6795_v21 = vsel %vm471_vm7, %v22348_v15, %v6794_v14  ;;  %v22349_v9 = vld [vmem:[#allocation101_spill] sm:$0xff]  ;;  %v22352_v51 = vld [vmem:[#allocation119_spill] sm:$0xff]  ;;  %v6901_v45 = vsel %vm471_vm7, %v22354_v36, %v6900_v5  ;;  %v7015_v61 = vsel %vm461_vm2, %v22268_v29, %v7014_v54  ;;  %v6993_v59 = vsel %vm459_vm1, %v19608_v52, %v22231_v46  ;;  %v22358_v25 = vld [vmem:[#allocation106_spill] sm:$0xff] }
 0xa40   :  { %v6809_v30 = vsel %vm471_vm7, %v22349_v9, %v6808_v13  ;;  %v22350_v7 = vld [vmem:[#allocation117_spill] sm:$0xff]  ;;  %v7000_v63 = vsel %vm459_vm1, %v22353_v34, %v22352_v51  ;;  %v6994_v29 = vsel %vm461_vm2, %v20354_v33, %v6993_v59  ;;  %v22360_v58 = vld [vmem:[#allocation108_spill] sm:$0xff] }
 0xa41   :  { %v6986_v48 = vsel %vm459_vm1, %v22351_v43, %v22350_v7  ;;  %v7001_v13 = vsel %vm461_vm2, %v22263_v32, %v7000_v63  ;;  %v22355_v8 = vld [vmem:[#allocation53_spill] sm:$0xff]  ;;  %v7016_v32 = vsel %vm463_vm3, %v22269_v35, %v7015_v61  ;;  %v22356_v35 = vld [vmem:[#allocation64_spill] sm:$0xff]  ;;  %v22362_v7 = vld [vmem:[#allocation107_spill] sm:$0xff] }
 0xa42   :  { %v6987_v14 = vsel %vm461_vm2, %v19672_v62, %v6986_v48  ;;  %v6915_v47 = vsel %vm471_vm7, %v22355_v8, %v6914_v23  ;;  %v7002_v1 = vsel %vm463_vm3, %v22264_v22, %v7001_v13  ;;  %v7007_v62 = vsel %vm459_vm1, %v22245_v42, %v22244_v24  ;;  %v22359_v23 = vld [vmem:[#allocation47_spill] sm:$0xff]  ;;  %v22361_v15 = vld [vmem:[#allocation40_spill] sm:$0xff] }
 0xa43   :  { %v6988_v19 = vsel %vm463_vm3, %v19740_v53, %v6987_v14  ;;  %v7008_v53 = vsel %vm461_vm2, %v20469_v38, %v7007_v62  ;;  %v7021_v22 = vsel %vm459_vm1, %v22255_v28, %v22253_v50  ;;  %v7003_v46 = vsel %vm465_vm4, %v20630_v37, %v7002_v1  ;;  %v22357_v37 = vld [vmem:[#allocation103_spill] sm:$0xff]  ;;  %v22364_v34 = vld [vmem:[#allocation116_spill] sm:$0xff] }
 0xa44   :  { %v6989_v52 = vsel %vm465_vm4, %v20412_v20, %v6988_v19  ;;  %v7017_v24 = vsel %vm465_vm4, %v20688_v26, %v7016_v32  ;;  %v7022_v42 = vsel %vm461_vm2, %v20537_v16, %v7021_v22  ;;  %v7004_v38 = vsel %vm467_vm5, %v20646_v12, %v7003_v46  ;;  %v22363_v48 = vld [vmem:[#allocation123_spill] sm:$0xff] }
 0xa45   :  { %v6990_v33 = vsel %vm467_vm5, %v20433_v40, %v6989_v52  ;;  %v6995_v50 = vsel %vm463_vm3, %v22356_v35, %v6994_v29  ;;  %v7009_v20 = vsel %vm463_vm3, %v20489_v6, %v7008_v53  ;;  %v7018_v28 = vsel %vm467_vm5, %v20694_v39, %v7017_v24 }
 0xa46   :  { %v6996_v26 = vsel %vm465_vm4, %v22357_v37, %v6995_v50  ;;  %v7010_v16 = vsel %vm465_vm4, %v20501_v11, %v7009_v20  ;;  %v7023_v40 = vsel %vm463_vm3, %v20561_v55, %v7022_v42  ;;  %v6991_v12 = vsel %vm469_vm6, %v20441_v10, %v6990_v33  ;;  %v15101_v37 = vld [vmem:[#allocation7 + $0xf00] ss:$24 sps:$4 sm:$0xff]  }
 0xa47   :  { %v7005_v5 = vsel %vm469_vm6, %v20662_v56, %v7004_v38  ;;  %v7019_v6 = vsel %vm469_vm6, %v20713_v31, %v7018_v28  ;;  %v7024_v39 = vsel %vm465_vm4, %v22358_v25, %v7023_v40  ;;  %v6992_v27 = vsel %vm471_vm7, %v22359_v23, %v6991_v12  ;;  %v15104_v12 = vld [vmem:[#allocation7 + $0x908] ss:$24 sps:$4 sm:$0xff]   ;;  %v15112_v25 = vld [vmem:[#allocation7 + $0x93c] ss:$24 sps:$4 sm:$0xff]   ;;  %v15110_v23 = vld [vmem:[#allocation7 + $0x938] ss:$24 sps:$4 sm:$0xff]  }
 0xa48   :  { %v7006_v11 = vsel %vm471_vm7, %v20682_v17, %v7005_v5  ;;  %v6997_v55 = vsel %vm467_vm5, %v22360_v58, %v6996_v26  ;;  %v7011_v10 = vsel %vm467_vm5, %v22361_v15, %v7010_v16  ;;  %v7020_v31 = vsel %vm471_vm7, %v20728_v49, %v7019_v6  ;;  %v15109_v5 = vld [vmem:[#allocation7 + $0xf34] ss:$24 sps:$4 sm:$0xff]   ;;  %v15113_v58 = vld [vmem:[#allocation7 + $0xf60] ss:$24 sps:$4 sm:$0xff]  }
 0xa49   :  { %v6998_v43 = vsel %vm469_vm6, %v22362_v7, %v6997_v55  ;;  %v7012_v51 = vsel %vm469_vm6, %v22363_v48, %v7011_v10  ;;  %v7025_v17 = vsel %vm467_vm5, %v22364_v34, %v7024_v39  ;;  %v15107_v39 = vld [vmem:[#allocation7 + $0xf30] ss:$24 sps:$4 sm:$0xff]   ;;  %v15121_v15 = vld [vmem:[#allocation7 + $0xf94] ss:$24 sps:$4 sm:$0xff]   ;;  %vm16608_vm1 = vmmov 0  }
 0xa4a   :  { %v7026_v53 = vsel %vm469_vm6, %v20611_v4, %v7025_v17  ;;  %v15116_v55 = vld [vmem:[#allocation7 + $0x968] ss:$24 sps:$4 sm:$0xff]   ;;  %v15124_v10 = vld [vmem:[#allocation7 + $0x99c] ss:$24 sps:$4 sm:$0xff]   ;;  %v15130_v7 = vld [vmem:[#allocation7 + $0x9cc] ss:$24 sps:$4 sm:$0xff]  }
 0xa4b   :  { %v15128_v48 = vld [vmem:[#allocation7 + $0x9c8] ss:$24 sps:$4 sm:$0xff]   ;;  %v15136_v34 = vld [vmem:[#allocation7 + $0x9fc] ss:$24 sps:$4 sm:$0xff]   ;;  %vm12927_vm2 = vcmask 7168   ;;  %vm12929_vm3 = vcmask 31744  }
 0xa4c   :  { %v15131_v17 = vld [vmem:[#allocation7 + $0xff0] ss:$24 sps:$4 sm:$0xff]  }
 0xaac   :  { %v6824_v9 = vpop.permute.xlu1 %6823  ;;  %v6718_v56 = vpop.permute.xlu0 %6717 }
 0xaad   :  { %v6922_v63 = vmul.f32 %v6880_v41, %v6824_v9  ;;  %v6924_v54 = vmul.f32 %v6894_v0, %v6824_v9  ;;  %v6926_v36 = vmul.f32 %v20750_v60, %v6824_v9  ;;  %v6816_v14 = vmul.f32 %v6774_v3, %v6718_v56  ;;  %v22365_v0 = vld [vmem:[#allocation112_spill] sm:$0xff] }
 0xaae   :  { %v6818_v13 = vmul.f32 %v6788_v44, %v6718_v56  ;;  %v6820_v61 = vmul.f32 %v6802_v57, %v6718_v56  ;;  %v6817_v8 = vmul.f32 %v6781_v2, %v6718_v56  ;;  %v6923_v19 = vmul.f32 %v6887_v18, %v6824_v9  ;;  %v22366_v3 = vld [vmem:[#allocation124_spill] sm:$0xff]  ;;  %v22367_v57 = vld [vmem:[#allocation114_spill] sm:$0xff] }
 0xaaf   :  { %v6819_v1 = vmul.f32 %v6795_v21, %v6718_v56  ;;  %v6925_v49 = vmul.f32 %v6901_v45, %v6824_v9  ;;  %v6928_v59 = vadd.f32 %v6922_v63, %v6816_v14  ;;  %v6821_v62 = vmul.f32 %v6809_v30, %v6718_v56  ;;  %v15122_v56 = vld [vmem:[#allocation7 + $0x998] ss:$24 sps:$4 sm:$0xff]  }
 0xab0   :  { %v6930_v32 = vadd.f32 %v6924_v54, %v6818_v13  ;;  %v6927_v29 = vmul.f32 %v6915_v47, %v6824_v9  ;;  %v6932_v22 = vadd.f32 %v6926_v36, %v6820_v61  ;;  %v6929_v41 = vadd.f32 %v6923_v19, %v6817_v8  ;;  %v15119_v9 = vld [vmem:[#allocation7 + $0xf90] ss:$24 sps:$4 sm:$0xff]   ;;  %v15139_v54 = vld [vmem:[#allocation7 + $0x1024] ss:$24 sps:$4 sm:$0xff]   ;;  %v15137_v14 = vld [vmem:[#allocation7 + $0x1020] ss:$24 sps:$4 sm:$0xff]  }
 0xab1   :  { %v6936_v52 = vpop.permute.xlu0 %6935  ;;  %v6999_v60 = vsel %vm471_vm7, %v22365_v0, %v6998_v43  ;;  %v7013_v44 = vsel %vm471_vm7, %v22366_v3, %v7012_v51  ;;  %v7027_v2 = vsel %vm471_vm7, %v22367_v57, %v7026_v53  ;;  %v6931_v47 = vadd.f32 %v6925_v49, %v6819_v1  ;;  %v15125_v43 = vld [vmem:[#allocation7 + $0xfc0] ss:$24 sps:$4 sm:$0xff]   ;;  %v15133_v51 = vld [vmem:[#allocation7 + $0xff4] ss:$24 sps:$4 sm:$0xff]   ;;  %v15143_v19 = vld [vmem:[#allocation7 + $0x1050] ss:$24 sps:$4 sm:$0xff]  }
 0xab2   :  { %v7034_v18 = vmul.f32 %v6992_v27, %v6936_v52  ;;  %v7036_v21 = vmul.f32 %v7006_v11, %v6936_v52  ;;  %v7038_v30 = vmul.f32 %v7020_v31, %v6936_v52  ;;  %v7035_v45 = vmul.f32 %v6999_v60, %v6936_v52  ;;  %v15115_v27 = vld [vmem:[#allocation7 + $0xf64] ss:$24 sps:$4 sm:$0xff]   ;;  %v15134_v63 = vld [vmem:[#allocation7 + $0x9f8] ss:$24 sps:$4 sm:$0xff]   ;;  %v15140_v13 = vld [vmem:[#allocation7 + $0xa28] ss:$24 sps:$4 sm:$0xff]  }
 0xab3   :  { %v7037_v46 = vmul.f32 %v7013_v44, %v6936_v52  ;;  %v6933_v24 = vadd.f32 %v6927_v29, %v6821_v62  ;;  %v7039_v4 = vmul.f32 %v7027_v2, %v6936_v52  ;;  %v15118_v11 = vld [vmem:[#allocation7 + $0x96c] ss:$24 sps:$4 sm:$0xff]   ;;  %v15148_v8 = vld [vmem:[#allocation7 + $0xa5c] ss:$24 sps:$4 sm:$0xff]   ;;  %v15146_v1 = vld [vmem:[#allocation7 + $0xa58] ss:$24 sps:$4 sm:$0xff]  }
 0xab4   :  { %v7041_v42 = vadd.f32 %v7035_v45, %v6929_v41  ;;  %v7040_v33 = vadd.f32 %v7034_v18, %v6928_v59  ;;  %v7042_v38 = vadd.f32 %v7036_v21, %v6930_v32  ;;  %v20994_v35 = vadd.f32 %v7038_v30, %v6932_v22  ;;  %v15127_v31 = vld [vmem:[#allocation7 + $0xfc4] ss:$24 sps:$4 sm:$0xff]   ;;  %v15145_v61 = vld [vmem:[#allocation7 + $0x1054] ss:$24 sps:$4 sm:$0xff]   ;;  %v15149_v62 = vld [vmem:[#allocation7 + $0x1080] ss:$24 sps:$4 sm:$0xff]  }
 0xab5   :  { %v7043_v50 = vadd.f32 %v7037_v46, %v6931_v47  ;;  %v7045_v20 = vadd.f32 %v7039_v4, %v6933_v24  ;;  %v15142_v36 = vld [vmem:[#allocation7 + $0xa2c] ss:$24 sps:$4 sm:$0xff]   ;;  %v15152_v32 = vld [vmem:[#allocation7 + $0xa88] ss:$24 sps:$4 sm:$0xff]   ;;  %v15160_v53 = vld [vmem:[#allocation7 + $0xabc] ss:$24 sps:$4 sm:$0xff]  }
 0xab6   :  { %v20996_v28 = vpack.c.bf16 %v7041_v42, %v7041_v42  ;;  %v20998_v26 = vpack.c.bf16 %v7040_v33, %v7040_v33  ;;  %v21000_v16 = vpack.c.bf16 %v7042_v38, %v7042_v38  ;;  %v15151_v49 = vld [vmem:[#allocation7 + $0x1084] ss:$24 sps:$4 sm:$0xff]   ;;  %v15157_v29 = vld [vmem:[#allocation7 + $0x10b4] ss:$24 sps:$4 sm:$0xff]   ;;  %v15155_v22 = vld [vmem:[#allocation7 + $0x10b0] ss:$24 sps:$4 sm:$0xff]  }
 0xab7   :  { %v21002_v40 = vpack.c.bf16 %v7043_v50, %v7043_v50  ;;  %v21007_v6 = vpack.c.bf16 %v7045_v20, %v7045_v20  ;;  %v15154_v59 = vld [vmem:[#allocation7 + $0xa8c] ss:$24 sps:$4 sm:$0xff]   ;;  %v15158_v52 = vld [vmem:[#allocation7 + $0xab8] ss:$24 sps:$4 sm:$0xff]   ;;  %v15164_v3 = vld [vmem:[#allocation7 + $0xae8] ss:$24 sps:$4 sm:$0xff]  }
 0xab8   :  { %9101 = vmatprep.mubr.bf16.mxu1 %v20996_v28  ;;  %v15163_v41 = vld [vmem:[#allocation7 + $0x10e4] ss:$24 sps:$4 sm:$0xff]   ;;  %v15161_v60 = vld [vmem:[#allocation7 + $0x10e0] ss:$24 sps:$4 sm:$0xff]   ;;  %v15169_v44 = vld [vmem:[#allocation7 + $0x1114] ss:$24 sps:$4 sm:$0xff]  }
 0xab9   :  { %9142 = vmatprep.mubr.bf16.mxu0 %v21002_v40  ;;  %9102 = vmatmul.mubr.bf16.vlgmr.msra.gmra.mrb[28].mxu1 %v20998_v26  ;;  %v15166_v0 = vld [vmem:[#allocation7 + $0xaec] ss:$24 sps:$4 sm:$0xff]   ;;  %v15172_v57 = vld [vmem:[#allocation7 + $0xb1c] ss:$24 sps:$4 sm:$0xff]   ;;  %v15167_v2 = vld [vmem:[#allocation7 + $0x1110] ss:$24 sps:$4 sm:$0xff]  }
 0xaba   :  { %9143 = vmatmul.mubr.bf16.vlgmr.msra.gmra.mrb[28].mxu0 %v21000_v16  ;;  %9152 = vmatpush1.bf16.msra.mxu1 %v15101_v37  ;;  %v15170_v18 = vld [vmem:[#allocation7 + $0xb18] ss:$24 sps:$4 sm:$0xff]   ;;  %v15175_v21 = vld [vmem:[#allocation7 + $0x1144] ss:$24 sps:$4 sm:$0xff]   ;;  %v15176_v47 = vld [vmem:[#allocation7 + $0xb48] ss:$24 sps:$4 sm:$0xff]  }
 0xabb   :  { %9193 = vmatpush1.bf16.msra.mxu0 %v15104_v12  ;;  %9183 = vmatprep.mubr.bf16.mxu1 %v21007_v6  ;;  %v15178_v30 = vld [vmem:[#allocation7 + $0xb4c] ss:$24 sps:$4 sm:$0xff]   ;;  %v15173_v45 = vld [vmem:[#allocation7 + $0x1140] ss:$24 sps:$4 sm:$0xff]   ;;  %v15184_v24 = vld [vmem:[#allocation7 + $0xb7c] ss:$24 sps:$4 sm:$0xff]  }
 0xabc   :  { %9224 = vmatprep.mubr.bf16.mxu0 %v20996_v28  ;;  %9153 = vmatprep.subr.bf16.mxu1 %v15109_v5  ;;  %v15181_v46 = vld [vmem:[#allocation7 + $0x1174] ss:$24 sps:$4 sm:$0xff]   ;;  %v15179_v4 = vld [vmem:[#allocation7 + $0x1170] ss:$24 sps:$4 sm:$0xff]   ;;  %v15187_v33 = vld [vmem:[#allocation7 + $0x11a4] ss:$24 sps:$4 sm:$0xff]  }
 0xabd   :  { %9194 = vmatprep.subr.bf16.mxu0 %v15112_v25  ;;  %v15182_v42 = vld [vmem:[#allocation7 + $0xb78] ss:$24 sps:$4 sm:$0xff]   ;;  %v15190_v38 = vld [vmem:[#allocation7 + $0xbac] ss:$24 sps:$4 sm:$0xff]   ;;  %v15188_v20 = vld [vmem:[#allocation7 + $0xba8] ss:$24 sps:$4 sm:$0xff]  }
 0xabe   :  { %9154 = vmatpush1.bf16.msra.mxu1 %v15107_v39  ;;  %v15185_v50 = vld [vmem:[#allocation7 + $0x11a0] ss:$24 sps:$4 sm:$0xff]   ;;  %v15193_v37 = vld [vmem:[#allocation7 + $0x11d4] ss:$24 sps:$4 sm:$0xff]   ;;  %v15191_v5 = vld [vmem:[#allocation7 + $0x11d0] ss:$24 sps:$4 sm:$0xff]  }
 0xabf   :  { %9195 = vmatpush1.bf16.msra.mxu0 %v15110_v23  ;;  %9155 = vmatprep.subr.bf16.mxu1 %v15115_v27  ;;  %v15196_v12 = vld [vmem:[#allocation7 + $0xbdc] ss:$24 sps:$4 sm:$0xff]   ;;  %v15194_v25 = vld [vmem:[#allocation7 + $0xbd8] ss:$24 sps:$4 sm:$0xff]   ;;  %v15199_v39 = vld [vmem:[#allocation7 + $0xc0c] ss:$24 sps:$4 sm:$0xff]  }
 0xac0   :  { %9196 = vmatprep.subr.bf16.mxu0 %v15118_v11  ;;  %v15202_v23 = vld [vmem:[#allocation7 + $0xf0c] ss:$24 sps:$4 sm:$0xff]   ;;  %v15197_v27 = vld [vmem:[#allocation7 + $0xc08] ss:$24 sps:$4 sm:$0xff]   ;;  %v21014_v11 = vpack.c.bf16 %v20994_v35, %v20994_v35 }
 0xac1   :  { %v15214_v35 = vld [vmem:[#allocation7 + $0xf6c] ss:$24 sps:$4 sm:$0xff]  }
 0xac2   :  { %9156 = vmatpush1.bf16.msra.mxu1 %v15113_v58  ;;  %v15200_v58 = vld [vmem:[#allocation7 + $0xf08] ss:$24 sps:$4 sm:$0xff]  }
 0xac3   :  { %9197 = vmatpush1.bf16.msra.mxu0 %v15116_v55  ;;  %9157 = vmatprep.subr.bf16.mxu1 %v15121_v15  ;;  %v15205_v55 = vld [vmem:[#allocation7 + $0xc3c] ss:$24 sps:$4 sm:$0xff]  }
 0xac4   :  { %9198 = vmatprep.subr.bf16.mxu0 %v15124_v10  ;;  %v15208_v15 = vld [vmem:[#allocation7 + $0xf3c] ss:$24 sps:$4 sm:$0xff]   ;;  %v15203_v10 = vld [vmem:[#allocation7 + $0xc38] ss:$24 sps:$4 sm:$0xff]  }
 0xac6   :  { %9158 = vmatpush1.bf16.msra.mxu1 %v15119_v9  ;;  %v15206_v9 = vld [vmem:[#allocation7 + $0xf38] ss:$24 sps:$4 sm:$0xff]  }
 0xac7   :  { %9199 = vmatpush1.bf16.msra.mxu0 %v15122_v56  ;;  %9159 = vmatprep.subr.bf16.mxu1 %v15127_v31  ;;  %v15211_v56 = vld [vmem:[#allocation7 + $0xc6c] ss:$24 sps:$4 sm:$0xff]   ;;  %v15209_v31 = vld [vmem:[#allocation7 + $0xc68] ss:$24 sps:$4 sm:$0xff]  }
 0xac8   :  { %9200 = vmatprep.subr.bf16.mxu0 %v15130_v7  ;;  %v15212_v7 = vld [vmem:[#allocation7 + $0xf68] ss:$24 sps:$4 sm:$0xff]  }
 0xaca   :  { %9160 = vmatpush1.bf16.msra.mxu1 %v15125_v43  ;;  %v15217_v43 = vld [vmem:[#allocation7 + $0xc9c] ss:$24 sps:$4 sm:$0xff]  }
 0xacb   :  { %9201 = vmatpush1.bf16.msra.mxu0 %v15128_v48  ;;  %9161 = vmatprep.subr.bf16.mxu1 %v15133_v51  ;;  %v15220_v48 = vld [vmem:[#allocation7 + $0xf9c] ss:$24 sps:$4 sm:$0xff]   ;;  %v15215_v51 = vld [vmem:[#allocation7 + $0xc98] ss:$24 sps:$4 sm:$0xff]  }
 0xacc   :  { %9202 = vmatprep.subr.bf16.mxu0 %v15136_v34  ;;  %v15218_v34 = vld [vmem:[#allocation7 + $0xf98] ss:$24 sps:$4 sm:$0xff]  }
 0xace   :  { %9162 = vmatpush1.bf16.msra.mxu1 %v15131_v17  ;;  %v15223_v17 = vld [vmem:[#allocation7 + $0xccc] ss:$24 sps:$4 sm:$0xff]  }
 0xacf   :  { %9203 = vmatpush1.bf16.msra.mxu0 %v15134_v63  ;;  %9163 = vmatprep.subr.bf16.mxu1 %v15139_v54  ;;  %v15226_v63 = vld [vmem:[#allocation7 + $0xfcc] ss:$24 sps:$4 sm:$0xff]   ;;  %v15221_v54 = vld [vmem:[#allocation7 + $0xcc8] ss:$24 sps:$4 sm:$0xff]  }
 0xad0   :  { %9204 = vmatprep.subr.bf16.mxu0 %v15142_v36  ;;  %v15224_v36 = vld [vmem:[#allocation7 + $0xfc8] ss:$24 sps:$4 sm:$0xff]  }
 0xad2   :  { %9164 = vmatpush1.bf16.msra.mxu1 %v15137_v14  ;;  %v15229_v14 = vld [vmem:[#allocation7 + $0xcfc] ss:$24 sps:$4 sm:$0xff]  }
 0xad3   :  { %9205 = vmatpush1.bf16.msra.mxu0 %v15140_v13  ;;  %9165 = vmatprep.subr.bf16.mxu1 %v15145_v61  ;;  %v15232_v13 = vld [vmem:[#allocation7 + $0xffc] ss:$24 sps:$4 sm:$0xff]   ;;  %v15227_v61 = vld [vmem:[#allocation7 + $0xcf8] ss:$24 sps:$4 sm:$0xff]  }
 0xad4   :  { %9206 = vmatprep.subr.bf16.mxu0 %v15148_v8  ;;  %v15230_v8 = vld [vmem:[#allocation7 + $0xff8] ss:$24 sps:$4 sm:$0xff]  }
 0xad6   :  { %9166 = vmatpush1.bf16.msra.mxu1 %v15143_v19  ;;  %v15235_v19 = vld [vmem:[#allocation7 + $0xd2c] ss:$24 sps:$4 sm:$0xff]  }
 0xad7   :  { %9207 = vmatpush1.bf16.msra.mxu0 %v15146_v1  ;;  %9167 = vmatprep.subr.bf16.mxu1 %v15151_v49  ;;  %v15238_v1 = vld [vmem:[#allocation7 + $0x102c] ss:$24 sps:$4 sm:$0xff]   ;;  %v15233_v49 = vld [vmem:[#allocation7 + $0xd28] ss:$24 sps:$4 sm:$0xff]  }
 0xad8   :  { %9208 = vmatprep.subr.bf16.mxu0 %v15154_v59  ;;  %v15236_v59 = vld [vmem:[#allocation7 + $0x1028] ss:$24 sps:$4 sm:$0xff]  }
 0xada   :  { %9168 = vmatpush1.bf16.msra.mxu1 %v15149_v62  ;;  %v15241_v62 = vld [vmem:[#allocation7 + $0xd5c] ss:$24 sps:$4 sm:$0xff]  }
 0xadb   :  { %9209 = vmatpush1.bf16.msra.mxu0 %v15152_v32  ;;  %9169 = vmatprep.subr.bf16.mxu1 %v15157_v29  ;;  %v15244_v32 = vld [vmem:[#allocation7 + $0x105c] ss:$24 sps:$4 sm:$0xff]   ;;  %v15239_v29 = vld [vmem:[#allocation7 + $0xd58] ss:$24 sps:$4 sm:$0xff]  }
 0xadc   :  { %9210 = vmatprep.subr.bf16.mxu0 %v15160_v53  ;;  %v15242_v53 = vld [vmem:[#allocation7 + $0x1058] ss:$24 sps:$4 sm:$0xff]  }
 0xade   :  { %9170 = vmatpush1.bf16.msra.mxu1 %v15155_v22  ;;  %v15247_v22 = vld [vmem:[#allocation7 + $0xd8c] ss:$24 sps:$4 sm:$0xff]  }
 0xadf   :  { %9211 = vmatpush1.bf16.msra.mxu0 %v15158_v52  ;;  %9171 = vmatprep.subr.bf16.mxu1 %v15163_v41  ;;  %v15250_v52 = vld [vmem:[#allocation7 + $0x108c] ss:$24 sps:$4 sm:$0xff]   ;;  %v15245_v41 = vld [vmem:[#allocation7 + $0xd88] ss:$24 sps:$4 sm:$0xff]  }
 0xae0   :  { %9212 = vmatprep.subr.bf16.mxu0 %v15166_v0  ;;  %v15248_v0 = vld [vmem:[#allocation7 + $0x1088] ss:$24 sps:$4 sm:$0xff]  }
 0xae2   :  { %9172 = vmatpush1.bf16.msra.mxu1 %v15161_v60  ;;  %v15253_v60 = vld [vmem:[#allocation7 + $0xdbc] ss:$24 sps:$4 sm:$0xff]  }
 0xae3   :  { %9213 = vmatpush1.bf16.msra.mxu0 %v15164_v3  ;;  %9173 = vmatprep.subr.bf16.mxu1 %v15169_v44  ;;  %v15256_v3 = vld [vmem:[#allocation7 + $0x10bc] ss:$24 sps:$4 sm:$0xff]   ;;  %v15251_v44 = vld [vmem:[#allocation7 + $0xdb8] ss:$24 sps:$4 sm:$0xff]  }
 0xae4   :  { %9214 = vmatprep.subr.bf16.mxu0 %v15172_v57  ;;  %v15254_v57 = vld [vmem:[#allocation7 + $0x10b8] ss:$24 sps:$4 sm:$0xff]  }
 0xae6   :  { %9174 = vmatpush1.bf16.msra.mxu1 %v15167_v2  ;;  %v15259_v2 = vld [vmem:[#allocation7 + $0xdec] ss:$24 sps:$4 sm:$0xff]  }
 0xae7   :  { %9215 = vmatpush1.bf16.msra.mxu0 %v15170_v18  ;;  %9175 = vmatprep.subr.bf16.mxu1 %v15175_v21  ;;  %v15262_v18 = vld [vmem:[#allocation7 + $0x10ec] ss:$24 sps:$4 sm:$0xff]   ;;  %v15257_v21 = vld [vmem:[#allocation7 + $0xde8] ss:$24 sps:$4 sm:$0xff]  }
 0xae8   :  { %9216 = vmatprep.subr.bf16.mxu0 %v15178_v30  ;;  %v15260_v30 = vld [vmem:[#allocation7 + $0x10e8] ss:$24 sps:$4 sm:$0xff]  }
 0xaea   :  { %9176 = vmatpush1.bf16.msra.mxu1 %v15173_v45  ;;  %v15265_v45 = vld [vmem:[#allocation7 + $0xe1c] ss:$24 sps:$4 sm:$0xff]  }
 0xaeb   :  { %9217 = vmatpush1.bf16.msra.mxu0 %v15176_v47  ;;  %9177 = vmatprep.subr.bf16.mxu1 %v15181_v46  ;;  %v15268_v47 = vld [vmem:[#allocation7 + $0x111c] ss:$24 sps:$4 sm:$0xff]   ;;  %v15263_v46 = vld [vmem:[#allocation7 + $0xe18] ss:$24 sps:$4 sm:$0xff]  }
 0xaec   :  { %9218 = vmatprep.subr.bf16.mxu0 %v15184_v24  ;;  %v15266_v24 = vld [vmem:[#allocation7 + $0x1118] ss:$24 sps:$4 sm:$0xff]  }
 0xaee   :  { %9178 = vmatpush1.bf16.msra.mxu1 %v15179_v4  ;;  %v15271_v4 = vld [vmem:[#allocation7 + $0xe4c] ss:$24 sps:$4 sm:$0xff]  }
 0xaef   :  { %9219 = vmatpush1.bf16.msra.mxu0 %v15182_v42  ;;  %9179 = vmatprep.subr.bf16.mxu1 %v15187_v33  ;;  %v15274_v42 = vld [vmem:[#allocation7 + $0x114c] ss:$24 sps:$4 sm:$0xff]   ;;  %v15269_v33 = vld [vmem:[#allocation7 + $0xe48] ss:$24 sps:$4 sm:$0xff]  }
 0xaf0   :  { %9220 = vmatprep.subr.bf16.mxu0 %v15190_v38  ;;  %v15272_v38 = vld [vmem:[#allocation7 + $0x1148] ss:$24 sps:$4 sm:$0xff]  }
 0xaf2   :  { %9180 = vmatpush1.bf16.msra.mxu1 %v15185_v50  ;;  %v15277_v50 = vld [vmem:[#allocation7 + $0xe7c] ss:$24 sps:$4 sm:$0xff]  }
 0xaf3   :  { %9221 = vmatpush1.bf16.msra.mxu0 %v15188_v20  ;;  %9181 = vmatprep.subr.bf16.mxu1 %v15193_v37  ;;  %v15280_v20 = vld [vmem:[#allocation7 + $0x117c] ss:$24 sps:$4 sm:$0xff]   ;;  %v15275_v37 = vld [vmem:[#allocation7 + $0xe78] ss:$24 sps:$4 sm:$0xff]  }
 0xaf4   :  { %9222 = vmatprep.subr.bf16.mxu0 %v15196_v12  ;;  %v15278_v12 = vld [vmem:[#allocation7 + $0x1178] ss:$24 sps:$4 sm:$0xff]  }
 0xaf6   :  { %9182 = vmatpush1.bf16.msra.mxu1 %v15191_v5  ;;  %v15283_v5 = vld [vmem:[#allocation7 + $0xeac] ss:$24 sps:$4 sm:$0xff]  }
 0xaf7   :  { %9223 = vmatpush1.bf16.msra.mxu0 %v15194_v25  ;;  %9233 = vmatprep.subr.bf16.mxu1 %v15199_v39  ;;  %v15286_v25 = vld [vmem:[#allocation7 + $0x11ac] ss:$24 sps:$4 sm:$0xff]   ;;  %v15281_v39 = vld [vmem:[#allocation7 + $0xea8] ss:$24 sps:$4 sm:$0xff]  }
 0xaf8   :  { %9274 = vmatprep.subr.bf16.mxu0 %v15202_v23  ;;  %v15284_v23 = vld [vmem:[#allocation7 + $0x11a8] ss:$24 sps:$4 sm:$0xff]  }
 0xaf9   :  { %9184 = vmatmul.mubr.bf16.vlgmr.msra.gmra.mrb[32].mxu1 %v21014_v11 }
 0xafa   :  { %9225 = vmatmul.mubr.bf16.vlgmr.msra.gmra.mrb[32].mxu0 %v20998_v26  ;;  %9234 = vmatpush1.bf16.msra.mxu1 %v15197_v27  ;;  %v15289_v27 = vld [vmem:[#allocation7 + $0xedc] ss:$24 sps:$4 sm:$0xff]  }
 0xafb   :  { %9265 = vmatprep.mubr.bf16.mxu1 %v21002_v40  ;;  %9275 = vmatpush1.bf16.msra.mxu0 %v15200_v58  ;;  %v15292_v58 = vld [vmem:[#allocation7 + $0x11dc] ss:$24 sps:$4 sm:$0xff]  }
 0xafc   :  { %9306 = vmatprep.mubr.bf16.mxu0 %v21007_v6  ;;  %9235 = vmatprep.subr.bf16.mxu1 %v15205_v55  ;;  %v15287_v55 = vld [vmem:[#allocation7 + $0xed8] ss:$24 sps:$4 sm:$0xff]  }
 0xafd   :  { %9276 = vmatprep.subr.bf16.mxu0 %v15208_v15  ;;  %v15290_v15 = vld [vmem:[#allocation7 + $0x11d8] ss:$24 sps:$4 sm:$0xff]  }
 0xafe   :  { %9236 = vmatpush1.bf16.msra.mxu1 %v15203_v10  ;;  %v15295_v10 = vld [vmem:[#allocation7 + $0x914] ss:$24 sps:$4 sm:$0xff]  }
 0xaff   :  { %9277 = vmatpush1.bf16.msra.mxu0 %v15206_v9  ;;  %9237 = vmatprep.subr.bf16.mxu1 %v15211_v56  ;;  %v15298_v9 = vld [vmem:[#allocation7 + $0xc14] ss:$24 sps:$4 sm:$0xff]   ;;  %v15293_v56 = vld [vmem:[#allocation7 + $0x910] ss:$24 sps:$4 sm:$0xff]  }
 0xb00   :  { %9278 = vmatprep.subr.bf16.mxu0 %v15214_v35  ;;  %v15296_v35 = vld [vmem:[#allocation7 + $0xc10] ss:$24 sps:$4 sm:$0xff]  }
 0xb02   :  { %9238 = vmatpush1.bf16.msra.mxu1 %v15209_v31  ;;  %v15301_v31 = vld [vmem:[#allocation7 + $0x944] ss:$24 sps:$4 sm:$0xff]  }
 0xb03   :  { %9279 = vmatpush1.bf16.msra.mxu0 %v15212_v7  ;;  %9239 = vmatprep.subr.bf16.mxu1 %v15217_v43  ;;  %v15304_v7 = vld [vmem:[#allocation7 + $0xc44] ss:$24 sps:$4 sm:$0xff]   ;;  %v15299_v43 = vld [vmem:[#allocation7 + $0x940] ss:$24 sps:$4 sm:$0xff]  }
 0xb04   :  { %9280 = vmatprep.subr.bf16.mxu0 %v15220_v48  ;;  %v15302_v48 = vld [vmem:[#allocation7 + $0xc40] ss:$24 sps:$4 sm:$0xff]  }
 0xb06   :  { %9240 = vmatpush1.bf16.msra.mxu1 %v15215_v51  ;;  %v15307_v51 = vld [vmem:[#allocation7 + $0x974] ss:$24 sps:$4 sm:$0xff]  }
 0xb07   :  { %9281 = vmatpush1.bf16.msra.mxu0 %v15218_v34  ;;  %9241 = vmatprep.subr.bf16.mxu1 %v15223_v17  ;;  %v15310_v34 = vld [vmem:[#allocation7 + $0xc74] ss:$24 sps:$4 sm:$0xff]   ;;  %v15305_v17 = vld [vmem:[#allocation7 + $0x970] ss:$24 sps:$4 sm:$0xff]  }
 0xb08   :  { %9282 = vmatprep.subr.bf16.mxu0 %v15226_v63  ;;  %v15308_v63 = vld [vmem:[#allocation7 + $0xc70] ss:$24 sps:$4 sm:$0xff]  }
 0xb0a   :  { %9242 = vmatpush1.bf16.msra.mxu1 %v15221_v54  ;;  %v15313_v54 = vld [vmem:[#allocation7 + $0x9a4] ss:$24 sps:$4 sm:$0xff]  }
 0xb0b   :  { %9283 = vmatpush1.bf16.msra.mxu0 %v15224_v36  ;;  %9243 = vmatprep.subr.bf16.mxu1 %v15229_v14  ;;  %v15316_v36 = vld [vmem:[#allocation7 + $0xca4] ss:$24 sps:$4 sm:$0xff]   ;;  %v15311_v14 = vld [vmem:[#allocation7 + $0x9a0] ss:$24 sps:$4 sm:$0xff]  }
 0xb0c   :  { %9284 = vmatprep.subr.bf16.mxu0 %v15232_v13  ;;  %v15319_v13 = vld [vmem:[#allocation7 + $0x9d4] ss:$24 sps:$4 sm:$0xff]  }
 0xb0e   :  { %9244 = vmatpush1.bf16.msra.mxu1 %v15227_v61  ;;  %v15322_v61 = vld [vmem:[#allocation7 + $0xcd4] ss:$24 sps:$4 sm:$0xff]  }
 0xb0f   :  { %9285 = vmatpush1.bf16.msra.mxu0 %v15230_v8  ;;  %9245 = vmatprep.subr.bf16.mxu1 %v15235_v19  ;;  %v15320_v8 = vld [vmem:[#allocation7 + $0xcd0] ss:$24 sps:$4 sm:$0xff]   ;;  %v15325_v19 = vld [vmem:[#allocation7 + $0xa04] ss:$24 sps:$4 sm:$0xff]  }
 0xb10   :  { %9286 = vmatprep.subr.bf16.mxu0 %v15238_v1  ;;  %v15328_v1 = vld [vmem:[#allocation7 + $0xd04] ss:$24 sps:$4 sm:$0xff]  }
 0xb12   :  { %9246 = vmatpush1.bf16.msra.mxu1 %v15233_v49  ;;  %v15323_v49 = vld [vmem:[#allocation7 + $0xa00] ss:$24 sps:$4 sm:$0xff]  }
 0xb13   :  { %9287 = vmatpush1.bf16.msra.mxu0 %v15236_v59  ;;  %9247 = vmatprep.subr.bf16.mxu1 %v15241_v62  ;;  %v15326_v59 = vld [vmem:[#allocation7 + $0xd00] ss:$24 sps:$4 sm:$0xff]   ;;  %v15331_v62 = vld [vmem:[#allocation7 + $0xa34] ss:$24 sps:$4 sm:$0xff]  }
 0xb14   :  { %9288 = vmatprep.subr.bf16.mxu0 %v15244_v32  ;;  %v15334_v32 = vld [vmem:[#allocation7 + $0xd34] ss:$24 sps:$4 sm:$0xff]  }
 0xb16   :  { %9248 = vmatpush1.bf16.msra.mxu1 %v15239_v29  ;;  %v15329_v29 = vld [vmem:[#allocation7 + $0xa30] ss:$24 sps:$4 sm:$0xff]  }
 0xb17   :  { %9289 = vmatpush1.bf16.msra.mxu0 %v15242_v53  ;;  %9249 = vmatprep.subr.bf16.mxu1 %v15247_v22  ;;  %v15332_v53 = vld [vmem:[#allocation7 + $0xd30] ss:$24 sps:$4 sm:$0xff]   ;;  %v15337_v22 = vld [vmem:[#allocation7 + $0xa64] ss:$24 sps:$4 sm:$0xff]  }
 0xb18   :  { %9290 = vmatprep.subr.bf16.mxu0 %v15250_v52  ;;  %v15340_v52 = vld [vmem:[#allocation7 + $0xd64] ss:$24 sps:$4 sm:$0xff]  }
 0xb1a   :  { %9250 = vmatpush1.bf16.msra.mxu1 %v15245_v41  ;;  %v15335_v41 = vld [vmem:[#allocation7 + $0xa60] ss:$24 sps:$4 sm:$0xff]  }
 0xb1b   :  { %9291 = vmatpush1.bf16.msra.mxu0 %v15248_v0  ;;  %9251 = vmatprep.subr.bf16.mxu1 %v15253_v60  ;;  %v15338_v0 = vld [vmem:[#allocation7 + $0xd60] ss:$24 sps:$4 sm:$0xff]   ;;  %v15343_v60 = vld [vmem:[#allocation7 + $0xa94] ss:$24 sps:$4 sm:$0xff]  }
 0xb1c   :  { %9292 = vmatprep.subr.bf16.mxu0 %v15256_v3  ;;  %v15346_v3 = vld [vmem:[#allocation7 + $0xd94] ss:$24 sps:$4 sm:$0xff]  }
 0xb1e   :  { %9252 = vmatpush1.bf16.msra.mxu1 %v15251_v44  ;;  %v15341_v44 = vld [vmem:[#allocation7 + $0xa90] ss:$24 sps:$4 sm:$0xff]  }
 0xb1f   :  { %9293 = vmatpush1.bf16.msra.mxu0 %v15254_v57  ;;  %9253 = vmatprep.subr.bf16.mxu1 %v15259_v2  ;;  %v15344_v57 = vld [vmem:[#allocation7 + $0xd90] ss:$24 sps:$4 sm:$0xff]   ;;  %v15349_v2 = vld [vmem:[#allocation7 + $0xac4] ss:$24 sps:$4 sm:$0xff]  }
 0xb20   :  { %9294 = vmatprep.subr.bf16.mxu0 %v15262_v18  ;;  %v15352_v18 = vld [vmem:[#allocation7 + $0xdc4] ss:$24 sps:$4 sm:$0xff]  }
 0xb22   :  { %9254 = vmatpush1.bf16.msra.mxu1 %v15257_v21  ;;  %v15347_v21 = vld [vmem:[#allocation7 + $0xac0] ss:$24 sps:$4 sm:$0xff]  }
 0xb23   :  { %9295 = vmatpush1.bf16.msra.mxu0 %v15260_v30  ;;  %9255 = vmatprep.subr.bf16.mxu1 %v15265_v45  ;;  %v15350_v30 = vld [vmem:[#allocation7 + $0xdc0] ss:$24 sps:$4 sm:$0xff]   ;;  %v15355_v45 = vld [vmem:[#allocation7 + $0xaf4] ss:$24 sps:$4 sm:$0xff]  }
 0xb24   :  { %9296 = vmatprep.subr.bf16.mxu0 %v15268_v47  ;;  %v15358_v47 = vld [vmem:[#allocation7 + $0xdf4] ss:$24 sps:$4 sm:$0xff]  }
 0xb26   :  { %9256 = vmatpush1.bf16.msra.mxu1 %v15263_v46  ;;  %v15353_v46 = vld [vmem:[#allocation7 + $0xaf0] ss:$24 sps:$4 sm:$0xff]  }
 0xb27   :  { %9297 = vmatpush1.bf16.msra.mxu0 %v15266_v24  ;;  %9257 = vmatprep.subr.bf16.mxu1 %v15271_v4  ;;  %v15356_v24 = vld [vmem:[#allocation7 + $0xdf0] ss:$24 sps:$4 sm:$0xff]   ;;  %v15361_v4 = vld [vmem:[#allocation7 + $0xb24] ss:$24 sps:$4 sm:$0xff]  }
 0xb28   :  { %9298 = vmatprep.subr.bf16.mxu0 %v15274_v42  ;;  %v15364_v42 = vld [vmem:[#allocation7 + $0xe24] ss:$24 sps:$4 sm:$0xff]  }
 0xb2a   :  { %9258 = vmatpush1.bf16.msra.mxu1 %v15269_v33  ;;  %v15359_v33 = vld [vmem:[#allocation7 + $0xb20] ss:$24 sps:$4 sm:$0xff]  }
 0xb2b   :  { %9299 = vmatpush1.bf16.msra.mxu0 %v15272_v38  ;;  %9259 = vmatprep.subr.bf16.mxu1 %v15277_v50  ;;  %v15362_v38 = vld [vmem:[#allocation7 + $0xe20] ss:$24 sps:$4 sm:$0xff]   ;;  %v15367_v50 = vld [vmem:[#allocation7 + $0xb54] ss:$24 sps:$4 sm:$0xff]  }
 0xb2c   :  { %9300 = vmatprep.subr.bf16.mxu0 %v15280_v20  ;;  %v15370_v20 = vld [vmem:[#allocation7 + $0xe54] ss:$24 sps:$4 sm:$0xff]  }
 0xb2e   :  { %9260 = vmatpush1.bf16.msra.mxu1 %v15275_v37  ;;  %v15365_v37 = vld [vmem:[#allocation7 + $0xb50] ss:$24 sps:$4 sm:$0xff]  }
 0xb2f   :  { %9301 = vmatpush1.bf16.msra.mxu0 %v15278_v12  ;;  %9261 = vmatprep.subr.bf16.mxu1 %v15283_v5  ;;  %v15368_v12 = vld [vmem:[#allocation7 + $0xe50] ss:$24 sps:$4 sm:$0xff]   ;;  %v15373_v5 = vld [vmem:[#allocation7 + $0xb84] ss:$24 sps:$4 sm:$0xff]  }
 0xb30   :  { %9302 = vmatprep.subr.bf16.mxu0 %v15286_v25  ;;  %v15376_v25 = vld [vmem:[#allocation7 + $0xe84] ss:$24 sps:$4 sm:$0xff]  }
 0xb32   :  { %9262 = vmatpush1.bf16.msra.mxu1 %v15281_v39  ;;  %v15371_v39 = vld [vmem:[#allocation7 + $0xb80] ss:$24 sps:$4 sm:$0xff]  }
 0xb33   :  { %9303 = vmatpush1.bf16.msra.mxu0 %v15284_v23  ;;  %9263 = vmatprep.subr.bf16.mxu1 %v15289_v27  ;;  %v15374_v23 = vld [vmem:[#allocation7 + $0xe80] ss:$24 sps:$4 sm:$0xff]   ;;  %v15379_v27 = vld [vmem:[#allocation7 + $0xbb4] ss:$24 sps:$4 sm:$0xff]  }
 0xb34   :  { %9304 = vmatprep.subr.bf16.mxu0 %v15292_v58  ;;  %v15382_v58 = vld [vmem:[#allocation7 + $0xeb4] ss:$24 sps:$4 sm:$0xff]  }
 0xb36   :  { %9264 = vmatpush1.bf16.msra.mxu1 %v15287_v55  ;;  %v15377_v55 = vld [vmem:[#allocation7 + $0xbb0] ss:$24 sps:$4 sm:$0xff]  }
 0xb37   :  { %9305 = vmatpush1.bf16.msra.mxu0 %v15290_v15  ;;  %9315 = vmatprep.subr.bf16.mxu1 %v15295_v10  ;;  %v15380_v15 = vld [vmem:[#allocation7 + $0xeb0] ss:$24 sps:$4 sm:$0xff]   ;;  %v15385_v10 = vld [vmem:[#allocation7 + $0xbe4] ss:$24 sps:$4 sm:$0xff]  }
 0xb38   :  { %9356 = vmatprep.subr.bf16.mxu0 %v15298_v9  ;;  %v15388_v9 = vld [vmem:[#allocation7 + $0xee4] ss:$24 sps:$4 sm:$0xff]  }
 0xb39   :  { %9266 = vmatmul.mubr.bf16.vlgmr.msra.gmra.mrb[36].mxu1 %v21000_v16 }
 0xb3a   :  { %9307 = vmatmul.mubr.bf16.vlgmr.msra.gmra.mrb[36].mxu0 %v21014_v11  ;;  %9316 = vmatpush1.bf16.msra.mxu1 %v15293_v56  ;;  %v15383_v56 = vld [vmem:[#allocation7 + $0xbe0] ss:$24 sps:$4 sm:$0xff]  }
 0xb3b   :  { %9347 = vmatprep.mubr.bf16.mxu1 %v20996_v28  ;;  %9357 = vmatpush1.bf16.msra.mxu0 %v15296_v35  ;;  %v15314_v28 = vld [vmem:[#allocation7 + $0xca0] ss:$24 sps:$4 sm:$0xff]  }
 0xb3c   :  { %9388 = vmatprep.mubr.bf16.mxu0 %v21002_v40  ;;  %9317 = vmatprep.subr.bf16.mxu1 %v15301_v31  ;;  %v15317_v40 = vld [vmem:[#allocation7 + $0x9d0] ss:$24 sps:$4 sm:$0xff]   ;;  %v15386_v35 = vld [vmem:[#allocation7 + $0xee0] ss:$24 sps:$4 sm:$0xff]   ;;  %v15391_v31 = vld [vmem:[#allocation7 + $0xf14] ss:$24 sps:$4 sm:$0xff]  }
 0xb3d   :  { %9358 = vmatprep.subr.bf16.mxu0 %v15304_v7  ;;  %v15394_v7 = vld [vmem:[#allocation7 + $0x4] ss:$24 sps:$4 sm:$0xff]  }
 0xb3e   :  { %9318 = vmatpush1.bf16.msra.mxu1 %v15299_v43  ;;  %v15389_v43 = vld [vmem:[#allocation7 + $0xf10] ss:$24 sps:$4 sm:$0xff]  }
 0xb3f   :  { %9359 = vmatpush1.bf16.msra.mxu0 %v15302_v48  ;;  %9319 = vmatprep.subr.bf16.mxu1 %v15307_v51  ;;  %v15392_v48 = vld [vmem:[#allocation7] ss:$24 sps:$4 sm:$0xff]   ;;  %v15397_v51 = vld [vmem:[#allocation7 + $0xf44] ss:$24 sps:$4 sm:$0xff]  }
 0xb40   :  { %9360 = vmatprep.subr.bf16.mxu0 %v15310_v34  ;;  %v15400_v34 = vld [vmem:[#allocation7 + $0x34] ss:$24 sps:$4 sm:$0xff]  }
 0xb42   :  { %9320 = vmatpush1.bf16.msra.mxu1 %v15305_v17  ;;  %v15395_v17 = vld [vmem:[#allocation7 + $0xf40] ss:$24 sps:$4 sm:$0xff]  }
 0xb43   :  { %9361 = vmatpush1.bf16.msra.mxu0 %v15308_v63  ;;  %9321 = vmatprep.subr.bf16.mxu1 %v15313_v54  ;;  %v15398_v63 = vld [vmem:[#allocation7 + $0x30] ss:$24 sps:$4 sm:$0xff]   ;;  %v15403_v54 = vld [vmem:[#allocation7 + $0xf74] ss:$24 sps:$4 sm:$0xff]  }
 0xb44   :  { %9362 = vmatprep.subr.bf16.mxu0 %v15316_v36  ;;  %v22368_v36 = vld [vmem:[#allocation46_spill] sm:$0xff] }
 0xb46   :  { %9322 = vmatpush1.bf16.msra.mxu1 %v15311_v14  ;;  %v15406_v14 = vld [vmem:[#allocation7 + $0x64] ss:$24 sps:$4 sm:$0xff]  }
 0xb47   :  { %9363 = vmatpush1.bf16.msra.mxu0 %v15314_v28  ;;  %9323 = vmatprep.subr.bf16.mxu1 %v15319_v13  ;;  %v15401_v28 = vld [vmem:[#allocation7 + $0xf70] ss:$24 sps:$4 sm:$0xff]   ;;  %v15409_v13 = vld [vmem:[#allocation7 + $0xfa4] ss:$24 sps:$4 sm:$0xff]  }
 0xb48   :  { %9364 = vmatprep.subr.bf16.mxu0 %v15322_v61  ;;  %v15407_v61 = vld [vmem:[#allocation7 + $0xfa0] ss:$24 sps:$4 sm:$0xff]  }
 0xb4a   :  { %9324 = vmatpush1.bf16.msra.mxu1 %v15317_v40  ;;  %v15415_v40 = vld [vmem:[#allocation7 + $0xfd4] ss:$24 sps:$4 sm:$0xff]  }
 0xb4b   :  { %9365 = vmatpush1.bf16.msra.mxu0 %v15320_v8  ;;  %9325 = vmatprep.subr.bf16.mxu1 %v15325_v19  ;;  %v15418_v8 = vld [vmem:[#allocation7 + $0xc4] ss:$24 sps:$4 sm:$0xff]   ;;  %v15413_v19 = vld [vmem:[#allocation7 + $0xfd0] ss:$24 sps:$4 sm:$0xff]  }
 0xb4c   :  { %9366 = vmatprep.subr.bf16.mxu0 %v15328_v1  ;;  %v15416_v1 = vld [vmem:[#allocation7 + $0xc0] ss:$24 sps:$4 sm:$0xff]  }
 0xb4e   :  { %9326 = vmatpush1.bf16.msra.mxu1 %v15323_v49  ;;  %v15421_v49 = vld [vmem:[#allocation7 + $0x1004] ss:$24 sps:$4 sm:$0xff]  }
 0xb4f   :  { %9367 = vmatpush1.bf16.msra.mxu0 %v15326_v59  ;;  %9327 = vmatprep.subr.bf16.mxu1 %v15331_v62  ;;  %v15424_v59 = vld [vmem:[#allocation7 + $0xf4] ss:$24 sps:$4 sm:$0xff]   ;;  %v15419_v62 = vld [vmem:[#allocation7 + $0x1000] ss:$24 sps:$4 sm:$0xff]  }
 0xb50   :  { %9368 = vmatprep.subr.bf16.mxu0 %v15334_v32  ;;  %v15422_v32 = vld [vmem:[#allocation7 + $0xf0] ss:$24 sps:$4 sm:$0xff]  }
 0xb52   :  { %9328 = vmatpush1.bf16.msra.mxu1 %v15329_v29  ;;  %v15427_v29 = vld [vmem:[#allocation7 + $0x1034] ss:$24 sps:$4 sm:$0xff]  }
 0xb53   :  { %9369 = vmatpush1.bf16.msra.mxu0 %v15332_v53  ;;  %9329 = vmatprep.subr.bf16.mxu1 %v15337_v22  ;;  %v15430_v22 = vld [vmem:[#allocation7 + $0x124] ss:$24 sps:$4 sm:$0xff]  }
 0xb54   :  { %9370 = vmatprep.subr.bf16.mxu0 %v15340_v52 }
 0xb56   :  { %9330 = vmatpush1.bf16.msra.mxu1 %v15335_v41 }
 0xb57   :  { %9371 = vmatpush1.bf16.msra.mxu0 %v15338_v0  ;;  %9331 = vmatprep.subr.bf16.mxu1 %v15343_v60 }
 0xb58   :  { %9372 = vmatprep.subr.bf16.mxu0 %v15346_v3 }
 0xb5a   :  { %9332 = vmatpush1.bf16.msra.mxu1 %v15341_v44  ;;  %v15425_v44 = vld [vmem:[#allocation7 + $0x1030] ss:$24 sps:$4 sm:$0xff]  }
 0xb5b   :  { %9373 = vmatpush1.bf16.msra.mxu0 %v15344_v57  ;;  %9333 = vmatprep.subr.bf16.mxu1 %v15349_v2 }
 0xb5c   :  { %9374 = vmatprep.subr.bf16.mxu0 %v15352_v18 }
 0xb5e   :  { %9334 = vmatpush1.bf16.msra.mxu1 %v15347_v21  ;;  %v15428_v21 = vld [vmem:[#allocation7 + $0x120] ss:$24 sps:$4 sm:$0xff]  }
 0xb5f   :  { %9375 = vmatpush1.bf16.msra.mxu0 %v15350_v30  ;;  %9335 = vmatprep.subr.bf16.mxu1 %v15355_v45  ;;  %v15433_v30 = vld [vmem:[#allocation7 + $0x1064] ss:$24 sps:$4 sm:$0xff]  }
 0xb60   :  { %9376 = vmatprep.subr.bf16.mxu0 %v15358_v47  ;;  %v15436_v47 = vld [vmem:[#allocation7 + $0x154] ss:$24 sps:$4 sm:$0xff]  }
 0xb62   :  { %9336 = vmatpush1.bf16.msra.mxu1 %v15353_v46  ;;  %v15431_v46 = vld [vmem:[#allocation7 + $0x1060] ss:$24 sps:$4 sm:$0xff]  }
 0xb63   :  { %9377 = vmatpush1.bf16.msra.mxu0 %v15356_v24  ;;  %9337 = vmatprep.subr.bf16.mxu1 %v15361_v4  ;;  %v15434_v24 = vld [vmem:[#allocation7 + $0x150] ss:$24 sps:$4 sm:$0xff]   ;;  %v15439_v4 = vld [vmem:[#allocation7 + $0x1094] ss:$24 sps:$4 sm:$0xff]  }
 0xb64   :  { %9378 = vmatprep.subr.bf16.mxu0 %v15364_v42  ;;  %v15442_v42 = vld [vmem:[#allocation7 + $0x184] ss:$24 sps:$4 sm:$0xff]  }
 0xb66   :  { %9338 = vmatpush1.bf16.msra.mxu1 %v15359_v33  ;;  %v15437_v33 = vld [vmem:[#allocation7 + $0x1090] ss:$24 sps:$4 sm:$0xff]  }
 0xb67   :  { %9379 = vmatpush1.bf16.msra.mxu0 %v15362_v38  ;;  %9339 = vmatprep.subr.bf16.mxu1 %v15367_v50  ;;  %v15440_v38 = vld [vmem:[#allocation7 + $0x180] ss:$24 sps:$4 sm:$0xff]   ;;  %v15445_v50 = vld [vmem:[#allocation7 + $0x10c4] ss:$24 sps:$4 sm:$0xff]  }
 0xb68   :  { %9380 = vmatprep.subr.bf16.mxu0 %v15370_v20  ;;  %v15448_v20 = vld [vmem:[#allocation7 + $0x1b4] ss:$24 sps:$4 sm:$0xff]  }
 0xb6a   :  { %9340 = vmatpush1.bf16.msra.mxu1 %v15365_v37  ;;  %v15443_v37 = vld [vmem:[#allocation7 + $0x10c0] ss:$24 sps:$4 sm:$0xff]  }
 0xb6b   :  { %9381 = vmatpush1.bf16.msra.mxu0 %v15368_v12  ;;  %9341 = vmatprep.subr.bf16.mxu1 %v15373_v5  ;;  %v15446_v12 = vld [vmem:[#allocation7 + $0x1b0] ss:$24 sps:$4 sm:$0xff]   ;;  %v15451_v5 = vld [vmem:[#allocation7 + $0x10f4] ss:$24 sps:$4 sm:$0xff]  }
 0xb6c   :  { %9382 = vmatprep.subr.bf16.mxu0 %v15376_v25  ;;  %v15454_v25 = vld [vmem:[#allocation7 + $0x1e4] ss:$24 sps:$4 sm:$0xff]  }
 0xb6e   :  { %9342 = vmatpush1.bf16.msra.mxu1 %v15371_v39  ;;  %v15449_v39 = vld [vmem:[#allocation7 + $0x10f0] ss:$24 sps:$4 sm:$0xff]  }
 0xb6f   :  { %9383 = vmatpush1.bf16.msra.mxu0 %v15374_v23  ;;  %9343 = vmatprep.subr.bf16.mxu1 %v15379_v27  ;;  %v15452_v23 = vld [vmem:[#allocation7 + $0x1e0] ss:$24 sps:$4 sm:$0xff]   ;;  %v15457_v27 = vld [vmem:[#allocation7 + $0x1124] ss:$24 sps:$4 sm:$0xff]  }
 0xb70   :  { %9384 = vmatprep.subr.bf16.mxu0 %v15382_v58  ;;  %v15460_v58 = vld [vmem:[#allocation7 + $0x214] ss:$24 sps:$4 sm:$0xff]  }
 0xb72   :  { %9344 = vmatpush1.bf16.msra.mxu1 %v15377_v55  ;;  %v15455_v55 = vld [vmem:[#allocation7 + $0x1120] ss:$24 sps:$4 sm:$0xff]  }
 0xb73   :  { %9385 = vmatpush1.bf16.msra.mxu0 %v15380_v15  ;;  %9345 = vmatprep.subr.bf16.mxu1 %v15385_v10  ;;  %v15458_v15 = vld [vmem:[#allocation7 + $0x210] ss:$24 sps:$4 sm:$0xff]   ;;  %v15463_v10 = vld [vmem:[#allocation7 + $0x1154] ss:$24 sps:$4 sm:$0xff]  }
 0xb74   :  { %9386 = vmatprep.subr.bf16.mxu0 %v15388_v9  ;;  %v15466_v9 = vld [vmem:[#allocation7 + $0x244] ss:$24 sps:$4 sm:$0xff]  }
 0xb76   :  { %9346 = vmatpush1.bf16.msra.mxu1 %v15383_v56  ;;  %v15461_v56 = vld [vmem:[#allocation7 + $0x1150] ss:$24 sps:$4 sm:$0xff]  }
 0xb77   :  { %9387 = vmatpush1.bf16.msra.mxu0 %v15386_v35  ;;  %9397 = vmatprep.subr.bf16.mxu1 %v15391_v31  ;;  %v15464_v35 = vld [vmem:[#allocation7 + $0x240] ss:$24 sps:$4 sm:$0xff]   ;;  %v15469_v31 = vld [vmem:[#allocation7 + $0x1184] ss:$24 sps:$4 sm:$0xff]  }
 0xb78   :  { %10878 = vmatprep.subr.bf16.mxu0 %v15394_v7  ;;  %v15472_v7 = vld [vmem:[#allocation7 + $0x274] ss:$24 sps:$4 sm:$0xff]  }
 0xb79   :  { %9348 = vmatmul.mubr.bf16.vlgmr.msra.gmra.mrb[40].mxu1 %v20998_v26  ;;  %v15404_v26 = vld [vmem:[#allocation7 + $0x60] ss:$24 sps:$4 sm:$0xff]  }
 0xb7a   :  { %9389 = vmatmul.mubr.bf16.vlgmr.msra.gmra.mrb[40].mxu0 %v21000_v16  ;;  %9398 = vmatpush1.bf16.msra.mxu1 %v15389_v43  ;;  %v15412_v16 = vld [vmem:[#allocation7 + $0x94] ss:$24 sps:$4 sm:$0xff]   ;;  %v15467_v43 = vld [vmem:[#allocation7 + $0x1180] ss:$24 sps:$4 sm:$0xff]  }
 0xb7b   :  { %9429 = vmatprep.mubr.bf16.mxu1 %v21007_v6  ;;  %10879 = vmatpush1.bf16.msra.mxu0 %v15392_v48  ;;  %v15410_v6 = vld [vmem:[#allocation7 + $0x90] ss:$24 sps:$4 sm:$0xff]  }
 0xb7c   :  { %10910 = vmatprep.mubr.bf16.mxu0 %v22368_v36  ;;  %9399 = vmatprep.subr.bf16.mxu1 %v15397_v51  ;;  %v15470_v48 = vld [vmem:[#allocation7 + $0x270] ss:$24 sps:$4 sm:$0xff]   ;;  %v15475_v51 = vld [vmem:[#allocation7 + $0x11b4] ss:$24 sps:$4 sm:$0xff]  }
 0xb7d   :  { %10880 = vmatprep.subr.bf16.mxu0 %v15400_v34  ;;  %v15478_v34 = vld [vmem:[#allocation7 + $0x2a4] ss:$24 sps:$4 sm:$0xff]  }
 0xb7e   :  { %9400 = vmatpush1.bf16.msra.mxu1 %v15395_v17  ;;  %v15473_v17 = vld [vmem:[#allocation7 + $0x11b0] ss:$24 sps:$4 sm:$0xff]  }
 0xb7f   :  { %10881 = vmatpush1.bf16.msra.mxu0 %v15398_v63  ;;  %9401 = vmatprep.subr.bf16.mxu1 %v15403_v54  ;;  %v15476_v63 = vld [vmem:[#allocation7 + $0x2a0] ss:$24 sps:$4 sm:$0xff]   ;;  %v15481_v54 = vld [vmem:[#allocation7 + $0x11e4] ss:$24 sps:$4 sm:$0xff]  }
 0xb80   :  { %10882 = vmatprep.subr.bf16.mxu0 %v15406_v14  ;;  %v15484_v14 = vld [vmem:[#allocation7 + $0x2d4] ss:$24 sps:$4 sm:$0xff]  }
 0xb82   :  { %9402 = vmatpush1.bf16.msra.mxu1 %v15401_v28  ;;  %v15479_v28 = vld [vmem:[#allocation7 + $0x11e0] ss:$24 sps:$4 sm:$0xff]  }
 0xb83   :  { %10883 = vmatpush1.bf16.msra.mxu0 %v15404_v26  ;;  %9403 = vmatprep.subr.bf16.mxu1 %v15409_v13  ;;  %v15482_v26 = vld [vmem:[#allocation7 + $0x2d0] ss:$24 sps:$4 sm:$0xff]   ;;  %v15487_v13 = vld [vmem:[#allocation7 + $0x304] ss:$24 sps:$4 sm:$0xff]  }
 0xb84   :  { %10884 = vmatprep.subr.bf16.mxu0 %v15412_v16  ;;  %v15490_v16 = vld [vmem:[#allocation7 + $0x604] ss:$24 sps:$4 sm:$0xff]  }
 0xb86   :  { %9404 = vmatpush1.bf16.msra.mxu1 %v15407_v61  ;;  %v15485_v61 = vld [vmem:[#allocation7 + $0x300] ss:$24 sps:$4 sm:$0xff]  }
 0xb87   :  { %10885 = vmatpush1.bf16.msra.mxu0 %v15410_v6  ;;  %9405 = vmatprep.subr.bf16.mxu1 %v15415_v40  ;;  %v15488_v6 = vld [vmem:[#allocation7 + $0x600] ss:$24 sps:$4 sm:$0xff]   ;;  %v15493_v40 = vld [vmem:[#allocation7 + $0x334] ss:$24 sps:$4 sm:$0xff]  }
 0xb88   :  { %10886 = vmatprep.subr.bf16.mxu0 %v15418_v8  ;;  %v15496_v8 = vld [vmem:[#allocation7 + $0x634] ss:$24 sps:$4 sm:$0xff]  }
 0xb8a   :  { %9406 = vmatpush1.bf16.msra.mxu1 %v15413_v19  ;;  %v22369_v19 = vld [vmem:[#allocation29_spill] sm:$0xff] }
 0xb8b   :  { %10887 = vmatpush1.bf16.msra.mxu0 %v15416_v1  ;;  %9407 = vmatprep.subr.bf16.mxu1 %v15421_v49  ;;  %v15491_v1 = vld [vmem:[#allocation7 + $0x330] ss:$24 sps:$4 sm:$0xff]   ;;  %v22370_v49 = vld [vmem:[#allocation30_spill] sm:$0xff] }
 0xb8c   :  { %v9103_v53 = vpop.f32.mrb[28].mxu1  ;;  %10888 = vmatprep.subr.bf16.mxu0 %v15424_v59  ;;  %v15494_v59 = vld [vmem:[#allocation7 + $0x630] ss:$24 sps:$4 sm:$0xff]  }
 0xb8d   :  { %v9144_v52 = vpop.f32.mrb[28].mxu0  ;;  %v9105_v41 = vpop.f32.mrb[29].mxu1 }
 0xb8e   :  { %v21028_v0 = vadd.f32 %v9144_v52, %v9103_v53  ;;  %v9146_v60 = vpop.f32.mrb[29].mxu0  ;;  %9408 = vmatpush1.bf16.msra.mxu1 %v15419_v62  ;;  %v9107_v3 = vpop.f32.mrb[30].mxu1  ;;  %v15499_v62 = vld [vmem:[#allocation7 + $0x364] ss:$24 sps:$4 sm:$0xff]   ;;  %v15497_v53 = vld [vmem:[#allocation7 + $0x360] ss:$24 sps:$4 sm:$0xff]  }
 0xb8f   :  { %v21030_v57 = vadd.f32 %v9146_v60, %v9105_v41  ;;  %10889 = vmatpush1.bf16.msra.mxu0 %v15422_v32  ;;  %v9148_v2 = vpop.f32.mrb[30].mxu0  ;;  %v9108_v18 = vpop.f32.mrb[31].mxu1  ;;  %9409 = vmatprep.subr.bf16.mxu1 %v15427_v29  ;;  %v22371_v32 = vld [vmem:[#allocation33_spill] sm:$0xff]  ;;  %v15503_v41 = vld [vmem:[#allocation7 + $0x390] ss:$24 sps:$4 sm:$0xff]  }
 0xb90   :  { %v9149_v45 = vpop.f32.mrb[31].mxu0  ;;  %10890 = vmatprep.subr.bf16.mxu0 %v15430_v22  ;;  %v15502_v29 = vld [vmem:[#allocation7 + $0x664] ss:$24 sps:$4 sm:$0xff]   ;;  %v15505_v22 = vld [vmem:[#allocation7 + $0x394] ss:$24 sps:$4 sm:$0xff]  }
 0xb91   :  { %v15508_v52 = vld [vmem:[#allocation7 + $0x694] ss:$24 sps:$4 sm:$0xff]   ;;  %v15506_v60 = vld [vmem:[#allocation7 + $0x690] ss:$24 sps:$4 sm:$0xff]   ;;  %v15511_v3 = vld [vmem:[#allocation7 + $0x3c4] ss:$24 sps:$4 sm:$0xff]  }
 0xb92   :  { %9410 = vmatpush1.bf16.msra.mxu1 %v15425_v44  ;;  %v15514_v44 = vld [vmem:[#allocation7 + $0x6c4] ss:$24 sps:$4 sm:$0xff]   ;;  %v15509_v2 = vld [vmem:[#allocation7 + $0x3c0] ss:$24 sps:$4 sm:$0xff]   ;;  %v15515_v45 = vld [vmem:[#allocation7 + $0x3f0] ss:$24 sps:$4 sm:$0xff]  }
 0xb93   :  { %10891 = vmatpush1.bf16.msra.mxu0 %v15428_v21  ;;  %9411 = vmatprep.subr.bf16.mxu1 %v15433_v30  ;;  %v15512_v18 = vld [vmem:[#allocation7 + $0x6c0] ss:$24 sps:$4 sm:$0xff]   ;;  %v15517_v21 = vld [vmem:[#allocation7 + $0x3f4] ss:$24 sps:$4 sm:$0xff]  }
 0xb94   :  { %10892 = vmatprep.subr.bf16.mxu0 %v15436_v47  ;;  %v15520_v30 = vld [vmem:[#allocation7 + $0x6f4] ss:$24 sps:$4 sm:$0xff]   ;;  %v15518_v47 = vld [vmem:[#allocation7 + $0x6f0] ss:$24 sps:$4 sm:$0xff]  }
 0xb96   :  { %9412 = vmatpush1.bf16.msra.mxu1 %v15431_v46  ;;  %v15523_v46 = vld [vmem:[#allocation7 + $0x424] ss:$24 sps:$4 sm:$0xff]  }
 0xb97   :  { %10893 = vmatpush1.bf16.msra.mxu0 %v15434_v24  ;;  %9413 = vmatprep.subr.bf16.mxu1 %v15439_v4  ;;  %v15526_v4 = vld [vmem:[#allocation7 + $0x724] ss:$24 sps:$4 sm:$0xff]  }
 0xb98   :  { %10894 = vmatprep.subr.bf16.mxu0 %v15442_v42 }
 0xb9a   :  { %9414 = vmatpush1.bf16.msra.mxu1 %v15437_v33 }
 0xb9b   :  { %10895 = vmatpush1.bf16.msra.mxu0 %v15440_v38  ;;  %9415 = vmatprep.subr.bf16.mxu1 %v15445_v50 }
 0xb9c   :  { %10896 = vmatprep.subr.bf16.mxu0 %v15448_v20 }
 0xb9e   :  { %9416 = vmatpush1.bf16.msra.mxu1 %v15443_v37 }
 0xb9f   :  { %10897 = vmatpush1.bf16.msra.mxu0 %v15446_v12  ;;  %9417 = vmatprep.subr.bf16.mxu1 %v15451_v5  ;;  %v15521_v12 = vld [vmem:[#allocation7 + $0x420] ss:$24 sps:$4 sm:$0xff]  }
 0xba0   :  { %10898 = vmatprep.subr.bf16.mxu0 %v15454_v25 }
 0xba2   :  { %9418 = vmatpush1.bf16.msra.mxu1 %v15449_v39  ;;  %v15524_v39 = vld [vmem:[#allocation7 + $0x720] ss:$24 sps:$4 sm:$0xff]  }
 0xba3   :  { %10899 = vmatpush1.bf16.msra.mxu0 %v15452_v23  ;;  %9419 = vmatprep.subr.bf16.mxu1 %v15457_v27  ;;  %v15529_v23 = vld [vmem:[#allocation7 + $0x454] ss:$24 sps:$4 sm:$0xff]  }
 0xba4   :  { %10900 = vmatprep.subr.bf16.mxu0 %v15460_v58  ;;  %v15527_v58 = vld [vmem:[#allocation7 + $0x450] ss:$24 sps:$4 sm:$0xff]  }
 0xba6   :  { %9420 = vmatpush1.bf16.msra.mxu1 %v15455_v55  ;;  %v15535_v55 = vld [vmem:[#allocation7 + $0x484] ss:$24 sps:$4 sm:$0xff]  }
 0xba7   :  { %10901 = vmatpush1.bf16.msra.mxu0 %v15458_v15  ;;  %9421 = vmatprep.subr.bf16.mxu1 %v15463_v10  ;;  %v15538_v15 = vld [vmem:[#allocation7 + $0x784] ss:$24 sps:$4 sm:$0xff]   ;;  %v15533_v10 = vld [vmem:[#allocation7 + $0x480] ss:$24 sps:$4 sm:$0xff]  }
 0xba8   :  { %10902 = vmatprep.subr.bf16.mxu0 %v15466_v9  ;;  %v15536_v9 = vld [vmem:[#allocation7 + $0x780] ss:$24 sps:$4 sm:$0xff]  }
 0xbaa   :  { %9422 = vmatpush1.bf16.msra.mxu1 %v15461_v56  ;;  %v15541_v56 = vld [vmem:[#allocation7 + $0x4b4] ss:$24 sps:$4 sm:$0xff]  }
 0xbab   :  { %10903 = vmatpush1.bf16.msra.mxu0 %v15464_v35  ;;  %9423 = vmatprep.subr.bf16.mxu1 %v15469_v31  ;;  %v15544_v35 = vld [vmem:[#allocation7 + $0x7b4] ss:$24 sps:$4 sm:$0xff]   ;;  %v15539_v31 = vld [vmem:[#allocation7 + $0x4b0] ss:$24 sps:$4 sm:$0xff]  }
 0xbac   :  { %10904 = vmatprep.subr.bf16.mxu0 %v15472_v7  ;;  %v15542_v7 = vld [vmem:[#allocation7 + $0x7b0] ss:$24 sps:$4 sm:$0xff]  }
 0xbae   :  { %9424 = vmatpush1.bf16.msra.mxu1 %v15467_v43  ;;  %v15547_v43 = vld [vmem:[#allocation7 + $0x4e4] ss:$24 sps:$4 sm:$0xff]  }
 0xbaf   :  { %10905 = vmatpush1.bf16.msra.mxu0 %v15470_v48  ;;  %9425 = vmatprep.subr.bf16.mxu1 %v15475_v51  ;;  %v15550_v48 = vld [vmem:[#allocation7 + $0x7e4] ss:$24 sps:$4 sm:$0xff]   ;;  %v15545_v51 = vld [vmem:[#allocation7 + $0x4e0] ss:$24 sps:$4 sm:$0xff]  }
 0xbb0   :  { %10906 = vmatprep.subr.bf16.mxu0 %v15478_v34  ;;  %v15548_v34 = vld [vmem:[#allocation7 + $0x7e0] ss:$24 sps:$4 sm:$0xff]  }
 0xbb2   :  { %9426 = vmatpush1.bf16.msra.mxu1 %v15473_v17  ;;  %v15553_v17 = vld [vmem:[#allocation7 + $0x514] ss:$24 sps:$4 sm:$0xff]  }
 0xbb3   :  { %10907 = vmatpush1.bf16.msra.mxu0 %v15476_v63  ;;  %9427 = vmatprep.subr.bf16.mxu1 %v15481_v54  ;;  %v15556_v63 = vld [vmem:[#allocation7 + $0x814] ss:$24 sps:$4 sm:$0xff]   ;;  %v15551_v54 = vld [vmem:[#allocation7 + $0x510] ss:$24 sps:$4 sm:$0xff]  }
 0xbb4   :  { %10908 = vmatprep.subr.bf16.mxu0 %v15484_v14  ;;  %v15554_v14 = vld [vmem:[#allocation7 + $0x810] ss:$24 sps:$4 sm:$0xff]  }
 0xbb6   :  { %9428 = vmatpush1.bf16.msra.mxu1 %v15479_v28  ;;  %v15559_v28 = vld [vmem:[#allocation7 + $0x544] ss:$24 sps:$4 sm:$0xff]  }
 0xbb7   :  { %10909 = vmatpush1.bf16.msra.mxu0 %v15482_v26  ;;  %10919 = vmatprep.subr.bf16.mxu1 %v15487_v13  ;;  %v15562_v26 = vld [vmem:[#allocation7 + $0x844] ss:$24 sps:$4 sm:$0xff]   ;;  %v15557_v13 = vld [vmem:[#allocation7 + $0x540] ss:$24 sps:$4 sm:$0xff]  }
 0xbb8   :  { %10960 = vmatprep.subr.bf16.mxu0 %v15490_v16  ;;  %v15560_v16 = vld [vmem:[#allocation7 + $0x840] ss:$24 sps:$4 sm:$0xff]  }
 0xbb9   :  { %9430 = vmatmul.mubr.bf16.vlgmr.msra.gmra.mrb[44].mxu1 %v21014_v11  ;;  %v15500_v11 = vld [vmem:[#allocation7 + $0x660] ss:$24 sps:$4 sm:$0xff]  }
 0xbba   :  { %10911 = vmatmul.mubr.bf16.vlgmr.msra.gmra.mrb[44].mxu0 %v22369_v19  ;;  %10920 = vmatpush1.bf16.msra.mxu1 %v15485_v61  ;;  %v15565_v61 = vld [vmem:[#allocation7 + $0x574] ss:$24 sps:$4 sm:$0xff]  }
 0xbbb   :  { %10951 = vmatprep.mubr.bf16.mxu1 %v22370_v49  ;;  %10961 = vmatpush1.bf16.msra.mxu0 %v15488_v6  ;;  %v15568_v6 = vld [vmem:[#allocation7 + $0x874] ss:$24 sps:$4 sm:$0xff]  }
 0xbbc   :  { %10992 = vmatprep.mubr.bf16.mxu0 %v22371_v32  ;;  %10921 = vmatprep.subr.bf16.mxu1 %v15493_v40  ;;  %v15563_v40 = vld [vmem:[#allocation7 + $0x570] ss:$24 sps:$4 sm:$0xff]  }
 0xbbd   :  { %10962 = vmatprep.subr.bf16.mxu0 %v15496_v8  ;;  %v15566_v8 = vld [vmem:[#allocation7 + $0x870] ss:$24 sps:$4 sm:$0xff]  }
 0xbbe   :  { %10922 = vmatpush1.bf16.msra.mxu1 %v15491_v1  ;;  %v15571_v1 = vld [vmem:[#allocation7 + $0x5a4] ss:$24 sps:$4 sm:$0xff]  }
 0xbbf   :  { %10963 = vmatpush1.bf16.msra.mxu0 %v15494_v59  ;;  %10923 = vmatprep.subr.bf16.mxu1 %v15499_v62  ;;  %v15574_v59 = vld [vmem:[#allocation7 + $0x8a4] ss:$24 sps:$4 sm:$0xff]   ;;  %v15569_v62 = vld [vmem:[#allocation7 + $0x5a0] ss:$24 sps:$4 sm:$0xff]  }
 0xbc0   :  { %10964 = vmatprep.subr.bf16.mxu0 %v15502_v29  ;;  %v15572_v29 = vld [vmem:[#allocation7 + $0x8a0] ss:$24 sps:$4 sm:$0xff]  }
 0xbc2   :  { %10924 = vmatpush1.bf16.msra.mxu1 %v15497_v53  ;;  %v15577_v53 = vld [vmem:[#allocation7 + $0x5d4] ss:$24 sps:$4 sm:$0xff]  }
 0xbc3   :  { %10965 = vmatpush1.bf16.msra.mxu0 %v15500_v11  ;;  %10925 = vmatprep.subr.bf16.mxu1 %v15505_v22  ;;  %v15580_v11 = vld [vmem:[#allocation7 + $0x8d4] ss:$24 sps:$4 sm:$0xff]   ;;  %v15575_v22 = vld [vmem:[#allocation7 + $0x5d0] ss:$24 sps:$4 sm:$0xff]  }
 0xbc4   :  { %10966 = vmatprep.subr.bf16.mxu0 %v15508_v52  ;;  %v15578_v52 = vld [vmem:[#allocation7 + $0x8d0] ss:$24 sps:$4 sm:$0xff]  }
 0xbc6   :  { %10926 = vmatpush1.bf16.msra.mxu1 %v15503_v41  ;;  %v15583_v41 = vld [vmem:[#allocation7 + $0xc] ss:$24 sps:$4 sm:$0xff]  }
 0xbc7   :  { %10967 = vmatpush1.bf16.msra.mxu0 %v15506_v60  ;;  %10927 = vmatprep.subr.bf16.mxu1 %v15511_v3  ;;  %v15586_v60 = vld [vmem:[#allocation7 + $0x30c] ss:$24 sps:$4 sm:$0xff]   ;;  %v15581_v3 = vld [vmem:[#allocation7 + $0x8] ss:$24 sps:$4 sm:$0xff]  }
 0xbc8   :  { %10968 = vmatprep.subr.bf16.mxu0 %v15514_v44  ;;  %v15584_v44 = vld [vmem:[#allocation7 + $0x308] ss:$24 sps:$4 sm:$0xff]  }
 0xbca   :  { %10928 = vmatpush1.bf16.msra.mxu1 %v15509_v2  ;;  %v15589_v2 = vld [vmem:[#allocation7 + $0x3c] ss:$24 sps:$4 sm:$0xff]  }
 0xbcb   :  { %10969 = vmatpush1.bf16.msra.mxu0 %v15512_v18  ;;  %10929 = vmatprep.subr.bf16.mxu1 %v15517_v21  ;;  %v22372_v18 = vld [vmem:[#allocation32_spill] sm:$0xff] }
 0xbcc   :  { %v9185_v24 = vpop.f32.mrb[32].mxu1  ;;  %10970 = vmatprep.subr.bf16.mxu0 %v15520_v30  ;;  %v15592_v21 = vld [vmem:[#allocation7 + $0x33c] ss:$24 sps:$4 sm:$0xff]   ;;  %v22373_v30 = vld [vmem:[#allocation35_spill] sm:$0xff] }
 0xbcd   :  { %v21037_v42 = vadd.f32 %v9185_v24, %v21028_v0  ;;  %v21039_v33 = vpop.f32.mrb[32].mxu0  ;;  %v9187_v38 = vpop.f32.mrb[33].mxu1  ;;  %v15532_v0 = vld [vmem:[#allocation7 + $0x754] ss:$24 sps:$4 sm:$0xff]  }
 0xbce   :  { %v21042_v50 = vadd.f32 %v9187_v38, %v21030_v57  ;;  %v21044_v20 = vpop.f32.mrb[33].mxu0  ;;  %v9189_v37 = vpop.f32.mrb[34].mxu1  ;;  %10930 = vmatpush1.bf16.msra.mxu1 %v15515_v45  ;;  %v15530_v57 = vld [vmem:[#allocation7 + $0x750] ss:$24 sps:$4 sm:$0xff]   ;;  %v15598_v24 = vld [vmem:[#allocation7 + $0x36c] ss:$24 sps:$4 sm:$0xff]  }
 0xbcf   :  { %v9230_v5 = vpop.f32.mrb[34].mxu0  ;;  %10971 = vmatpush1.bf16.msra.mxu0 %v15518_v47  ;;  %v9190_v25 = vpop.f32.mrb[35].mxu1  ;;  %10931 = vmatprep.subr.bf16.mxu1 %v15523_v46  ;;  %v15587_v45 = vld [vmem:[#allocation7 + $0x38] ss:$24 sps:$4 sm:$0xff]   ;;  %v15595_v46 = vld [vmem:[#allocation7 + $0x6c] ss:$24 sps:$4 sm:$0xff]  }
 0xbd0   :  { %v9231_v27 = vpop.f32.mrb[35].mxu0  ;;  %10972 = vmatprep.subr.bf16.mxu0 %v15526_v4  ;;  %v15590_v47 = vld [vmem:[#allocation7 + $0x338] ss:$24 sps:$4 sm:$0xff]   ;;  %v15593_v4 = vld [vmem:[#allocation7 + $0x68] ss:$24 sps:$4 sm:$0xff]  }
 0xbd1   :  { %v15596_v38 = vld [vmem:[#allocation7 + $0x368] ss:$24 sps:$4 sm:$0xff]   ;;  %v15601_v37 = vld [vmem:[#allocation7 + $0x9c] ss:$24 sps:$4 sm:$0xff]   ;;  %v15599_v5 = vld [vmem:[#allocation7 + $0x98] ss:$24 sps:$4 sm:$0xff]  }
 0xbd2   :  { %10932 = vmatpush1.bf16.msra.mxu1 %v15521_v12  ;;  %v15604_v12 = vld [vmem:[#allocation7 + $0x39c] ss:$24 sps:$4 sm:$0xff]   ;;  %v15602_v25 = vld [vmem:[#allocation7 + $0x398] ss:$24 sps:$4 sm:$0xff]   ;;  %v15605_v27 = vld [vmem:[#allocation7 + $0xc8] ss:$24 sps:$4 sm:$0xff]  }
 0xbd3   :  { %10973 = vmatpush1.bf16.msra.mxu0 %v15524_v39  ;;  %10933 = vmatprep.subr.bf16.mxu1 %v15529_v23  ;;  %v15607_v39 = vld [vmem:[#allocation7 + $0xcc] ss:$24 sps:$4 sm:$0xff]  }
 0xbd4   :  { %10974 = vmatprep.subr.bf16.mxu0 %v15532_v0  ;;  %v15610_v23 = vld [vmem:[#allocation7 + $0x3cc] ss:$24 sps:$4 sm:$0xff]   ;;  %v15608_v0 = vld [vmem:[#allocation7 + $0x3c8] ss:$24 sps:$4 sm:$0xff]  }
 0xbd6   :  { %10934 = vmatpush1.bf16.msra.mxu1 %v15527_v58  ;;  %v15613_v58 = vld [vmem:[#allocation7 + $0xfc] ss:$24 sps:$4 sm:$0xff]  }
 0xbd7   :  { %10975 = vmatpush1.bf16.msra.mxu0 %v15530_v57  ;;  %10935 = vmatprep.subr.bf16.mxu1 %v15535_v55  ;;  %v15616_v57 = vld [vmem:[#allocation7 + $0x3fc] ss:$24 sps:$4 sm:$0xff]   ;;  %v15611_v55 = vld [vmem:[#allocation7 + $0xf8] ss:$24 sps:$4 sm:$0xff]  }
 0xbd8   :  { %10976 = vmatprep.subr.bf16.mxu0 %v15538_v15  ;;  %v15614_v15 = vld [vmem:[#allocation7 + $0x3f8] ss:$24 sps:$4 sm:$0xff]  }
 0xbda   :  { %10936 = vmatpush1.bf16.msra.mxu1 %v15533_v10  ;;  %v15619_v10 = vld [vmem:[#allocation7 + $0x12c] ss:$24 sps:$4 sm:$0xff]  }
 0xbdb   :  { %10977 = vmatpush1.bf16.msra.mxu0 %v15536_v9  ;;  %10937 = vmatprep.subr.bf16.mxu1 %v15541_v56  ;;  %v15622_v56 = vld [vmem:[#allocation7 + $0x42c] ss:$24 sps:$4 sm:$0xff]  }
 0xbdc   :  { %10978 = vmatprep.subr.bf16.mxu0 %v15544_v35 }
 0xbde   :  { %10938 = vmatpush1.bf16.msra.mxu1 %v15539_v31 }
 0xbdf   :  { %10979 = vmatpush1.bf16.msra.mxu0 %v15542_v7  ;;  %10939 = vmatprep.subr.bf16.mxu1 %v15547_v43 }
 0xbe0   :  { %10980 = vmatprep.subr.bf16.mxu0 %v15550_v48 }
 0xbe2   :  { %10940 = vmatpush1.bf16.msra.mxu1 %v15545_v51 }
 0xbe3   :  { %10981 = vmatpush1.bf16.msra.mxu0 %v15548_v34  ;;  %10941 = vmatprep.subr.bf16.mxu1 %v15553_v17  ;;  %v15617_v34 = vld [vmem:[#allocation7 + $0x128] ss:$24 sps:$4 sm:$0xff]  }
 0xbe4   :  { %10982 = vmatprep.subr.bf16.mxu0 %v15556_v63 }
 0xbe6   :  { %10942 = vmatpush1.bf16.msra.mxu1 %v15551_v54 }
 0xbe7   :  { %10983 = vmatpush1.bf16.msra.mxu0 %v15554_v14  ;;  %10943 = vmatprep.subr.bf16.mxu1 %v15559_v28  ;;  %v15620_v14 = vld [vmem:[#allocation7 + $0x428] ss:$24 sps:$4 sm:$0xff]   ;;  %v15625_v28 = vld [vmem:[#allocation7 + $0x15c] ss:$24 sps:$4 sm:$0xff]  }
 0xbe8   :  { %10984 = vmatprep.subr.bf16.mxu0 %v15562_v26 }
 0xbea   :  { %10944 = vmatpush1.bf16.msra.mxu1 %v15557_v13 }
 0xbeb   :  { %10985 = vmatpush1.bf16.msra.mxu0 %v15560_v16  ;;  %10945 = vmatprep.subr.bf16.mxu1 %v15565_v61  ;;  %v15623_v16 = vld [vmem:[#allocation7 + $0x158] ss:$24 sps:$4 sm:$0xff]   ;;  %v15631_v61 = vld [vmem:[#allocation7 + $0x18c] ss:$24 sps:$4 sm:$0xff]  }
 0xbec   :  { %10986 = vmatprep.subr.bf16.mxu0 %v15568_v6  ;;  %v15634_v6 = vld [vmem:[#allocation7 + $0x48c] ss:$24 sps:$4 sm:$0xff]  }
 0xbee   :  { %10946 = vmatpush1.bf16.msra.mxu1 %v15563_v40  ;;  %v15629_v40 = vld [vmem:[#allocation7 + $0x188] ss:$24 sps:$4 sm:$0xff]  }
 0xbef   :  { %10987 = vmatpush1.bf16.msra.mxu0 %v15566_v8  ;;  %10947 = vmatprep.subr.bf16.mxu1 %v15571_v1  ;;  %v15632_v8 = vld [vmem:[#allocation7 + $0x488] ss:$24 sps:$4 sm:$0xff]   ;;  %v15637_v1 = vld [vmem:[#allocation7 + $0x1bc] ss:$24 sps:$4 sm:$0xff]  }
 0xbf0   :  { %10988 = vmatprep.subr.bf16.mxu0 %v15574_v59  ;;  %v15640_v59 = vld [vmem:[#allocation7 + $0x4bc] ss:$24 sps:$4 sm:$0xff]  }
 0xbf2   :  { %10948 = vmatpush1.bf16.msra.mxu1 %v15569_v62  ;;  %v15635_v62 = vld [vmem:[#allocation7 + $0x1b8] ss:$24 sps:$4 sm:$0xff]  }
 0xbf3   :  { %10989 = vmatpush1.bf16.msra.mxu0 %v15572_v29  ;;  %10949 = vmatprep.subr.bf16.mxu1 %v15577_v53  ;;  %v15638_v29 = vld [vmem:[#allocation7 + $0x4b8] ss:$24 sps:$4 sm:$0xff]   ;;  %v15643_v53 = vld [vmem:[#allocation7 + $0x1ec] ss:$24 sps:$4 sm:$0xff]  }
 0xbf4   :  { %10990 = vmatprep.subr.bf16.mxu0 %v15580_v11  ;;  %v15646_v11 = vld [vmem:[#allocation7 + $0x4ec] ss:$24 sps:$4 sm:$0xff]  }
 0xbf6   :  { %10950 = vmatpush1.bf16.msra.mxu1 %v15575_v22  ;;  %v15641_v22 = vld [vmem:[#allocation7 + $0x1e8] ss:$24 sps:$4 sm:$0xff]  }
 0xbf7   :  { %10991 = vmatpush1.bf16.msra.mxu0 %v15578_v52  ;;  %11001 = vmatprep.subr.bf16.mxu1 %v15583_v41  ;;  %v15644_v52 = vld [vmem:[#allocation7 + $0x4e8] ss:$24 sps:$4 sm:$0xff]   ;;  %v15649_v41 = vld [vmem:[#allocation7 + $0x21c] ss:$24 sps:$4 sm:$0xff]  }
 0xbf8   :  { %11042 = vmatprep.subr.bf16.mxu0 %v15586_v60  ;;  %v15652_v60 = vld [vmem:[#allocation7 + $0x51c] ss:$24 sps:$4 sm:$0xff]  }
 0xbf9   :  { %10952 = vmatmul.mubr.bf16.vlgmr.msra.gmra.mrb[48].mxu1 %v22372_v18 }
 0xbfa   :  { %10993 = vmatmul.mubr.bf16.vlgmr.msra.gmra.mrb[48].mxu0 %v22373_v30  ;;  %11002 = vmatpush1.bf16.msra.mxu1 %v15581_v3  ;;  %v15647_v3 = vld [vmem:[#allocation7 + $0x218] ss:$24 sps:$4 sm:$0xff]  }
 0xbfb   :  { %11033 = vmatprep.mubr.bf16.mxu1 %v22368_v36  ;;  %11043 = vmatpush1.bf16.msra.mxu0 %v15584_v44  ;;  %v15650_v44 = vld [vmem:[#allocation7 + $0x518] ss:$24 sps:$4 sm:$0xff]  }
 0xbfc   :  { %11074 = vmatprep.mubr.bf16.mxu0 %v22370_v49  ;;  %11003 = vmatprep.subr.bf16.mxu1 %v15589_v2  ;;  %v15655_v2 = vld [vmem:[#allocation7 + $0x24c] ss:$24 sps:$4 sm:$0xff]  }
 0xbfd   :  { %11044 = vmatprep.subr.bf16.mxu0 %v15592_v21  ;;  %v15658_v21 = vld [vmem:[#allocation7 + $0x54c] ss:$24 sps:$4 sm:$0xff]  }
 0xbfe   :  { %11004 = vmatpush1.bf16.msra.mxu1 %v15587_v45  ;;  %v15653_v45 = vld [vmem:[#allocation7 + $0x248] ss:$24 sps:$4 sm:$0xff]  }
 0xbff   :  { %11045 = vmatpush1.bf16.msra.mxu0 %v15590_v47  ;;  %11005 = vmatprep.subr.bf16.mxu1 %v15595_v46  ;;  %v15656_v47 = vld [vmem:[#allocation7 + $0x548] ss:$24 sps:$4 sm:$0xff]   ;;  %v15661_v46 = vld [vmem:[#allocation7 + $0x27c] ss:$24 sps:$4 sm:$0xff]  }
 0xc00   :  { %11046 = vmatprep.subr.bf16.mxu0 %v15598_v24  ;;  %v15664_v24 = vld [vmem:[#allocation7 + $0x57c] ss:$24 sps:$4 sm:$0xff]  }
 0xc02   :  { %11006 = vmatpush1.bf16.msra.mxu1 %v15593_v4  ;;  %v15659_v4 = vld [vmem:[#allocation7 + $0x278] ss:$24 sps:$4 sm:$0xff]  }
 0xc03   :  { %11047 = vmatpush1.bf16.msra.mxu0 %v15596_v38  ;;  %11007 = vmatprep.subr.bf16.mxu1 %v15601_v37  ;;  %v15662_v38 = vld [vmem:[#allocation7 + $0x578] ss:$24 sps:$4 sm:$0xff]   ;;  %v15667_v37 = vld [vmem:[#allocation7 + $0x2ac] ss:$24 sps:$4 sm:$0xff]  }
 0xc04   :  { %11048 = vmatprep.subr.bf16.mxu0 %v15604_v12  ;;  %v15670_v12 = vld [vmem:[#allocation7 + $0x5ac] ss:$24 sps:$4 sm:$0xff]  }
 0xc06   :  { %11008 = vmatpush1.bf16.msra.mxu1 %v15599_v5  ;;  %v15665_v5 = vld [vmem:[#allocation7 + $0x2a8] ss:$24 sps:$4 sm:$0xff]  }
 0xc07   :  { %11049 = vmatpush1.bf16.msra.mxu0 %v15602_v25  ;;  %11009 = vmatprep.subr.bf16.mxu1 %v15607_v39  ;;  %v15668_v25 = vld [vmem:[#allocation7 + $0x5a8] ss:$24 sps:$4 sm:$0xff]   ;;  %v15673_v39 = vld [vmem:[#allocation7 + $0x2dc] ss:$24 sps:$4 sm:$0xff]  }
 0xc08   :  { %11050 = vmatprep.subr.bf16.mxu0 %v15610_v23  ;;  %v15676_v23 = vld [vmem:[#allocation7 + $0x5dc] ss:$24 sps:$4 sm:$0xff]  }
 0xc0a   :  { %11010 = vmatpush1.bf16.msra.mxu1 %v15605_v27  ;;  %v15671_v27 = vld [vmem:[#allocation7 + $0x2d8] ss:$24 sps:$4 sm:$0xff]  }
 0xc0b   :  { %11051 = vmatpush1.bf16.msra.mxu0 %v15608_v0  ;;  %11011 = vmatprep.subr.bf16.mxu1 %v15613_v58  ;;  %v15674_v0 = vld [vmem:[#allocation7 + $0x5d8] ss:$24 sps:$4 sm:$0xff]   ;;  %v15679_v58 = vld [vmem:[#allocation7 + $0x60c] ss:$24 sps:$4 sm:$0xff]  }
 0xc0c   :  { %v9267_v9 = vpop.f32.mrb[36].mxu1  ;;  %11052 = vmatprep.subr.bf16.mxu0 %v15616_v57  ;;  %v15682_v57 = vld [vmem:[#allocation7 + $0x14] ss:$24 sps:$4 sm:$0xff]  }
 0xc0d   :  { %v9268_v35 = vadd.f32 %v9267_v9, %v21039_v33  ;;  %v9308_v31 = vpop.f32.mrb[36].mxu0  ;;  %v9269_v7 = vpop.f32.mrb[37].mxu1  ;;  %v15628_v33 = vld [vmem:[#allocation7 + $0x45c] ss:$24 sps:$4 sm:$0xff]  }
 0xc0e   :  { %v9270_v43 = vadd.f32 %v9269_v7, %v21044_v20  ;;  %v9310_v48 = vpop.f32.mrb[37].mxu0  ;;  %v9271_v51 = vpop.f32.mrb[38].mxu1  ;;  %11012 = vmatpush1.bf16.msra.mxu1 %v15611_v55  ;;  %v15626_v20 = vld [vmem:[#allocation7 + $0x458] ss:$24 sps:$4 sm:$0xff]   ;;  %v15677_v55 = vld [vmem:[#allocation7 + $0x608] ss:$24 sps:$4 sm:$0xff]  }
 0xc0f   :  { %v21052_v17 = vadd.f32 %v9308_v31, %v9268_v35  ;;  %v9312_v63 = vpop.f32.mrb[38].mxu0  ;;  %11053 = vmatpush1.bf16.msra.mxu0 %v15614_v15  ;;  %v9272_v54 = vpop.f32.mrb[39].mxu1  ;;  %11013 = vmatprep.subr.bf16.mxu1 %v15619_v10  ;;  %v15680_v15 = vld [vmem:[#allocation7 + $0x10] ss:$24 sps:$4 sm:$0xff]   ;;  %v15685_v10 = vld [vmem:[#allocation7 + $0x63c] ss:$24 sps:$4 sm:$0xff]  }
 0xc10   :  { %v21054_v26 = vadd.f32 %v9310_v48, %v9270_v43  ;;  %v9313_v13 = vpop.f32.mrb[39].mxu0  ;;  %11054 = vmatprep.subr.bf16.mxu0 %v15622_v56  ;;  %v15688_v9 = vld [vmem:[#allocation7 + $0x44] ss:$24 sps:$4 sm:$0xff]   ;;  %v15683_v56 = vld [vmem:[#allocation7 + $0x638] ss:$24 sps:$4 sm:$0xff]  }
 0xc11   :  { %v15686_v35 = vld [vmem:[#allocation7 + $0x40] ss:$24 sps:$4 sm:$0xff]   ;;  %v15691_v31 = vld [vmem:[#allocation7 + $0x66c] ss:$24 sps:$4 sm:$0xff]   ;;  %v15692_v48 = vld [vmem:[#allocation7 + $0x70] ss:$24 sps:$4 sm:$0xff]  }
 0xc12   :  { %11014 = vmatpush1.bf16.msra.mxu1 %v15617_v34  ;;  %v15694_v7 = vld [vmem:[#allocation7 + $0x74] ss:$24 sps:$4 sm:$0xff]   ;;  %v15689_v43 = vld [vmem:[#allocation7 + $0x668] ss:$24 sps:$4 sm:$0xff]   ;;  %v15700_v34 = vld [vmem:[#allocation7 + $0xa4] ss:$24 sps:$4 sm:$0xff]  }
 0xc13   :  { %11055 = vmatpush1.bf16.msra.mxu0 %v15620_v14  ;;  %11015 = vmatprep.subr.bf16.mxu1 %v15625_v28  ;;  %v15697_v51 = vld [vmem:[#allocation7 + $0x69c] ss:$24 sps:$4 sm:$0xff]   ;;  %v15695_v63 = vld [vmem:[#allocation7 + $0x698] ss:$24 sps:$4 sm:$0xff]   ;;  %v15703_v14 = vld [vmem:[#allocation7 + $0x6cc] ss:$24 sps:$4 sm:$0xff]  }
 0xc14   :  { %11056 = vmatprep.subr.bf16.mxu0 %v15628_v33  ;;  %v15698_v54 = vld [vmem:[#allocation7 + $0xa0] ss:$24 sps:$4 sm:$0xff]   ;;  %v15706_v28 = vld [vmem:[#allocation7 + $0xd4] ss:$24 sps:$4 sm:$0xff]   ;;  %v15704_v13 = vld [vmem:[#allocation7 + $0xd0] ss:$24 sps:$4 sm:$0xff]  }
 0xc15   :  { %v15709_v33 = vld [vmem:[#allocation7 + $0x6fc] ss:$24 sps:$4 sm:$0xff]  }
 0xc16   :  { %11016 = vmatpush1.bf16.msra.mxu1 %v15623_v16  ;;  %v15712_v16 = vld [vmem:[#allocation7 + $0x104] ss:$24 sps:$4 sm:$0xff]  }
 0xc17   :  { %11057 = vmatpush1.bf16.msra.mxu0 %v15626_v20  ;;  %11017 = vmatprep.subr.bf16.mxu1 %v15631_v61  ;;  %v15707_v20 = vld [vmem:[#allocation7 + $0x6f8] ss:$24 sps:$4 sm:$0xff]  }
 0xc18   :  { %11058 = vmatprep.subr.bf16.mxu0 %v15634_v6  ;;  %v15710_v61 = vld [vmem:[#allocation7 + $0x100] ss:$24 sps:$4 sm:$0xff]   ;;  %v15715_v6 = vld [vmem:[#allocation7 + $0x72c] ss:$24 sps:$4 sm:$0xff]  }
 0xc1a   :  { %11018 = vmatpush1.bf16.msra.mxu1 %v15629_v40 }
 0xc1b   :  { %11059 = vmatpush1.bf16.msra.mxu0 %v15632_v8  ;;  %11019 = vmatprep.subr.bf16.mxu1 %v15637_v1  ;;  %v15718_v8 = vld [vmem:[#allocation7 + $0x134] ss:$24 sps:$4 sm:$0xff]  }
 0xc1c   :  { %11060 = vmatprep.subr.bf16.mxu0 %v15640_v59 }
 0xc1e   :  { %11020 = vmatpush1.bf16.msra.mxu1 %v15635_v62 }
 0xc1f   :  { %11061 = vmatpush1.bf16.msra.mxu0 %v15638_v29  ;;  %11021 = vmatprep.subr.bf16.mxu1 %v15643_v53 }
 0xc20   :  { %11062 = vmatprep.subr.bf16.mxu0 %v15646_v11  ;;  %v15713_v11 = vld [vmem:[#allocation7 + $0x728] ss:$24 sps:$4 sm:$0xff]  }
 0xc22   :  { %11022 = vmatpush1.bf16.msra.mxu1 %v15641_v22 }
 0xc23   :  { %11063 = vmatpush1.bf16.msra.mxu0 %v15644_v52  ;;  %11023 = vmatprep.subr.bf16.mxu1 %v15649_v41 }
 0xc24   :  { %11064 = vmatprep.subr.bf16.mxu0 %v15652_v60  ;;  %v15716_v60 = vld [vmem:[#allocation7 + $0x130] ss:$24 sps:$4 sm:$0xff]  }
 0xc26   :  { %11024 = vmatpush1.bf16.msra.mxu1 %v15647_v3  ;;  %v15721_v3 = vld [vmem:[#allocation7 + $0x75c] ss:$24 sps:$4 sm:$0xff]  }
 0xc27   :  { %11065 = vmatpush1.bf16.msra.mxu0 %v15650_v44  ;;  %11025 = vmatprep.subr.bf16.mxu1 %v15655_v2  ;;  %v15724_v2 = vld [vmem:[#allocation7 + $0x164] ss:$24 sps:$4 sm:$0xff]  }
 0xc28   :  { %11066 = vmatprep.subr.bf16.mxu0 %v15658_v21  ;;  %v15719_v21 = vld [vmem:[#allocation7 + $0x758] ss:$24 sps:$4 sm:$0xff]  }
 0xc2a   :  { %11026 = vmatpush1.bf16.msra.mxu1 %v15653_v45  ;;  %v15722_v45 = vld [vmem:[#allocation7 + $0x160] ss:$24 sps:$4 sm:$0xff]  }
 0xc2b   :  { %11067 = vmatpush1.bf16.msra.mxu0 %v15656_v47  ;;  %11027 = vmatprep.subr.bf16.mxu1 %v15661_v46  ;;  %v15727_v47 = vld [vmem:[#allocation7 + $0x78c] ss:$24 sps:$4 sm:$0xff]  }
 0xc2c   :  { %11068 = vmatprep.subr.bf16.mxu0 %v15664_v24  ;;  %v15730_v46 = vld [vmem:[#allocation7 + $0x194] ss:$24 sps:$4 sm:$0xff]   ;;  %v15725_v24 = vld [vmem:[#allocation7 + $0x788] ss:$24 sps:$4 sm:$0xff]  }
 0xc2e   :  { %11028 = vmatpush1.bf16.msra.mxu1 %v15659_v4  ;;  %v15728_v4 = vld [vmem:[#allocation7 + $0x190] ss:$24 sps:$4 sm:$0xff]  }
 0xc2f   :  { %11069 = vmatpush1.bf16.msra.mxu0 %v15662_v38  ;;  %11029 = vmatprep.subr.bf16.mxu1 %v15667_v37  ;;  %v15733_v38 = vld [vmem:[#allocation7 + $0x7bc] ss:$24 sps:$4 sm:$0xff]  }
 0xc30   :  { %11070 = vmatprep.subr.bf16.mxu0 %v15670_v12  ;;  %v15736_v37 = vld [vmem:[#allocation7 + $0x1c4] ss:$24 sps:$4 sm:$0xff]   ;;  %v15731_v12 = vld [vmem:[#allocation7 + $0x7b8] ss:$24 sps:$4 sm:$0xff]  }
 0xc32   :  { %11030 = vmatpush1.bf16.msra.mxu1 %v15665_v5  ;;  %v15734_v5 = vld [vmem:[#allocation7 + $0x1c0] ss:$24 sps:$4 sm:$0xff]  }
 0xc33   :  { %11071 = vmatpush1.bf16.msra.mxu0 %v15668_v25  ;;  %11031 = vmatprep.subr.bf16.mxu1 %v15673_v39  ;;  %v15739_v25 = vld [vmem:[#allocation7 + $0x7ec] ss:$24 sps:$4 sm:$0xff]  }
 0xc34   :  { %11072 = vmatprep.subr.bf16.mxu0 %v15676_v23  ;;  %v15742_v39 = vld [vmem:[#allocation7 + $0x1f4] ss:$24 sps:$4 sm:$0xff]   ;;  %v15737_v23 = vld [vmem:[#allocation7 + $0x7e8] ss:$24 sps:$4 sm:$0xff]  }
 0xc36   :  { %11032 = vmatpush1.bf16.msra.mxu1 %v15671_v27  ;;  %v15740_v27 = vld [vmem:[#allocation7 + $0x1f0] ss:$24 sps:$4 sm:$0xff]  }
 0xc37   :  { %11073 = vmatpush1.bf16.msra.mxu0 %v15674_v0  ;;  %11083 = vmatprep.subr.bf16.mxu1 %v15679_v58  ;;  %v15745_v0 = vld [vmem:[#allocation7 + $0x81c] ss:$24 sps:$4 sm:$0xff]  }
 0xc38   :  { %11124 = vmatprep.subr.bf16.mxu0 %v15682_v57  ;;  %v15748_v58 = vld [vmem:[#allocation7 + $0x224] ss:$24 sps:$4 sm:$0xff]   ;;  %v15743_v57 = vld [vmem:[#allocation7 + $0x818] ss:$24 sps:$4 sm:$0xff]  }
 0xc39   :  { %11034 = vmatmul.mubr.bf16.vlgmr.msra.gmra.mrb[52].mxu1 %v22369_v19 }
 0xc3a   :  { %11075 = vmatmul.mubr.bf16.vlgmr.msra.gmra.mrb[52].mxu0 %v22372_v18  ;;  %11084 = vmatpush1.bf16.msra.mxu1 %v15677_v55  ;;  %v15746_v55 = vld [vmem:[#allocation7 + $0x220] ss:$24 sps:$4 sm:$0xff]  }
 0xc3b   :  { %11115 = vmatprep.mubr.bf16.mxu1 %v22371_v32  ;;  %11125 = vmatpush1.bf16.msra.mxu0 %v15680_v15  ;;  %v15751_v15 = vld [vmem:[#allocation7 + $0x84c] ss:$24 sps:$4 sm:$0xff]  }
 0xc3c   :  { %11156 = vmatprep.mubr.bf16.mxu0 %v22368_v36  ;;  %11085 = vmatprep.subr.bf16.mxu1 %v15685_v10  ;;  %v15701_v36 = vld [vmem:[#allocation7 + $0x6c8] ss:$24 sps:$4 sm:$0xff]   ;;  %v15754_v10 = vld [vmem:[#allocation7 + $0x254] ss:$24 sps:$4 sm:$0xff]  }
 0xc3d   :  { %11126 = vmatprep.subr.bf16.mxu0 %v15688_v9  ;;  %v15749_v9 = vld [vmem:[#allocation7 + $0x848] ss:$24 sps:$4 sm:$0xff]  }
 0xc3e   :  { %11086 = vmatpush1.bf16.msra.mxu1 %v15683_v56  ;;  %v15752_v56 = vld [vmem:[#allocation7 + $0x250] ss:$24 sps:$4 sm:$0xff]  }
 0xc3f   :  { %11127 = vmatpush1.bf16.msra.mxu0 %v15686_v35  ;;  %11087 = vmatprep.subr.bf16.mxu1 %v15691_v31  ;;  %v15757_v35 = vld [vmem:[#allocation7 + $0x87c] ss:$24 sps:$4 sm:$0xff]  }
 0xc40   :  { %11128 = vmatprep.subr.bf16.mxu0 %v15694_v7  ;;  %v15760_v31 = vld [vmem:[#allocation7 + $0x284] ss:$24 sps:$4 sm:$0xff]   ;;  %v15755_v7 = vld [vmem:[#allocation7 + $0x878] ss:$24 sps:$4 sm:$0xff]  }
 0xc42   :  { %11088 = vmatpush1.bf16.msra.mxu1 %v15689_v43  ;;  %v15758_v43 = vld [vmem:[#allocation7 + $0x280] ss:$24 sps:$4 sm:$0xff]  }
 0xc43   :  { %11129 = vmatpush1.bf16.msra.mxu0 %v15692_v48  ;;  %11089 = vmatprep.subr.bf16.mxu1 %v15697_v51  ;;  %v15763_v48 = vld [vmem:[#allocation7 + $0x8ac] ss:$24 sps:$4 sm:$0xff]  }
 0xc44   :  { %11130 = vmatprep.subr.bf16.mxu0 %v15700_v34  ;;  %v15766_v51 = vld [vmem:[#allocation7 + $0x2b4] ss:$24 sps:$4 sm:$0xff]   ;;  %v15761_v34 = vld [vmem:[#allocation7 + $0x8a8] ss:$24 sps:$4 sm:$0xff]  }
 0xc46   :  { %11090 = vmatpush1.bf16.msra.mxu1 %v15695_v63  ;;  %v15764_v63 = vld [vmem:[#allocation7 + $0x2b0] ss:$24 sps:$4 sm:$0xff]  }
 0xc47   :  { %11131 = vmatpush1.bf16.msra.mxu0 %v15698_v54  ;;  %11091 = vmatprep.subr.bf16.mxu1 %v15703_v14  ;;  %v15769_v54 = vld [vmem:[#allocation7 + $0x8dc] ss:$24 sps:$4 sm:$0xff]  }
 0xc48   :  { %11132 = vmatprep.subr.bf16.mxu0 %v15706_v28  ;;  %v15772_v14 = vld [vmem:[#allocation7 + $0x2e4] ss:$24 sps:$4 sm:$0xff]   ;;  %v15767_v28 = vld [vmem:[#allocation7 + $0x8d8] ss:$24 sps:$4 sm:$0xff]  }
 0xc4a   :  { %11092 = vmatpush1.bf16.msra.mxu1 %v15701_v36  ;;  %v15770_v36 = vld [vmem:[#allocation7 + $0x2e0] ss:$24 sps:$4 sm:$0xff]  }
 0xc4b   :  { %11133 = vmatpush1.bf16.msra.mxu0 %v15704_v13  ;;  %11093 = vmatprep.subr.bf16.mxu1 %v15709_v33  ;;  %v15775_v13 = vld [vmem:[#allocation7 + $0x314] ss:$24 sps:$4 sm:$0xff]  }
 0xc4c   :  { %v9349_v40 = vpop.f32.mrb[40].mxu1  ;;  %11134 = vmatprep.subr.bf16.mxu0 %v15712_v16  ;;  %v15778_v33 = vld [vmem:[#allocation7 + $0x614] ss:$24 sps:$4 sm:$0xff]   ;;  %v15773_v16 = vld [vmem:[#allocation7 + $0x310] ss:$24 sps:$4 sm:$0xff]  }
 0xc4d   :  { %v9390_v1 = vpop.f32.mrb[40].mxu0  ;;  %v9351_v59 = vpop.f32.mrb[41].mxu1 }
 0xc4e   :  { %v21060_v62 = vadd.f32 %v9390_v1, %v9349_v40  ;;  %v9392_v29 = vpop.f32.mrb[41].mxu0  ;;  %v9353_v53 = vpop.f32.mrb[42].mxu1  ;;  %11094 = vmatpush1.bf16.msra.mxu1 %v15707_v20  ;;  %v15776_v20 = vld [vmem:[#allocation7 + $0x610] ss:$24 sps:$4 sm:$0xff]   ;;  %v15779_v40 = vld [vmem:[#allocation7 + $0x340] ss:$24 sps:$4 sm:$0xff]  }
 0xc4f   :  { %v21062_v22 = vadd.f32 %v9392_v29, %v9351_v59  ;;  %v9394_v52 = vpop.f32.mrb[42].mxu0  ;;  %11135 = vmatpush1.bf16.msra.mxu0 %v15710_v61  ;;  %v9354_v41 = vpop.f32.mrb[43].mxu1  ;;  %11095 = vmatprep.subr.bf16.mxu1 %v15715_v6  ;;  %v15781_v61 = vld [vmem:[#allocation7 + $0x344] ss:$24 sps:$4 sm:$0xff]   ;;  %v15787_v1 = vld [vmem:[#allocation7 + $0x374] ss:$24 sps:$4 sm:$0xff]  }
 0xc50   :  { %v9395_v44 = vpop.f32.mrb[43].mxu0  ;;  %11136 = vmatprep.subr.bf16.mxu0 %v15718_v8  ;;  %v15784_v6 = vld [vmem:[#allocation7 + $0x644] ss:$24 sps:$4 sm:$0xff]   ;;  %v15782_v8 = vld [vmem:[#allocation7 + $0x640] ss:$24 sps:$4 sm:$0xff]  }
 0xc51   :  { %v15790_v59 = vld [vmem:[#allocation7 + $0x674] ss:$24 sps:$4 sm:$0xff]   ;;  %v15785_v29 = vld [vmem:[#allocation7 + $0x370] ss:$24 sps:$4 sm:$0xff]   ;;  %v15791_v52 = vld [vmem:[#allocation7 + $0x3a0] ss:$24 sps:$4 sm:$0xff]  }
 0xc52   :  { %11096 = vmatpush1.bf16.msra.mxu1 %v15713_v11  ;;  %v15788_v53 = vld [vmem:[#allocation7 + $0x670] ss:$24 sps:$4 sm:$0xff]   ;;  %v15793_v11 = vld [vmem:[#allocation7 + $0x3a4] ss:$24 sps:$4 sm:$0xff]   ;;  %v15799_v41 = vld [vmem:[#allocation7 + $0x3d4] ss:$24 sps:$4 sm:$0xff]  }
 0xc53   :  { %11137 = vmatpush1.bf16.msra.mxu0 %v15716_v60  ;;  %11097 = vmatprep.subr.bf16.mxu1 %v15721_v3  ;;  %v15802_v60 = vld [vmem:[#allocation7 + $0x6d4] ss:$24 sps:$4 sm:$0xff]   ;;  %v15800_v3 = vld [vmem:[#allocation7 + $0x6d0] ss:$24 sps:$4 sm:$0xff]   ;;  %v15805_v44 = vld [vmem:[#allocation7 + $0x404] ss:$24 sps:$4 sm:$0xff]  }
 0xc54   :  { %11138 = vmatprep.subr.bf16.mxu0 %v15724_v2  ;;  %v15808_v2 = vld [vmem:[#allocation7 + $0x704] ss:$24 sps:$4 sm:$0xff]  }
 0xc56   :  { %11098 = vmatpush1.bf16.msra.mxu1 %v15719_v21  ;;  %v15803_v21 = vld [vmem:[#allocation7 + $0x400] ss:$24 sps:$4 sm:$0xff]  }
 0xc57   :  { %11139 = vmatpush1.bf16.msra.mxu0 %v15722_v45  ;;  %11099 = vmatprep.subr.bf16.mxu1 %v15727_v47  ;;  %v15806_v45 = vld [vmem:[#allocation7 + $0x700] ss:$24 sps:$4 sm:$0xff]   ;;  %v15811_v47 = vld [vmem:[#allocation7 + $0x434] ss:$24 sps:$4 sm:$0xff]  }
 0xc58   :  { %11140 = vmatprep.subr.bf16.mxu0 %v15730_v46 }
 0xc5a   :  { %11100 = vmatpush1.bf16.msra.mxu1 %v15725_v24  ;;  %v15814_v24 = vld [vmem:[#allocation7 + $0x734] ss:$24 sps:$4 sm:$0xff]  }
 0xc5b   :  { %11141 = vmatpush1.bf16.msra.mxu0 %v15728_v4  ;;  %11101 = vmatprep.subr.bf16.mxu1 %v15733_v38 }
 0xc5c   :  { %11142 = vmatprep.subr.bf16.mxu0 %v15736_v37 }
 0xc5e   :  { %11102 = vmatpush1.bf16.msra.mxu1 %v15731_v12 }
 0xc5f   :  { %11143 = vmatpush1.bf16.msra.mxu0 %v15734_v5  ;;  %11103 = vmatprep.subr.bf16.mxu1 %v15739_v25 }
 0xc60   :  { %11144 = vmatprep.subr.bf16.mxu0 %v15742_v39 }
 0xc62   :  { %11104 = vmatpush1.bf16.msra.mxu1 %v15737_v23  ;;  %v15809_v23 = vld [vmem:[#allocation7 + $0x430] ss:$24 sps:$4 sm:$0xff]  }
 0xc63   :  { %11145 = vmatpush1.bf16.msra.mxu0 %v15740_v27  ;;  %11105 = vmatprep.subr.bf16.mxu1 %v15745_v0 }
 0xc64   :  { %11146 = vmatprep.subr.bf16.mxu0 %v15748_v58 }
 0xc66   :  { %11106 = vmatpush1.bf16.msra.mxu1 %v15743_v57  ;;  %v15817_v57 = vld [vmem:[#allocation7 + $0x464] ss:$24 sps:$4 sm:$0xff]  }
 0xc67   :  { %11147 = vmatpush1.bf16.msra.mxu0 %v15746_v55  ;;  %11107 = vmatprep.subr.bf16.mxu1 %v15751_v15  ;;  %v15815_v15 = vld [vmem:[#allocation7 + $0x460] ss:$24 sps:$4 sm:$0xff]  }
 0xc68   :  { %11148 = vmatprep.subr.bf16.mxu0 %v15754_v10  ;;  %v15823_v10 = vld [vmem:[#allocation7 + $0x494] ss:$24 sps:$4 sm:$0xff]  }
 0xc6a   :  { %11108 = vmatpush1.bf16.msra.mxu1 %v15749_v9  ;;  %v15826_v9 = vld [vmem:[#allocation7 + $0x794] ss:$24 sps:$4 sm:$0xff]  }
 0xc6b   :  { %11149 = vmatpush1.bf16.msra.mxu0 %v15752_v56  ;;  %11109 = vmatprep.subr.bf16.mxu1 %v15757_v35  ;;  %v15824_v56 = vld [vmem:[#allocation7 + $0x790] ss:$24 sps:$4 sm:$0xff]   ;;  %v15829_v35 = vld [vmem:[#allocation7 + $0x4c4] ss:$24 sps:$4 sm:$0xff]  }
 0xc6c   :  { %11150 = vmatprep.subr.bf16.mxu0 %v15760_v31  ;;  %v15832_v31 = vld [vmem:[#allocation7 + $0x7c4] ss:$24 sps:$4 sm:$0xff]  }
 0xc6e   :  { %11110 = vmatpush1.bf16.msra.mxu1 %v15755_v7  ;;  %v15827_v7 = vld [vmem:[#allocation7 + $0x4c0] ss:$24 sps:$4 sm:$0xff]  }
 0xc6f   :  { %11151 = vmatpush1.bf16.msra.mxu0 %v15758_v43  ;;  %11111 = vmatprep.subr.bf16.mxu1 %v15763_v48  ;;  %v15830_v43 = vld [vmem:[#allocation7 + $0x7c0] ss:$24 sps:$4 sm:$0xff]   ;;  %v15835_v48 = vld [vmem:[#allocation7 + $0x4f4] ss:$24 sps:$4 sm:$0xff]  }
 0xc70   :  { %11152 = vmatprep.subr.bf16.mxu0 %v15766_v51  ;;  %v15838_v51 = vld [vmem:[#allocation7 + $0x7f4] ss:$24 sps:$4 sm:$0xff]  }
 0xc72   :  { %11112 = vmatpush1.bf16.msra.mxu1 %v15761_v34  ;;  %v15833_v34 = vld [vmem:[#allocation7 + $0x4f0] ss:$24 sps:$4 sm:$0xff]  }
 0xc73   :  { %11153 = vmatpush1.bf16.msra.mxu0 %v15764_v63  ;;  %11113 = vmatprep.subr.bf16.mxu1 %v15769_v54  ;;  %v15836_v63 = vld [vmem:[#allocation7 + $0x7f0] ss:$24 sps:$4 sm:$0xff]   ;;  %v15841_v54 = vld [vmem:[#allocation7 + $0x524] ss:$24 sps:$4 sm:$0xff]  }
 0xc74   :  { %11154 = vmatprep.subr.bf16.mxu0 %v15772_v14  ;;  %v15844_v14 = vld [vmem:[#allocation7 + $0x824] ss:$24 sps:$4 sm:$0xff]  }
 0xc76   :  { %11114 = vmatpush1.bf16.msra.mxu1 %v15767_v28  ;;  %v15839_v28 = vld [vmem:[#allocation7 + $0x520] ss:$24 sps:$4 sm:$0xff]  }
 0xc77   :  { %11155 = vmatpush1.bf16.msra.mxu0 %v15770_v36  ;;  %11165 = vmatprep.subr.bf16.mxu1 %v15775_v13  ;;  %v15842_v36 = vld [vmem:[#allocation7 + $0x820] ss:$24 sps:$4 sm:$0xff]   ;;  %v15847_v13 = vld [vmem:[#allocation7 + $0x554] ss:$24 sps:$4 sm:$0xff]  }
 0xc78   :  { %11206 = vmatprep.subr.bf16.mxu0 %v15778_v33  ;;  %v15850_v33 = vld [vmem:[#allocation7 + $0x854] ss:$24 sps:$4 sm:$0xff]  }
 0xc79   :  { %11116 = vmatmul.mubr.bf16.vlgmr.msra.gmra.mrb[56].mxu1 %v22373_v30 }
 0xc7a   :  { %11157 = vmatmul.mubr.bf16.vlgmr.msra.gmra.mrb[56].mxu0 %v22369_v19  ;;  %11166 = vmatpush1.bf16.msra.mxu1 %v15773_v16  ;;  %v15796_v19 = vld [vmem:[#allocation7 + $0x6a4] ss:$24 sps:$4 sm:$0xff]   ;;  %v15845_v16 = vld [vmem:[#allocation7 + $0x550] ss:$24 sps:$4 sm:$0xff]  }
 0xc7b   :  { %11197 = vmatprep.mubr.bf16.mxu1 %v22370_v49  ;;  %11207 = vmatpush1.bf16.msra.mxu0 %v15776_v20  ;;  %v15794_v49 = vld [vmem:[#allocation7 + $0x6a0] ss:$24 sps:$4 sm:$0xff]   ;;  %v15848_v20 = vld [vmem:[#allocation7 + $0x850] ss:$24 sps:$4 sm:$0xff]  }
 0xc7c   :  { %11238 = vmatprep.mubr.bf16.mxu0 %v22371_v32  ;;  %11167 = vmatprep.subr.bf16.mxu1 %v15781_v61  ;;  %v15797_v32 = vld [vmem:[#allocation7 + $0x3d0] ss:$24 sps:$4 sm:$0xff]   ;;  %v15853_v61 = vld [vmem:[#allocation7 + $0x584] ss:$24 sps:$4 sm:$0xff]  }
 0xc7d   :  { %11208 = vmatprep.subr.bf16.mxu0 %v15784_v6  ;;  %v15856_v6 = vld [vmem:[#allocation7 + $0x884] ss:$24 sps:$4 sm:$0xff]  }
 0xc7e   :  { %11168 = vmatpush1.bf16.msra.mxu1 %v15779_v40  ;;  %v15851_v40 = vld [vmem:[#allocation7 + $0x580] ss:$24 sps:$4 sm:$0xff]  }
 0xc7f   :  { %11209 = vmatpush1.bf16.msra.mxu0 %v15782_v8  ;;  %11169 = vmatprep.subr.bf16.mxu1 %v15787_v1  ;;  %v15854_v8 = vld [vmem:[#allocation7 + $0x880] ss:$24 sps:$4 sm:$0xff]   ;;  %v15859_v1 = vld [vmem:[#allocation7 + $0x5b4] ss:$24 sps:$4 sm:$0xff]  }
 0xc80   :  { %11210 = vmatprep.subr.bf16.mxu0 %v15790_v59  ;;  %v15862_v59 = vld [vmem:[#allocation7 + $0x8b4] ss:$24 sps:$4 sm:$0xff]  }
 0xc82   :  { %11170 = vmatpush1.bf16.msra.mxu1 %v15785_v29  ;;  %v15857_v29 = vld [vmem:[#allocation7 + $0x5b0] ss:$24 sps:$4 sm:$0xff]  }
 0xc83   :  { %11211 = vmatpush1.bf16.msra.mxu0 %v15788_v53  ;;  %11171 = vmatprep.subr.bf16.mxu1 %v15793_v11  ;;  %v15860_v53 = vld [vmem:[#allocation7 + $0x8b0] ss:$24 sps:$4 sm:$0xff]   ;;  %v15865_v11 = vld [vmem:[#allocation7 + $0x5e4] ss:$24 sps:$4 sm:$0xff]  }
 0xc84   :  { %11212 = vmatprep.subr.bf16.mxu0 %v15796_v19  ;;  %v15868_v19 = vld [vmem:[#allocation7 + $0x8e4] ss:$24 sps:$4 sm:$0xff]  }
 0xc86   :  { %11172 = vmatpush1.bf16.msra.mxu1 %v15791_v52  ;;  %v15863_v52 = vld [vmem:[#allocation7 + $0x5e0] ss:$24 sps:$4 sm:$0xff]  }
 0xc87   :  { %11213 = vmatpush1.bf16.msra.mxu0 %v15794_v49  ;;  %11173 = vmatprep.subr.bf16.mxu1 %v15799_v41  ;;  %v15866_v49 = vld [vmem:[#allocation7 + $0x8e0] ss:$24 sps:$4 sm:$0xff]  }
 0xc88   :  { %11214 = vmatprep.subr.bf16.mxu0 %v15802_v60  ;;  %v15871_v41 = vld [vmem:[%s21674_s13 + $0x4] ss:$12 sps:$4 sm:$0xff]   ;;  %v15875_v60 = vld [vmem:[%s21674_s13 + $0xc8] ss:$12 sps:$4 sm:$0xff]  }
 0xc8a   :  { %11174 = vmatpush1.bf16.msra.mxu1 %v15797_v32  ;;  %v15869_v32 = vld [vmem:[%s21674_s13] ss:$12 sps:$4 sm:$0xff]  }
 0xc8b   :  { %11215 = vmatpush1.bf16.msra.mxu0 %v15800_v3  ;;  %11175 = vmatprep.subr.bf16.mxu1 %v15805_v44  ;;  %v15874_v3 = vld [vmem:[%s21674_s13 + $0x1c] ss:$12 sps:$4 sm:$0xff]  }
 0xc8c   :  { %v9431_v46 = vpop.f32.mrb[44].mxu1  ;;  %11216 = vmatprep.subr.bf16.mxu0 %v15808_v2  ;;  %v15876_v44 = vld [vmem:[%s21674_s13 + $0x8] ss:$12 sps:$4 sm:$0xff]   ;;  %v15880_v2 = vld [vmem:[%s21674_s13 + $0xe0] ss:$12 sps:$4 sm:$0xff]  }
 0xc8d   :  { %v21069_v4 = vadd.f32 %v9431_v46, %v21060_v62  ;;  %v10912_v38 = vpop.f32.mrb[44].mxu0  ;;  %v9433_v37 = vpop.f32.mrb[45].mxu1  ;;  %v15812_v62 = vld [vmem:[#allocation7 + $0x730] ss:$24 sps:$4 sm:$0xff]  }
 0xc8e   :  { %v21072_v12 = vadd.f32 %v10912_v38, %v21037_v42  ;;  %v21075_v5 = vadd.f32 %v9433_v37, %v21062_v22  ;;  %v10914_v25 = vpop.f32.mrb[45].mxu0  ;;  %v9435_v39 = vpop.f32.mrb[46].mxu1  ;;  %11176 = vmatpush1.bf16.msra.mxu1 %v15803_v21  ;;  %v15820_v42 = vld [vmem:[#allocation7 + $0x764] ss:$24 sps:$4 sm:$0xff]   ;;  %v15818_v22 = vld [vmem:[#allocation7 + $0x760] ss:$24 sps:$4 sm:$0xff]  }
 0xc8f   :  { %v21078_v27 = vadd.f32 %v10914_v25, %v21042_v50  ;;  %v10916_v0 = vpop.f32.mrb[46].mxu0  ;;  %11217 = vmatpush1.bf16.msra.mxu0 %v15806_v45  ;;  %v9436_v58 = vpop.f32.mrb[47].mxu1  ;;  %11177 = vmatprep.subr.bf16.mxu1 %v15811_v47  ;;  %v15821_v50 = vld [vmem:[#allocation7 + $0x490] ss:$24 sps:$4 sm:$0xff]   ;;  %v15872_v21 = vld [vmem:[%s21674_s13 + $0x18] ss:$12 sps:$4 sm:$0xff]  }
 0xc90   :  { %v10917_v55 = vpop.f32.mrb[47].mxu0  ;;  %11218 = vmatprep.subr.bf16.mxu0 %v15814_v24  ;;  %v15879_v45 = vld [vmem:[%s21674_s13 + $0x34] ss:$12 sps:$4 sm:$0xff]   ;;  %v15884_v46 = vld [vmem:[%s21674_s13 + $0x4c] ss:$12 sps:$4 sm:$0xff]  }
 0xc91   :  { %v15881_v47 = vld [vmem:[%s21674_s13 + $0x20] ss:$12 sps:$4 sm:$0xff]   ;;  %v15886_v24 = vld [vmem:[%s21674_s13 + $0x38] ss:$12 sps:$4 sm:$0xff]   ;;  %v15890_v38 = vld [vmem:[%s21674_s13 + $0x110] ss:$12 sps:$4 sm:$0xff]  }
 0xc92   :  { %11178 = vmatpush1.bf16.msra.mxu1 %v15809_v23  ;;  %v15882_v37 = vld [vmem:[%s21674_s13 + $0x48] ss:$12 sps:$4 sm:$0xff]   ;;  %v15889_v25 = vld [vmem:[%s21674_s13 + $0x64] ss:$12 sps:$4 sm:$0xff]   ;;  %v15887_v0 = vld [vmem:[%s21674_s13 + $0x60] ss:$12 sps:$4 sm:$0xff]  }
 0xc93   :  { %11219 = vmatpush1.bf16.msra.mxu0 %v15812_v62  ;;  %11179 = vmatprep.subr.bf16.mxu1 %v15817_v57  ;;  %v15891_v39 = vld [vmem:[%s21674_s13 + $0x50] ss:$12 sps:$4 sm:$0xff]   ;;  %v15895_v23 = vld [vmem:[%s21674_s13 + $0x128] ss:$12 sps:$4 sm:$0xff]   ;;  %v15900_v57 = vld [vmem:[%s21674_s13 + $0x140] ss:$12 sps:$4 sm:$0xff]  }
 0xc94   :  { %11220 = vmatprep.subr.bf16.mxu0 %v15820_v42  ;;  %v15894_v58 = vld [vmem:[%s21674_s13 + $0x7c] ss:$12 sps:$4 sm:$0xff]   ;;  %v15892_v42 = vld [vmem:[%s21674_s13 + $0x78] ss:$12 sps:$4 sm:$0xff]  }
 0xc95   :  { %v15896_v62 = vld [vmem:[%s21674_s13 + $0x68] ss:$12 sps:$4 sm:$0xff]  }
 0xc96   :  { %11180 = vmatpush1.bf16.msra.mxu1 %v15815_v15  ;;  %v21148_v55 = vld [vmem:[#allocation8] sm:$0x3f] }
 0xc97   :  { %11221 = vmatpush1.bf16.msra.mxu0 %v15818_v22  ;;  %11181 = vmatprep.subr.bf16.mxu1 %v15823_v10  ;;  %v15899_v15 = vld [vmem:[%s21674_s13 + $0x94] ss:$12 sps:$4 sm:$0xff]  }
 0xc98   :  { %11222 = vmatprep.subr.bf16.mxu0 %v15826_v9  ;;  %v15901_v22 = vld [vmem:[%s21674_s13 + $0x80] ss:$12 sps:$4 sm:$0xff]  }
 0xc99   :  { %v21159_v9 = vld [vmem:[#allocation10] sm:$0x3f] }
 0xc9a   :  { %11182 = vmatpush1.bf16.msra.mxu1 %v15821_v50  ;;  %v15905_v50 = vld [vmem:[%s21674_s13 + $0x158] ss:$12 sps:$4 sm:$0xff]  }
 0xc9b   :  { %11223 = vmatpush1.bf16.msra.mxu0 %v15824_v56  ;;  %11183 = vmatprep.subr.bf16.mxu1 %v15829_v35 }
 0xc9c   :  { %11224 = vmatprep.subr.bf16.mxu0 %v15832_v31  ;;  %v22374_v31 = vld [vmem:[#allocation23_spill] sm:$0xff] }
 0xc9e   :  { %11184 = vmatpush1.bf16.msra.mxu1 %v15827_v7  ;;  %v11252_v7 = vrot.slane %v21148_v55, %v22374_v31 }
 0xc9f   :  { %11225 = vmatpush1.bf16.msra.mxu0 %v15830_v43  ;;  %11185 = vmatprep.subr.bf16.mxu1 %v15835_v48  ;;  %v21167_v48 = vld [vmem:[#allocation11] sm:$0x3f] }
 0xca0   :  { %11226 = vmatprep.subr.bf16.mxu0 %v15838_v51 }
 0xca2   :  { %11186 = vmatpush1.bf16.msra.mxu1 %v15833_v34 }
 0xca3   :  { %11227 = vmatpush1.bf16.msra.mxu0 %v15836_v63  ;;  %11187 = vmatprep.subr.bf16.mxu1 %v15841_v54  ;;  %v22375_v63 = vld [vmem:[#allocation24_spill] sm:$0xff] }
 0xca4   :  { %11228 = vmatprep.subr.bf16.mxu0 %v15844_v14  ;;  %v11256_v54 = vrot.slane %v21148_v55, %v22375_v63 }
 0xca6   :  { %11188 = vmatpush1.bf16.msra.mxu1 %v15839_v28  ;;  %v15897_v28 = vld [vmem:[%s21674_s13 + $0x90] ss:$12 sps:$4 sm:$0xff]  }
 0xca7   :  { %11229 = vmatpush1.bf16.msra.mxu0 %v15842_v36  ;;  %11189 = vmatprep.subr.bf16.mxu1 %v15847_v13  ;;  %v11290_v36 = vrot.slane %v21159_v9, %v22374_v31 }
 0xca8   :  { %11230 = vmatprep.subr.bf16.mxu0 %v15850_v33 }
 0xcaa   :  { %11190 = vmatpush1.bf16.msra.mxu1 %v15845_v16  ;;  %v15906_v16 = vld [vmem:[%s21674_s13 + $0x98] ss:$12 sps:$4 sm:$0xff]  }
 0xcab   :  { %11231 = vmatpush1.bf16.msra.mxu0 %v15848_v20  ;;  %11191 = vmatprep.subr.bf16.mxu1 %v15853_v61  ;;  %v11294_v61 = vrot.slane %v21159_v9, %v22375_v63 }
 0xcac   :  { %11232 = vmatprep.subr.bf16.mxu0 %v15856_v6 }
 0xcae   :  { %11192 = vmatpush1.bf16.msra.mxu1 %v15851_v40  ;;  %v15910_v40 = vld [vmem:[%s21674_s13 + $0x170] ss:$12 sps:$4 sm:$0xff]  }
 0xcaf   :  { %11233 = vmatpush1.bf16.msra.mxu0 %v15854_v8  ;;  %11193 = vmatprep.subr.bf16.mxu1 %v15859_v1  ;;  %v11328_v1 = vrot.slane %v21167_v48, %v22374_v31 }
 0xcb0   :  { %11234 = vmatprep.subr.bf16.mxu0 %v15862_v59 }
 0xcb2   :  { %11194 = vmatpush1.bf16.msra.mxu1 %v15857_v29  ;;  %v15902_v29 = vld [vmem:[%s21674_s13 + $0xa8] ss:$12 sps:$4 sm:$0xff]  }
 0xcb3   :  { %11235 = vmatpush1.bf16.msra.mxu0 %v15860_v53  ;;  %11195 = vmatprep.subr.bf16.mxu1 %v15865_v11  ;;  %v11332_v53 = vrot.slane %v21167_v48, %v22375_v63 }
 0xcb4   :  { %11236 = vmatprep.subr.bf16.mxu0 %v15868_v19  ;;  %v15909_v19 = vld [vmem:[%s21674_s13 + $0xc4] ss:$12 sps:$4 sm:$0xff]  }
 0xcb6   :  { %11196 = vmatpush1.bf16.msra.mxu1 %v15863_v52  ;;  %v15911_v52 = vld [vmem:[%s21674_s13 + $0xb0] ss:$12 sps:$4 sm:$0xff]  }
 0xcb7   :  { %11237 = vmatpush1.bf16.msra.mxu0 %v15866_v49  ;;  %12350 = vmatprep.subr.bf16.mxu1 %v15871_v41  ;;  %v15960_v41 = vld [vmem:[%s21674_s13 + $0x248] ss:$12 sps:$4 sm:$0xff]  }
 0xcb8   :  { %14449 = vmatprep.subr.bf16.mxu0 %v15875_v60 }
 0xcb9   :  { %11198 = vmatmul.mubr.bf16.vlgmr.msra.gmra.mrb[60].mxu1 %v22372_v18  ;;  %v15885_v18 = vld [vmem:[%s21674_s13 + $0xf8] ss:$12 sps:$4 sm:$0xff]  }
 0xcba   :  { %11239 = vmatmul.mubr.bf16.vlgmr.msra.gmra.mrb[60].mxu0 %v22373_v30  ;;  %12351 = vmatpush1.bf16.msra.mxu1 %v15869_v32  ;;  %v15877_v30 = vld [vmem:[%s21674_s13 + $0x30] ss:$12 sps:$4 sm:$0xff]   ;;  %v15907_v32 = vld [vmem:[%s21674_s13 + $0xc0] ss:$12 sps:$4 sm:$0xff]  }
 0xcbb   :  { %12352 = vmatprep.subr.bf16.mxu1 %v15874_v3  ;;  %14450 = vmatpush3.bf16.msra.mxu0 %v15876_v44 }
 0xcbc   :  { %14451 = vmatprep.subr.bf16.mxu0 %v15880_v2  ;;  %v15914_v2 = vld [vmem:[%s21674_s13 + $0xdc] ss:$12 sps:$4 sm:$0xff]  }
 0xcbe   :  { %12353 = vmatpush1.bf16.msra.mxu1 %v15872_v21 }
 0xcbf   :  { %12354 = vmatprep.subr.bf16.mxu1 %v15879_v45  ;;  %14452 = vmatpush3.bf16.msra.mxu0 %v15881_v47  ;;  %v15912_v47 = vld [vmem:[%s21674_s13 + $0xd8] ss:$12 sps:$4 sm:$0xff]  }
 0xcc0   :  { %14453 = vmatprep.subr.bf16.mxu0 %v15885_v18  ;;  %v15961_v18 = vld [vmem:[%s21674_s13 + $0x188] ss:$12 sps:$4 sm:$0xff]  }
 0xcc2   :  { %12355 = vmatpush1.bf16.msra.mxu1 %v15877_v30 }
 0xcc3   :  { %12356 = vmatprep.subr.bf16.mxu1 %v15884_v46  ;;  %14454 = vmatpush3.bf16.msra.mxu0 %v15886_v24  ;;  %v15917_v46 = vld [vmem:[%s21674_s13 + $0xf4] ss:$12 sps:$4 sm:$0xff]  }
 0xcc4   :  { %14455 = vmatprep.subr.bf16.mxu0 %v15890_v38  ;;  %v15965_v24 = vld [vmem:[%s21674_s13 + $0x260] ss:$12 sps:$4 sm:$0xff]   ;;  %v15915_v38 = vld [vmem:[%s21674_s13 + $0xf0] ss:$12 sps:$4 sm:$0xff]  }
 0xcc6   :  { %12357 = vmatpush1.bf16.msra.mxu1 %v15882_v37  ;;  %v15966_v37 = vld [vmem:[%s21674_s13 + $0x1a0] ss:$12 sps:$4 sm:$0xff]  }
 0xcc7   :  { %12358 = vmatprep.subr.bf16.mxu1 %v15889_v25  ;;  %14456 = vmatpush3.bf16.msra.mxu0 %v15891_v39  ;;  %v15920_v25 = vld [vmem:[%s21674_s13 + $0x10c] ss:$12 sps:$4 sm:$0xff]  }
 0xcc8   :  { %14457 = vmatprep.subr.bf16.mxu0 %v15895_v23  ;;  %v15970_v39 = vld [vmem:[%s21674_s13 + $0x278] ss:$12 sps:$4 sm:$0xff]   ;;  %v15918_v23 = vld [vmem:[%s21674_s13 + $0x108] ss:$12 sps:$4 sm:$0xff]  }
 0xcca   :  { %12359 = vmatpush1.bf16.msra.mxu1 %v15887_v0  ;;  %v15971_v0 = vld [vmem:[%s21674_s13 + $0x1b8] ss:$12 sps:$4 sm:$0xff]  }
 0xccb   :  { %12360 = vmatprep.subr.bf16.mxu1 %v15894_v58  ;;  %14458 = vmatpush3.bf16.msra.mxu0 %v15896_v62  ;;  %v15923_v58 = vld [vmem:[%s21674_s13 + $0x124] ss:$12 sps:$4 sm:$0xff]  }
 0xccc   :  { %v10953_v10 = vpop.f32.mrb[48].mxu1  ;;  %14459 = vmatprep.subr.bf16.mxu0 %v15900_v57  ;;  %v15975_v62 = vld [vmem:[%s21674_s13 + $0x290] ss:$12 sps:$4 sm:$0xff]   ;;  %v15921_v57 = vld [vmem:[%s21674_s13 + $0x120] ss:$12 sps:$4 sm:$0xff]  }
 0xccd   :  { %v10954_v56 = vadd.f32 %v10953_v10, %v21072_v12  ;;  %v10994_v35 = vpop.f32.mrb[48].mxu0  ;;  %v10955_v43 = vpop.f32.mrb[49].mxu1  ;;  %v15924_v10 = vld [vmem:[%s21674_s13 + $0x138] ss:$12 sps:$4 sm:$0xff]  }
 0xcce   :  { %v10956_v51 = vadd.f32 %v10955_v43, %v21078_v27  ;;  %v10996_v34 = vpop.f32.mrb[49].mxu0  ;;  %v10957_v14 = vpop.f32.mrb[50].mxu1  ;;  %12361 = vmatpush1.bf16.msra.mxu1 %v15892_v42  ;;  %v15904_v27 = vld [vmem:[%s21674_s13 + $0xac] ss:$12 sps:$4 sm:$0xff]   ;;  %v15976_v42 = vld [vmem:[%s21674_s13 + $0x1d0] ss:$12 sps:$4 sm:$0xff]  }
 0xccf   :  { %v10995_v12 = vadd.f32 %v10994_v35, %v10954_v56  ;;  %v10998_v13 = vpop.f32.mrb[50].mxu0  ;;  %v10958_v33 = vpop.f32.mrb[51].mxu1  ;;  %12362 = vmatprep.subr.bf16.mxu1 %v15899_v15  ;;  %14460 = vmatpush3.bf16.msra.mxu0 %v15901_v22  ;;  %v15926_v15 = vld [vmem:[%s21674_s13 + $0x13c] ss:$12 sps:$4 sm:$0xff]   ;;  %v15929_v56 = vld [vmem:[%s21674_s13 + $0x154] ss:$12 sps:$4 sm:$0xff]  }
 0xcd0   :  { %v10997_v20 = vadd.f32 %v10996_v34, %v10956_v51  ;;  %v10999_v6 = vpop.f32.mrb[51].mxu0  ;;  %14461 = vmatprep.subr.bf16.mxu0 %v15905_v50  ;;  %v15980_v22 = vld [vmem:[%s21674_s13 + $0x2a8] ss:$12 sps:$4 sm:$0xff]   ;;  %v15985_v35 = vld [vmem:[%s21674_s13 + $0x2c0] ss:$12 sps:$4 sm:$0xff]  }
 0xcd1   :  { %v11279_v8 = vadd.f32 %v11252_v7, %v10995_v12  ;;  %v15981_v50 = vld [vmem:[%s21674_s13 + $0x1e8] ss:$12 sps:$4 sm:$0xff]   ;;  %v15927_v7 = vld [vmem:[%s21674_s13 + $0x150] ss:$12 sps:$4 sm:$0xff]   ;;  %v15986_v43 = vld [vmem:[%s21674_s13 + $0x200] ss:$12 sps:$4 sm:$0xff]  }
 0xcd2   :  { %v11280_v59 = vadd.f32 %v11256_v54, %v10997_v20  ;;  %12363 = vmatpush1.bf16.msra.mxu1 %v15897_v28  ;;  %v15932_v51 = vld [vmem:[%s21674_s13 + $0x16c] ss:$12 sps:$4 sm:$0xff]   ;;  %v15930_v54 = vld [vmem:[%s21674_s13 + $0x168] ss:$12 sps:$4 sm:$0xff]   ;;  %v15935_v28 = vld [vmem:[%s21674_s13 + $0x184] ss:$12 sps:$4 sm:$0xff]  }
 0xcd3   :  { %v11317_v11 = vmul.f32 %v11290_v36, %v11279_v8  ;;  %12364 = vmatprep.subr.bf16.mxu1 %v15904_v27  ;;  %14462 = vmatpush3.bf16.msra.mxu0 %v15906_v16  ;;  %v15990_v34 = vld [vmem:[%s21674_s13 + $0x2d8] ss:$12 sps:$4 sm:$0xff]   ;;  %v15995_v12 = vld [vmem:[%s21674_s13 + $0x2f0] ss:$12 sps:$4 sm:$0xff]   ;;  %v15933_v36 = vld [vmem:[%s21674_s13 + $0x180] ss:$12 sps:$4 sm:$0xff]  }
 0xcd4   :  { %v11318_v49 = vmul.f32 %v11294_v61, %v11280_v59  ;;  %14463 = vmatprep.subr.bf16.mxu0 %v15910_v40  ;;  %v15991_v14 = vld [vmem:[%s21674_s13 + $0x218] ss:$12 sps:$4 sm:$0xff]   ;;  %v15996_v13 = vld [vmem:[%s21674_s13 + $0x230] ss:$12 sps:$4 sm:$0xff]   ;;  %v16024_v27 = vld [vmem:[%s21674_s13 + $0x3c8] ss:$12 sps:$4 sm:$0xff]  }
 0xcd5   :  { %v11355_v60 = vadd.f32 %v11328_v1, %v11317_v11  ;;  %v15938_v33 = vld [vmem:[%s21674_s13 + $0x19c] ss:$12 sps:$4 sm:$0xff]   ;;  %v15936_v16 = vld [vmem:[%s21674_s13 + $0x198] ss:$12 sps:$4 sm:$0xff]   ;;  %v15941_v20 = vld [vmem:[%s21674_s13 + $0x1b4] ss:$12 sps:$4 sm:$0xff]  }
 0xcd6   :  { %12365 = vmatpush1.bf16.msra.mxu1 %v15902_v29  ;;  %v11356_v3 = vadd.f32 %v11332_v53, %v11318_v49  ;;  %v15939_v61 = vld [vmem:[%s21674_s13 + $0x1b0] ss:$12 sps:$4 sm:$0xff]   ;;  %v15944_v6 = vld [vmem:[%s21674_s13 + $0x1cc] ss:$12 sps:$4 sm:$0xff]   ;;  %v15942_v40 = vld [vmem:[%s21674_s13 + $0x1c8] ss:$12 sps:$4 sm:$0xff]  }
 0xcd7   :  { %v11361_v44 = vmax.f32 %v11355_v60, 0.0  ;;  %12366 = vmatprep.subr.bf16.mxu1 %v15909_v19  ;;  %14464 = vmatpush3.bf16.msra.mxu0 %v15911_v52  ;;  %v15947_v8 = vld [vmem:[%s21674_s13 + $0x1e4] ss:$12 sps:$4 sm:$0xff]   ;;  %v15945_v1 = vld [vmem:[%s21674_s13 + $0x1e0] ss:$12 sps:$4 sm:$0xff]  }
 0xcd8   :  { %v11362_v21 = vmax.f32 %v11356_v3, 0.0  ;;  %14471 = vmatprep.subr.bf16.mxu0 %v15960_v41  ;;  %v15950_v59 = vld [vmem:[%s21674_s13 + $0x1fc] ss:$12 sps:$4 sm:$0xff]   ;;  %v15948_v29 = vld [vmem:[%s21674_s13 + $0x1f8] ss:$12 sps:$4 sm:$0xff]  }
 0xcd9   :  { %v11559_v30 = vpack.c.bf16 %v11361_v44, %v11361_v44  ;;  %v15953_v53 = vld [vmem:[%s21674_s13 + $0x214] ss:$12 sps:$4 sm:$0xff]   ;;  %v15951_v3 = vld [vmem:[%s21674_s13 + $0x210] ss:$12 sps:$4 sm:$0xff]  }
 0xcda   :  { %12367 = vmatpush1.bf16.msra.mxu1 %v15907_v32  ;;  %v11560_v45 = vpack.c.bf16 %v11362_v21, %v11362_v21 }
 0xcdb   :  { %12368 = vmatprep.subr.bf16.mxu1 %v15914_v2 }
 0xcdc   :  { %12382 = vmatprep.mubr.bf16.mxu1 %v11560_v45  ;;  %12505 = vmatprep.mubr.bf16.mxu0 %v11560_v45  ;;  %v15956_v45 = vld [vmem:[%s21674_s13 + $0x22c] ss:$12 sps:$4 sm:$0xff]  }
 0xcdd   :  { %12506 = vmatmul.mubr.bf16.vlgmr.msra.gmra.mrb[64].mxu0 %v11559_v30 }
 0xcde   :  { %12369 = vmatpush1.bf16.msra.mxu1 %v15912_v47  ;;  %14472 = vmatpush3.bf16.msra.mxu0 %v15961_v18  ;;  %v15959_v18 = vld [vmem:[%s21674_s13 + $0x244] ss:$12 sps:$4 sm:$0xff]  }
 0xcdf   :  { %12370 = vmatprep.subr.bf16.mxu1 %v15917_v46  ;;  %14473 = vmatprep.subr.bf16.mxu0 %v15965_v24  ;;  %v15964_v46 = vld [vmem:[%s21674_s13 + $0x25c] ss:$12 sps:$4 sm:$0xff]   ;;  %v15962_v24 = vld [vmem:[%s21674_s13 + $0x258] ss:$12 sps:$4 sm:$0xff]  }
 0xce2   :  { %12371 = vmatpush1.bf16.msra.mxu1 %v15915_v38  ;;  %14474 = vmatpush3.bf16.msra.mxu0 %v15966_v37  ;;  %v15969_v38 = vld [vmem:[%s21674_s13 + $0x274] ss:$12 sps:$4 sm:$0xff]   ;;  %v15967_v37 = vld [vmem:[%s21674_s13 + $0x270] ss:$12 sps:$4 sm:$0xff]  }
 0xce3   :  { %12372 = vmatprep.subr.bf16.mxu1 %v15920_v25  ;;  %14475 = vmatprep.subr.bf16.mxu0 %v15970_v39  ;;  %v15974_v25 = vld [vmem:[%s21674_s13 + $0x28c] ss:$12 sps:$4 sm:$0xff]   ;;  %v15972_v39 = vld [vmem:[%s21674_s13 + $0x288] ss:$12 sps:$4 sm:$0xff]  }
 0xce6   :  { %12373 = vmatpush1.bf16.msra.mxu1 %v15918_v23  ;;  %14476 = vmatpush3.bf16.msra.mxu0 %v15971_v0  ;;  %v15979_v23 = vld [vmem:[%s21674_s13 + $0x2a4] ss:$12 sps:$4 sm:$0xff]   ;;  %v15977_v0 = vld [vmem:[%s21674_s13 + $0x2a0] ss:$12 sps:$4 sm:$0xff]  }
 0xce7   :  { %12374 = vmatprep.subr.bf16.mxu1 %v15923_v58  ;;  %14477 = vmatprep.subr.bf16.mxu0 %v15975_v62  ;;  %v15984_v58 = vld [vmem:[%s21674_s13 + $0x2bc] ss:$12 sps:$4 sm:$0xff]   ;;  %v15982_v62 = vld [vmem:[%s21674_s13 + $0x2b8] ss:$12 sps:$4 sm:$0xff]  }
 0xcea   :  { %12375 = vmatpush1.bf16.msra.mxu1 %v15921_v57  ;;  %14478 = vmatpush3.bf16.msra.mxu0 %v15976_v42  ;;  %v15989_v57 = vld [vmem:[%s21674_s13 + $0x2d4] ss:$12 sps:$4 sm:$0xff]   ;;  %v15987_v42 = vld [vmem:[%s21674_s13 + $0x2d0] ss:$12 sps:$4 sm:$0xff]  }
 0xceb   :  { %12376 = vmatprep.subr.bf16.mxu1 %v15926_v15  ;;  %14479 = vmatprep.subr.bf16.mxu0 %v15980_v22  ;;  %v15994_v15 = vld [vmem:[%s21674_s13 + $0x2ec] ss:$12 sps:$4 sm:$0xff]   ;;  %v15992_v22 = vld [vmem:[%s21674_s13 + $0x2e8] ss:$12 sps:$4 sm:$0xff]  }
 0xcee   :  { %12377 = vmatpush1.bf16.msra.mxu1 %v15924_v10  ;;  %14480 = vmatpush3.bf16.msra.mxu0 %v15981_v50  ;;  %v15999_v10 = vld [vmem:[%s21674_s13 + $0x304] ss:$12 sps:$4 sm:$0xff]   ;;  %v22376_v50 = vld [vmem:[#allocation25_spill] sm:$0xff] }
 0xcef   :  { %12378 = vmatprep.subr.bf16.mxu1 %v15929_v56  ;;  %14481 = vmatprep.subr.bf16.mxu0 %v15985_v35  ;;  %v11260_v56 = vrot.slane %v21148_v55, %v22376_v50 }
 0xcf2   :  { %12379 = vmatpush1.bf16.msra.mxu1 %v15927_v7  ;;  %14482 = vmatpush3.bf16.msra.mxu0 %v15986_v43  ;;  %v22377_v7 = vld [vmem:[#allocation26_spill] sm:$0xff] }
 0xcf3   :  { %12380 = vmatprep.subr.bf16.mxu1 %v15932_v51  ;;  %14483 = vmatprep.subr.bf16.mxu0 %v15990_v34  ;;  %v11264_v43 = vrot.slane %v21148_v55, %v22377_v7  ;;  %v11298_v34 = vrot.slane %v21159_v9, %v22376_v50 }
 0xcf6   :  { %12381 = vmatpush1.bf16.msra.mxu1 %v15930_v54  ;;  %14484 = vmatpush3.bf16.msra.mxu0 %v15991_v14 }
 0xcf7   :  { %12391 = vmatprep.subr.bf16.mxu1 %v15935_v28  ;;  %14485 = vmatprep.subr.bf16.mxu0 %v15995_v12 }
 0xcf9   :  { %12383 = vmatmul.mubr.bf16.vlgmr.msra.gmra.mrb[64].mxu1 %v11559_v30  ;;  %v15957_v30 = vld [vmem:[%s21674_s13 + $0x240] ss:$12 sps:$4 sm:$0xff]  }
 0xcfa   :  { %12392 = vmatpush1.bf16.msra.mxu1 %v15933_v36  ;;  %14486 = vmatpush3.bf16.msra.mxu0 %v15996_v13  ;;  %v11302_v36 = vrot.slane %v21159_v9, %v22377_v7 }
 0xcfb   :  { %12393 = vmatprep.subr.bf16.mxu1 %v15938_v33  ;;  %14493 = vmatprep.subr.bf16.mxu0 %v16024_v27 }
 0xcfe   :  { %12394 = vmatpush1.bf16.msra.mxu1 %v15936_v16  ;;  %v11336_v16 = vrot.slane %v21167_v48, %v22376_v50 }
 0xcff   :  { %12395 = vmatprep.subr.bf16.mxu1 %v15941_v20 }
 0xd02   :  { %12396 = vmatpush1.bf16.msra.mxu1 %v15939_v61 }
 0xd03   :  { %12397 = vmatprep.subr.bf16.mxu1 %v15944_v6 }
 0xd06   :  { %12398 = vmatpush1.bf16.msra.mxu1 %v15942_v40 }
 0xd07   :  { %12399 = vmatprep.subr.bf16.mxu1 %v15947_v8 }
 0xd0a   :  { %12400 = vmatpush1.bf16.msra.mxu1 %v15945_v1 }
 0xd0b   :  { %12401 = vmatprep.subr.bf16.mxu1 %v15950_v59 }
 0xd0c   :  { %v11035_v11 = vpop.f32.mrb[52].mxu1 }
 0xd0d   :  { %v11036_v19 = vadd.f32 %v11035_v11, %v21052_v17  ;;  %v11076_v52 = vpop.f32.mrb[52].mxu0  ;;  %v11037_v49 = vpop.f32.mrb[53].mxu1 }
 0xd0e   :  { %v11038_v41 = vadd.f32 %v11037_v49, %v21054_v26  ;;  %v11078_v60 = vpop.f32.mrb[53].mxu0  ;;  %v11039_v32 = vpop.f32.mrb[54].mxu1  ;;  %12402 = vmatpush1.bf16.msra.mxu1 %v15948_v29  ;;  %v15954_v26 = vld [vmem:[%s21674_s13 + $0x228] ss:$12 sps:$4 sm:$0xff]   ;;  %v15997_v49 = vld [vmem:[%s21674_s13 + $0x300] ss:$12 sps:$4 sm:$0xff]  }
 0xd0f   :  { %v11077_v44 = vadd.f32 %v11076_v52, %v11036_v19  ;;  %v11080_v2 = vpop.f32.mrb[54].mxu0  ;;  %v11040_v21 = vpop.f32.mrb[55].mxu1  ;;  %12403 = vmatprep.subr.bf16.mxu1 %v15953_v53  ;;  %v16029_v32 = vld [vmem:[%s21674_s13 + $0x3e0] ss:$12 sps:$4 sm:$0xff]  }
 0xd10   :  { %v11079_v17 = vadd.f32 %v11078_v60, %v11038_v41  ;;  %v11081_v47 = vpop.f32.mrb[55].mxu0  ;;  %v16002_v60 = vld [vmem:[%s21674_s13 + $0x31c] ss:$12 sps:$4 sm:$0xff]   ;;  %v16005_v2 = vld [vmem:[%s21674_s13 + $0x334] ss:$12 sps:$4 sm:$0xff]  }
 0xd11   :  { %v16034_v21 = vld [vmem:[%s21674_s13 + $0x3f8] ss:$12 sps:$4 sm:$0xff]  }
 0xd12   :  { %12404 = vmatpush1.bf16.msra.mxu1 %v15951_v3  ;;  %v16000_v3 = vld [vmem:[%s21674_s13 + $0x318] ss:$12 sps:$4 sm:$0xff]  }
 0xd13   :  { %12405 = vmatprep.subr.bf16.mxu1 %v15956_v45  ;;  %v16003_v45 = vld [vmem:[%s21674_s13 + $0x330] ss:$12 sps:$4 sm:$0xff]   ;;  %v16008_v47 = vld [vmem:[%s21674_s13 + $0x34c] ss:$12 sps:$4 sm:$0xff]  }
 0xd16   :  { %12406 = vmatpush1.bf16.msra.mxu1 %v15954_v26  ;;  %v16039_v26 = vld [vmem:[%s21674_s13 + $0x410] ss:$12 sps:$4 sm:$0xff]  }
 0xd17   :  { %12407 = vmatprep.subr.bf16.mxu1 %v15959_v18  ;;  %v16006_v18 = vld [vmem:[%s21674_s13 + $0x348] ss:$12 sps:$4 sm:$0xff]  }
 0xd1a   :  { %12408 = vmatpush1.bf16.msra.mxu1 %v15957_v30  ;;  %v16040_v30 = vld [vmem:[%s21674_s13 + $0x350] ss:$12 sps:$4 sm:$0xff]  }
 0xd1b   :  { %12409 = vmatprep.subr.bf16.mxu1 %v15964_v46  ;;  %v16011_v46 = vld [vmem:[%s21674_s13 + $0x364] ss:$12 sps:$4 sm:$0xff]  }
 0xd1e   :  { %12410 = vmatpush1.bf16.msra.mxu1 %v15962_v24  ;;  %v16044_v24 = vld [vmem:[%s21674_s13 + $0x428] ss:$12 sps:$4 sm:$0xff]  }
 0xd1f   :  { %12411 = vmatprep.subr.bf16.mxu1 %v15969_v38  ;;  %v16009_v38 = vld [vmem:[%s21674_s13 + $0x360] ss:$12 sps:$4 sm:$0xff]  }
 0xd22   :  { %12412 = vmatpush1.bf16.msra.mxu1 %v15967_v37  ;;  %v16045_v37 = vld [vmem:[%s21674_s13 + $0x368] ss:$12 sps:$4 sm:$0xff]  }
 0xd23   :  { %12413 = vmatprep.subr.bf16.mxu1 %v15974_v25  ;;  %v16014_v25 = vld [vmem:[%s21674_s13 + $0x37c] ss:$12 sps:$4 sm:$0xff]  }
 0xd26   :  { %12414 = vmatpush1.bf16.msra.mxu1 %v15972_v39  ;;  %v16049_v39 = vld [vmem:[%s21674_s13 + $0x440] ss:$12 sps:$4 sm:$0xff]  }
 0xd27   :  { %12415 = vmatprep.subr.bf16.mxu1 %v15979_v23  ;;  %v16012_v23 = vld [vmem:[%s21674_s13 + $0x378] ss:$12 sps:$4 sm:$0xff]  }
 0xd2a   :  { %12416 = vmatpush1.bf16.msra.mxu1 %v15977_v0  ;;  %v16050_v0 = vld [vmem:[%s21674_s13 + $0x380] ss:$12 sps:$4 sm:$0xff]  }
 0xd2b   :  { %12417 = vmatprep.subr.bf16.mxu1 %v15984_v58  ;;  %v16017_v58 = vld [vmem:[%s21674_s13 + $0x394] ss:$12 sps:$4 sm:$0xff]  }
 0xd2e   :  { %12418 = vmatpush1.bf16.msra.mxu1 %v15982_v62  ;;  %v16054_v62 = vld [vmem:[%s21674_s13 + $0x458] ss:$12 sps:$4 sm:$0xff]  }
 0xd2f   :  { %12419 = vmatprep.subr.bf16.mxu1 %v15989_v57  ;;  %v16015_v57 = vld [vmem:[%s21674_s13 + $0x390] ss:$12 sps:$4 sm:$0xff]  }
 0xd32   :  { %12420 = vmatpush1.bf16.msra.mxu1 %v15987_v42  ;;  %v16055_v42 = vld [vmem:[%s21674_s13 + $0x398] ss:$12 sps:$4 sm:$0xff]  }
 0xd33   :  { %12421 = vmatprep.subr.bf16.mxu1 %v15994_v15  ;;  %v16020_v15 = vld [vmem:[%s21674_s13 + $0x3ac] ss:$12 sps:$4 sm:$0xff]  }
 0xd36   :  { %12422 = vmatpush1.bf16.msra.mxu1 %v15992_v22  ;;  %v16059_v22 = vld [vmem:[%s21674_s13 + $0x470] ss:$12 sps:$4 sm:$0xff]  }
 0xd37   :  { %12432 = vmatprep.subr.bf16.mxu1 %v15999_v10  ;;  %v16018_v10 = vld [vmem:[%s21674_s13 + $0x3a8] ss:$12 sps:$4 sm:$0xff]  }
 0xd4c   :  { %v11117_v35 = vpop.f32.mrb[56].mxu1 }
 0xd4d   :  { %v11118_v51 = vadd.f32 %v11117_v35, %v11077_v44  ;;  %v11158_v54 = vpop.f32.mrb[56].mxu0  ;;  %v11119_v14 = vpop.f32.mrb[57].mxu1  ;;  %v16030_v44 = vld [vmem:[%s21674_s13 + $0x320] ss:$12 sps:$4 sm:$0xff]   ;;  %v16023_v35 = vld [vmem:[%s21674_s13 + $0x3c4] ss:$12 sps:$4 sm:$0xff]  }
 0xd4e   :  { %v21405_v28 = vadd.f32 %v11158_v54, %v21069_v4  ;;  %v11120_v12 = vadd.f32 %v11119_v14, %v11079_v17  ;;  %v11160_v13 = vpop.f32.mrb[57].mxu0  ;;  %v11121_v33 = vpop.f32.mrb[58].mxu1  ;;  %v11340_v4 = vrot.slane %v21167_v48, %v22377_v7  ;;  %v16035_v17 = vld [vmem:[%s21674_s13 + $0x338] ss:$12 sps:$4 sm:$0xff]   ;;  %v16021_v7 = vld [vmem:[%s21674_s13 + $0x3c0] ss:$12 sps:$4 sm:$0xff]  }
 0xd4f   :  { %v11281_v27 = vadd.f32 %v11260_v56, %v11118_v51  ;;  %v21412_v20 = vadd.f32 %v11160_v13, %v21075_v5  ;;  %v11162_v61 = vpop.f32.mrb[58].mxu0  ;;  %v11122_v6 = vpop.f32.mrb[59].mxu1  ;;  %v16025_v5 = vld [vmem:[%s21674_s13 + $0x308] ss:$12 sps:$4 sm:$0xff]   ;;  %v16060_v56 = vld [vmem:[%s21674_s13 + $0x3b0] ss:$12 sps:$4 sm:$0xff]  }
 0xd50   :  { %v11282_v40 = vadd.f32 %v11264_v43, %v11120_v12  ;;  %v11163_v8 = vpop.f32.mrb[59].mxu0  ;;  %v16028_v43 = vld [vmem:[%s21674_s13 + $0x3dc] ss:$12 sps:$4 sm:$0xff]   ;;  %v16026_v51 = vld [vmem:[%s21674_s13 + $0x3d8] ss:$12 sps:$4 sm:$0xff]  }
 0xd51   :  { %v11319_v1 = vmul.f32 %v11298_v34, %v11281_v27  ;;  %v16033_v34 = vld [vmem:[%s21674_s13 + $0x3f4] ss:$12 sps:$4 sm:$0xff]   ;;  %v16031_v54 = vld [vmem:[%s21674_s13 + $0x3f0] ss:$12 sps:$4 sm:$0xff]   ;;  %v16038_v14 = vld [vmem:[%s21674_s13 + $0x40c] ss:$12 sps:$4 sm:$0xff]  }
 0xd52   :  { %v11320_v59 = vmul.f32 %v11302_v36, %v11282_v40  ;;  %v16036_v12 = vld [vmem:[%s21674_s13 + $0x408] ss:$12 sps:$4 sm:$0xff]   ;;  %v16043_v36 = vld [vmem:[%s21674_s13 + $0x424] ss:$12 sps:$4 sm:$0xff]   ;;  %v16041_v13 = vld [vmem:[%s21674_s13 + $0x420] ss:$12 sps:$4 sm:$0xff]  }
 0xd53   :  { %v11357_v29 = vadd.f32 %v11336_v16, %v11319_v1  ;;  %v16048_v33 = vld [vmem:[%s21674_s13 + $0x43c] ss:$12 sps:$4 sm:$0xff]   ;;  %v16046_v16 = vld [vmem:[%s21674_s13 + $0x438] ss:$12 sps:$4 sm:$0xff]   ;;  %v16053_v1 = vld [vmem:[%s21674_s13 + $0x454] ss:$12 sps:$4 sm:$0xff]  }
 0xd54   :  { %v11358_v53 = vadd.f32 %v11340_v4, %v11320_v59  ;;  %v22378_v40 = vld [vmem:[#allocation27_spill] sm:$0xff] }
 0xd55   :  { %v11363_v11 = vmax.f32 %v11357_v29, 0.0  ;;  %v11268_v8 = vrot.slane %v21148_v55, %v22378_v40 }
 0xd56   :  { %v11364_v19 = vmax.f32 %v11358_v53, 0.0  ;;  %v22379_v53 = vld [vmem:[#allocation28_spill] sm:$0xff] }
 0xd57   :  { %v11561_v41 = vpack.c.bf16 %v11363_v11, %v11363_v11  ;;  %v11272_v11 = vrot.slane %v21148_v55, %v22379_v53  ;;  %v11344_v55 = vrot.slane %v21167_v48, %v22378_v40 }
 0xd58   :  { %v11562_v52 = vpack.c.bf16 %v11364_v19, %v11364_v19 }
 0xd5a   :  { %12423 = vmatprep.mubr.bf16.mxu1 %v11562_v52  ;;  %12545 = vmatprep.mubr.bf16.mxu0 %v11562_v52 }
 0xd5b   :  { %12424 = vmatmul.mubr.bf16.vlgmr.msra.gmra.mrb[64].mxu1 %v11561_v41  ;;  %12546 = vmatmul.mubr.bf16.vlgmr.msra.gmra.mrb[68].mxu0 %v11561_v41 }
 0xd5c   :  { %12433 = vmatpush1.bf16.msra.mxu1 %v15997_v49  ;;  %14494 = vmatpush3.bf16.msra.mxu0 %v16025_v5 }
 0xd5d   :  { %12434 = vmatprep.subr.bf16.mxu1 %v16002_v60  ;;  %14495 = vmatprep.subr.bf16.mxu0 %v16029_v32  ;;  %v11310_v60 = vrot.slane %v21159_v9, %v22379_v53 }
 0xd60   :  { %12435 = vmatpush1.bf16.msra.mxu1 %v16000_v3  ;;  %14496 = vmatpush3.bf16.msra.mxu0 %v16030_v44  ;;  %v16058_v44 = vld [vmem:[%s21674_s13 + $0x46c] ss:$12 sps:$4 sm:$0xff]  }
 0xd61   :  { %12436 = vmatprep.subr.bf16.mxu1 %v16005_v2  ;;  %14497 = vmatprep.subr.bf16.mxu0 %v16034_v21  ;;  %v11348_v21 = vrot.slane %v21167_v48, %v22379_v53 }
 0xd64   :  { %12437 = vmatpush1.bf16.msra.mxu1 %v16003_v45  ;;  %14498 = vmatpush3.bf16.msra.mxu0 %v16035_v17  ;;  %v16056_v17 = vld [vmem:[%s21674_s13 + $0x468] ss:$12 sps:$4 sm:$0xff]  }
 0xd65   :  { %12438 = vmatprep.subr.bf16.mxu1 %v16008_v47  ;;  %14499 = vmatprep.subr.bf16.mxu0 %v16039_v26 }
 0xd68   :  { %12439 = vmatpush1.bf16.msra.mxu1 %v16006_v18  ;;  %14500 = vmatpush3.bf16.msra.mxu0 %v16040_v30 }
 0xd69   :  { %12440 = vmatprep.subr.bf16.mxu1 %v16011_v46  ;;  %14501 = vmatprep.subr.bf16.mxu0 %v16044_v24 }
 0xd6c   :  { %12441 = vmatpush1.bf16.msra.mxu1 %v16009_v38  ;;  %14502 = vmatpush3.bf16.msra.mxu0 %v16045_v37 }
 0xd6d   :  { %12442 = vmatprep.subr.bf16.mxu1 %v16014_v25  ;;  %14503 = vmatprep.subr.bf16.mxu0 %v16049_v39  ;;  %v16061_v39 = vld [vmem:[%s21678_s17 + $0x40] sm:$0xff]  }
 0xd70   :  { %12443 = vmatpush1.bf16.msra.mxu1 %v16012_v23  ;;  %14504 = vmatpush3.bf16.msra.mxu0 %v16050_v0  ;;  %v16062_v23 = vld [vmem:[%s21678_s17] sm:$0xff]   ;;  %v16063_v0 = vld [vmem:[%s21678_s17 + $0x48] sm:$0xff]  }
 0xd71   :  { %12444 = vmatprep.subr.bf16.mxu1 %v16017_v58  ;;  %14505 = vmatprep.subr.bf16.mxu0 %v16054_v62  ;;  %v16064_v62 = vld [vmem:[%s21678_s17 + $0x8] sm:$0xff]  }
 0xd74   :  { %12445 = vmatpush1.bf16.msra.mxu1 %v16015_v57  ;;  %14506 = vmatpush3.bf16.msra.mxu0 %v16055_v42  ;;  %v16065_v57 = vld [vmem:[%s21678_s17 + $0x50] sm:$0xff]  }
 0xd75   :  { %12446 = vmatprep.subr.bf16.mxu1 %v16020_v15  ;;  %14507 = vmatprep.subr.bf16.mxu0 %v16059_v22  ;;  %v16066_v42 = vld [vmem:[%s21678_s17 + $0x10] sm:$0xff]   ;;  %v16067_v15 = vld [vmem:[%s21678_s17 + $0x58] sm:$0xff]  }
 0xd76   :  { %v16068_v22 = vld [vmem:[%s21678_s17 + $0x18] sm:$0xff]  }
 0xd78   :  { %12447 = vmatpush1.bf16.msra.mxu1 %v16018_v10  ;;  %14508 = vmatpush3.bf16.msra.mxu0 %v16060_v56  ;;  %v16069_v10 = vld [vmem:[%s21678_s17 + $0x60] sm:$0xff]  }
 0xd79   :  { %12448 = vmatprep.subr.bf16.mxu1 %v16023_v35  ;;  %14515 = vmatprep.subr.bf16.mxu0 %v16061_v39  ;;  %v16070_v56 = vld [vmem:[%s21678_s17 + $0x20] sm:$0xff]   ;;  %v16071_v35 = vld [vmem:[%s21678_s17 + $0x68] sm:$0xff]  }
 0xd7c   :  { %12449 = vmatpush1.bf16.msra.mxu1 %v16021_v7  ;;  %v16072_v7 = vld [vmem:[%s21678_s17 + $0x28] sm:$0xff]  }
 0xd7d   :  { %12450 = vmatprep.subr.bf16.mxu1 %v16028_v43  ;;  %v16073_v43 = vld [vmem:[%s21678_s17 + $0x70] sm:$0xff]  }
 0xd80   :  { %12451 = vmatpush1.bf16.msra.mxu1 %v16026_v51  ;;  %v16074_v51 = vld [vmem:[%s21678_s17 + $0x30] sm:$0xff]  }
 0xd81   :  { %12452 = vmatprep.subr.bf16.mxu1 %v16033_v34  ;;  %v16075_v34 = vld [vmem:[%s21678_s17 + $0x78] sm:$0xff]  }
 0xd84   :  { %12453 = vmatpush1.bf16.msra.mxu1 %v16031_v54  ;;  %v16076_v54 = vld [vmem:[%s21678_s17 + $0x38] sm:$0xff]  }
 0xd85   :  { %12454 = vmatprep.subr.bf16.mxu1 %v16038_v14  ;;  %v22380_v14 = vmov 0.0  }
 0xd88   :  { %12455 = vmatpush1.bf16.msra.mxu1 %v16036_v12  ;;  %v11565_v12 = vld [vmem:[#allocation13] sm:$0x7] }
 0xd89   :  { %12456 = vmatprep.subr.bf16.mxu1 %v16043_v36  ;;  %v11578_v36 = vrot.slane %v11565_v12, %v22376_v50 }
 0xd8c   :  { %v11199_v27 = vpop.f32.mrb[60].mxu1  ;;  %12457 = vmatpush1.bf16.msra.mxu1 %v16041_v13 }
 0xd8d   :  { %v11200_v61 = vadd.f32 %v11199_v27, %v21405_v28  ;;  %v11240_v6 = vpop.f32.mrb[60].mxu0  ;;  %v11201_v4 = vpop.f32.mrb[61].mxu1  ;;  %12458 = vmatprep.subr.bf16.mxu1 %v16048_v33  ;;  %v11306_v28 = vrot.slane %v21159_v9, %v22378_v40 }
 0xd8e   :  { %v11202_v59 = vadd.f32 %v11201_v4, %v21412_v20  ;;  %v11242_v29 = vpop.f32.mrb[61].mxu0  ;;  %v11203_v19 = vpop.f32.mrb[62].mxu1  ;;  %v16051_v20 = vld [vmem:[%s21674_s13 + $0x450] ss:$12 sps:$4 sm:$0xff]   ;;  %v11570_v4 = vrot.slane %v11565_v12, %v22374_v31 }
 0xd8f   :  { %v11241_v52 = vadd.f32 %v11240_v6, %v11200_v61  ;;  %v11244_v49 = vpop.f32.mrb[62].mxu0  ;;  %v11204_v5 = vpop.f32.mrb[63].mxu1 }
 0xd90   :  { %v11243_v41 = vadd.f32 %v11242_v29, %v11202_v59  ;;  %v11245_v32 = vpop.f32.mrb[63].mxu0  ;;  %12459 = vmatpush1.bf16.msra.mxu1 %v16046_v16  ;;  %v11574_v59 = vrot.slane %v11565_v12, %v22375_v63 }
 0xd91   :  { %v11283_v3 = vadd.f32 %v11268_v8, %v11241_v52  ;;  %12460 = vmatprep.subr.bf16.mxu1 %v16053_v1  ;;  %v12593_v8 = vld [vmem:[#allocation14] sm:$0x7]  ;;  %v12613_v1 = vld [vmem:[#allocation16] sm:$0x7] }
 0xd92   :  { %v11284_v2 = vadd.f32 %v11272_v11, %v11243_v41  ;;  %v12598_v29 = vrot.slane %v12593_v8, %v22374_v31  ;;  %v12602_v19 = vrot.slane %v12593_v8, %v22375_v63  ;;  %v12626_v39 = vrot.slane %v12613_v1, %v22376_v50 }
 0xd93   :  { %v11321_v9 = vmul.f32 %v11306_v28, %v11283_v3  ;;  %v12618_v28 = vrot.slane %v12613_v1, %v22374_v31  ;;  %v16077_v31 = vld [vmem:[%s21678_s17 + $0x80] sm:$0xff]  }
 0xd94   :  { %v11322_v45 = vmul.f32 %v11310_v60, %v11284_v2  ;;  %12461 = vmatpush1.bf16.msra.mxu1 %v16051_v20  ;;  %v12622_v60 = vrot.slane %v12613_v1, %v22375_v63  ;;  %v16078_v63 = vld [vmem:[%s21678_s17 + $0x88] sm:$0xff]  }
 0xd95   :  { %v11359_v47 = vadd.f32 %v11344_v55, %v11321_v9  ;;  %12462 = vmatprep.subr.bf16.mxu1 %v16058_v44 }
 0xd96   :  { %v11360_v26 = vadd.f32 %v11348_v21, %v11322_v45 }
 0xd97   :  { %v11365_v18 = vmax.f32 %v11359_v47, 0.0 }
 0xd98   :  { %12463 = vmatpush1.bf16.msra.mxu1 %v16056_v17  ;;  %v11366_v30 = vmax.f32 %v11360_v26, 0.0 }
 0xd99   :  { %v11563_v24 = vpack.c.bf16 %v11365_v18, %v11365_v18 }
 0xd9a   :  { %v11564_v46 = vpack.c.bf16 %v11366_v30, %v11366_v30 }
 0xd9c   :  { %12464 = vmatprep.mubr.bf16.mxu1 %v11564_v46  ;;  %12585 = vmatprep.mubr.bf16.mxu0 %v11564_v46  ;;  %v16079_v46 = vld [vmem:[%s21678_s17 + $0x90] sm:$0xff]  }
 0xd9d   :  { %12465 = vmatmul.mubr.bf16.vlgmr.msra.gmra.mrb[64].mxu1 %v11563_v24  ;;  %12586 = vmatmul.mubr.bf16.vlgmr.msra.gmra.mrb[72].mxu0 %v11563_v24  ;;  %v16080_v24 = vld [vmem:[%s21678_s17 + $0x98] sm:$0xff]  }
 0xd9e   :  { %14516 = vmatpush3.bf16.msra.mxu0 %v16062_v23  ;;  %v16083_v23 = vld [vmem:[%s21678_s17 + $0xb0] sm:$0xff]  }
 0xd9f   :  { %14517 = vmatprep.subr.bf16.mxu0 %v16063_v0 }
 0xda2   :  { %14518 = vmatpush3.bf16.msra.mxu0 %v16064_v62 }
 0xda3   :  { %14519 = vmatprep.subr.bf16.mxu0 %v16065_v57 }
 0xda6   :  { %14520 = vmatpush3.bf16.msra.mxu0 %v16066_v42 }
 0xda7   :  { %14521 = vmatprep.subr.bf16.mxu0 %v16067_v15 }
 0xdaa   :  { %14522 = vmatpush3.bf16.msra.mxu0 %v16068_v22 }
 0xdab   :  { %14523 = vmatprep.subr.bf16.mxu0 %v16069_v10 }
 0xdae   :  { %14524 = vmatpush3.bf16.msra.mxu0 %v16070_v56  ;;  %v14160_v56 = vld [vmem:[#allocation2] ss:$0 sm:$0xff] }
 0xdaf   :  { %14525 = vmatprep.subr.bf16.mxu0 %v16071_v35 }
 0xdb0   :  { %v14465_v48 = vpop.f32.mrb[64].mxu0 }
 0xdb1   :  { %v14466_v38 = vpop.f32.mrb[65].mxu0 }
 0xdb2   :  { %v14467_v37 = vadd.f32 %v14466_v38, %v14465_v48  ;;  %v14468_v25 = vpop.f32.mrb[66].mxu0  ;;  %14526 = vmatpush3.bf16.msra.mxu0 %v16072_v7  ;;  %v16081_v48 = vld [vmem:[%s21678_s17 + $0xa0] sm:$0xff]   ;;  %v12606_v38 = vrot.slane %v12593_v8, %v22376_v50 }
 0xdb3   :  { %v14469_v58 = vpop.f32.mrb[67].mxu0  ;;  %14527 = vmatprep.subr.bf16.mxu0 %v16073_v43 }
 0xdb4   :  { %v12508_v27 = vadd.f32 %v14467_v37, %v11578_v36  ;;  %v16082_v37 = vld [vmem:[%s21678_s17 + $0xa8] sm:$0xff]   ;;  %v16084_v58 = vld [vmem:[%s21678_s17 + $0xb8] sm:$0xff]  }
 0xdb6   :  { %14528 = vmatpush3.bf16.msra.mxu0 %v16074_v51 }
 0xdb7   :  { %14529 = vmatprep.subr.bf16.mxu0 %v16075_v34 }
 0xdba   :  { %14530 = vmatpush3.bf16.msra.mxu0 %v16076_v54 }
 0xdbb   :  { %14546 = vmatprep.subr.bf16.mxu0 %v22380_v14 }
 0xe2e   :  { %v14487_v13 = vpop.f32.mrb[68].mxu0 }
 0xe2f   :  { %v14488_v33 = vpop.f32.mrb[69].mxu0 }
 0xe30   :  { %v14489_v16 = vadd.f32 %v14488_v33, %v14487_v13  ;;  %v14490_v61 = vpop.f32.mrb[70].mxu0 }
 0xe31   :  { %v14491_v6 = vpop.f32.mrb[71].mxu0 }
 0xe32   :  { %v12548_v40 = vadd.f32 %v14489_v16, %v12508_v27  ;;  %v12925_v27 = vpop.permute.xlu1 %12924 }
 0xe70   :  { %v12466_v53 = vpop.f32.mrb[64].mxu1  ;;  %v14509_v11 = vpop.f32.mrb[72].mxu0 }
 0xe71   :  { %v14662_v52 = vadd.f32 %v12466_v53, %v11570_v4  ;;  %v12468_v49 = vpop.f32.mrb[65].mxu1  ;;  %v14510_v5 = vpop.f32.mrb[73].mxu0 }
 0xe72   :  { %v14663_v41 = vadd.f32 %v12468_v49, %v11574_v59  ;;  %v14511_v32 = vadd.f32 %v14510_v5, %v14509_v11  ;;  %v12470_v20 = vpop.f32.mrb[66].mxu1  ;;  %v14512_v3 = vpop.f32.mrb[74].mxu0 }
 0xe73   :  { %v12610_v55 = vmul.f32 %v14662_v52, %v12598_v29  ;;  %v12471_v44 = vpop.f32.mrb[67].mxu1  ;;  %v14513_v2 = vpop.f32.mrb[75].mxu0 }
 0xe74   :  { %v12611_v21 = vmul.f32 %v14663_v41, %v12602_v19  ;;  %v12588_v9 = vadd.f32 %v14511_v32, %v12548_v40 }
 0xe75   :  { %v12630_v45 = vadd.f32 %v12618_v28, %v12610_v55 }
 0xe76   :  { %v12631_v17 = vadd.f32 %v12622_v60, %v12611_v21  ;;  %v12612_v25 = vmul.f32 %v12606_v38, %v12588_v9 }
 0xe77   :  { %v12633_v47 = vmax.f32 %v12630_v45, 0.0 }
 0xe78   :  { %v12634_v26 = vmax.f32 %v12631_v17, 0.0  ;;  %v12632_v0 = vadd.f32 %v12626_v39, %v12612_v25 }
 0xe79   :  { %v12684_v30 = vpack.c.bf16 %v12633_v47, %v12633_v47 }
 0xe7a   :  { %v12685_v18 = vpack.c.bf16 %v12634_v26, %v12634_v26  ;;  %v12635_v62 = vmax.f32 %v12632_v0, 0.0 }
 0xe7c   :  { %12870 = vmatprep.mubr.bf16.mxu0 %v12685_v18  ;;  %v12686_v50 = vpack.c.bf16 %v12635_v62, %v12635_v62 }
 0xe7d   :  { %12871 = vmatmul.mubr.bf16.vlgmr.msra.gmra.mrb[76].mxu0 %v12684_v30 }
 0xe7e   :  { %14547 = vmatpush3.bf16.msra.mxu0 %v16077_v31  ;;  %14562 = vmatprep.mubr.msk.bf16.mxu0 %vm16608_vm1, %v22380_v14 }
 0xe7f   :  { %14548 = vmatprep.subr.bf16.mxu0 %v22380_v14 }
 0xe82   :  { %14549 = vmatpush3.bf16.msra.mxu0 %v16078_v63 }
 0xe83   :  { %14550 = vmatprep.subr.bf16.mxu0 %v22380_v14 }
 0xe86   :  { %14551 = vmatpush3.bf16.msra.mxu0 %v16079_v46 }
 0xe87   :  { %14552 = vmatprep.subr.bf16.mxu0 %v22380_v14 }
 0xe8a   :  { %14553 = vmatpush3.bf16.msra.mxu0 %v16080_v24 }
 0xe8b   :  { %14554 = vmatprep.subr.bf16.mxu0 %v22380_v14 }
 0xe8e   :  { %14555 = vmatpush3.bf16.msra.mxu0 %v16081_v48 }
 0xe8f   :  { %14556 = vmatprep.subr.bf16.mxu0 %v22380_v14 }
 0xe92   :  { %14557 = vmatpush3.bf16.msra.mxu0 %v16082_v37 }
 0xe93   :  { %14558 = vmatprep.subr.bf16.mxu0 %v22380_v14 }
 0xe96   :  { %14559 = vmatpush3.bf16.msra.mxu0 %v16083_v23 }
 0xe97   :  { %14560 = vmatprep.subr.bf16.mxu0 %v22380_v14 }
 0xe9a   :  { %14561 = vmatpush3.bf16.msra.mxu0 %v16084_v58 }
 0xe9d   :  { %14563 = vmatmul.mubr.bf16.vlgmr.msra.gmra.mrb[80].mxu0 %v12686_v50 }
 0xf50   :  { %v14531_v57 = vpop.f32.mrb[76].mxu0 }
 0xf51   :  { %v14532_v42 = vpop.f32.mrb[77].mxu0 }
 0xf52   :  { %v14533_v15 = vadd.f32 %v14532_v42, %v14531_v57  ;;  %v14534_v22 = vpop.f32.mrb[78].mxu0 }
 0xf53   :  { %v14535_v10 = vpop.f32.mrb[79].mxu0 }
 0xf54   :  { %v12873_v35 = vadd.f32 %v14533_v15, %v14160_v56 }
 0xf70   :  { %v12912_v7 = vpop.f32.mrb[80].mxu0 }
 0xf71   :  { %v12913_v43 = vadd.f32 %v12912_v7, %v12873_v35  ;;  %v14564_v51 = vpop.f32.mrb[81].mxu0 }
 0xf72   :  { %v12915_v34 = vpop.f32.mrb[82].mxu0 }
 0xf73   :  { %v12918_v54 = vsub.f32 0.0, %v12913_v43  ;;  %v14565_v12 = vpop.f32.mrb[83].mxu0 }
 0xf75   :  { %v12919_v36 = vmul.f32 1.442695, %v12918_v54 }
 0xf77   :  { %16205 = vpow2.f32 %v12919_v36 }
 0xf81   :  { %v16206_v13 = vpop.eup %16205 }
 0xf82   :  { %v12921_v14 = vadd.f32 1.0, %v16206_v13 }
 0xf84   :  { %16207 = vrcp.f32 %v12921_v14 }
 0xf8e   :  { %v16208_v33 = vpop.eup %16207 }
 0xf8f   :  { %v12928_v16 = vsel %vm12927_vm2, %v16208_v33, %v12925_v27 }
 0xf90   :  { %v12930_v61 = vsel %vm12929_vm3, %v12928_v16, 0.0 }
 0xf91   :  { %12931 = vst [vmem:[%s21680_s19] sm:$0xff] %v12930_v61 }
 0xf92   :  { %12936 = vsyncpa [#allocation4], 1 }
 0xf93   :  { %12937 = vsyncpa [#allocation6], 1 }
 0xf94   :  { %12938 = vsyncpa [#allocation9], 1 }
 0xf95   :  { %12939 = vsyncpa [#allocation12], 1 }
 0xf96   :  { %12940 = vsyncpa [#allocation15], 1 }

</bundles_post_ra>
